<compile_context>
chip_gen: v5e
topology: v5e:2x2
jax: 0.10.0
libtpu: 0.0.40
codegen_flags: <defaults>
</compile_context>

<pallas_src>
import functools

import jax
import jax.numpy as jnp
from jax.experimental import pallas as pl
from jax.experimental.pallas import tpu as pltpu

LRELU_SLOPE = 0.2          # nl_layer assumed to be LeakyReLU(0.2)
B0_MINUS_B1_MODE = False   # global_options.B0minusB1Mode -> concat path
CIN0_PAD = 8               # first-conv input channels padded 6 -> 8
OUT_PAD = 128              # final fc output padded to a lane-dense width
OUTPUT_NC = 2              # real output width of fc_B


def _lrelu(x):
    return jnp.where(x > 0, x, LRELU_SLOPE * x)


# ----------------------------------------------------------------------------
# In-kernel helpers (operate on values / weight refs, everything stays in VMEM)
# ----------------------------------------------------------------------------
def _avgpool2x2(a2d, h, w):
    """AvgPool2d(kernel=2, stride=2) on a row-major flattened (h*w, C) value.

    Pure VPU adds; every reshape keeps the lane (channel) dim untouched.
    """
    c = a2d.shape[-1]
    ho, wo = h // 2, w // 2
    s = a2d.reshape(h * wo, 2, c)          # pair adjacent columns
    s = s[:, 0, :] + s[:, 1, :]            # (h*wo, c)
    s = s.reshape(ho, 2, wo, c)            # pair adjacent rows
    s = s[:, 0] + s[:, 1]                  # (ho, wo, c)
    return (0.25 * s).reshape(ho * wo, c)


def _conv3x3_refpad(a_bf16, h, w, w_ref, b_ref):
    """ReflectionPad2d(1) + Conv2d(k=3, s=1) as ONE matmul (implicit im2col).

    a_bf16: (h*w, cin) bf16 activation (LeakyReLU / cast already applied).
    w_ref : (9*cin, cout) bf16 weight ref, rows ordered (kh, kw, cin).
    b_ref : (1, cout) f32 bias ref.
    Returns (h*w, cout) f32.
    """
    cin = w_ref.shape[0] // 9
    a3 = a_bf16.reshape(h, w, cin)
    # in-kernel ReflectionPad2d(1): cols then rows (corners come out right)
    aw = jnp.concatenate([a3[:, 1:2, :], a3, a3[:, w - 2:w - 1, :]], axis=1)
    xp = jnp.concatenate([aw[1:2], aw, aw[h - 2:h - 1]], axis=0)  # (h+2, w+2, cin)
    # implicit im2col: 9 shifted windows concatenated along K
    taps = [xp[kh:kh + h, kw:kw + w, :].reshape(h * w, cin)
            for kh in range(3) for kw in range(3)]
    patch = jnp.concatenate(taps, axis=-1)                        # (h*w, 9*cin)
    out = jnp.dot(patch, w_ref[...], preferred_element_type=jnp.float32)
    return out + b_ref[...]


def _basic_block(x2d, h, w, w1, b1, w2, b2, ws, bs):
    """DRIT BasicBlock:
       main    : LReLU -> conv3x3 -> LReLU -> conv3x3 -> AvgPool2d(2)
       shortcut: AvgPool2d(2) -> 1x1 conv
    """
    t = _conv3x3_refpad(_lrelu(x2d).astype(jnp.bfloat16), h, w, w1, b1)
    u = _conv3x3_refpad(_lrelu(t).astype(jnp.bfloat16), h, w, w2, b2)
    main = _avgpool2x2(u, h, w)                                   # (ho*wo, cout)
    xpool = _avgpool2x2(x2d, h, w)                                # (ho*wo, cin)
    sc = jnp.dot(xpool.astype(jnp.bfloat16), ws[...],
                 preferred_element_type=jnp.float32) + bs[...]
    return main + sc


# ----------------------------------------------------------------------------
# The single fused kernel: first conv + 3 BasicBlocks + LReLU/avg-pool + fc_B
# ----------------------------------------------------------------------------
def _e_content_kernel(*refs, h_sp, w_sp):
    o_ref = refs[-1]
    p0_ref, w0_ref, b0_ref = refs[0], refs[1], refs[2]
    blk = refs[3:3 + 18]                                          # 3 blocks x 6
    f1w, f1b, f2w, f2b, f3w, f3b = refs[21:27]

    # conv_B[0:2]: ReflectionPad2d(1) + Conv2d(k=3, stride=2).  The stride-2
    # im2col patch (h*w, 9*CIN0_PAD) is precomputed outside; here it is one dot.
    x = jnp.dot(p0_ref[0], w0_ref[...],
                preferred_element_type=jnp.float32) + b0_ref[...]  # (h*w, 32)

    h, w = h_sp, w_sp
    for bi in range(3):                                            # conv_B[2:5]
        w1, b1, w2, b2, ws, bs = blk[6 * bi:6 * bi + 6]
        x = _basic_block(x, h, w, w1, b1, w2, b2, ws, bs)
        h //= 2
        w //= 2

    # conv_B tail: LReLU + AdaptiveAvgPool2d(1); then fc_B (Linear/ReLU x2 + Linear)
    feat = jnp.mean(_lrelu(x), axis=0, keepdims=True)              # (1, 128)
    h1 = jnp.maximum(
        jnp.dot(feat, f1w[...], preferred_element_type=jnp.float32) + f1b[...], 0.0)
    h2 = jnp.maximum(
        jnp.dot(h1, f2w[...], preferred_element_type=jnp.float32) + f2b[...], 0.0)
    y = jnp.dot(h2, f3w[...], preferred_element_type=jnp.float32) + f3b[...]
    o_ref[0] = y                                                   # (1, OUT_PAD)


def _const_spec(shape):
    return pl.BlockSpec(shape, lambda n, _nd=len(shape): (0,) * _nd)


# ----------------------------------------------------------------------------
# Forward pass
# ----------------------------------------------------------------------------
def e_content_forward(params, xprev, xb):
    # NCHW (PyTorch) -> NHWC (channels on the lane axis)
    xprev = jnp.transpose(xprev, (0, 2, 3, 1))
    xb = jnp.transpose(xb, (0, 2, 3, 1))
    if B0_MINUS_B1_MODE:
        x = xb - xprev
    else:
        x = jnp.concatenate([xprev, xb], axis=-1)                 # torch.cat(dim=1)
    N, H, W, cin = x.shape
    assert H % 16 == 0 and W % 16 == 0, "spatial dims must be divisible by 16"

    # One-off XLA prep for the raw input: pad channels to 8, reflect-pad, and
    # build the stride-2 im2col patch (columns ordered kh, kw, c).
    x = jnp.pad(x, ((0, 0), (0, 0), (0, 0), (0, CIN0_PAD - cin)))
    xpad = jnp.pad(x, ((0, 0), (1, 1), (1, 1), (0, 0)), mode="reflect")
    ho, wo = H // 2, W // 2
    taps = [xpad[:, kh:kh + H:2, kw:kw + W:2, :].reshape(N, ho * wo, CIN0_PAD)
            for kh in range(3) for kw in range(3)]
    patch0 = jnp.concatenate(taps, axis=-1).astype(jnp.bfloat16)  # (N, ho*wo, 72)

    weights = [params["w0"], params["b0"]]
    for bp in params["blocks"]:
        weights += [bp["w1"], bp["b1"], bp["w2"], bp["b2"], bp["ws"], bp["bs"]]
    weights += [params["fc1_w"], params["fc1_b"],
                params["fc2_w"], params["fc2_b"],
                params["fc3_w"], params["fc3_b"]]

    in_specs = [pl.BlockSpec((1, ho * wo, 9 * CIN0_PAD), lambda n: (n, 0, 0))]
    in_specs += [_const_spec(wgt.shape) for wgt in weights]

    kernel = functools.partial(_e_content_kernel, h_sp=ho, w_sp=wo)
    out = pl.pallas_call(
        kernel,
        out_shape=jax.ShapeDtypeStruct((N, 1, OUT_PAD), jnp.float32),
        grid=(N,),
        in_specs=in_specs,
        out_specs=pl.BlockSpec((1, 1, OUT_PAD), lambda n: (n, 0, 0)),
        compiler_params=pltpu.CompilerParams(
            dimension_semantics=("parallel",)),
    )(patch0, *weights)

    return out[:, 0, :OUTPUT_NC]                                  # (N, 2)


# ----------------------------------------------------------------------------
# Deterministic parameter initialization (shapes follow E_content.__init__),
# stored directly in the kernel-native packed layouts.
# ----------------------------------------------------------------------------
def init_params(key, input_dim_b):
    ndf, max_ndf, n_blocks = 32, 4, 4
    cin0 = input_dim_b if B0_MINUS_B1_MODE else input_dim_b * 2
    keys = iter(jax.random.split(key, 64))

    def conv3_w(cin, cout, cin_pad=None):
        # logical (kh, kw, Cin, Cout); a PyTorch (Cout, Cin, kh, kw) checkpoint
        # would need w.transpose(2, 3, 1, 0) before this packing.
        cin_pad = cin if cin_pad is None else cin_pad
        w = jax.random.normal(next(keys), (3, 3, cin, cout), jnp.float32)
        w = w * (1.0 / (3.0 * float(cin) ** 0.5))
        wp = jnp.zeros((3, 3, cin_pad, cout), jnp.float32).at[:, :, :cin, :].set(w)
        return wp.reshape(9 * cin_pad, cout).astype(jnp.bfloat16)

    def bias(cout):
        return jax.random.normal(next(keys), (1, cout), jnp.float32) * 0.01

    def lin(cin, cout, pad_out=None):
        w = jax.random.normal(next(keys), (cin, cout), jnp.float32)
        w = w * (1.0 / float(cin) ** 0.5)
        b = jax.random.normal(next(keys), (1, cout), jnp.float32) * 0.01
        if pad_out is not None:
            w = jnp.zeros((cin, pad_out), jnp.float32).at[:, :cout].set(w)
            b = jnp.zeros((1, pad_out), jnp.float32).at[:, :cout].set(b)
        return w, b

    params = {"w0": conv3_w(cin0, ndf, cin_pad=CIN0_PAD), "b0": bias(ndf),
              "blocks": []}
    for n in range(1, n_blocks):
        cin = ndf * min(max_ndf, n)          # 32, 64, 96
        cout = ndf * min(max_ndf, n + 1)     # 64, 96, 128
        ws, bs = lin(cin, cout)              # shortcut 1x1 conv
        params["blocks"].append({
            "w1": conv3_w(cin, cin), "b1": bias(cin),
            "w2": conv3_w(cin, cout), "b2": bias(cout),
            "ws": ws.astype(jnp.bfloat16), "bs": bs,
        })
    out_ndf = ndf * min(max_ndf, n_blocks)   # 128
    params["fc1_w"], params["fc1_b"] = lin(out_ndf, out_ndf // 2)
    params["fc2_w"], params["fc2_b"] = lin(out_ndf // 2, out_ndf // 4)
    params["fc3_w"], params["fc3_b"] = lin(out_ndf // 4, OUTPUT_NC, pad_out=OUT_PAD)
    return params


if __name__ == "__main__":
    key = jax.random.PRNGKey(0)
    kp, kx1, kx2 = jax.random.split(key, 3)

    input_dim_b = 3
    N, H, W = 2, 32, 32

    params = init_params(kp, input_dim_b)
    xprev = jax.random.normal(kx1, (N, input_dim_b, H, W), jnp.float32)  # NCHW
    xb = jax.random.normal(kx2, (N, input_dim_b, H, W), jnp.float32)     # NCHW

    out = jax.jit(e_content_forward)(params, xprev, xb)
    out = jax.block_until_ready(out)
    assert out.shape == (N, OUTPUT_NC) and out.dtype == jnp.float32
    assert bool(jnp.all(jnp.isfinite(out)))
    print("KERNEL_OK")
</pallas_src>

<mosaic_0001>
module attributes {stable_mosaic.version = 11 : i64} {
  func.func @_e_content_kernel(%arg0: i32, %arg1: memref<1x256x72xbf16, #tpu.memory_space<vmem>>, %arg2: memref<72x32xbf16, #tpu.memory_space<vmem>>, %arg3: memref<1x32xf32, #tpu.memory_space<vmem>>, %arg4: memref<288x32xbf16, #tpu.memory_space<vmem>>, %arg5: memref<1x32xf32, #tpu.memory_space<vmem>>, %arg6: memref<288x64xbf16, #tpu.memory_space<vmem>>, %arg7: memref<1x64xf32, #tpu.memory_space<vmem>>, %arg8: memref<32x64xbf16, #tpu.memory_space<vmem>>, %arg9: memref<1x64xf32, #tpu.memory_space<vmem>>, %arg10: memref<576x64xbf16, #tpu.memory_space<vmem>>, %arg11: memref<1x64xf32, #tpu.memory_space<vmem>>, %arg12: memref<576x96xbf16, #tpu.memory_space<vmem>>, %arg13: memref<1x96xf32, #tpu.memory_space<vmem>>, %arg14: memref<64x96xbf16, #tpu.memory_space<vmem>>, %arg15: memref<1x96xf32, #tpu.memory_space<vmem>>, %arg16: memref<864x96xbf16, #tpu.memory_space<vmem>>, %arg17: memref<1x96xf32, #tpu.memory_space<vmem>>, %arg18: memref<864x128xbf16, #tpu.memory_space<vmem>>, %arg19: memref<1x128xf32, #tpu.memory_space<vmem>>, %arg20: memref<96x128xbf16, #tpu.memory_space<vmem>>, %arg21: memref<1x128xf32, #tpu.memory_space<vmem>>, %arg22: memref<128x64xf32, #tpu.memory_space<vmem>>, %arg23: memref<1x64xf32, #tpu.memory_space<vmem>>, %arg24: memref<64x32xf32, #tpu.memory_space<vmem>>, %arg25: memref<1x32xf32, #tpu.memory_space<vmem>>, %arg26: memref<32x128xf32, #tpu.memory_space<vmem>>, %arg27: memref<1x128xf32, #tpu.memory_space<vmem>>, %arg28: memref<1x1x128xf32, #tpu.memory_space<vmem>>) attributes {dimension_semantics = [#tpu.dimension_semantics<parallel>], iteration_bounds = array<i64: 2>, scalar_prefetch = 0 : i64, scratch_operands = 0 : i64, tpu.core_type = #tpu.core_type<tc>, window_params = [{transform_indices = @transform_0, window_bounds = array<i64: 1, 256, 72>}, {pipeline_mode = #tpu.pipeline_mode<synchronous>, transform_indices = @transform_1, window_bounds = array<i64: 72, 32>}, {pipeline_mode = #tpu.pipeline_mode<synchronous>, transform_indices = @transform_2, window_bounds = array<i64: 1, 32>}, {pipeline_mode = #tpu.pipeline_mode<synchronous>, transform_indices = @transform_3, window_bounds = array<i64: 288, 32>}, {pipeline_mode = #tpu.pipeline_mode<synchronous>, transform_indices = @transform_4, window_bounds = array<i64: 1, 32>}, {pipeline_mode = #tpu.pipeline_mode<synchronous>, transform_indices = @transform_5, window_bounds = array<i64: 288, 64>}, {pipeline_mode = #tpu.pipeline_mode<synchronous>, transform_indices = @transform_6, window_bounds = array<i64: 1, 64>}, {pipeline_mode = #tpu.pipeline_mode<synchronous>, transform_indices = @transform_7, window_bounds = array<i64: 32, 64>}, {pipeline_mode = #tpu.pipeline_mode<synchronous>, transform_indices = @transform_8, window_bounds = array<i64: 1, 64>}, {pipeline_mode = #tpu.pipeline_mode<synchronous>, transform_indices = @transform_9, window_bounds = array<i64: 576, 64>}, {pipeline_mode = #tpu.pipeline_mode<synchronous>, transform_indices = @transform_10, window_bounds = array<i64: 1, 64>}, {pipeline_mode = #tpu.pipeline_mode<synchronous>, transform_indices = @transform_11, window_bounds = array<i64: 576, 96>}, {pipeline_mode = #tpu.pipeline_mode<synchronous>, transform_indices = @transform_12, window_bounds = array<i64: 1, 96>}, {pipeline_mode = #tpu.pipeline_mode<synchronous>, transform_indices = @transform_13, window_bounds = array<i64: 64, 96>}, {pipeline_mode = #tpu.pipeline_mode<synchronous>, transform_indices = @transform_14, window_bounds = array<i64: 1, 96>}, {pipeline_mode = #tpu.pipeline_mode<synchronous>, transform_indices = @transform_15, window_bounds = array<i64: 864, 96>}, {pipeline_mode = #tpu.pipeline_mode<synchronous>, transform_indices = @transform_16, window_bounds = array<i64: 1, 96>}, {pipeline_mode = #tpu.pipeline_mode<synchronous>, transform_indices = @transform_17, window_bounds = array<i64: 864, 128>}, {pipeline_mode = #tpu.pipeline_mode<synchronous>, transform_indices = @transform_18, window_bounds = array<i64: 1, 128>}, {pipeline_mode = #tpu.pipeline_mode<synchronous>, transform_indices = @transform_19, window_bounds = array<i64: 96, 128>}, {pipeline_mode = #tpu.pipeline_mode<synchronous>, transform_indices = @transform_20, window_bounds = array<i64: 1, 128>}, {pipeline_mode = #tpu.pipeline_mode<synchronous>, transform_indices = @transform_21, window_bounds = array<i64: 128, 64>}, {pipeline_mode = #tpu.pipeline_mode<synchronous>, transform_indices = @transform_22, window_bounds = array<i64: 1, 64>}, {pipeline_mode = #tpu.pipeline_mode<synchronous>, transform_indices = @transform_23, window_bounds = array<i64: 64, 32>}, {pipeline_mode = #tpu.pipeline_mode<synchronous>, transform_indices = @transform_24, window_bounds = array<i64: 1, 32>}, {pipeline_mode = #tpu.pipeline_mode<synchronous>, transform_indices = @transform_25, window_bounds = array<i64: 32, 128>}, {pipeline_mode = #tpu.pipeline_mode<synchronous>, transform_indices = @transform_26, window_bounds = array<i64: 1, 128>}, {transform_indices = @transform_27, window_bounds = array<i64: 1, 1, 128>}]} {
    %c0 = arith.constant 0 : index
    %c0_0 = arith.constant 0 : index
    %c0_1 = arith.constant 0 : index
    %0 = vector.load %arg1[%c0, %c0_0, %c0_1] : memref<1x256x72xbf16, #tpu.memory_space<vmem>>, vector<1x256x72xbf16>
    %1 = vector.shape_cast %0 : vector<1x256x72xbf16> to vector<256x72xbf16>
    %c0_2 = arith.constant 0 : index
    %c0_3 = arith.constant 0 : index
    %2 = vector.load %arg2[%c0_2, %c0_3] : memref<72x32xbf16, #tpu.memory_space<vmem>>, vector<72x32xbf16>
    %cst = arith.constant dense<0.000000e+00> : vector<256x32xf32>
    %3 = tpu.matmul %1, %2, %cst {dimension_numbers = #tpu.dot_dimension_numbers<[1], [0], [0], [1], [0, 0, 1, 1], [], []>} : vector<256x72xbf16>, vector<72x32xbf16>, vector<256x32xf32> -> vector<256x32xf32>
    %c0_4 = arith.constant 0 : index
    %c0_5 = arith.constant 0 : index
    %4 = vector.load %arg3[%c0_4, %c0_5] : memref<1x32xf32, #tpu.memory_space<vmem>>, vector<1x32xf32>
    %5 = vector.broadcast %4 : vector<1x32xf32> to vector<256x32xf32>
    %6 = arith.addf %3, %5 : vector<256x32xf32>
    %cst_6 = arith.constant 0.000000e+00 : f32
    %7 = vector.broadcast %cst_6 : f32 to vector<256x32xf32>
    %8 = arith.cmpf ogt, %6, %7 : vector<256x32xf32>
    %cst_7 = arith.constant 2.000000e-01 : f32
    %9 = vector.broadcast %cst_7 : f32 to vector<256x32xf32>
    %10 = arith.mulf %9, %6 : vector<256x32xf32>
    %11 = arith.select %8, %6, %10 : vector<256x32xi1>, vector<256x32xf32>
    %12 = arith.truncf %11 : vector<256x32xf32> to vector<256x32xbf16>
    %13 = vector.shape_cast %12 : vector<256x32xbf16> to vector<16x16x32xbf16>
    %14 = vector.extract_strided_slice %13 {offsets = [0, 1, 0], sizes = [16, 1, 32], strides = [1, 1, 1]} : vector<16x16x32xbf16> to vector<16x1x32xbf16>
    %15 = vector.extract_strided_slice %13 {offsets = [0, 14, 0], sizes = [16, 1, 32], strides = [1, 1, 1]} : vector<16x16x32xbf16> to vector<16x1x32xbf16>
    %16 = tpu.concatenate %14, %13, %15 in 1 : vector<16x1x32xbf16>, vector<16x16x32xbf16>, vector<16x1x32xbf16> -> vector<16x18x32xbf16>
    %17 = vector.extract_strided_slice %16 {offsets = [1, 0, 0], sizes = [1, 18, 32], strides = [1, 1, 1]} : vector<16x18x32xbf16> to vector<1x18x32xbf16>
    %18 = vector.extract_strided_slice %16 {offsets = [14, 0, 0], sizes = [1, 18, 32], strides = [1, 1, 1]} : vector<16x18x32xbf16> to vector<1x18x32xbf16>
    %19 = tpu.concatenate %17, %16, %18 in 0 : vector<1x18x32xbf16>, vector<16x18x32xbf16>, vector<1x18x32xbf16> -> vector<18x18x32xbf16>
    %20 = vector.extract_strided_slice %19 {offsets = [0, 0, 0], sizes = [16, 16, 32], strides = [1, 1, 1]} : vector<18x18x32xbf16> to vector<16x16x32xbf16>
    %21 = vector.shape_cast %20 : vector<16x16x32xbf16> to vector<256x32xbf16>
    %22 = vector.extract_strided_slice %19 {offsets = [0, 1, 0], sizes = [16, 16, 32], strides = [1, 1, 1]} : vector<18x18x32xbf16> to vector<16x16x32xbf16>
    %23 = vector.shape_cast %22 : vector<16x16x32xbf16> to vector<256x32xbf16>
    %24 = vector.extract_strided_slice %19 {offsets = [0, 2, 0], sizes = [16, 16, 32], strides = [1, 1, 1]} : vector<18x18x32xbf16> to vector<16x16x32xbf16>
    %25 = vector.shape_cast %24 : vector<16x16x32xbf16> to vector<256x32xbf16>
    %26 = vector.extract_strided_slice %19 {offsets = [1, 0, 0], sizes = [16, 16, 32], strides = [1, 1, 1]} : vector<18x18x32xbf16> to vector<16x16x32xbf16>
    %27 = vector.shape_cast %26 : vector<16x16x32xbf16> to vector<256x32xbf16>
    %28 = vector.extract_strided_slice %19 {offsets = [1, 1, 0], sizes = [16, 16, 32], strides = [1, 1, 1]} : vector<18x18x32xbf16> to vector<16x16x32xbf16>
    %29 = vector.shape_cast %28 : vector<16x16x32xbf16> to vector<256x32xbf16>
    %30 = vector.extract_strided_slice %19 {offsets = [1, 2, 0], sizes = [16, 16, 32], strides = [1, 1, 1]} : vector<18x18x32xbf16> to vector<16x16x32xbf16>
    %31 = vector.shape_cast %30 : vector<16x16x32xbf16> to vector<256x32xbf16>
    %32 = vector.extract_strided_slice %19 {offsets = [2, 0, 0], sizes = [16, 16, 32], strides = [1, 1, 1]} : vector<18x18x32xbf16> to vector<16x16x32xbf16>
    %33 = vector.shape_cast %32 : vector<16x16x32xbf16> to vector<256x32xbf16>
    %34 = vector.extract_strided_slice %19 {offsets = [2, 1, 0], sizes = [16, 16, 32], strides = [1, 1, 1]} : vector<18x18x32xbf16> to vector<16x16x32xbf16>
    %35 = vector.shape_cast %34 : vector<16x16x32xbf16> to vector<256x32xbf16>
    %36 = vector.extract_strided_slice %19 {offsets = [2, 2, 0], sizes = [16, 16, 32], strides = [1, 1, 1]} : vector<18x18x32xbf16> to vector<16x16x32xbf16>
    %37 = vector.shape_cast %36 : vector<16x16x32xbf16> to vector<256x32xbf16>
    %38 = tpu.concatenate %21, %23, %25, %27, %29, %31, %33, %35, %37 in 1 : vector<256x32xbf16>, vector<256x32xbf16>, vector<256x32xbf16>, vector<256x32xbf16>, vector<256x32xbf16>, vector<256x32xbf16>, vector<256x32xbf16>, vector<256x32xbf16>, vector<256x32xbf16> -> vector<256x288xbf16>
    %c0_8 = arith.constant 0 : index
    %c0_9 = arith.constant 0 : index
    %39 = vector.load %arg4[%c0_8, %c0_9] : memref<288x32xbf16, #tpu.memory_space<vmem>>, vector<288x32xbf16>
    %cst_10 = arith.constant dense<0.000000e+00> : vector<256x32xf32>
    %40 = tpu.matmul %38, %39, %cst_10 {dimension_numbers = #tpu.dot_dimension_numbers<[1], [0], [0], [1], [0, 0, 1, 1], [], []>} : vector<256x288xbf16>, vector<288x32xbf16>, vector<256x32xf32> -> vector<256x32xf32>
    %c0_11 = arith.constant 0 : index
    %c0_12 = arith.constant 0 : index
    %41 = vector.load %arg5[%c0_11, %c0_12] : memref<1x32xf32, #tpu.memory_space<vmem>>, vector<1x32xf32>
    %42 = vector.broadcast %41 : vector<1x32xf32> to vector<256x32xf32>
    %43 = arith.addf %40, %42 : vector<256x32xf32>
    %cst_13 = arith.constant 0.000000e+00 : f32
    %44 = vector.broadcast %cst_13 : f32 to vector<256x32xf32>
    %45 = arith.cmpf ogt, %43, %44 : vector<256x32xf32>
    %cst_14 = arith.constant 2.000000e-01 : f32
    %46 = vector.broadcast %cst_14 : f32 to vector<256x32xf32>
    %47 = arith.mulf %46, %43 : vector<256x32xf32>
    %48 = arith.select %45, %43, %47 : vector<256x32xi1>, vector<256x32xf32>
    %49 = arith.truncf %48 : vector<256x32xf32> to vector<256x32xbf16>
    %50 = vector.shape_cast %49 : vector<256x32xbf16> to vector<16x16x32xbf16>
    %51 = vector.extract_strided_slice %50 {offsets = [0, 1, 0], sizes = [16, 1, 32], strides = [1, 1, 1]} : vector<16x16x32xbf16> to vector<16x1x32xbf16>
    %52 = vector.extract_strided_slice %50 {offsets = [0, 14, 0], sizes = [16, 1, 32], strides = [1, 1, 1]} : vector<16x16x32xbf16> to vector<16x1x32xbf16>
    %53 = tpu.concatenate %51, %50, %52 in 1 : vector<16x1x32xbf16>, vector<16x16x32xbf16>, vector<16x1x32xbf16> -> vector<16x18x32xbf16>
    %54 = vector.extract_strided_slice %53 {offsets = [1, 0, 0], sizes = [1, 18, 32], strides = [1, 1, 1]} : vector<16x18x32xbf16> to vector<1x18x32xbf16>
    %55 = vector.extract_strided_slice %53 {offsets = [14, 0, 0], sizes = [1, 18, 32], strides = [1, 1, 1]} : vector<16x18x32xbf16> to vector<1x18x32xbf16>
    %56 = tpu.concatenate %54, %53, %55 in 0 : vector<1x18x32xbf16>, vector<16x18x32xbf16>, vector<1x18x32xbf16> -> vector<18x18x32xbf16>
    %57 = vector.extract_strided_slice %56 {offsets = [0, 0, 0], sizes = [16, 16, 32], strides = [1, 1, 1]} : vector<18x18x32xbf16> to vector<16x16x32xbf16>
    %58 = vector.shape_cast %57 : vector<16x16x32xbf16> to vector<256x32xbf16>
    %59 = vector.extract_strided_slice %56 {offsets = [0, 1, 0], sizes = [16, 16, 32], strides = [1, 1, 1]} : vector<18x18x32xbf16> to vector<16x16x32xbf16>
    %60 = vector.shape_cast %59 : vector<16x16x32xbf16> to vector<256x32xbf16>
    %61 = vector.extract_strided_slice %56 {offsets = [0, 2, 0], sizes = [16, 16, 32], strides = [1, 1, 1]} : vector<18x18x32xbf16> to vector<16x16x32xbf16>
    %62 = vector.shape_cast %61 : vector<16x16x32xbf16> to vector<256x32xbf16>
    %63 = vector.extract_strided_slice %56 {offsets = [1, 0, 0], sizes = [16, 16, 32], strides = [1, 1, 1]} : vector<18x18x32xbf16> to vector<16x16x32xbf16>
    %64 = vector.shape_cast %63 : vector<16x16x32xbf16> to vector<256x32xbf16>
    %65 = vector.extract_strided_slice %56 {offsets = [1, 1, 0], sizes = [16, 16, 32], strides = [1, 1, 1]} : vector<18x18x32xbf16> to vector<16x16x32xbf16>
    %66 = vector.shape_cast %65 : vector<16x16x32xbf16> to vector<256x32xbf16>
    %67 = vector.extract_strided_slice %56 {offsets = [1, 2, 0], sizes = [16, 16, 32], strides = [1, 1, 1]} : vector<18x18x32xbf16> to vector<16x16x32xbf16>
    %68 = vector.shape_cast %67 : vector<16x16x32xbf16> to vector<256x32xbf16>
    %69 = vector.extract_strided_slice %56 {offsets = [2, 0, 0], sizes = [16, 16, 32], strides = [1, 1, 1]} : vector<18x18x32xbf16> to vector<16x16x32xbf16>
    %70 = vector.shape_cast %69 : vector<16x16x32xbf16> to vector<256x32xbf16>
    %71 = vector.extract_strided_slice %56 {offsets = [2, 1, 0], sizes = [16, 16, 32], strides = [1, 1, 1]} : vector<18x18x32xbf16> to vector<16x16x32xbf16>
    %72 = vector.shape_cast %71 : vector<16x16x32xbf16> to vector<256x32xbf16>
    %73 = vector.extract_strided_slice %56 {offsets = [2, 2, 0], sizes = [16, 16, 32], strides = [1, 1, 1]} : vector<18x18x32xbf16> to vector<16x16x32xbf16>
    %74 = vector.shape_cast %73 : vector<16x16x32xbf16> to vector<256x32xbf16>
    %75 = tpu.concatenate %58, %60, %62, %64, %66, %68, %70, %72, %74 in 1 : vector<256x32xbf16>, vector<256x32xbf16>, vector<256x32xbf16>, vector<256x32xbf16>, vector<256x32xbf16>, vector<256x32xbf16>, vector<256x32xbf16>, vector<256x32xbf16>, vector<256x32xbf16> -> vector<256x288xbf16>
    %c0_15 = arith.constant 0 : index
    %c0_16 = arith.constant 0 : index
    %76 = vector.load %arg6[%c0_15, %c0_16] : memref<288x64xbf16, #tpu.memory_space<vmem>>, vector<288x64xbf16>
    %cst_17 = arith.constant dense<0.000000e+00> : vector<256x64xf32>
    %77 = tpu.matmul %75, %76, %cst_17 {dimension_numbers = #tpu.dot_dimension_numbers<[1], [0], [0], [1], [0, 0, 1, 1], [], []>} : vector<256x288xbf16>, vector<288x64xbf16>, vector<256x64xf32> -> vector<256x64xf32>
    %c0_18 = arith.constant 0 : index
    %c0_19 = arith.constant 0 : index
    %78 = vector.load %arg7[%c0_18, %c0_19] : memref<1x64xf32, #tpu.memory_space<vmem>>, vector<1x64xf32>
    %79 = vector.broadcast %78 : vector<1x64xf32> to vector<256x64xf32>
    %80 = arith.addf %77, %79 : vector<256x64xf32>
    %81 = vector.shape_cast %80 : vector<256x64xf32> to vector<128x2x64xf32>
    %82 = vector.extract_strided_slice %81 {offsets = [0, 0, 0], sizes = [128, 1, 64], strides = [1, 1, 1]} : vector<128x2x64xf32> to vector<128x1x64xf32>
    %83 = vector.shape_cast %82 : vector<128x1x64xf32> to vector<128x64xf32>
    %84 = vector.extract_strided_slice %81 {offsets = [0, 1, 0], sizes = [128, 1, 64], strides = [1, 1, 1]} : vector<128x2x64xf32> to vector<128x1x64xf32>
    %85 = vector.shape_cast %84 : vector<128x1x64xf32> to vector<128x64xf32>
    %86 = arith.addf %83, %85 : vector<128x64xf32>
    %87 = vector.shape_cast %86 : vector<128x64xf32> to vector<8x2x8x64xf32>
    %88 = vector.extract_strided_slice %87 {offsets = [0, 0, 0, 0], sizes = [8, 1, 8, 64], strides = [1, 1, 1, 1]} : vector<8x2x8x64xf32> to vector<8x1x8x64xf32>
    %89 = vector.shape_cast %88 : vector<8x1x8x64xf32> to vector<8x8x64xf32>
    %90 = vector.extract_strided_slice %87 {offsets = [0, 1, 0, 0], sizes = [8, 1, 8, 64], strides = [1, 1, 1, 1]} : vector<8x2x8x64xf32> to vector<8x1x8x64xf32>
    %91 = vector.shape_cast %90 : vector<8x1x8x64xf32> to vector<8x8x64xf32>
    %92 = arith.addf %89, %91 : vector<8x8x64xf32>
    %cst_20 = arith.constant 2.500000e-01 : f32
    %93 = vector.broadcast %cst_20 : f32 to vector<8x8x64xf32>
    %94 = arith.mulf %93, %92 : vector<8x8x64xf32>
    %95 = vector.shape_cast %94 : vector<8x8x64xf32> to vector<64x64xf32>
    %96 = vector.shape_cast %6 : vector<256x32xf32> to vector<128x2x32xf32>
    %97 = vector.extract_strided_slice %96 {offsets = [0, 0, 0], sizes = [128, 1, 32], strides = [1, 1, 1]} : vector<128x2x32xf32> to vector<128x1x32xf32>
    %98 = vector.shape_cast %97 : vector<128x1x32xf32> to vector<128x32xf32>
    %99 = vector.extract_strided_slice %96 {offsets = [0, 1, 0], sizes = [128, 1, 32], strides = [1, 1, 1]} : vector<128x2x32xf32> to vector<128x1x32xf32>
    %100 = vector.shape_cast %99 : vector<128x1x32xf32> to vector<128x32xf32>
    %101 = arith.addf %98, %100 : vector<128x32xf32>
    %102 = vector.shape_cast %101 : vector<128x32xf32> to vector<8x2x8x32xf32>
    %103 = vector.extract_strided_slice %102 {offsets = [0, 0, 0, 0], sizes = [8, 1, 8, 32], strides = [1, 1, 1, 1]} : vector<8x2x8x32xf32> to vector<8x1x8x32xf32>
    %104 = vector.shape_cast %103 : vector<8x1x8x32xf32> to vector<8x8x32xf32>
    %105 = vector.extract_strided_slice %102 {offsets = [0, 1, 0, 0], sizes = [8, 1, 8, 32], strides = [1, 1, 1, 1]} : vector<8x2x8x32xf32> to vector<8x1x8x32xf32>
    %106 = vector.shape_cast %105 : vector<8x1x8x32xf32> to vector<8x8x32xf32>
    %107 = arith.addf %104, %106 : vector<8x8x32xf32>
    %cst_21 = arith.constant 2.500000e-01 : f32
    %108 = vector.broadcast %cst_21 : f32 to vector<8x8x32xf32>
    %109 = arith.mulf %108, %107 : vector<8x8x32xf32>
    %110 = vector.shape_cast %109 : vector<8x8x32xf32> to vector<64x32xf32>
    %111 = arith.truncf %110 : vector<64x32xf32> to vector<64x32xbf16>
    %c0_22 = arith.constant 0 : index
    %c0_23 = arith.constant 0 : index
    %112 = vector.load %arg8[%c0_22, %c0_23] : memref<32x64xbf16, #tpu.memory_space<vmem>>, vector<32x64xbf16>
    %cst_24 = arith.constant dense<0.000000e+00> : vector<64x64xf32>
    %113 = tpu.matmul %111, %112, %cst_24 {dimension_numbers = #tpu.dot_dimension_numbers<[1], [0], [0], [1], [0, 0, 1, 1], [], []>} : vector<64x32xbf16>, vector<32x64xbf16>, vector<64x64xf32> -> vector<64x64xf32>
    %c0_25 = arith.constant 0 : index
    %c0_26 = arith.constant 0 : index
    %114 = vector.load %arg9[%c0_25, %c0_26] : memref<1x64xf32, #tpu.memory_space<vmem>>, vector<1x64xf32>
    %115 = vector.broadcast %114 : vector<1x64xf32> to vector<64x64xf32>
    %116 = arith.addf %113, %115 : vector<64x64xf32>
    %117 = arith.addf %95, %116 : vector<64x64xf32>
    %cst_27 = arith.constant 0.000000e+00 : f32
    %118 = vector.broadcast %cst_27 : f32 to vector<64x64xf32>
    %119 = arith.cmpf ogt, %117, %118 : vector<64x64xf32>
    %cst_28 = arith.constant 2.000000e-01 : f32
    %120 = vector.broadcast %cst_28 : f32 to vector<64x64xf32>
    %121 = arith.mulf %120, %117 : vector<64x64xf32>
    %122 = arith.select %119, %117, %121 : vector<64x64xi1>, vector<64x64xf32>
    %123 = arith.truncf %122 : vector<64x64xf32> to vector<64x64xbf16>
    %124 = vector.shape_cast %123 : vector<64x64xbf16> to vector<8x8x64xbf16>
    %125 = vector.extract_strided_slice %124 {offsets = [0, 1, 0], sizes = [8, 1, 64], strides = [1, 1, 1]} : vector<8x8x64xbf16> to vector<8x1x64xbf16>
    %126 = vector.extract_strided_slice %124 {offsets = [0, 6, 0], sizes = [8, 1, 64], strides = [1, 1, 1]} : vector<8x8x64xbf16> to vector<8x1x64xbf16>
    %127 = tpu.concatenate %125, %124, %126 in 1 : vector<8x1x64xbf16>, vector<8x8x64xbf16>, vector<8x1x64xbf16> -> vector<8x10x64xbf16>
    %128 = vector.extract_strided_slice %127 {offsets = [1, 0, 0], sizes = [1, 10, 64], strides = [1, 1, 1]} : vector<8x10x64xbf16> to vector<1x10x64xbf16>
    %129 = vector.extract_strided_slice %127 {offsets = [6, 0, 0], sizes = [1, 10, 64], strides = [1, 1, 1]} : vector<8x10x64xbf16> to vector<1x10x64xbf16>
    %130 = tpu.concatenate %128, %127, %129 in 0 : vector<1x10x64xbf16>, vector<8x10x64xbf16>, vector<1x10x64xbf16> -> vector<10x10x64xbf16>
    %131 = vector.extract_strided_slice %130 {offsets = [0, 0, 0], sizes = [8, 8, 64], strides = [1, 1, 1]} : vector<10x10x64xbf16> to vector<8x8x64xbf16>
    %132 = vector.shape_cast %131 : vector<8x8x64xbf16> to vector<64x64xbf16>
    %133 = vector.extract_strided_slice %130 {offsets = [0, 1, 0], sizes = [8, 8, 64], strides = [1, 1, 1]} : vector<10x10x64xbf16> to vector<8x8x64xbf16>
    %134 = vector.shape_cast %133 : vector<8x8x64xbf16> to vector<64x64xbf16>
    %135 = vector.extract_strided_slice %130 {offsets = [0, 2, 0], sizes = [8, 8, 64], strides = [1, 1, 1]} : vector<10x10x64xbf16> to vector<8x8x64xbf16>
    %136 = vector.shape_cast %135 : vector<8x8x64xbf16> to vector<64x64xbf16>
    %137 = vector.extract_strided_slice %130 {offsets = [1, 0, 0], sizes = [8, 8, 64], strides = [1, 1, 1]} : vector<10x10x64xbf16> to vector<8x8x64xbf16>
    %138 = vector.shape_cast %137 : vector<8x8x64xbf16> to vector<64x64xbf16>
    %139 = vector.extract_strided_slice %130 {offsets = [1, 1, 0], sizes = [8, 8, 64], strides = [1, 1, 1]} : vector<10x10x64xbf16> to vector<8x8x64xbf16>
    %140 = vector.shape_cast %139 : vector<8x8x64xbf16> to vector<64x64xbf16>
    %141 = vector.extract_strided_slice %130 {offsets = [1, 2, 0], sizes = [8, 8, 64], strides = [1, 1, 1]} : vector<10x10x64xbf16> to vector<8x8x64xbf16>
    %142 = vector.shape_cast %141 : vector<8x8x64xbf16> to vector<64x64xbf16>
    %143 = vector.extract_strided_slice %130 {offsets = [2, 0, 0], sizes = [8, 8, 64], strides = [1, 1, 1]} : vector<10x10x64xbf16> to vector<8x8x64xbf16>
    %144 = vector.shape_cast %143 : vector<8x8x64xbf16> to vector<64x64xbf16>
    %145 = vector.extract_strided_slice %130 {offsets = [2, 1, 0], sizes = [8, 8, 64], strides = [1, 1, 1]} : vector<10x10x64xbf16> to vector<8x8x64xbf16>
    %146 = vector.shape_cast %145 : vector<8x8x64xbf16> to vector<64x64xbf16>
    %147 = vector.extract_strided_slice %130 {offsets = [2, 2, 0], sizes = [8, 8, 64], strides = [1, 1, 1]} : vector<10x10x64xbf16> to vector<8x8x64xbf16>
    %148 = vector.shape_cast %147 : vector<8x8x64xbf16> to vector<64x64xbf16>
    %149 = tpu.concatenate %132, %134, %136, %138, %140, %142, %144, %146, %148 in 1 : vector<64x64xbf16>, vector<64x64xbf16>, vector<64x64xbf16>, vector<64x64xbf16>, vector<64x64xbf16>, vector<64x64xbf16>, vector<64x64xbf16>, vector<64x64xbf16>, vector<64x64xbf16> -> vector<64x576xbf16>
    %c0_29 = arith.constant 0 : index
    %c0_30 = arith.constant 0 : index
    %150 = vector.load %arg10[%c0_29, %c0_30] : memref<576x64xbf16, #tpu.memory_space<vmem>>, vector<576x64xbf16>
    %cst_31 = arith.constant dense<0.000000e+00> : vector<64x64xf32>
    %151 = tpu.matmul %149, %150, %cst_31 {dimension_numbers = #tpu.dot_dimension_numbers<[1], [0], [0], [1], [0, 0, 1, 1], [], []>} : vector<64x576xbf16>, vector<576x64xbf16>, vector<64x64xf32> -> vector<64x64xf32>
    %c0_32 = arith.constant 0 : index
    %c0_33 = arith.constant 0 : index
    %152 = vector.load %arg11[%c0_32, %c0_33] : memref<1x64xf32, #tpu.memory_space<vmem>>, vector<1x64xf32>
    %153 = vector.broadcast %152 : vector<1x64xf32> to vector<64x64xf32>
    %154 = arith.addf %151, %153 : vector<64x64xf32>
    %cst_34 = arith.constant 0.000000e+00 : f32
    %155 = vector.broadcast %cst_34 : f32 to vector<64x64xf32>
    %156 = arith.cmpf ogt, %154, %155 : vector<64x64xf32>
    %cst_35 = arith.constant 2.000000e-01 : f32
    %157 = vector.broadcast %cst_35 : f32 to vector<64x64xf32>
    %158 = arith.mulf %157, %154 : vector<64x64xf32>
    %159 = arith.select %156, %154, %158 : vector<64x64xi1>, vector<64x64xf32>
    %160 = arith.truncf %159 : vector<64x64xf32> to vector<64x64xbf16>
    %161 = vector.shape_cast %160 : vector<64x64xbf16> to vector<8x8x64xbf16>
    %162 = vector.extract_strided_slice %161 {offsets = [0, 1, 0], sizes = [8, 1, 64], strides = [1, 1, 1]} : vector<8x8x64xbf16> to vector<8x1x64xbf16>
    %163 = vector.extract_strided_slice %161 {offsets = [0, 6, 0], sizes = [8, 1, 64], strides = [1, 1, 1]} : vector<8x8x64xbf16> to vector<8x1x64xbf16>
    %164 = tpu.concatenate %162, %161, %163 in 1 : vector<8x1x64xbf16>, vector<8x8x64xbf16>, vector<8x1x64xbf16> -> vector<8x10x64xbf16>
    %165 = vector.extract_strided_slice %164 {offsets = [1, 0, 0], sizes = [1, 10, 64], strides = [1, 1, 1]} : vector<8x10x64xbf16> to vector<1x10x64xbf16>
    %166 = vector.extract_strided_slice %164 {offsets = [6, 0, 0], sizes = [1, 10, 64], strides = [1, 1, 1]} : vector<8x10x64xbf16> to vector<1x10x64xbf16>
    %167 = tpu.concatenate %165, %164, %166 in 0 : vector<1x10x64xbf16>, vector<8x10x64xbf16>, vector<1x10x64xbf16> -> vector<10x10x64xbf16>
    %168 = vector.extract_strided_slice %167 {offsets = [0, 0, 0], sizes = [8, 8, 64], strides = [1, 1, 1]} : vector<10x10x64xbf16> to vector<8x8x64xbf16>
    %169 = vector.shape_cast %168 : vector<8x8x64xbf16> to vector<64x64xbf16>
    %170 = vector.extract_strided_slice %167 {offsets = [0, 1, 0], sizes = [8, 8, 64], strides = [1, 1, 1]} : vector<10x10x64xbf16> to vector<8x8x64xbf16>
    %171 = vector.shape_cast %170 : vector<8x8x64xbf16> to vector<64x64xbf16>
    %172 = vector.extract_strided_slice %167 {offsets = [0, 2, 0], sizes = [8, 8, 64], strides = [1, 1, 1]} : vector<10x10x64xbf16> to vector<8x8x64xbf16>
    %173 = vector.shape_cast %172 : vector<8x8x64xbf16> to vector<64x64xbf16>
    %174 = vector.extract_strided_slice %167 {offsets = [1, 0, 0], sizes = [8, 8, 64], strides = [1, 1, 1]} : vector<10x10x64xbf16> to vector<8x8x64xbf16>
    %175 = vector.shape_cast %174 : vector<8x8x64xbf16> to vector<64x64xbf16>
    %176 = vector.extract_strided_slice %167 {offsets = [1, 1, 0], sizes = [8, 8, 64], strides = [1, 1, 1]} : vector<10x10x64xbf16> to vector<8x8x64xbf16>
    %177 = vector.shape_cast %176 : vector<8x8x64xbf16> to vector<64x64xbf16>
    %178 = vector.extract_strided_slice %167 {offsets = [1, 2, 0], sizes = [8, 8, 64], strides = [1, 1, 1]} : vector<10x10x64xbf16> to vector<8x8x64xbf16>
    %179 = vector.shape_cast %178 : vector<8x8x64xbf16> to vector<64x64xbf16>
    %180 = vector.extract_strided_slice %167 {offsets = [2, 0, 0], sizes = [8, 8, 64], strides = [1, 1, 1]} : vector<10x10x64xbf16> to vector<8x8x64xbf16>
    %181 = vector.shape_cast %180 : vector<8x8x64xbf16> to vector<64x64xbf16>
    %182 = vector.extract_strided_slice %167 {offsets = [2, 1, 0], sizes = [8, 8, 64], strides = [1, 1, 1]} : vector<10x10x64xbf16> to vector<8x8x64xbf16>
    %183 = vector.shape_cast %182 : vector<8x8x64xbf16> to vector<64x64xbf16>
    %184 = vector.extract_strided_slice %167 {offsets = [2, 2, 0], sizes = [8, 8, 64], strides = [1, 1, 1]} : vector<10x10x64xbf16> to vector<8x8x64xbf16>
    %185 = vector.shape_cast %184 : vector<8x8x64xbf16> to vector<64x64xbf16>
    %186 = tpu.concatenate %169, %171, %173, %175, %177, %179, %181, %183, %185 in 1 : vector<64x64xbf16>, vector<64x64xbf16>, vector<64x64xbf16>, vector<64x64xbf16>, vector<64x64xbf16>, vector<64x64xbf16>, vector<64x64xbf16>, vector<64x64xbf16>, vector<64x64xbf16> -> vector<64x576xbf16>
    %c0_36 = arith.constant 0 : index
    %c0_37 = arith.constant 0 : index
    %187 = vector.load %arg12[%c0_36, %c0_37] : memref<576x96xbf16, #tpu.memory_space<vmem>>, vector<576x96xbf16>
    %cst_38 = arith.constant dense<0.000000e+00> : vector<64x96xf32>
    %188 = tpu.matmul %186, %187, %cst_38 {dimension_numbers = #tpu.dot_dimension_numbers<[1], [0], [0], [1], [0, 0, 1, 1], [], []>} : vector<64x576xbf16>, vector<576x96xbf16>, vector<64x96xf32> -> vector<64x96xf32>
    %c0_39 = arith.constant 0 : index
    %c0_40 = arith.constant 0 : index
    %189 = vector.load %arg13[%c0_39, %c0_40] : memref<1x96xf32, #tpu.memory_space<vmem>>, vector<1x96xf32>
    %190 = vector.broadcast %189 : vector<1x96xf32> to vector<64x96xf32>
    %191 = arith.addf %188, %190 : vector<64x96xf32>
    %192 = vector.shape_cast %191 : vector<64x96xf32> to vector<32x2x96xf32>
    %193 = vector.extract_strided_slice %192 {offsets = [0, 0, 0], sizes = [32, 1, 96], strides = [1, 1, 1]} : vector<32x2x96xf32> to vector<32x1x96xf32>
    %194 = vector.shape_cast %193 : vector<32x1x96xf32> to vector<32x96xf32>
    %195 = vector.extract_strided_slice %192 {offsets = [0, 1, 0], sizes = [32, 1, 96], strides = [1, 1, 1]} : vector<32x2x96xf32> to vector<32x1x96xf32>
    %196 = vector.shape_cast %195 : vector<32x1x96xf32> to vector<32x96xf32>
    %197 = arith.addf %194, %196 : vector<32x96xf32>
    %198 = vector.shape_cast %197 : vector<32x96xf32> to vector<4x2x4x96xf32>
    %199 = vector.extract_strided_slice %198 {offsets = [0, 0, 0, 0], sizes = [4, 1, 4, 96], strides = [1, 1, 1, 1]} : vector<4x2x4x96xf32> to vector<4x1x4x96xf32>
    %200 = vector.shape_cast %199 : vector<4x1x4x96xf32> to vector<4x4x96xf32>
    %201 = vector.extract_strided_slice %198 {offsets = [0, 1, 0, 0], sizes = [4, 1, 4, 96], strides = [1, 1, 1, 1]} : vector<4x2x4x96xf32> to vector<4x1x4x96xf32>
    %202 = vector.shape_cast %201 : vector<4x1x4x96xf32> to vector<4x4x96xf32>
    %203 = arith.addf %200, %202 : vector<4x4x96xf32>
    %cst_41 = arith.constant 2.500000e-01 : f32
    %204 = vector.broadcast %cst_41 : f32 to vector<4x4x96xf32>
    %205 = arith.mulf %204, %203 : vector<4x4x96xf32>
    %206 = vector.shape_cast %205 : vector<4x4x96xf32> to vector<16x96xf32>
    %207 = vector.shape_cast %117 : vector<64x64xf32> to vector<32x2x64xf32>
    %208 = vector.extract_strided_slice %207 {offsets = [0, 0, 0], sizes = [32, 1, 64], strides = [1, 1, 1]} : vector<32x2x64xf32> to vector<32x1x64xf32>
    %209 = vector.shape_cast %208 : vector<32x1x64xf32> to vector<32x64xf32>
    %210 = vector.extract_strided_slice %207 {offsets = [0, 1, 0], sizes = [32, 1, 64], strides = [1, 1, 1]} : vector<32x2x64xf32> to vector<32x1x64xf32>
    %211 = vector.shape_cast %210 : vector<32x1x64xf32> to vector<32x64xf32>
    %212 = arith.addf %209, %211 : vector<32x64xf32>
    %213 = vector.shape_cast %212 : vector<32x64xf32> to vector<4x2x4x64xf32>
    %214 = vector.extract_strided_slice %213 {offsets = [0, 0, 0, 0], sizes = [4, 1, 4, 64], strides = [1, 1, 1, 1]} : vector<4x2x4x64xf32> to vector<4x1x4x64xf32>
    %215 = vector.shape_cast %214 : vector<4x1x4x64xf32> to vector<4x4x64xf32>
    %216 = vector.extract_strided_slice %213 {offsets = [0, 1, 0, 0], sizes = [4, 1, 4, 64], strides = [1, 1, 1, 1]} : vector<4x2x4x64xf32> to vector<4x1x4x64xf32>
    %217 = vector.shape_cast %216 : vector<4x1x4x64xf32> to vector<4x4x64xf32>
    %218 = arith.addf %215, %217 : vector<4x4x64xf32>
    %cst_42 = arith.constant 2.500000e-01 : f32
    %219 = vector.broadcast %cst_42 : f32 to vector<4x4x64xf32>
    %220 = arith.mulf %219, %218 : vector<4x4x64xf32>
    %221 = vector.shape_cast %220 : vector<4x4x64xf32> to vector<16x64xf32>
    %222 = arith.truncf %221 : vector<16x64xf32> to vector<16x64xbf16>
    %c0_43 = arith.constant 0 : index
    %c0_44 = arith.constant 0 : index
    %223 = vector.load %arg14[%c0_43, %c0_44] : memref<64x96xbf16, #tpu.memory_space<vmem>>, vector<64x96xbf16>
    %cst_45 = arith.constant dense<0.000000e+00> : vector<16x96xf32>
    %224 = tpu.matmul %222, %223, %cst_45 {dimension_numbers = #tpu.dot_dimension_numbers<[1], [0], [0], [1], [0, 0, 1, 1], [], []>} : vector<16x64xbf16>, vector<64x96xbf16>, vector<16x96xf32> -> vector<16x96xf32>
    %c0_46 = arith.constant 0 : index
    %c0_47 = arith.constant 0 : index
    %225 = vector.load %arg15[%c0_46, %c0_47] : memref<1x96xf32, #tpu.memory_space<vmem>>, vector<1x96xf32>
    %226 = vector.broadcast %225 : vector<1x96xf32> to vector<16x96xf32>
    %227 = arith.addf %224, %226 : vector<16x96xf32>
    %228 = arith.addf %206, %227 : vector<16x96xf32>
    %cst_48 = arith.constant 0.000000e+00 : f32
    %229 = vector.broadcast %cst_48 : f32 to vector<16x96xf32>
    %230 = arith.cmpf ogt, %228, %229 : vector<16x96xf32>
    %cst_49 = arith.constant 2.000000e-01 : f32
    %231 = vector.broadcast %cst_49 : f32 to vector<16x96xf32>
    %232 = arith.mulf %231, %228 : vector<16x96xf32>
    %233 = arith.select %230, %228, %232 : vector<16x96xi1>, vector<16x96xf32>
    %234 = arith.truncf %233 : vector<16x96xf32> to vector<16x96xbf16>
    %235 = vector.shape_cast %234 : vector<16x96xbf16> to vector<4x4x96xbf16>
    %236 = vector.extract_strided_slice %235 {offsets = [0, 1, 0], sizes = [4, 1, 96], strides = [1, 1, 1]} : vector<4x4x96xbf16> to vector<4x1x96xbf16>
    %237 = vector.extract_strided_slice %235 {offsets = [0, 2, 0], sizes = [4, 1, 96], strides = [1, 1, 1]} : vector<4x4x96xbf16> to vector<4x1x96xbf16>
    %238 = tpu.concatenate %236, %235, %237 in 1 : vector<4x1x96xbf16>, vector<4x4x96xbf16>, vector<4x1x96xbf16> -> vector<4x6x96xbf16>
    %239 = vector.extract_strided_slice %238 {offsets = [1, 0, 0], sizes = [1, 6, 96], strides = [1, 1, 1]} : vector<4x6x96xbf16> to vector<1x6x96xbf16>
    %240 = vector.extract_strided_slice %238 {offsets = [2, 0, 0], sizes = [1, 6, 96], strides = [1, 1, 1]} : vector<4x6x96xbf16> to vector<1x6x96xbf16>
    %241 = tpu.concatenate %239, %238, %240 in 0 : vector<1x6x96xbf16>, vector<4x6x96xbf16>, vector<1x6x96xbf16> -> vector<6x6x96xbf16>
    %242 = vector.extract_strided_slice %241 {offsets = [0, 0, 0], sizes = [4, 4, 96], strides = [1, 1, 1]} : vector<6x6x96xbf16> to vector<4x4x96xbf16>
    %243 = vector.shape_cast %242 : vector<4x4x96xbf16> to vector<16x96xbf16>
    %244 = vector.extract_strided_slice %241 {offsets = [0, 1, 0], sizes = [4, 4, 96], strides = [1, 1, 1]} : vector<6x6x96xbf16> to vector<4x4x96xbf16>
    %245 = vector.shape_cast %244 : vector<4x4x96xbf16> to vector<16x96xbf16>
    %246 = vector.extract_strided_slice %241 {offsets = [0, 2, 0], sizes = [4, 4, 96], strides = [1, 1, 1]} : vector<6x6x96xbf16> to vector<4x4x96xbf16>
    %247 = vector.shape_cast %246 : vector<4x4x96xbf16> to vector<16x96xbf16>
    %248 = vector.extract_strided_slice %241 {offsets = [1, 0, 0], sizes = [4, 4, 96], strides = [1, 1, 1]} : vector<6x6x96xbf16> to vector<4x4x96xbf16>
    %249 = vector.shape_cast %248 : vector<4x4x96xbf16> to vector<16x96xbf16>
    %250 = vector.extract_strided_slice %241 {offsets = [1, 1, 0], sizes = [4, 4, 96], strides = [1, 1, 1]} : vector<6x6x96xbf16> to vector<4x4x96xbf16>
    %251 = vector.shape_cast %250 : vector<4x4x96xbf16> to vector<16x96xbf16>
    %252 = vector.extract_strided_slice %241 {offsets = [1, 2, 0], sizes = [4, 4, 96], strides = [1, 1, 1]} : vector<6x6x96xbf16> to vector<4x4x96xbf16>
    %253 = vector.shape_cast %252 : vector<4x4x96xbf16> to vector<16x96xbf16>
    %254 = vector.extract_strided_slice %241 {offsets = [2, 0, 0], sizes = [4, 4, 96], strides = [1, 1, 1]} : vector<6x6x96xbf16> to vector<4x4x96xbf16>
    %255 = vector.shape_cast %254 : vector<4x4x96xbf16> to vector<16x96xbf16>
    %256 = vector.extract_strided_slice %241 {offsets = [2, 1, 0], sizes = [4, 4, 96], strides = [1, 1, 1]} : vector<6x6x96xbf16> to vector<4x4x96xbf16>
    %257 = vector.shape_cast %256 : vector<4x4x96xbf16> to vector<16x96xbf16>
    %258 = vector.extract_strided_slice %241 {offsets = [2, 2, 0], sizes = [4, 4, 96], strides = [1, 1, 1]} : vector<6x6x96xbf16> to vector<4x4x96xbf16>
    %259 = vector.shape_cast %258 : vector<4x4x96xbf16> to vector<16x96xbf16>
    %260 = tpu.concatenate %243, %245, %247, %249, %251, %253, %255, %257, %259 in 1 : vector<16x96xbf16>, vector<16x96xbf16>, vector<16x96xbf16>, vector<16x96xbf16>, vector<16x96xbf16>, vector<16x96xbf16>, vector<16x96xbf16>, vector<16x96xbf16>, vector<16x96xbf16> -> vector<16x864xbf16>
    %c0_50 = arith.constant 0 : index
    %c0_51 = arith.constant 0 : index
    %261 = vector.load %arg16[%c0_50, %c0_51] : memref<864x96xbf16, #tpu.memory_space<vmem>>, vector<864x96xbf16>
    %cst_52 = arith.constant dense<0.000000e+00> : vector<16x96xf32>
    %262 = tpu.matmul %260, %261, %cst_52 {dimension_numbers = #tpu.dot_dimension_numbers<[1], [0], [0], [1], [0, 0, 1, 1], [], []>} : vector<16x864xbf16>, vector<864x96xbf16>, vector<16x96xf32> -> vector<16x96xf32>
    %c0_53 = arith.constant 0 : index
    %c0_54 = arith.constant 0 : index
    %263 = vector.load %arg17[%c0_53, %c0_54] : memref<1x96xf32, #tpu.memory_space<vmem>>, vector<1x96xf32>
    %264 = vector.broadcast %263 : vector<1x96xf32> to vector<16x96xf32>
    %265 = arith.addf %262, %264 : vector<16x96xf32>
    %cst_55 = arith.constant 0.000000e+00 : f32
    %266 = vector.broadcast %cst_55 : f32 to vector<16x96xf32>
    %267 = arith.cmpf ogt, %265, %266 : vector<16x96xf32>
    %cst_56 = arith.constant 2.000000e-01 : f32
    %268 = vector.broadcast %cst_56 : f32 to vector<16x96xf32>
    %269 = arith.mulf %268, %265 : vector<16x96xf32>
    %270 = arith.select %267, %265, %269 : vector<16x96xi1>, vector<16x96xf32>
    %271 = arith.truncf %270 : vector<16x96xf32> to vector<16x96xbf16>
    %272 = vector.shape_cast %271 : vector<16x96xbf16> to vector<4x4x96xbf16>
    %273 = vector.extract_strided_slice %272 {offsets = [0, 1, 0], sizes = [4, 1, 96], strides = [1, 1, 1]} : vector<4x4x96xbf16> to vector<4x1x96xbf16>
    %274 = vector.extract_strided_slice %272 {offsets = [0, 2, 0], sizes = [4, 1, 96], strides = [1, 1, 1]} : vector<4x4x96xbf16> to vector<4x1x96xbf16>
    %275 = tpu.concatenate %273, %272, %274 in 1 : vector<4x1x96xbf16>, vector<4x4x96xbf16>, vector<4x1x96xbf16> -> vector<4x6x96xbf16>
    %276 = vector.extract_strided_slice %275 {offsets = [1, 0, 0], sizes = [1, 6, 96], strides = [1, 1, 1]} : vector<4x6x96xbf16> to vector<1x6x96xbf16>
    %277 = vector.extract_strided_slice %275 {offsets = [2, 0, 0], sizes = [1, 6, 96], strides = [1, 1, 1]} : vector<4x6x96xbf16> to vector<1x6x96xbf16>
    %278 = tpu.concatenate %276, %275, %277 in 0 : vector<1x6x96xbf16>, vector<4x6x96xbf16>, vector<1x6x96xbf16> -> vector<6x6x96xbf16>
    %279 = vector.extract_strided_slice %278 {offsets = [0, 0, 0], sizes = [4, 4, 96], strides = [1, 1, 1]} : vector<6x6x96xbf16> to vector<4x4x96xbf16>
    %280 = vector.shape_cast %279 : vector<4x4x96xbf16> to vector<16x96xbf16>
    %281 = vector.extract_strided_slice %278 {offsets = [0, 1, 0], sizes = [4, 4, 96], strides = [1, 1, 1]} : vector<6x6x96xbf16> to vector<4x4x96xbf16>
    %282 = vector.shape_cast %281 : vector<4x4x96xbf16> to vector<16x96xbf16>
    %283 = vector.extract_strided_slice %278 {offsets = [0, 2, 0], sizes = [4, 4, 96], strides = [1, 1, 1]} : vector<6x6x96xbf16> to vector<4x4x96xbf16>
    %284 = vector.shape_cast %283 : vector<4x4x96xbf16> to vector<16x96xbf16>
    %285 = vector.extract_strided_slice %278 {offsets = [1, 0, 0], sizes = [4, 4, 96], strides = [1, 1, 1]} : vector<6x6x96xbf16> to vector<4x4x96xbf16>
    %286 = vector.shape_cast %285 : vector<4x4x96xbf16> to vector<16x96xbf16>
    %287 = vector.extract_strided_slice %278 {offsets = [1, 1, 0], sizes = [4, 4, 96], strides = [1, 1, 1]} : vector<6x6x96xbf16> to vector<4x4x96xbf16>
    %288 = vector.shape_cast %287 : vector<4x4x96xbf16> to vector<16x96xbf16>
    %289 = vector.extract_strided_slice %278 {offsets = [1, 2, 0], sizes = [4, 4, 96], strides = [1, 1, 1]} : vector<6x6x96xbf16> to vector<4x4x96xbf16>
    %290 = vector.shape_cast %289 : vector<4x4x96xbf16> to vector<16x96xbf16>
    %291 = vector.extract_strided_slice %278 {offsets = [2, 0, 0], sizes = [4, 4, 96], strides = [1, 1, 1]} : vector<6x6x96xbf16> to vector<4x4x96xbf16>
    %292 = vector.shape_cast %291 : vector<4x4x96xbf16> to vector<16x96xbf16>
    %293 = vector.extract_strided_slice %278 {offsets = [2, 1, 0], sizes = [4, 4, 96], strides = [1, 1, 1]} : vector<6x6x96xbf16> to vector<4x4x96xbf16>
    %294 = vector.shape_cast %293 : vector<4x4x96xbf16> to vector<16x96xbf16>
    %295 = vector.extract_strided_slice %278 {offsets = [2, 2, 0], sizes = [4, 4, 96], strides = [1, 1, 1]} : vector<6x6x96xbf16> to vector<4x4x96xbf16>
    %296 = vector.shape_cast %295 : vector<4x4x96xbf16> to vector<16x96xbf16>
    %297 = tpu.concatenate %280, %282, %284, %286, %288, %290, %292, %294, %296 in 1 : vector<16x96xbf16>, vector<16x96xbf16>, vector<16x96xbf16>, vector<16x96xbf16>, vector<16x96xbf16>, vector<16x96xbf16>, vector<16x96xbf16>, vector<16x96xbf16>, vector<16x96xbf16> -> vector<16x864xbf16>
    %c0_57 = arith.constant 0 : index
    %c0_58 = arith.constant 0 : index
    %298 = vector.load %arg18[%c0_57, %c0_58] : memref<864x128xbf16, #tpu.memory_space<vmem>>, vector<864x128xbf16>
    %cst_59 = arith.constant dense<0.000000e+00> : vector<16x128xf32>
    %299 = tpu.matmul %297, %298, %cst_59 {dimension_numbers = #tpu.dot_dimension_numbers<[1], [0], [0], [1], [0, 0, 1, 1], [], []>} : vector<16x864xbf16>, vector<864x128xbf16>, vector<16x128xf32> -> vector<16x128xf32>
    %c0_60 = arith.constant 0 : index
    %c0_61 = arith.constant 0 : index
    %300 = vector.load %arg19[%c0_60, %c0_61] : memref<1x128xf32, #tpu.memory_space<vmem>>, vector<1x128xf32>
    %301 = vector.broadcast %300 : vector<1x128xf32> to vector<16x128xf32>
    %302 = arith.addf %299, %301 : vector<16x128xf32>
    %303 = vector.shape_cast %302 : vector<16x128xf32> to vector<8x2x128xf32>
    %304 = vector.extract_strided_slice %303 {offsets = [0, 0, 0], sizes = [8, 1, 128], strides = [1, 1, 1]} : vector<8x2x128xf32> to vector<8x1x128xf32>
    %305 = vector.shape_cast %304 : vector<8x1x128xf32> to vector<8x128xf32>
    %306 = vector.extract_strided_slice %303 {offsets = [0, 1, 0], sizes = [8, 1, 128], strides = [1, 1, 1]} : vector<8x2x128xf32> to vector<8x1x128xf32>
    %307 = vector.shape_cast %306 : vector<8x1x128xf32> to vector<8x128xf32>
    %308 = arith.addf %305, %307 : vector<8x128xf32>
    %309 = vector.shape_cast %308 : vector<8x128xf32> to vector<2x2x2x128xf32>
    %310 = vector.extract_strided_slice %309 {offsets = [0, 0, 0, 0], sizes = [2, 1, 2, 128], strides = [1, 1, 1, 1]} : vector<2x2x2x128xf32> to vector<2x1x2x128xf32>
    %311 = vector.shape_cast %310 : vector<2x1x2x128xf32> to vector<2x2x128xf32>
    %312 = vector.extract_strided_slice %309 {offsets = [0, 1, 0, 0], sizes = [2, 1, 2, 128], strides = [1, 1, 1, 1]} : vector<2x2x2x128xf32> to vector<2x1x2x128xf32>
    %313 = vector.shape_cast %312 : vector<2x1x2x128xf32> to vector<2x2x128xf32>
    %314 = arith.addf %311, %313 : vector<2x2x128xf32>
    %cst_62 = arith.constant 2.500000e-01 : f32
    %315 = vector.broadcast %cst_62 : f32 to vector<2x2x128xf32>
    %316 = arith.mulf %315, %314 : vector<2x2x128xf32>
    %317 = vector.shape_cast %316 : vector<2x2x128xf32> to vector<4x128xf32>
    %318 = vector.shape_cast %228 : vector<16x96xf32> to vector<8x2x96xf32>
    %319 = vector.extract_strided_slice %318 {offsets = [0, 0, 0], sizes = [8, 1, 96], strides = [1, 1, 1]} : vector<8x2x96xf32> to vector<8x1x96xf32>
    %320 = vector.shape_cast %319 : vector<8x1x96xf32> to vector<8x96xf32>
    %321 = vector.extract_strided_slice %318 {offsets = [0, 1, 0], sizes = [8, 1, 96], strides = [1, 1, 1]} : vector<8x2x96xf32> to vector<8x1x96xf32>
    %322 = vector.shape_cast %321 : vector<8x1x96xf32> to vector<8x96xf32>
    %323 = arith.addf %320, %322 : vector<8x96xf32>
    %324 = vector.shape_cast %323 : vector<8x96xf32> to vector<2x2x2x96xf32>
    %325 = vector.extract_strided_slice %324 {offsets = [0, 0, 0, 0], sizes = [2, 1, 2, 96], strides = [1, 1, 1, 1]} : vector<2x2x2x96xf32> to vector<2x1x2x96xf32>
    %326 = vector.shape_cast %325 : vector<2x1x2x96xf32> to vector<2x2x96xf32>
    %327 = vector.extract_strided_slice %324 {offsets = [0, 1, 0, 0], sizes = [2, 1, 2, 96], strides = [1, 1, 1, 1]} : vector<2x2x2x96xf32> to vector<2x1x2x96xf32>
    %328 = vector.shape_cast %327 : vector<2x1x2x96xf32> to vector<2x2x96xf32>
    %329 = arith.addf %326, %328 : vector<2x2x96xf32>
    %cst_63 = arith.constant 2.500000e-01 : f32
    %330 = vector.broadcast %cst_63 : f32 to vector<2x2x96xf32>
    %331 = arith.mulf %330, %329 : vector<2x2x96xf32>
    %332 = vector.shape_cast %331 : vector<2x2x96xf32> to vector<4x96xf32>
    %333 = arith.truncf %332 : vector<4x96xf32> to vector<4x96xbf16>
    %c0_64 = arith.constant 0 : index
    %c0_65 = arith.constant 0 : index
    %334 = vector.load %arg20[%c0_64, %c0_65] : memref<96x128xbf16, #tpu.memory_space<vmem>>, vector<96x128xbf16>
    %cst_66 = arith.constant dense<0.000000e+00> : vector<4x128xf32>
    %335 = tpu.matmul %333, %334, %cst_66 {dimension_numbers = #tpu.dot_dimension_numbers<[1], [0], [0], [1], [0, 0, 1, 1], [], []>} : vector<4x96xbf16>, vector<96x128xbf16>, vector<4x128xf32> -> vector<4x128xf32>
    %c0_67 = arith.constant 0 : index
    %c0_68 = arith.constant 0 : index
    %336 = vector.load %arg21[%c0_67, %c0_68] : memref<1x128xf32, #tpu.memory_space<vmem>>, vector<1x128xf32>
    %337 = vector.broadcast %336 : vector<1x128xf32> to vector<4x128xf32>
    %338 = arith.addf %335, %337 : vector<4x128xf32>
    %339 = arith.addf %317, %338 : vector<4x128xf32>
    %cst_69 = arith.constant 0.000000e+00 : f32
    %340 = vector.broadcast %cst_69 : f32 to vector<4x128xf32>
    %341 = arith.cmpf ogt, %339, %340 : vector<4x128xf32>
    %cst_70 = arith.constant 2.000000e-01 : f32
    %342 = vector.broadcast %cst_70 : f32 to vector<4x128xf32>
    %343 = arith.mulf %342, %339 : vector<4x128xf32>
    %344 = arith.select %341, %339, %343 : vector<4x128xi1>, vector<4x128xf32>
    %cst_71 = arith.constant dense<0.000000e+00> : vector<128xf32>
    %345 = vector.multi_reduction <add>, %344, %cst_71 [0] : vector<4x128xf32> to vector<128xf32>
    %346 = vector.shape_cast %345 : vector<128xf32> to vector<1x128xf32>
    %cst_72 = arith.constant 4.000000e+00 : f32
    %347 = vector.broadcast %cst_72 : f32 to vector<1x128xf32>
    %348 = arith.divf %346, %347 : vector<1x128xf32>
    %c0_73 = arith.constant 0 : index
    %c0_74 = arith.constant 0 : index
    %349 = vector.load %arg22[%c0_73, %c0_74] : memref<128x64xf32, #tpu.memory_space<vmem>>, vector<128x64xf32>
    %cst_75 = arith.constant dense<0.000000e+00> : vector<1x64xf32>
    %350 = tpu.matmul %348, %349, %cst_75 {dimension_numbers = #tpu.dot_dimension_numbers<[1], [0], [0], [1], [0, 0, 1, 1], [], []>} : vector<1x128xf32>, vector<128x64xf32>, vector<1x64xf32> -> vector<1x64xf32>
    %c0_76 = arith.constant 0 : index
    %c0_77 = arith.constant 0 : index
    %351 = vector.load %arg23[%c0_76, %c0_77] : memref<1x64xf32, #tpu.memory_space<vmem>>, vector<1x64xf32>
    %352 = arith.addf %350, %351 : vector<1x64xf32>
    %cst_78 = arith.constant 0.000000e+00 : f32
    %353 = vector.broadcast %cst_78 : f32 to vector<1x64xf32>
    %354 = arith.maximumf %352, %353 : vector<1x64xf32>
    %c0_79 = arith.constant 0 : index
    %c0_80 = arith.constant 0 : index
    %355 = vector.load %arg24[%c0_79, %c0_80] : memref<64x32xf32, #tpu.memory_space<vmem>>, vector<64x32xf32>
    %cst_81 = arith.constant dense<0.000000e+00> : vector<1x32xf32>
    %356 = tpu.matmul %354, %355, %cst_81 {dimension_numbers = #tpu.dot_dimension_numbers<[1], [0], [0], [1], [0, 0, 1, 1], [], []>} : vector<1x64xf32>, vector<64x32xf32>, vector<1x32xf32> -> vector<1x32xf32>
    %c0_82 = arith.constant 0 : index
    %c0_83 = arith.constant 0 : index
    %357 = vector.load %arg25[%c0_82, %c0_83] : memref<1x32xf32, #tpu.memory_space<vmem>>, vector<1x32xf32>
    %358 = arith.addf %356, %357 : vector<1x32xf32>
    %cst_84 = arith.constant 0.000000e+00 : f32
    %359 = vector.broadcast %cst_84 : f32 to vector<1x32xf32>
    %360 = arith.maximumf %358, %359 : vector<1x32xf32>
    %c0_85 = arith.constant 0 : index
    %c0_86 = arith.constant 0 : index
    %361 = vector.load %arg26[%c0_85, %c0_86] : memref<32x128xf32, #tpu.memory_space<vmem>>, vector<32x128xf32>
    %cst_87 = arith.constant dense<0.000000e+00> : vector<1x128xf32>
    %362 = tpu.matmul %360, %361, %cst_87 {dimension_numbers = #tpu.dot_dimension_numbers<[1], [0], [0], [1], [0, 0, 1, 1], [], []>} : vector<1x32xf32>, vector<32x128xf32>, vector<1x128xf32> -> vector<1x128xf32>
    %c0_88 = arith.constant 0 : index
    %c0_89 = arith.constant 0 : index
    %363 = vector.load %arg27[%c0_88, %c0_89] : memref<1x128xf32, #tpu.memory_space<vmem>>, vector<1x128xf32>
    %364 = arith.addf %362, %363 : vector<1x128xf32>
    %c0_90 = arith.constant 0 : index
    %c0_91 = arith.constant 0 : index
    %c0_92 = arith.constant 0 : index
    %365 = vector.load %arg28[%c0_90, %c0_91, %c0_92] : memref<1x1x128xf32, #tpu.memory_space<vmem>>, vector<1x1x128xf32>
    %366 = vector.shape_cast %365 : vector<1x1x128xf32> to vector<1x128xf32>
    %367 = vector.shape_cast %364 : vector<1x128xf32> to vector<1x1x128xf32>
    tpu.vector_store %arg28[%c0_90, %c0_91, %c0_92], %367 {strides = array<i32>} : memref<1x1x128xf32, #tpu.memory_space<vmem>>, vector<1x1x128xf32>,
    return
  }
  func.func @transform_0(%arg0: i32) -> (i32, i32, i32) {
    %c0_i32 = arith.constant 0 : i32
    %c0_i32_0 = arith.constant 0 : i32
    %c0_i32_1 = arith.constant 0 : i32
    return %arg0, %c0_i32, %c0_i32_0 : i32, i32, i32
  }
  func.func @transform_1(%arg0: i32) -> (i32, i32) {
    %c0_i32 = arith.constant 0 : i32
    %c0_i32_0 = arith.constant 0 : i32
    %c0_i32_1 = arith.constant 0 : i32
    return %c0_i32, %c0_i32_0 : i32, i32
  }
  func.func @transform_2(%arg0: i32) -> (i32, i32) {
    %c0_i32 = arith.constant 0 : i32
    %c0_i32_0 = arith.constant 0 : i32
    %c0_i32_1 = arith.constant 0 : i32
    return %c0_i32, %c0_i32_0 : i32, i32
  }
  func.func @transform_3(%arg0: i32) -> (i32, i32) {
    %c0_i32 = arith.constant 0 : i32
    %c0_i32_0 = arith.constant 0 : i32
    %c0_i32_1 = arith.constant 0 : i32
    return %c0_i32, %c0_i32_0 : i32, i32
  }
  func.func @transform_4(%arg0: i32) -> (i32, i32) {
    %c0_i32 = arith.constant 0 : i32
    %c0_i32_0 = arith.constant 0 : i32
    %c0_i32_1 = arith.constant 0 : i32
    return %c0_i32, %c0_i32_0 : i32, i32
  }
  func.func @transform_5(%arg0: i32) -> (i32, i32) {
    %c0_i32 = arith.constant 0 : i32
    %c0_i32_0 = arith.constant 0 : i32
    %c0_i32_1 = arith.constant 0 : i32
    return %c0_i32, %c0_i32_0 : i32, i32
  }
  func.func @transform_6(%arg0: i32) -> (i32, i32) {
    %c0_i32 = arith.constant 0 : i32
    %c0_i32_0 = arith.constant 0 : i32
    %c0_i32_1 = arith.constant 0 : i32
    return %c0_i32, %c0_i32_0 : i32, i32
  }
  func.func @transform_7(%arg0: i32) -> (i32, i32) {
    %c0_i32 = arith.constant 0 : i32
    %c0_i32_0 = arith.constant 0 : i32
    %c0_i32_1 = arith.constant 0 : i32
    return %c0_i32, %c0_i32_0 : i32, i32
  }
  func.func @transform_8(%arg0: i32) -> (i32, i32) {
    %c0_i32 = arith.constant 0 : i32
    %c0_i32_0 = arith.constant 0 : i32
    %c0_i32_1 = arith.constant 0 : i32
    return %c0_i32, %c0_i32_0 : i32, i32
  }
  func.func @transform_9(%arg0: i32) -> (i32, i32) {
    %c0_i32 = arith.constant 0 : i32
    %c0_i32_0 = arith.constant 0 : i32
    %c0_i32_1 = arith.constant 0 : i32
    return %c0_i32, %c0_i32_0 : i32, i32
  }
  func.func @transform_10(%arg0: i32) -> (i32, i32) {
    %c0_i32 = arith.constant 0 : i32
    %c0_i32_0 = arith.constant 0 : i32
    %c0_i32_1 = arith.constant 0 : i32
    return %c0_i32, %c0_i32_0 : i32, i32
  }
  func.func @transform_11(%arg0: i32) -> (i32, i32) {
    %c0_i32 = arith.constant 0 : i32
    %c0_i32_0 = arith.constant 0 : i32
    %c0_i32_1 = arith.constant 0 : i32
    return %c0_i32, %c0_i32_0 : i32, i32
  }
  func.func @transform_12(%arg0: i32) -> (i32, i32) {
    %c0_i32 = arith.constant 0 : i32
    %c0_i32_0 = arith.constant 0 : i32
    %c0_i32_1 = arith.constant 0 : i32
    return %c0_i32, %c0_i32_0 : i32, i32
  }
  func.func @transform_13(%arg0: i32) -> (i32, i32) {
    %c0_i32 = arith.constant 0 : i32
    %c0_i32_0 = arith.constant 0 : i32
    %c0_i32_1 = arith.constant 0 : i32
    return %c0_i32, %c0_i32_0 : i32, i32
  }
  func.func @transform_14(%arg0: i32) -> (i32, i32) {
    %c0_i32 = arith.constant 0 : i32
    %c0_i32_0 = arith.constant 0 : i32
    %c0_i32_1 = arith.constant 0 : i32
    return %c0_i32, %c0_i32_0 : i32, i32
  }
  func.func @transform_15(%arg0: i32) -> (i32, i32) {
    %c0_i32 = arith.constant 0 : i32
    %c0_i32_0 = arith.constant 0 : i32
    %c0_i32_1 = arith.constant 0 : i32
    return %c0_i32, %c0_i32_0 : i32, i32
  }
  func.func @transform_16(%arg0: i32) -> (i32, i32) {
    %c0_i32 = arith.constant 0 : i32
    %c0_i32_0 = arith.constant 0 : i32
    %c0_i32_1 = arith.constant 0 : i32
    return %c0_i32, %c0_i32_0 : i32, i32
  }
  func.func @transform_17(%arg0: i32) -> (i32, i32) {
    %c0_i32 = arith.constant 0 : i32
    %c0_i32_0 = arith.constant 0 : i32
    %c0_i32_1 = arith.constant 0 : i32
    return %c0_i32, %c0_i32_0 : i32, i32
  }
  func.func @transform_18(%arg0: i32) -> (i32, i32) {
    %c0_i32 = arith.constant 0 : i32
    %c0_i32_0 = arith.constant 0 : i32
    %c0_i32_1 = arith.constant 0 : i32
    return %c0_i32, %c0_i32_0 : i32, i32
  }
  func.func @transform_19(%arg0: i32) -> (i32, i32) {
    %c0_i32 = arith.constant 0 : i32
    %c0_i32_0 = arith.constant 0 : i32
    %c0_i32_1 = arith.constant 0 : i32
    return %c0_i32, %c0_i32_0 : i32, i32
  }
  func.func @transform_20(%arg0: i32) -> (i32, i32) {
    %c0_i32 = arith.constant 0 : i32
    %c0_i32_0 = arith.constant 0 : i32
    %c0_i32_1 = arith.constant 0 : i32
    return %c0_i32, %c0_i32_0 : i32, i32
  }
  func.func @transform_21(%arg0: i32) -> (i32, i32) {
    %c0_i32 = arith.constant 0 : i32
    %c0_i32_0 = arith.constant 0 : i32
    %c0_i32_1 = arith.constant 0 : i32
    return %c0_i32, %c0_i32_0 : i32, i32
  }
  func.func @transform_22(%arg0: i32) -> (i32, i32) {
    %c0_i32 = arith.constant 0 : i32
    %c0_i32_0 = arith.constant 0 : i32
    %c0_i32_1 = arith.constant 0 : i32
    return %c0_i32, %c0_i32_0 : i32, i32
  }
  func.func @transform_23(%arg0: i32) -> (i32, i32) {
    %c0_i32 = arith.constant 0 : i32
    %c0_i32_0 = arith.constant 0 : i32
    %c0_i32_1 = arith.constant 0 : i32
    return %c0_i32, %c0_i32_0 : i32, i32
  }
  func.func @transform_24(%arg0: i32) -> (i32, i32) {
    %c0_i32 = arith.constant 0 : i32
    %c0_i32_0 = arith.constant 0 : i32
    %c0_i32_1 = arith.constant 0 : i32
    return %c0_i32, %c0_i32_0 : i32, i32
  }
  func.func @transform_25(%arg0: i32) -> (i32, i32) {
    %c0_i32 = arith.constant 0 : i32
    %c0_i32_0 = arith.constant 0 : i32
    %c0_i32_1 = arith.constant 0 : i32
    return %c0_i32, %c0_i32_0 : i32, i32
  }
  func.func @transform_26(%arg0: i32) -> (i32, i32) {
    %c0_i32 = arith.constant 0 : i32
    %c0_i32_0 = arith.constant 0 : i32
    %c0_i32_1 = arith.constant 0 : i32
    return %c0_i32, %c0_i32_0 : i32, i32
  }
  func.func @transform_27(%arg0: i32) -> (i32, i32, i32) {
    %c0_i32 = arith.constant 0 : i32
    %c0_i32_0 = arith.constant 0 : i32
    %c0_i32_1 = arith.constant 0 : i32
    return %arg0, %c0_i32, %c0_i32_0 : i32, i32, i32
  }
}

</mosaic_0001>

<bundles_post_ra>
// kernel: e_content_forward.1
= control target key start
LH: loop header
LB: loop body
LE: loop exit
PB: predicated region body
PF: predicated region fallthrough
CT: control target
= control target key end

     0   :  { %s19804_s0 = inlined_call_operand.vmem [shape: bf16[2,256,72], index: 0, kind: input, shape index: {}]   ;;  %s19805_s1 = inlined_call_operand.vmem [shape: bf16[72,32], index: 1, kind: input, shape index: {}]   ;;  %s19806_s2 = inlined_call_operand.vmem [shape: f32[1,32], index: 2, kind: input, shape index: {}]   ;;  %s19807_s3 = inlined_call_operand.vmem [shape: bf16[288,32], index: 3, kind: input, shape index: {}]   ;;  %s19808_s4 = inlined_call_operand.vmem [shape: f32[1,32], index: 4, kind: input, shape index: {}]   ;;  %s19809_s5 = inlined_call_operand.vmem [shape: bf16[288,64], index: 5, kind: input, shape index: {}]   ;;  %s19810_s6 = inlined_call_operand.vmem [shape: f32[1,64], index: 6, kind: input, shape index: {}]   ;;  %s19811_s7 = inlined_call_operand.vmem [shape: bf16[32,64], index: 7, kind: input, shape index: {}]   ;;  %s19812_s8 = inlined_call_operand.vmem [shape: f32[1,64], index: 8, kind: input, shape index: {}]   ;;  %s19813_s9 = inlined_call_operand.vmem [shape: bf16[576,64], index: 9, kind: input, shape index: {}]   ;;  %s19814_s10 = inlined_call_operand.vmem [shape: f32[1,64], index: 10, kind: input, shape index: {}]   ;;  %s19815_s11 = inlined_call_operand.vmem [shape: bf16[576,96], index: 11, kind: input, shape index: {}]   ;;  %s19816_s12 = inlined_call_operand.vmem [shape: f32[1,96], index: 12, kind: input, shape index: {}]   ;;  %s19817_s13 = inlined_call_operand.vmem [shape: bf16[64,96], index: 13, kind: input, shape index: {}]   ;;  %s19818_s14 = inlined_call_operand.vmem [shape: f32[1,96], index: 14, kind: input, shape index: {}]   ;;  %s19819_s15 = inlined_call_operand.vmem [shape: bf16[864,96], index: 15, kind: input, shape index: {}]   ;;  %s19820_s16 = inlined_call_operand.vmem [shape: f32[1,96], index: 16, kind: input, shape index: {}]   ;;  %s19821_s17 = inlined_call_operand.vmem [shape: bf16[864,128], index: 17, kind: input, shape index: {}]   ;;  %s19822_s18 = inlined_call_operand.vmem [shape: f32[1,128], index: 18, kind: input, shape index: {}]   ;;  %s19823_s19 = inlined_call_operand.vmem [shape: bf16[96,128], index: 19, kind: input, shape index: {}]   ;;  %s19824_s20 = inlined_call_operand.vmem [shape: f32[1,128], index: 20, kind: input, shape index: {}]   ;;  %s19825_s21 = inlined_call_operand.vmem [shape: f32[128,64], index: 21, kind: input, shape index: {}]   ;;  %s19826_s22 = inlined_call_operand.vmem [shape: f32[1,64], index: 22, kind: input, shape index: {}]   ;;  %s19827_s23 = inlined_call_operand.vmem [shape: f32[64,32], index: 23, kind: input, shape index: {}]   ;;  %s19828_s24 = inlined_call_operand.vmem [shape: f32[1,32], index: 24, kind: input, shape index: {}]   ;;  %s19829_s25 = inlined_call_operand.vmem [shape: f32[32,128], index: 25, kind: input, shape index: {}]   ;;  %s19830_s26 = inlined_call_operand.vmem [shape: f32[1,128], index: 26, kind: input, shape index: {}]   ;;  %s19831_s27 = inlined_call_operand.hbm [shape: f32[2,1,128], index: 27, kind: output, shape index: {}]  }
   0x1   :  { %20028 = sst [smem:[#allocation59_spill]] %s19804_s0 }
   0x2   :  { %20029 = sst [smem:[#allocation60_spill]] %s19805_s1 }
   0x3   :  { %20030 = sst [smem:[#allocation61_spill]] %s19806_s2 }
   0x4   :  { %20031 = sst [smem:[#allocation62_spill]] %s19807_s3 }
   0x5   :  { %20032 = sst [smem:[#allocation63_spill]] %s19808_s4 }
   0x6   :  { %20033 = sst [smem:[#allocation64_spill]] %s19809_s5 }
   0x7   :  { %20034 = sst [smem:[#allocation65_spill]] %s19810_s6 }
   0x8   :  { %20035 = sst [smem:[#allocation66_spill]] %s19811_s7 }
   0x9   :  { %20036 = sst [smem:[#allocation67_spill]] %s19812_s8 }
   0xa   :  { %20037 = sst [smem:[#allocation68_spill]] %s19813_s9 }
   0xb   :  { %20038 = sst [smem:[#allocation69_spill]] %s19814_s10 }
   0xc   :  { %20039 = sst [smem:[#allocation70_spill]] %s19815_s11 }
   0xd   :  { %20040 = sst [smem:[#allocation71_spill]] %s19816_s12 }
   0xe   :  { %20041 = sst [smem:[#allocation72_spill]] %s19830_s26 }
   0xf   :  { %32 = vsyncpa [#allocation3], 0 }
  0x10   :  { %34 = vsyncpa [#allocation3 + $0x1], 0  ;;  %s13811_s7 = smov 0   ;;  %s13813_s4 = smov 0  }
  0x11   :  { %s13815_s8 = smov 0   ;;  %s13817_s30 = smov 0  }
  0x12 LB: > { %20042 = sst [smem:[#allocation5_spill]] %s13653_s7  ;;  %s13832_s9 = sadd.s32 4294967295, %s13665_s30   ;;  %s13665_s30 = sphi %s13817_s30, %s20561_s30   ;;  %s13661_s8 = sphi %s13815_s8, %s20563_s8   ;;  %s13657_s4 = sphi %s13813_s4, %s20565_s4   ;;  %s13653_s7 = sphi %s13811_s7, %s20564_s7  }
  0x13   : > { %20043 = sst [smem:[#allocation6_spill]] %s13661_s8  ;;  %s11818_s5 = sadd.s32 4294967294, %s13665_s30  }
  0x14   : > { %20044 = sst [smem:[#allocation7_spill]] %s13665_s30  ;;  %s13836_s28 = sadd.s32 1, %s13665_s30  }
  0x15   : > { %20045 = sst [smem:[#allocation8_spill]] %s13836_s28  ;;  %s619_s0 = sadd.s32 1, %s13661_s8 }
  0x16   : > { %s616_s10 = ssub.s32 %s13665_s30, %s13836_s28  ;;  %p629_p0 = scmp.ne.s32.totalorder %s13661_s8, %s13657_s4 }
  0x17   : > { %p617_p1 = scmp.eq.s32.totalorder %s616_s10, 0  ;;  %p630_p2 = scmp.eq.s32.totalorder %s13832_s9, 1 }
  0x18   : > { %p635_p3 = scmp.ne.s32.totalorder %s13657_s4, %s13653_s7  ;;  %p636_p4 = scmp.eq.s32.totalorder %s11818_s5, 1 }
  0x19   : > { %s13847_s29 = scalar_select %p617_p1, %s13661_s8, %s619_s0  }
  0x1a   : > { %p13849_p5 = por %p630_p2, %p629_p0  ;;  %p13853_p6 = por %p636_p4, %p635_p3 }
  0x1b   : > { %20046 = sst [smem:[#allocation9_spill]] %s13847_s29  ;;  %p11821_p7 = scmp.ge.s32.totalorder %s13665_s30, 1 }
  0x1c   : > { %s20048_s6 = scalar_select %p13853_p6, 1, 0 }
  0x1d   : > { %p740_p8 = scmp.lt.s32.totalorder %s13665_s30, 3 }
  0x1e   : > { %20049 = sst [smem:[#allocation10_spill]] %s20048_s6 }
  0x1f   : > { %p741_p9 = pnand %p11821_p7, %p740_p8 }
  0x21   : > { %744 = sbr.rel (%p741_p9) target bundleno = 3216 (0xc90), region = 128 }
  0x26   : > { %s20050_s3 = sld [smem:[#allocation60_spill]]  ;;  %vm19908_vm0 = vcmask 1043456   ;;  %p811_p10 = scmp.lt.s32.totalorder %s13832_s9, 1  ;;  %vm969_vm1 = vcmask 588800   ;;  %vm19961_vm4 = vcmask 1040384   ;;  %vm1885_vm6 = vcmask 1046528  }
  0x27   : > { %s20051_s30 = sld [smem:[#allocation59_spill]]  ;;  %vm1640_vm5 = vsmask.f32 256  ;;  %vm1674_vm9 = vsmask.f32 7424  ;;  %s19958_s5 = smov 96  }
  0x28   : > { %s812_s11 = scalar_select %p811_p10, %s13832_s9, 1  ;;  %vm13934_vm8 = vmand %vm19961_vm4, %vm1640_vm5  ;;  %vm20013_vm11 = vcmask 261120  }
  0x29   : > { %s20054_s10 = sld [smem:[#allocation62_spill]]  ;;  %s19935_s0 = smov 64  }
  0x2a   : > { %s13292_s28 = sshll.u32 %s812_s11, 7  ;;  %s19998_s7 = smov 32  }
  0x2b   : > { %s20144_s11 = sld [smem:[#allocation63_spill]]  ;;  %s20260_s2 = smov 64  }
  0x2c   : > { %v857_v0 = vld [vmem:[%s20050_s3 + $0x20] sm:$0xf]  ;;  %v13312_v4 = vld [vmem:[%s20050_s3 + $0x18] sm:$0xff]  ;;  %v13311_v5 = vld [vmem:[%s20050_s3 + $0x10] sm:$0xff]  ;;  %s20257_s8 = sld [smem:[#allocation66_spill]] }
  0x2d   : > { %v959_v1 = vunpack.c.l.b16 %v857_v0  ;;  %v13310_v6 = vld [vmem:[%s20050_s3 + $0x8] sm:$0xff]  ;;  %v13309_v7 = vld [vmem:[%s20050_s3] sm:$0xff]  ;;  %s13880_s26 = scalar_lea.vmem %s20051_s30, %s13292_s28  ;;  %s20052_s30 = sld [smem:[#allocation61_spill]] }
  0x2e   : > { %v13293_v8 = vld [vmem:[%s13880_s26] sm:$0xff]  ;;  %v13294_v9 = vld [vmem:[%s13880_s26 + $0x8] sm:$0xff]  ;;  %v13295_v10 = vld [vmem:[%s13880_s26 + $0x10] sm:$0xff]  ;;  %s20533_s12 = sld [smem:[#allocation71_spill]] }
  0x2f   : > { %v964_v2 = vpack.c.b16 %v959_v1, %v959_v1  ;;  %v13296_v11 = vld [vmem:[%s13880_s26 + $0x18] sm:$0xff]  ;;  %v13297_v12 = vld [vmem:[%s13880_s26 + $0x20] sm:$0xff]  ;;  %v13298_v13 = vld [vmem:[%s13880_s26 + $0x28] sm:$0xff]  ;;  %s20557_s6 = sld [smem:[#allocation72_spill]] }
  0x30   : > { %v13299_v14 = vld [vmem:[%s13880_s26 + $0x30] sm:$0xff]  ;;  %v13300_v15 = vld [vmem:[%s13880_s26 + $0x38] sm:$0xff]  ;;  %v13301_v17 = vld [vmem:[%s13880_s26 + $0x40] sm:$0xff] }
  0x31   : > { %v1020_v3 = vsel %vm19908_vm0, %v964_v2, 0  ;;  %v13330_v22 = vld [vmem:[%s20054_s10 + $0x88] sm:$0xff]  ;;  %v13329_v29 = vld [vmem:[%s20054_s10 + $0x80] sm:$0xff] }
  0x32   : > { %1025 = vmatpush.bf16.msra.mxu0 %v1020_v3  ;;  %2746 = vmatpush.bf16.msra.mxu3 %v13330_v22  ;;  %v13302_v44 = vld [vmem:[%s13880_s26 + $0x48] sm:$0xff]  ;;  %s20258_s29 = smov %s20257_s8 }
  0x33   : > { %s20053_s28 = smov %s20052_s30  ;;  %v13901_v16 = vld [vmem:[%s20052_s30] ss:$0 sm:$0xff]  ;;  %s20095_s30 = sld [smem:[#allocation64_spill]] }
  0x36   : > { %1026 = vmatpush.bf16.msra.mxu0 %v13312_v4  ;;  %2747 = vmatpush.bf16.msra.mxu3 %v13329_v29  ;;  %v20055_v4 = vmov 0 }
  0x37   : > { %v20056_v4 = vsel %vm13934_vm8, 4294967295, %v20055_v4 }
  0x38   : > { %20057 = vst [vmem:[#allocation11_spill] sm:$0xff] %v20056_v4 }
  0x3a   : > { %1027 = vmatpush.bf16.msra.mxu0 %v13311_v5 }
  0x3e   : > { %1028 = vmatpush.bf16.msra.mxu0 %v13310_v6 }
  0x42   : > { %1029 = vmatpush.bf16.msra.mxu0 %v13309_v7 }
  0x45   : > { %11904 = vmatmul.msk.bf16.vlgmr.msra.gmra.mxu0 %vm969_vm1, %v13293_v8 }
  0x55   : > { %11905 = vmatmul.msk.bf16.gmra.mxu0 %vm969_vm1, %v13294_v9 }
  0x65   : > { %11906 = vmatmul.msk.bf16.gmra.mxu0 %vm969_vm1, %v13295_v10 }
  0x75   : > { %11907 = vmatmul.msk.bf16.gmra.mxu0 %vm969_vm1, %v13296_v11 }
  0x85   : > { %11908 = vmatmul.msk.bf16.gmra.mxu0 %vm969_vm1, %v13297_v12 }
  0x95   : > { %11909 = vmatmul.msk.bf16.gmra.mxu0 %vm969_vm1, %v13298_v13 }
  0xa5   : > { %11910 = vmatmul.msk.bf16.gmra.mxu0 %vm969_vm1, %v13299_v14 }
  0xb5   : > { %11911 = vmatmul.msk.bf16.gmra.mxu0 %vm969_vm1, %v13300_v15 }
  0xc2   : > { %v1031_v18 = vpop.f32.mrf.mxu0 }
  0xc3   : > { %v1032_v19 = vadd.f32 %v13901_v16, %v1031_v18 }
  0xc5   : > { %11912 = vmatmul.msk.bf16.gmra.mxu0 %vm969_vm1, %v13301_v17  ;;  %vm1111_vm2 = vcmp.gt.f32.partialorder %v1032_v19, 0.0  ;;  %v1143_v20 = vmul.f32 0.2, %v1032_v19  ;;  %v5435_v24 = vrot.slane %v1032_v19, 2  ;;  %v5436_v25 = vrot.slane %v1032_v19, 4 }
  0xc6   : > { %v5437_v30 = vrot.slane %v1032_v19, 6  ;;  %v12224_v31 = vrot.slane %v1032_v19, 9 }
  0xc7   : > { %v1175_v21 = vsel %vm1111_vm2, %v1032_v19, %v1143_v20  ;;  %v12225_v33 = vrot.slane %v5435_v24, 9  ;;  %v12226_v34 = vrot.slane %v5436_v25, 9 }
  0xc8   : > { %v1207_v23 = vpack.c.bf16 %v1175_v21, %v1175_v21  ;;  %v12227_v39 = vrot.slane %v5437_v30, 9  ;;  %v6011_v43 = vadd.f32 %v12224_v31, %v1032_v19 }
  0xc9   : > { %v6012_v45 = vadd.f32 %v12225_v33, %v5435_v24  ;;  %v6013_v49 = vadd.f32 %v12226_v34, %v5436_v25 }
  0xca   : > { %v1033_v26 = vpop.f32.mrf.mxu0  ;;  %v1255_v28 = vunpack.c.l.b16 %v1207_v23  ;;  %v13924_v53 = vadd.f32 %v12227_v39, %v5437_v30 }
  0xcb   : > { %v13910_v27 = vadd.f32 %v13901_v16, %v1033_v26 }
  0xcc   : > { %v1271_v37 = vpack.c.b16 %v1255_v28, %v1255_v28 }
  0xcd   : > { %vm1112_vm3 = vcmp.gt.f32.partialorder %v13910_v27, 0.0  ;;  %v1144_v32 = vmul.f32 0.2, %v13910_v27  ;;  %v5438_v35 = vrot.slane %v13910_v27, 2  ;;  %v5439_v38 = vrot.slane %v13910_v27, 4 }
  0xce   : > { %v5440_v41 = vrot.slane %v13910_v27, 6  ;;  %v12228_v42 = vrot.slane %v13910_v27, 9  ;;  %v1288_v51 = vshrl.u32 %v1271_v37, 16 }
  0xcf   : > { %v1176_v36 = vsel %vm1112_vm3, %v13910_v27, %v1144_v32  ;;  %v12229_v48 = vrot.slane %v5438_v35, 9  ;;  %v12230_v52 = vrot.slane %v5439_v38, 9 }
  0xd0   : > { %v1208_v40 = vpack.c.bf16 %v1176_v36, %v1176_v36  ;;  %v12231_v56 = vrot.slane %v5440_v41, 9  ;;  %v13927_v57 = vadd.f32 %v12228_v42, %v13910_v27 }
  0xd1   : > { %v13930_v0 = vadd.f32 %v12229_v48, %v5438_v35  ;;  %v13940_v18 = vadd.f32 %v12230_v52, %v5439_v38 }
  0xd2   : > { %v1036_v46 = vpop.f32.mrf.mxu0  ;;  %v1367_v47 = vunpack.c.l.b16 %v1208_v40  ;;  %v13943_v23 = vadd.f32 %v12231_v56, %v5440_v41 }
  0xd3   : > { %v1037_v50 = vadd.f32 %v13901_v16, %v1036_v46 }
  0xd4   : > { %v1383_v54 = vpack.c.b16 %v1367_v47, %v1255_v28  ;;  %v1543_v55 = vpack.c.b16 %v1367_v47, %v1367_v47 }
  0xd5   : > { %v5441_v58 = vrot.slane %v1037_v50, 2  ;;  %v5442_v59 = vrot.slane %v1037_v50, 4  ;;  %v12232_v60 = vrot.slane %v1037_v50, 9  ;;  %11913 = vmatmul.msk.bf16.gmra.mxu0 %vm969_vm1, %v13302_v44  ;;  %vm1113_vm7 = vcmp.gt.f32.partialorder %v1037_v50, 0.0 }
  0xd6   : > { %v1400_v61 = vshrl.u32 %v1383_v54, 16  ;;  %v1560_v62 = vshll.u32 %v1543_v55, 16  ;;  %v1145_v63 = vmul.f32 0.2, %v1037_v50  ;;  %v5443_v5 = vrot.slane %v1037_v50, 6 }
  0xd7   : > { %v12233_v1 = vrot.slane %v5441_v58, 9  ;;  %v12234_v2 = vrot.slane %v5442_v59, 9  ;;  %v6019_v3 = vadd.f32 %v12232_v60, %v1037_v50  ;;  %v1403_v7 = vshll.u32 %v1383_v54, 16 }
  0xd8   : > { %v1402_v6 = vrot.slane %v1400_v61, 7  ;;  %v1562_v8 = vrot.slane %v1560_v62, 3  ;;  %v1177_v9 = vsel %vm1113_vm7, %v1037_v50, %v1145_v63  ;;  %v12235_v12 = vrot.slane %v5443_v5, 9 }
  0xd9   : > { %v6020_v10 = vadd.f32 %v12233_v1, %v5441_v58  ;;  %v1209_v11 = vpack.c.bf16 %v1177_v9, %v1177_v9  ;;  %v6021_v13 = vadd.f32 %v12234_v2, %v5442_v59  ;;  %v6139_v19 = vadd.f32 %v6019_v3, %v6011_v43  ;;  %v13303_v43 = vld [vmem:[%s13880_s26 + $0x50] sm:$0xff] }
  0xda   : > { %v1038_v14 = vpop.f32.mrf.mxu0  ;;  %v1405_v15 = vor.u32 %v1403_v7, %v1402_v6  ;;  %v1658_v17 = vsel %vm13934_vm8, %v1402_v6, %v1562_v8  ;;  %v6022_v31 = vadd.f32 %v12235_v12, %v5443_v5  ;;  %vm20022_vm7 = vcmask 1041409  }
  0xdb   : > { %v1039_v20 = vadd.f32 %v13901_v16, %v1038_v14  ;;  %v1890_v21 = vrot.slane %v1658_v17, 1  ;;  %v1256_v22 = vunpack.c.l.b16 %v1209_v11  ;;  %v1695_v25 = vshll.u32 %v1658_v17, 16 }
  0xdc   : > { %v13947_v24 = vsel %vm13934_vm8, %v1288_v51, %v1405_v15  ;;  %v6140_v26 = vadd.f32 %v6020_v10, %v6012_v45  ;;  %v13949_v27 = vadd.f32 %v6021_v13, %v6013_v49  ;;  %v6142_v52 = vadd.f32 %v6022_v31, %v13924_v53 }
  0xdd   : > { %2008 = vrot.lane.b32.xlu1 %v13947_v24, %s19958_s5  ;;  %v1889_v28 = vrot.slane %v13947_v24, 1  ;;  %v1688_v29 = vshrl.u32 %v13947_v24, 16  ;;  %v1690_v30 = vshll.u32 %v13947_v24, 16  ;;  %vm1114_vm10 = vcmp.gt.f32.partialorder %v1039_v20, 0.0 }
  0xde   : > { %v1146_v32 = vmul.f32 0.2, %v1039_v20  ;;  %v1272_v33 = vpack.c.b16 %v1256_v22, %v1256_v22  ;;  %v5444_v34 = vrot.slane %v1039_v20, 2  ;;  %v5445_v37 = vrot.slane %v1039_v20, 4 }
  0xdf   : > { %v13957_v35 = vsel %vm1885_vm6, %v1889_v28, %v1890_v21  ;;  %v1692_v36 = vrot.slane %v1690_v30, 1  ;;  %v5446_v38 = vrot.slane %v1039_v20, 6  ;;  %v1697_v39 = vrot.slane %v1695_v25, 1 }
  0xe0   : > { %1980 = vrot.lane.b32.xlu2 %v13957_v35, %s19935_s0  ;;  %v1178_v40 = vsel %vm1114_vm10, %v1039_v20, %v1146_v32  ;;  %v12236_v41 = vrot.slane %v1039_v20, 9  ;;  %v12237_v42 = vrot.slane %v5444_v34, 9  ;;  %v12238_v46 = vrot.slane %v5445_v37, 9 }
  0xe1   : > { %v1693_v44 = vor.u32 %v1692_v36, %v1688_v29  ;;  %v1210_v45 = vpack.c.bf16 %v1178_v40, %v1178_v40  ;;  %v12239_v47 = vrot.slane %v5446_v38, 9  ;;  %v1291_v49 = vshrl.u32 %v1272_v33, 16 }
  0xe2   : > { %v1041_v48 = vpop.f32.mrf.mxu0  ;;  %v6023_v50 = vadd.f32 %v12236_v41, %v1039_v20  ;;  %v6024_v51 = vadd.f32 %v12237_v42, %v5444_v34  ;;  %v13967_v58 = vmul.f32 0.25, %v6139_v19  ;;  %v6025_v59 = vadd.f32 %v12238_v46, %v5445_v37 }
  0xe3   : > { %v1042_v54 = vadd.f32 %v13901_v16, %v1041_v48  ;;  %v13965_v55 = vsel %vm1674_vm9, %v1693_v44, %v1697_v39  ;;  %v1368_v56 = vunpack.c.l.b16 %v1210_v45  ;;  %v6026_v60 = vadd.f32 %v12239_v47, %v5446_v38 }
  0xe4   : > { %v6143_v61 = vadd.f32 %v6023_v50, %v13927_v57  ;;  %v6144_v62 = vadd.f32 %v6024_v51, %v13930_v0  ;;  %v13974_v9 = vmul.f32 0.25, %v6140_v26  ;;  %v13992_v32 = vmul.f32 0.25, %v13949_v27 }
  0xe5   : > { %v5447_v63 = vrot.slane %v1042_v54, 2  ;;  %v5448_v1 = vrot.slane %v1042_v54, 4  ;;  %v12240_v2 = vrot.slane %v1042_v54, 9  ;;  %11914 = vmatmul.msk.bf16.gmra.mxu0 %vm969_vm1, %v13303_v43  ;;  %1950 = vrot.lane.b32.xlu1 %v13965_v55, %s19998_s7  ;;  %v1384_v53 = vpack.c.b16 %v1368_v56, %v1256_v22 }
  0xe6   : > { %v1544_v3 = vpack.c.b16 %v1368_v56, %v1368_v56  ;;  %vm1115_vm12 = vcmp.gt.f32.partialorder %v1042_v54, 0.0  ;;  %v1147_v5 = vmul.f32 0.2, %v1042_v54  ;;  %v5449_v6 = vrot.slane %v1042_v54, 6 }
  0xe7   : > { %v12241_v7 = vrot.slane %v5447_v63, 9  ;;  %v12242_v8 = vrot.slane %v5448_v1, 9  ;;  %v1407_v57 = vshrl.u32 %v1384_v53, 16  ;;  %v13976_v0 = vadd.f32 %v12240_v2, %v1042_v54 }
  0xe8   : > { %v1564_v10 = vshll.u32 %v1544_v3, 16  ;;  %v1179_v11 = vsel %vm1115_vm12, %v1042_v54, %v1147_v5  ;;  %v12243_v12 = vrot.slane %v5449_v6, 9  ;;  %v1410_v15 = vshll.u32 %v1384_v53, 16 }
  0xe9   : > { %v13978_v13 = vadd.f32 %v12241_v7, %v5447_v63  ;;  %v1409_v14 = vrot.slane %v1407_v57, 7  ;;  %v1211_v17 = vpack.c.bf16 %v1179_v11, %v1179_v11  ;;  %v13980_v21 = vadd.f32 %v12242_v8, %v5448_v1 }
  0xea   : > { %v1043_v19 = vpop.f32.mrf.mxu0  ;;  %v1566_v20 = vrot.slane %v1564_v10, 3  ;;  %v6145_v22 = vadd.f32 %v6025_v59, %v13940_v18  ;;  %v13984_v25 = vadd.f32 %v6026_v60, %v13943_v23  ;;  %v13987_v30 = vadd.f32 %v12243_v12, %v5449_v6 }
  0xeb   : > { %v1044_v26 = vadd.f32 %v13901_v16, %v1043_v19  ;;  %v1412_v28 = vor.u32 %v1410_v15, %v1409_v14  ;;  %v1257_v29 = vunpack.c.l.b16 %v1211_v17  ;;  %v13994_v33 = vmul.f32 0.25, %v6142_v52 }
  0xec   : > { %v1659_v31 = vsel %vm13934_vm8, %v1409_v14, %v1566_v20  ;;  %v13996_v34 = vmul.f32 0.25, %v6143_v61  ;;  %v14002_v36 = vmul.f32 0.25, %v6144_v62  ;;  %v14017_v2 = vmul.f32 0.25, %v6145_v22 }
  0xed   : > { %v14000_v18 = vsel %vm13934_vm8, %v1291_v49, %v1412_v28  ;;  %v1683_v23 = vshll.u32 %v1659_v31, 16  ;;  %vm1116_vm13 = vcmp.gt.f32.partialorder %v1044_v26, 0.0  ;;  %v1887_v37 = vrot.slane %v1659_v31, 1  ;;  %v13304_v49 = vld [vmem:[%s13880_s26 + $0x58] sm:$0xff] }
  0xee   : > { %2010 = vrot.lane.b32.xlu2 %v14000_v18, %s19958_s5  ;;  %2072 = vrot.lane.b32.xlu1 %v14000_v18, %s19935_s0  ;;  %v1886_v27 = vrot.slane %v14000_v18, 1  ;;  %v1678_v38 = vshll.u32 %v14000_v18, 16  ;;  %v1148_v39 = vmul.f32 0.2, %v1044_v26  ;;  %v1676_v40 = vshrl.u32 %v14000_v18, 16 }
  0xef   : > { %v1273_v41 = vpack.c.b16 %v1257_v29, %v1257_v29  ;;  %v5450_v42 = vrot.slane %v1044_v26, 2  ;;  %v5451_v43 = vrot.slane %v1044_v26, 4  ;;  %v5452_v47 = vrot.slane %v1044_v26, 6 }
  0xf0   : > { %v1888_v44 = vsel %vm1885_vm6, %v1886_v27, %v1887_v37  ;;  %v1680_v45 = vrot.slane %v1678_v38, 1  ;;  %v1180_v46 = vsel %vm1116_vm13, %v1044_v26, %v1148_v39  ;;  %v1685_v48 = vrot.slane %v1683_v23, 1 }
  0xf1   : > { %11992 = vmatmul.msk.bf16.vlgmr.msra.gmra.mxu3 %vm20013_vm11, %v1888_v44  ;;  %v1212_v50 = vpack.c.bf16 %v1180_v46, %v1180_v46  ;;  %v12244_v51 = vrot.slane %v1044_v26, 9  ;;  %v12245_v52 = vrot.slane %v5450_v42, 9  ;;  %v1294_v59 = vshrl.u32 %v1273_v41, 16 }
  0xf2   : > { %v1046_v54 = vpop.f32.mrf.mxu0  ;;  %v1681_v56 = vor.u32 %v1680_v45, %v1676_v40  ;;  %v12246_v60 = vrot.slane %v5451_v43, 9  ;;  %v12247_v61 = vrot.slane %v5452_v47, 9  ;;  %vm6471_vm12 = vcmask 1042434  }
  0xf3   : > { %v1047_v62 = vadd.f32 %v13901_v16, %v1046_v54  ;;  %v1369_v63 = vunpack.c.l.b16 %v1212_v50  ;;  %v14015_v1 = vadd.f32 %v12244_v51, %v1044_v26  ;;  %v14022_v3 = vadd.f32 %v12245_v52, %v5450_v42 }
  0xf4   : > { %v14020_v53 = vsel %vm1674_vm9, %v1681_v56, %v1685_v48  ;;  %v14024_v5 = vadd.f32 %v12246_v60, %v5451_v43  ;;  %v14026_v6 = vadd.f32 %v12247_v61, %v5452_v47  ;;  %v14036_v42 = vmul.f32 0.25, %v13984_v25 }
  0xf5   : > { %v5453_v7 = vrot.slane %v1047_v62, 2  ;;  %v5454_v8 = vrot.slane %v1047_v62, 4  ;;  %v12248_v57 = vrot.slane %v1047_v62, 9  ;;  %1948 = vrot.lane.b32.xlu0 %v14020_v53, %s19998_s7  ;;  %11915 = vmatmul.msk.bf16.gmra.mxu0 %vm969_vm1, %v13304_v49  ;;  %v1385_v10 = vpack.c.b16 %v1369_v63, %v1257_v29 }
  0xf6   : > { %2102 = vrot.lane.b32.xlu2 %v14020_v53, %s19958_s5  ;;  %2042 = vrot.lane.b32.xlu1 %v1888_v44, %s19998_s7  ;;  %v1545_v11 = vpack.c.b16 %v1369_v63, %v1369_v63  ;;  %vm1117_vm14 = vcmp.gt.f32.partialorder %v1047_v62, 0.0  ;;  %v1149_v12 = vmul.f32 0.2, %v1047_v62  ;;  %v5455_v14 = vrot.slane %v1047_v62, 6 }
  0xf7   : > { %v12249_v15 = vrot.slane %v5453_v7, 9  ;;  %v12250_v17 = vrot.slane %v5454_v8, 9  ;;  %v6035_v19 = vadd.f32 %v12248_v57, %v1047_v62  ;;  %v1414_v20 = vshrl.u32 %v1385_v10, 16 }
  0xf8   : > { %v1417_v22 = vshll.u32 %v1385_v10, 16  ;;  %v1568_v26 = vshll.u32 %v1545_v11, 16  ;;  %v1181_v28 = vsel %vm1117_vm14, %v1047_v62, %v1149_v12  ;;  %v12251_v31 = vrot.slane %v5455_v14, 9 }
  0xf9   : > { %v6036_v23 = vadd.f32 %v12249_v15, %v5453_v7  ;;  %v1416_v27 = vrot.slane %v1414_v20, 7  ;;  %v1213_v29 = vpack.c.bf16 %v1181_v28, %v1181_v28  ;;  %v6037_v37 = vadd.f32 %v12250_v17, %v5454_v8  ;;  %v13305_v8 = vld [vmem:[%s13880_s26 + $0x60] sm:$0xff] }
  0xfa   : > { %v1048_v38 = vpop.f32.mrf.mxu0  ;;  %v1570_v39 = vrot.slane %v1568_v26, 3  ;;  %v6038_v40 = vadd.f32 %v12251_v31, %v5455_v14  ;;  %v6147_v41 = vadd.f32 %v6035_v19, %v13976_v0  ;;  %v6267_v47 = vpack.c.bf16 %v13967_v58, %v13967_v58 }
  0xfb   : > { %v1049_v43 = vadd.f32 %v13901_v16, %v1048_v38  ;;  %v1419_v45 = vor.u32 %v1417_v22, %v1416_v27  ;;  %v6148_v46 = vadd.f32 %v6036_v23, %v13978_v13  ;;  %v1258_v49 = vunpack.c.l.b16 %v1213_v29 }
  0xfc   : > { %v1660_v48 = vsel %vm13934_vm8, %v1416_v27, %v1570_v39  ;;  %v6149_v50 = vadd.f32 %v6037_v37, %v13980_v21  ;;  %v6150_v51 = vadd.f32 %v6038_v40, %v13987_v30  ;;  %v14060_v12 = vmul.f32 0.25, %v6147_v41 }
  0xfd   : > { %1978 = vrot.lane.b32.xlu0 %v1888_v44, %s19935_s0  ;;  %v14049_v0 = vsel %vm13934_vm8, %v1294_v59, %v1419_v45  ;;  %v1893_v25 = vrot.slane %v1660_v48, 1  ;;  %v1707_v52 = vshll.u32 %v1660_v48, 16  ;;  %vm1118_vm15 = vcmp.gt.f32.partialorder %v1049_v43, 0.0 }
  0xfe   : > { %2074 = vrot.lane.b32.xlu2 %v14049_v0, %s19935_s0  ;;  %v1892_v13 = vrot.slane %v14049_v0, 1  ;;  %v1700_v54 = vshrl.u32 %v14049_v0, 16  ;;  %v1702_v21 = vshll.u32 %v14049_v0, 16  ;;  %v1150_v30 = vmul.f32 0.2, %v1049_v43 }
  0xff   : > { %v1709_v56 = vrot.slane %v1707_v52, 1  ;;  %v1274_v44 = vpack.c.b16 %v1258_v49, %v1258_v49  ;;  %v5456_v60 = vrot.slane %v1049_v43, 2  ;;  %v5457_v61 = vrot.slane %v1049_v43, 4 }
 0x100   : > { %v1894_v59 = vsel %vm1885_vm6, %v1892_v13, %v1893_v25  ;;  %v1704_v62 = vrot.slane %v1702_v21, 1  ;;  %v1182_v63 = vsel %vm1118_vm15, %v1049_v43, %v1150_v30  ;;  %v5458_v7 = vrot.slane %v1049_v43, 6 }
 0x101   : > { %11993 = vmatmul.msk.bf16.gmra.mxu3 %vm20013_vm11, %v1894_v59  ;;  %2044 = vrot.lane.b32.xlu1 %v1894_v59, %s19998_s7  ;;  %v1214_v57 = vpack.c.bf16 %v1182_v63, %v1182_v63  ;;  %v12252_v10 = vrot.slane %v1049_v43, 9  ;;  %v12253_v11 = vrot.slane %v5456_v60, 9  ;;  %v1297_v17 = vshrl.u32 %v1274_v44, 16 }
 0x102   : > { %v1051_v14 = vpop.f32.mrf.mxu0  ;;  %v1705_v15 = vor.u32 %v1704_v62, %v1700_v54  ;;  %v12254_v19 = vrot.slane %v5457_v61, 9  ;;  %v12255_v20 = vrot.slane %v5458_v7, 9  ;;  %v14068_v37 = vmul.f32 0.25, %v6148_v46 }
 0x103   : > { %v14063_v22 = vadd.f32 %v13901_v16, %v1051_v14  ;;  %v1370_v26 = vunpack.c.l.b16 %v1214_v57  ;;  %v6039_v28 = vadd.f32 %v12252_v10, %v1049_v43  ;;  %v6040_v31 = vadd.f32 %v12253_v11, %v5456_v60 }
 0x104   : > { %v14066_v23 = vsel %vm1674_vm9, %v1705_v15, %v1709_v56  ;;  %v6041_v27 = vadd.f32 %v12254_v19, %v5457_v61  ;;  %v6042_v29 = vadd.f32 %v12255_v20, %v5458_v7  ;;  %v14081_v13 = vmul.f32 0.25, %v6149_v50 }
 0x105   : > { %2040 = vrot.lane.b32.xlu0 %v13957_v35, %s19998_s7  ;;  %11916 = vmatmul.msk.bf16.gmra.mxu0 %vm969_vm1, %v13305_v8  ;;  %v1386_v38 = vpack.c.b16 %v1370_v26, %v1258_v49  ;;  %v1546_v39 = vpack.c.b16 %v1370_v26, %v1370_v26  ;;  %vm1119_vm2 = vcmp.gt.f32.partialorder %v14063_v22, 0.0  ;;  %v1151_v40 = vmul.f32 0.2, %v14063_v22 }
 0x106   : > { %1982 = vrot.lane.b32.xlu2 %v1894_v59, %s19935_s0  ;;  %v6151_v41 = vadd.f32 %v6039_v28, %v14015_v1  ;;  %v6152_v43 = vadd.f32 %v6040_v31, %v14022_v3  ;;  %v6153_v45 = vadd.f32 %v6041_v27, %v14024_v5  ;;  %v6154_v46 = vadd.f32 %v6042_v29, %v14026_v6 }
 0x107   : > { %v1421_v48 = vshrl.u32 %v1386_v38, 16  ;;  %v1424_v35 = vshll.u32 %v1386_v38, 16  ;;  %v1572_v25 = vshll.u32 %v1546_v39, 16  ;;  %v1183_v49 = vsel %vm1119_vm2, %v14063_v22, %v1151_v40  ;;  %v13306_v39 = vld [vmem:[%s13880_s26 + $0x68] sm:$0xff] }
 0x108   : > { %v1215_v52 = vpack.c.bf16 %v1183_v49, %v1183_v49  ;;  %v14083_v54 = vmul.f32 0.25, %v6150_v51  ;;  %v14085_v21 = vmul.f32 0.25, %v6151_v41  ;;  %v14089_v5 = vmul.f32 0.25, %v6152_v43 }
 0x109   : > { %1952 = vrot.lane.b32.xlu1 %v14066_v23, %s19998_s7  ;;  %v1423_v1 = vrot.slane %v1421_v48, 7  ;;  %v1574_v3 = vrot.slane %v1572_v25, 3  ;;  %v14091_v6 = vmul.f32 0.25, %v6153_v45  ;;  %v14093_v44 = vmul.f32 0.25, %v6154_v46 }
 0x10a   : > { %v1053_v30 = vpop.f32.mrf.mxu0  ;;  %v1259_v56 = vunpack.c.l.b16 %v1215_v52  ;;  %v6268_v50 = vpack.c.bf16 %v13974_v9, %v13974_v9  ;;  %v6269_v51 = vpack.c.bf16 %v13992_v32, %v13992_v32  ;;  %v6270_v62 = vpack.c.bf16 %v13994_v33, %v13994_v33 }
 0x10b   : > { %v14100_v60 = vadd.f32 %v13901_v16, %v1053_v30  ;;  %v1426_v61 = vor.u32 %v1424_v35, %v1423_v1  ;;  %v1661_v59 = vsel %vm13934_vm8, %v1423_v1, %v1574_v3  ;;  %v6271_v57 = vpack.c.bf16 %v13996_v34, %v13996_v34 }
 0x10c   : > { %v1896_v63 = vrot.slane %v1661_v59, 1  ;;  %v1719_v7 = vshll.u32 %v1661_v59, 16  ;;  %v1275_v8 = vpack.c.b16 %v1259_v56, %v1259_v56  ;;  %v6272_v33 = vpack.c.bf16 %v14002_v36, %v14002_v36 }
 0x10d   : > { %2012 = vrot.lane.b32.xlu0 %v14049_v0, %s19958_s5  ;;  %v14112_v9 = vsel %vm13934_vm8, %v1297_v17, %v1426_v61  ;;  %vm1120_vm3 = vcmp.gt.f32.partialorder %v14100_v60, 0.0  ;;  %v1152_v32 = vmul.f32 0.2, %v14100_v60  ;;  %v6273_v14 = vpack.c.bf16 %v14017_v2, %v14017_v2 }
 0x10e   : > { %v1895_v10 = vrot.slane %v14112_v9, 1  ;;  %v1712_v11 = vshrl.u32 %v14112_v9, 16  ;;  %v1714_v34 = vshll.u32 %v14112_v9, 16  ;;  %v1721_v15 = vrot.slane %v1719_v7, 1 }
 0x10f   : > { %v1184_v17 = vsel %vm1120_vm3, %v14100_v60, %v1152_v32  ;;  %v6274_v19 = vpack.c.bf16 %v14036_v42, %v14036_v42  ;;  %v6275_v20 = vpack.c.bf16 %v14060_v12, %v14060_v12  ;;  %v6276_v31 = vpack.c.bf16 %v14068_v37, %v14068_v37 }
 0x110   : > { %v1897_v36 = vsel %vm1885_vm6, %v1895_v10, %v1896_v63  ;;  %v1716_v26 = vrot.slane %v1714_v34, 1  ;;  %v1216_v28 = vpack.c.bf16 %v1184_v17, %v1184_v17  ;;  %v1300_v2 = vshrl.u32 %v1275_v8, 16 }
 0x111   : > { %1984 = vrot.lane.b32.xlu1 %v1897_v36, %s19935_s0  ;;  %11994 = vmatmul.msk.bf16.gmra.mxu3 %vm20013_vm11, %v1897_v36  ;;  %v6277_v27 = vpack.c.bf16 %v14081_v13, %v14081_v13  ;;  %v6278_v42 = vpack.c.bf16 %v14083_v54, %v14083_v54  ;;  %v6279_v12 = vpack.c.bf16 %v14085_v21, %v14085_v21  ;;  %v6403_v41 = vunpack.c.l.b16 %v6267_v47 }
 0x112   : > { %v1056_v29 = vpop.f32.mrf.mxu0  ;;  %v1717_v38 = vor.u32 %v1716_v26, %v1712_v11  ;;  %v1371_v40 = vunpack.c.l.b16 %v1216_v28  ;;  %v6280_v37 = vpack.c.bf16 %v14089_v5, %v14089_v5  ;;  %v6281_v45 = vpack.c.bf16 %v14091_v6, %v14091_v6 }
 0x113   : > { %v14146_v43 = vadd.f32 %v13901_v16, %v1056_v29  ;;  %v6282_v46 = vpack.c.bf16 %v14093_v44, %v14093_v44  ;;  %v6404_v48 = vunpack.c.l.b16 %v6268_v50  ;;  %v6405_v52 = vunpack.c.l.b16 %v6269_v51 }
 0x114   : > { %v14153_v35 = vsel %vm1674_vm9, %v1717_v38, %v1721_v15  ;;  %v1387_v25 = vpack.c.b16 %v1371_v40, %v1259_v56  ;;  %v1547_v49 = vpack.c.b16 %v1371_v40, %v1371_v40  ;;  %v6406_v47 = vunpack.c.l.b16 %v6270_v62 }
 0x115   : > { %2104 = vrot.lane.b32.xlu0 %v14066_v23, %s19958_s5  ;;  %1954 = vrot.lane.b32.xlu2 %v14153_v35, %s19998_s7  ;;  %vm1121_vm5 = vcmp.gt.f32.partialorder %v14146_v43, 0.0  ;;  %v1153_v58 = vmul.f32 0.2, %v14146_v43  ;;  %v6407_v13 = vunpack.c.l.b16 %v6271_v57  ;;  %v14162_v3 = vunpack.c.l.b16 %v6272_v33 }
 0x116   : > { %11917 = vmatmul.msk.bf16.gmra.mxu0 %vm969_vm1, %v13306_v39  ;;  %v1428_v54 = vshrl.u32 %v1387_v25, 16  ;;  %v1431_v21 = vshll.u32 %v1387_v25, 16  ;;  %v1576_v1 = vshll.u32 %v1547_v49, 16  ;;  %v14165_v6 = vunpack.c.l.b16 %v6273_v14  ;;  %v13307_v25 = vld [vmem:[%s13880_s26 + $0x70] sm:$0xff] }
 0x117   : > { %v1185_v5 = vsel %vm1121_vm5, %v14146_v43, %v1153_v58  ;;  %v14167_v30 = vunpack.c.l.b16 %v6274_v19  ;;  %v14169_v56 = vunpack.c.l.b16 %v6275_v20  ;;  %v14171_v61 = vunpack.c.l.b16 %v6276_v31 }
 0x118   : > { %v1430_v44 = vrot.slane %v1428_v54, 7  ;;  %v1578_v50 = vrot.slane %v1576_v1, 3  ;;  %v1217_v51 = vpack.c.bf16 %v1185_v5, %v1185_v5  ;;  %v14174_v59 = vunpack.c.l.b16 %v6277_v27 }
 0x119   : > { %2046 = vrot.lane.b32.xlu1 %v1897_v36, %s19998_s7  ;;  %v14176_v62 = vunpack.c.l.b16 %v6278_v42  ;;  %v6467_v63 = vrot.slane %v6404_v48, 7  ;;  %v6470_v33 = vrot.slane %v6405_v52, 6  ;;  %v14192_v19 = vunpack.c.l.b16 %v6279_v12 }
 0x11a   : > { %v1058_v7 = vpop.f32.mrf.mxu0  ;;  %v1433_v8 = vor.u32 %v1431_v21, %v1430_v44  ;;  %v1662_v57 = vsel %vm13934_vm8, %v1430_v44, %v1578_v50  ;;  %v14180_v32 = vunpack.c.l.b16 %v1217_v51  ;;  %v14194_v20 = vunpack.c.l.b16 %v6280_v37 }
 0x11b   : > { %v14183_v10 = vadd.f32 %v13901_v16, %v1058_v7  ;;  %v1899_v11 = vrot.slane %v1662_v57, 1  ;;  %v1731_v34 = vshll.u32 %v1662_v57, 16  ;;  %v6469_v14 = vsel %vm20022_vm7, %v6467_v63, %v6403_v41 }
 0x11c   : > { %v14188_v15 = vsel %vm13934_vm8, %v1300_v2, %v1433_v8  ;;  %v1276_v17 = vpack.c.b16 %v14180_v32, %v14180_v32  ;;  %v14203_v31 = vunpack.c.l.b16 %v6281_v45  ;;  %v14207_v42 = vunpack.c.l.b16 %v6282_v46 }
 0x11d   : > { %2014 = vrot.lane.b32.xlu0 %v14112_v9, %s19958_s5  ;;  %2106 = vrot.lane.b32.xlu2 %v14153_v35, %s19958_s5  ;;  %v1898_v36 = vrot.slane %v14188_v15, 1  ;;  %v1724_v26 = vshrl.u32 %v14188_v15, 16  ;;  %v1726_v28 = vshll.u32 %v14188_v15, 16  ;;  %v1733_v2 = vrot.slane %v1731_v34, 1 }
 0x11e   : > { %vm1122_vm10 = vcmp.gt.f32.partialorder %v14183_v10, 0.0  ;;  %v1154_v27 = vmul.f32 0.2, %v14183_v10  ;;  %v6473_v38 = vrot.slane %v6406_v47, 5  ;;  %v6472_v40 = vsel %vm6471_vm12, %v6470_v33, %v6469_v14 }
 0x11f   : > { %v1900_v12 = vsel %vm1885_vm6, %v1898_v36, %v1899_v11  ;;  %v1728_v29 = vrot.slane %v1726_v28, 1  ;;  %vm6474_vm13 = vcmask 1043459   ;;  %v6476_v37 = vrot.slane %v6407_v13, 4 }
 0x120   : > { %v1186_v39 = vsel %vm1122_vm10, %v14183_v10, %v1154_v27  ;;  %v6475_v46 = vsel %vm6474_vm13, %v6473_v38, %v6472_v40  ;;  %vm6477_vm14 = vcmask 1044484   ;;  %v6479_v52 = vrot.slane %v14162_v3, 3 }
 0x121   : > { %1986 = vrot.lane.b32.xlu1 %v1900_v12, %s19935_s0  ;;  %v1729_v41 = vor.u32 %v1728_v29, %v1724_v26  ;;  %v1218_v45 = vpack.c.bf16 %v1186_v39, %v1186_v39  ;;  %11995 = vmatmul.msk.bf16.gmra.mxu3 %vm20013_vm11, %v1900_v12  ;;  %v6478_v49 = vsel %vm6477_vm14, %v6476_v37, %v6475_v46  ;;  %vm6480_vm15 = vcmask 1045509  }
 0x122   : > { %v1061_v48 = vpop.f32.mrf.mxu0  ;;  %v6482_v58 = vrot.slane %v14165_v6, 2  ;;  %vm19963_vm2 = vcmask 1046534   ;;  %v6481_v21 = vsel %vm6480_vm15, %v6479_v52, %v6478_v49  ;;  %v6485_v1 = vrot.slane %v14167_v30, 1 }
 0x123   : > { %v14220_v47 = vadd.f32 %v13901_v16, %v1061_v48  ;;  %v14223_v13 = vsel %vm1674_vm9, %v1729_v41, %v1733_v2  ;;  %v1372_v54 = vunpack.c.l.b16 %v1218_v45  ;;  %vm19962_vm3 = vcmask 1047559  }
 0x124   : > { %v6488_v5 = vrot.slane %v14171_v61, 7  ;;  %v6484_v30 = vsel %vm19963_vm2, %v6482_v58, %v6481_v21  ;;  %v6490_v51 = vrot.slane %v14174_v59, 6  ;;  %v6492_v61 = vrot.slane %v14176_v62, 5 }
 0x125   : > { %2076 = vrot.lane.b32.xlu0 %v14112_v9, %s19935_s0  ;;  %1956 = vrot.lane.b32.xlu2 %v14223_v13, %s19998_s7  ;;  %v1388_v3 = vpack.c.b16 %v1372_v54, %v14180_v32  ;;  %v1548_v6 = vpack.c.b16 %v1372_v54, %v1372_v54  ;;  %vm1123_vm5 = vcmp.gt.f32.partialorder %v14220_v47, 0.0  ;;  %v1155_v44 = vmul.f32 0.2, %v14220_v47 }
 0x126   : > { %11918 = vmatmul.msk.bf16.gmra.mxu0 %vm969_vm1, %v13307_v25  ;;  %v6489_v50 = vsel %vm20022_vm7, %v6488_v5, %v14169_v56  ;;  %v1303_v32 = vshrl.u32 %v1276_v17, 16  ;;  %v14243_v33 = vsel %vm19962_vm3, %v6485_v1, %v6484_v30  ;;  %v6494_v34 = vrot.slane %v14192_v19, 4 }
 0x127   : > { %v1435_v63 = vshrl.u32 %v1388_v3, 16  ;;  %v1438_v7 = vshll.u32 %v1388_v3, 16  ;;  %v1580_v8 = vshll.u32 %v1548_v6, 16  ;;  %v1187_v57 = vsel %vm1123_vm5, %v14220_v47, %v1155_v44  ;;  %20058 = vst [vmem:[#allocation12_spill] sm:$0xff] %v14243_v33  ;;  %v13308_v3 = vld [vmem:[%s13880_s26 + $0x78] sm:$0xff]  ;;  %s20096_s26 = smov %s20095_s30 }
 0x128   : > { %v6491_v11 = vsel %vm6471_vm12, %v6490_v51, %v6489_v50  ;;  %v6496_v62 = vrot.slane %v14194_v20, 3  ;;  %v1219_v26 = vpack.c.bf16 %v1187_v57, %v1187_v57  ;;  %v6498_v17 = vrot.slane %v14203_v31, 2  ;;  %v13320_v6 = vld [vmem:[%s20054_s10 + $0x38] sm:$0xff] }
 0x129   : > { %2048 = vrot.lane.b32.xlu1 %v1900_v12, %s19998_s7  ;;  %v1437_v56 = vrot.slane %v1435_v63, 7  ;;  %v1582_v14 = vrot.slane %v1580_v8, 3  ;;  %v6493_v59 = vsel %vm6474_vm13, %v6492_v61, %v6491_v11  ;;  %v6500_v2 = vrot.slane %v14207_v42, 1  ;;  %2562 = vmatpush.bf16.msra.mxu1 %v13320_v6  ;;  %v13319_v63 = vld [vmem:[%s20054_s10 + $0x30] sm:$0xff] }
 0x12a   : > { %v1063_v36 = vpop.f32.mrf.mxu0  ;;  %v6495_v28 = vsel %vm6477_vm14, %v6494_v34, %v6493_v59  ;;  %v1261_v48 = vunpack.c.l.b16 %v1219_v26  ;;  %v13318_v26 = vld [vmem:[%s20054_s10 + $0x28] sm:$0xff] }
 0x12b   : > { %v14254_v27 = vadd.f32 %v13901_v16, %v1063_v36  ;;  %v1440_v19 = vor.u32 %v1438_v7, %v1437_v56  ;;  %v1663_v12 = vsel %vm13934_vm8, %v1437_v56, %v1582_v14  ;;  %v6497_v29 = vsel %vm6480_vm15, %v6496_v62, %v6495_v28 }
 0x12c   : > { %v1902_v38 = vrot.slane %v1663_v12, 1  ;;  %v1743_v39 = vshll.u32 %v1663_v12, 16  ;;  %v6499_v20 = vsel %vm19963_vm2, %v6498_v17, %v6497_v29  ;;  %v1277_v50 = vpack.c.b16 %v1261_v48, %v1261_v48 }
 0x12d   : > { %2016 = vrot.lane.b32.xlu0 %v14188_v15, %s19958_s5  ;;  %2108 = vrot.lane.b32.xlu2 %v14223_v13, %s19958_s5  ;;  %v14266_v31 = vsel %vm13934_vm8, %v1303_v32, %v1440_v19  ;;  %vm1124_vm10 = vcmp.gt.f32.partialorder %v14254_v27, 0.0  ;;  %v1156_v42 = vmul.f32 0.2, %v14254_v27  ;;  %v14271_v40 = vsel %vm19962_vm3, %v6500_v2, %v6499_v20  ;;  %v13328_v19 = vld [vmem:[%s20054_s10 + $0x78] sm:$0xff]  ;;  %v13317_v20 = vld [vmem:[%s20054_s10 + $0x20] sm:$0xff] }
 0x12e   : > { %20059 = vst [vmem:[#allocation13_spill] sm:$0xff] %v14271_v40  ;;  %v1901_v37 = vrot.slane %v14266_v31, 1  ;;  %v1736_v41 = vshrl.u32 %v14266_v31, 16  ;;  %v1738_v45 = vshll.u32 %v14266_v31, 16  ;;  %v1745_v58 = vrot.slane %v1743_v39, 1  ;;  %2563 = vmatpush.bf16.msra.mxu1 %v13319_v63  ;;  %2651 = vmatpush.bf16.msra.mxu2 %v13328_v19 }
 0x12f   : > { %v1188_v46 = vsel %vm1124_vm10, %v14254_v27, %v1156_v42  ;;  %v1306_v11 = vshrl.u32 %v1277_v50, 16 }
 0x130   : > { %v1903_v49 = vsel %vm1885_vm6, %v1901_v37, %v1902_v38  ;;  %v1740_v52 = vrot.slane %v1738_v45, 1  ;;  %v1220_v54 = vpack.c.bf16 %v1188_v46, %v1188_v46  ;;  %v13327_v37 = vld [vmem:[%s20054_s10 + $0x70] sm:$0xff] }
 0x131   : > { %1988 = vrot.lane.b32.xlu1 %v1903_v49, %s19935_s0  ;;  %11996 = vmatmul.msk.bf16.gmra.mxu3 %vm20013_vm11, %v1903_v49 }
 0x132   : > { %v1066_v21 = vpop.f32.mrf.mxu0  ;;  %v1741_v1 = vor.u32 %v1740_v52, %v1736_v41  ;;  %v1373_v5 = vunpack.c.l.b16 %v1220_v54  ;;  %2564 = vmatpush.bf16.msra.mxu1 %v13318_v26  ;;  %2652 = vmatpush.bf16.msra.mxu2 %v13327_v37 }
 0x133   : > { %v14287_v44 = vadd.f32 %v13901_v16, %v1066_v21 }
 0x134   : > { %v14290_v30 = vsel %vm1674_vm9, %v1741_v1, %v1745_v58  ;;  %v1389_v51 = vpack.c.b16 %v1373_v5, %v1261_v48  ;;  %v1549_v61 = vpack.c.b16 %v1373_v5, %v1373_v5  ;;  %v13316_v1 = vld [vmem:[%s20054_s10 + $0x18] sm:$0xff]  ;;  %v14346_v5 = vld [vmem:[%s20053_s28] ss:$0 sm:$0xff] }
 0x135   : > { %2078 = vrot.lane.b32.xlu0 %v14188_v15, %s19935_s0  ;;  %1958 = vrot.lane.b32.xlu2 %v14290_v30, %s19998_s7  ;;  %v1157_v32 = vmul.f32 0.2, %v14287_v44  ;;  %vm1125_vm5 = vcmp.gt.f32.partialorder %v14287_v44, 0.0 }
 0x136   : > { %v1442_v7 = vshrl.u32 %v1389_v51, 16  ;;  %v1445_v8 = vshll.u32 %v1389_v51, 16  ;;  %v1584_v57 = vshll.u32 %v1549_v61, 16  ;;  %11919 = vmatmul.msk.bf16.gmra.mxu0 %vm969_vm1, %v13308_v3  ;;  %2565 = vmatpush.bf16.msra.mxu1 %v13317_v20  ;;  %v13326_v51 = vld [vmem:[%s20054_s10 + $0x68] sm:$0xff] }
 0x137   : > { %v1189_v36 = vsel %vm1125_vm5, %v14287_v44, %v1157_v32  ;;  %2653 = vmatpush.bf16.msra.mxu2 %v13326_v51 }
 0x138   : > { %v1444_v34 = vrot.slane %v1442_v7, 7  ;;  %v1586_v56 = vrot.slane %v1584_v57, 3  ;;  %v1221_v39 = vpack.c.bf16 %v1189_v36, %v1189_v36  ;;  %v13315_v57 = vld [vmem:[%s20054_s10 + $0x10] sm:$0xff] }
 0x139   : > { %2050 = vrot.lane.b32.xlu1 %v1903_v49, %s19998_s7 }
 0x13a   : > { %v1068_v14 = vpop.f32.mrf.mxu0  ;;  %v1447_v59 = vor.u32 %v1445_v8, %v1444_v34  ;;  %v1664_v62 = vsel %vm13934_vm8, %v1444_v34, %v1586_v56  ;;  %v14336_v49 = vpop.permute.xlu2 %1980  ;;  %v1262_v54 = vunpack.c.l.b16 %v1221_v39  ;;  %2566 = vmatpush.bf16.msra.mxu1 %v13316_v1  ;;  %v13325_v56 = vld [vmem:[%s20054_s10 + $0x60] sm:$0xff]  ;;  %v13324_v39 = vld [vmem:[%s20054_s10 + $0x58] sm:$0xff]  ;;  %v13323_v1 = vld [vmem:[%s20054_s10 + $0x50] sm:$0xff] }
 0x13b   : > { %v14310_v28 = vadd.f32 %v13901_v16, %v1068_v14  ;;  %v1905_v17 = vrot.slane %v1664_v62, 1  ;;  %v1755_v2 = vshll.u32 %v1664_v62, 16  ;;  %2654 = vmatpush.bf16.msra.mxu2 %v13325_v56 }
 0x13c   : > { %v14317_v12 = vsel %vm13934_vm8, %v1306_v11, %v1447_v59  ;;  %v1278_v61 = vpack.c.b16 %v1262_v54, %v1262_v54 }
 0x13d   : > { %2018 = vrot.lane.b32.xlu0 %v14266_v31, %s19958_s5  ;;  %2110 = vrot.lane.b32.xlu2 %v14290_v30, %s19958_s5  ;;  %v1904_v16 = vrot.slane %v14317_v12, 1  ;;  %v1748_v29 = vshrl.u32 %v14317_v12, 16  ;;  %v1750_v38 = vshll.u32 %v14317_v12, 16  ;;  %vm1126_vm1 = vcmp.gt.f32.partialorder %v14310_v28, 0.0 }
 0x13e   : > { %v1158_v42 = vmul.f32 0.2, %v14310_v28  ;;  %v1757_v46 = vrot.slane %v1755_v2, 1  ;;  %2567 = vmatpush.bf16.msra.mxu1 %v13315_v57  ;;  %v1309_v62 = vshrl.u32 %v1278_v61, 16  ;;  %v13314_v2 = vld [vmem:[%s20054_s10 + $0x8] sm:$0xff] }
 0x13f   : > { %v1906_v41 = vsel %vm1885_vm6, %v1904_v16, %v1905_v17  ;;  %v1752_v45 = vrot.slane %v1750_v38, 1  ;;  %2655 = vmatpush.bf16.msra.mxu2 %v13324_v39 }
 0x140   : > { %v1190_v48 = vsel %vm1126_vm1, %v14310_v28, %v1158_v42 }
 0x141   : > { %1990 = vrot.lane.b32.xlu1 %v1906_v41, %s19935_s0  ;;  %v1753_v52 = vor.u32 %v1752_v45, %v1748_v29  ;;  %v1222_v58 = vpack.c.bf16 %v1190_v48, %v1190_v48  ;;  %11997 = vmatmul.msk.bf16.gmra.mxu3 %vm20013_vm11, %v1906_v41  ;;  %v13313_v45 = vld [vmem:[%s20054_s10] sm:$0xff] }
 0x142   : > { %v1071_v21 = vpop.f32.mrf.mxu0  ;;  %2568 = vmatpush.bf16.msra.mxu1 %v13314_v2 }
 0x143   : > { %v14349_v3 = vadd.f32 %v14346_v5, %v1071_v21  ;;  %v14352_v6 = vsel %vm1674_vm9, %v1753_v52, %v1757_v46  ;;  %v1374_v50 = vunpack.c.l.b16 %v1222_v58  ;;  %2656 = vmatpush.bf16.msra.mxu2 %v13323_v1 }
 0x145   : > { %20060 = vst [vmem:[#allocation14_spill] sm:$0xff] %v14349_v3  ;;  %2080 = vrot.lane.b32.xlu0 %v14266_v31, %s19935_s0  ;;  %1960 = vrot.lane.b32.xlu2 %v14352_v6, %s19998_s7  ;;  %v1390_v63 = vpack.c.b16 %v1374_v50, %v1262_v54  ;;  %v1550_v7 = vpack.c.b16 %v1374_v50, %v1374_v50  ;;  %vm1127_vm10 = vcmp.gt.f32.partialorder %v14349_v3, 0.0  ;;  %v1159_v8 = vmul.f32 0.2, %v14349_v3 }
 0x146   : > { %2569 = vmatpush.bf16.msra.mxu1 %v13313_v45 }
 0x147   : > { %v1449_v32 = vshrl.u32 %v1390_v63, 16  ;;  %v1452_v11 = vshll.u32 %v1390_v63, 16  ;;  %v1588_v34 = vshll.u32 %v1550_v7, 16  ;;  %v1191_v14 = vsel %vm1127_vm10, %v14349_v3, %v1159_v8 }
 0x148   : > { %v14370_v59 = vpop.permute.xlu2 %2010  ;;  %v1223_v38 = vpack.c.bf16 %v1191_v14, %v1191_v14  ;;  %v20118_v3 = vrot.slane %v14287_v44, 6 }
 0x149   : > { %2052 = vrot.lane.b32.xlu1 %v1906_v41, %s19998_s7  ;;  %v1451_v36 = vrot.slane %v1449_v32, 7  ;;  %v1590_v26 = vrot.slane %v1588_v34, 3  ;;  %v13322_v34 = vld [vmem:[%s20054_s10 + $0x48] sm:$0xff] }
 0x14a   : > { %v1073_v17 = vpop.f32.mrf.mxu0  ;;  %v1263_v21 = vunpack.c.l.b16 %v1223_v38  ;;  %2657 = vmatpush.bf16.msra.mxu2 %v13322_v34  ;;  %v13321_v38 = vld [vmem:[%s20054_s10 + $0x40] sm:$0xff] }
 0x14b   : > { %v14377_v19 = vadd.f32 %v14346_v5, %v1073_v17  ;;  %v1454_v16 = vor.u32 %v1452_v11, %v1451_v36  ;;  %v1665_v29 = vsel %vm13934_vm8, %v1451_v36, %v1590_v26 }
 0x14c   : > { %v1908_v20 = vrot.slane %v1665_v29, 1  ;;  %v1767_v42 = vshll.u32 %v1665_v29, 16  ;;  %v1279_v14 = vpack.c.b16 %v1263_v21, %v1263_v21 }
 0x14d   : > { %20061 = vst [vmem:[#allocation15_spill] sm:$0xff] %v14377_v19  ;;  %2020 = vrot.lane.b32.xlu0 %v14317_v12, %s19958_s5  ;;  %2112 = vrot.lane.b32.xlu2 %v14352_v6, %s19958_s5  ;;  %v14390_v37 = vsel %vm13934_vm8, %v1309_v62, %v1454_v16  ;;  %vm1128_vm5 = vcmp.gt.f32.partialorder %v14377_v19, 0.0  ;;  %v1160_v41 = vmul.f32 0.2, %v14377_v19 }
 0x14e   : > { %v1907_v46 = vrot.slane %v14390_v37, 1  ;;  %v1760_v48 = vshrl.u32 %v14390_v37, 16  ;;  %v1762_v52 = vshll.u32 %v14390_v37, 16  ;;  %v1769_v61 = vrot.slane %v1767_v42, 1  ;;  %2658 = vmatpush.bf16.msra.mxu2 %v13321_v38 }
 0x14f   : > { %v14400_v58 = vpop.permute.xlu1 %2008  ;;  %v1192_v54 = vsel %vm1128_vm5, %v14377_v19, %v1160_v41  ;;  %v1312_v39 = vshrl.u32 %v1279_v14, 16 }
 0x150   : > { %v1909_v50 = vsel %vm1885_vm6, %v1907_v46, %v1908_v20  ;;  %v1764_v51 = vrot.slane %v1762_v52, 1  ;;  %v1224_v63 = vpack.c.bf16 %v1192_v54, %v1192_v54  ;;  %v14409_v32 = vpop.permute.xlu2 %2102 }
 0x151   : > { %1992 = vrot.lane.b32.xlu1 %v1909_v50, %s19935_s0  ;;  %11998 = vmatmul.msk.bf16.gmra.mxu3 %vm20013_vm11, %v1909_v50 }
 0x152   : > { %v1076_v7 = vpop.f32.mrf.mxu0  ;;  %v1765_v8 = vor.u32 %v1764_v51, %v1760_v48  ;;  %v1375_v57 = vunpack.c.l.b16 %v1224_v63 }
 0x153   : > { %v14412_v11 = vadd.f32 %v14346_v5, %v1076_v7 }
 0x154   : > { %v14418_v56 = vsel %vm1674_vm9, %v1765_v8, %v1769_v61  ;;  %v1391_v62 = vpack.c.b16 %v1375_v57, %v1263_v21  ;;  %v1551_v36 = vpack.c.b16 %v1375_v57, %v1375_v57 }
 0x155   : > { %20062 = vst [vmem:[#allocation16_spill] sm:$0xff] %v14412_v11  ;;  %2082 = vrot.lane.b32.xlu0 %v14317_v12, %s19935_s0  ;;  %1962 = vrot.lane.b32.xlu2 %v14418_v56, %s19998_s7  ;;  %v1161_v16 = vmul.f32 0.2, %v14412_v11  ;;  %vm1129_vm1 = vcmp.gt.f32.partialorder %v14412_v11, 0.0 }
 0x156   : > { %v1456_v26 = vshrl.u32 %v1391_v62, 16  ;;  %v1459_v17 = vshll.u32 %v1391_v62, 16  ;;  %v1592_v2 = vshll.u32 %v1551_v36, 16 }
 0x157   : > { %v14425_v29 = vpop.permute.xlu1 %1950  ;;  %v1193_v48 = vsel %vm1129_vm1, %v14412_v11, %v1161_v16  ;;  %v20117_v11 = vrot.slane %v14287_v44, 4 }
 0x158   : > { %v1458_v20 = vrot.slane %v1456_v26, 7  ;;  %v1594_v42 = vrot.slane %v1592_v2, 3  ;;  %v14442_v51 = vpop.permute.xlu2 %2074  ;;  %v1225_v7 = vpack.c.bf16 %v1193_v48, %v1193_v48  ;;  %v2136_v40 = vsel %vm20013_vm11, %v13947_v24, %v14425_v29 }
 0x159   : > { %2054 = vrot.lane.b32.xlu1 %v1909_v50, %s19998_s7 }
 0x15a   : > { %v1078_v41 = vpop.f32.mrf.mxu0  ;;  %v1461_v45 = vor.u32 %v1459_v17, %v1458_v20  ;;  %v1666_v46 = vsel %vm13934_vm8, %v1458_v20, %v1594_v42  ;;  %v1264_v2 = vunpack.c.l.b16 %v1225_v7 }
 0x15b   : > { %v14436_v52 = vadd.f32 %v14346_v5, %v1078_v41  ;;  %v1911_v54 = vrot.slane %v1666_v46, 1  ;;  %v1779_v21 = vshll.u32 %v1666_v46, 16 }
 0x15c   : > { %v14440_v1 = vsel %vm13934_vm8, %v1312_v39, %v1461_v45  ;;  %v1280_v42 = vpack.c.b16 %v1264_v2, %v1264_v2 }
 0x15d   : > { %20063 = vst [vmem:[#allocation17_spill] sm:$0xff] %v14436_v52  ;;  %2022 = vrot.lane.b32.xlu0 %v14390_v37, %s19958_s5  ;;  %2114 = vrot.lane.b32.xlu2 %v14418_v56, %s19958_s5  ;;  %v1910_v50 = vrot.slane %v14440_v1, 1  ;;  %v1772_v61 = vshrl.u32 %v14440_v1, 16  ;;  %v1774_v63 = vshll.u32 %v14440_v1, 16  ;;  %vm1130_vm10 = vcmp.gt.f32.partialorder %v14436_v52, 0.0 }
 0x15e   : > { %20064 = vst [vmem:[#allocation18_spill] sm:$0xff] %v14440_v1  ;;  %v1162_v8 = vmul.f32 0.2, %v14436_v52  ;;  %v1781_v14 = vrot.slane %v1779_v21, 1 }
 0x15f   : > { %v1912_v57 = vsel %vm1885_vm6, %v1910_v50, %v1911_v54  ;;  %v1776_v34 = vrot.slane %v1774_v63, 1  ;;  %v1315_v63 = vshrl.u32 %v1280_v42, 16 }
 0x160   : > { %v1194_v62 = vsel %vm1130_vm10, %v14436_v52, %v1162_v8  ;;  %v14455_v36 = vpop.permute.xlu1 %2072  ;;  %v14470_v48 = vpop.permute.xlu2 %1982  ;;  %vm2163_vm10 = vcmask 523264  }
 0x161   : > { %1994 = vrot.lane.b32.xlu1 %v1912_v57, %s19935_s0  ;;  %v1777_v26 = vor.u32 %v1776_v34, %v1772_v61  ;;  %v1226_v17 = vpack.c.bf16 %v1194_v62, %v1194_v62  ;;  %11999 = vmatmul.msk.bf16.gmra.mxu3 %vm20013_vm11, %v1912_v57 }
 0x162   : > { %v1081_v16 = vpop.f32.mrf.mxu0 }
 0x163   : > { %v14460_v38 = vadd.f32 %v14346_v5, %v1081_v16  ;;  %v14463_v39 = vsel %vm1674_vm9, %v1777_v26, %v1781_v14  ;;  %v1376_v20 = vunpack.c.l.b16 %v1226_v17 }
 0x165   : > { %20065 = vst [vmem:[#allocation19_spill] sm:$0xff] %v14460_v38  ;;  %2084 = vrot.lane.b32.xlu0 %v14390_v37, %s19935_s0  ;;  %1964 = vrot.lane.b32.xlu2 %v14463_v39, %s19998_s7  ;;  %v1392_v41 = vpack.c.b16 %v1376_v20, %v1264_v2  ;;  %v1552_v45 = vpack.c.b16 %v1376_v20, %v1376_v20  ;;  %v1163_v46 = vmul.f32 0.2, %v14460_v38  ;;  %vm1131_vm5 = vcmp.gt.f32.partialorder %v14460_v38, 0.0 }
 0x167   : > { %v1949_v54 = vpop.permute.xlu0 %1948  ;;  %v1463_v21 = vshrl.u32 %v1392_v41, 16  ;;  %v1466_v50 = vshll.u32 %v1392_v41, 16  ;;  %v1596_v61 = vshll.u32 %v1552_v45, 16  ;;  %v1195_v14 = vsel %vm1131_vm5, %v14460_v38, %v1163_v46 }
 0x168   : > { %v14475_v62 = vpop.permute.xlu1 %2042  ;;  %v1227_v41 = vpack.c.bf16 %v1195_v14, %v1195_v14  ;;  %vm20021_vm5 = vcmask 785408   ;;  %v12280_v38 = vrot.slane %v14287_v44, 9 }
 0x169   : > { %2056 = vrot.lane.b32.xlu1 %v1912_v57, %s19998_s7  ;;  %v1465_v7 = vrot.slane %v1463_v21, 7  ;;  %v1598_v8 = vrot.slane %v1596_v61, 3 }
 0x16a   : > { %v1083_v34 = vpop.f32.mrf.mxu0 }
 0x16b   : > { %v14478_v26 = vadd.f32 %v14346_v5, %v1083_v34  ;;  %v1468_v17 = vor.u32 %v1466_v50, %v1465_v7  ;;  %v1667_v2 = vsel %vm13934_vm8, %v1465_v7, %v1598_v8  ;;  %v2134_v50 = vsel %vm20013_vm11, %v14000_v18, %v1949_v54 }
 0x16c   : > { %v1914_v16 = vrot.slane %v1667_v2, 1  ;;  %v1791_v20 = vshll.u32 %v1667_v2, 16  ;;  %v1265_v2 = vunpack.c.l.b16 %v1227_v41 }
 0x16d   : > { %20066 = vst [vmem:[#allocation20_spill] sm:$0xff] %v14478_v26  ;;  %2024 = vrot.lane.b32.xlu0 %v14440_v1, %s19958_s5  ;;  %2116 = vrot.lane.b32.xlu2 %v14463_v39, %s19958_s5  ;;  %v14488_v57 = vsel %vm13934_vm8, %v1315_v63, %v1468_v17  ;;  %vm1132_vm1 = vcmp.gt.f32.partialorder %v14478_v26, 0.0  ;;  %v1164_v42 = vmul.f32 0.2, %v14478_v26 }
 0x16e   : > { %20067 = vst [vmem:[#allocation21_spill] sm:$0xff] %v14488_v57  ;;  %v1913_v45 = vrot.slane %v14488_v57, 1  ;;  %v1784_v46 = vshrl.u32 %v14488_v57, 16  ;;  %v1786_v21 = vshll.u32 %v14488_v57, 16  ;;  %v1793_v17 = vrot.slane %v1791_v20, 1 }
 0x16f   : > { %v1979_v61 = vpop.permute.xlu0 %1978  ;;  %v14497_v7 = vpop.permute.xlu2 %1954  ;;  %v1196_v63 = vsel %vm1132_vm1, %v14478_v26, %v1164_v42 }
 0x170   : > { %v14501_v8 = vsel %vm2163_vm10, %v2134_v50, %v1979_v61  ;;  %v1915_v34 = vsel %vm1885_vm6, %v1913_v45, %v1914_v16  ;;  %v1788_v14 = vrot.slane %v1786_v21, 1  ;;  %v1228_v54 = vpack.c.bf16 %v1196_v63, %v1196_v63 }
 0x171   : > { %1996 = vrot.lane.b32.xlu1 %v1915_v34, %s19935_s0  ;;  %v2196_v18 = vsel %vm20021_vm5, %v14501_v8, %v14400_v58  ;;  %12000 = vmatmul.msk.bf16.gmra.mxu3 %vm20013_vm11, %v1915_v34  ;;  %v1281_v45 = vpack.c.b16 %v1265_v2, %v1265_v2 }
 0x172   : > { %2570 = vmatmul.bf16.vlgmr.msra.gmra.mxu1 %v2196_v18  ;;  %v1086_v25 = vpop.f32.mrf.mxu0  ;;  %v1789_v42 = vor.u32 %v1788_v14, %v1784_v46  ;;  %v1377_v16 = vunpack.c.l.b16 %v1228_v54 }
 0x173   : > { %v14510_v50 = vadd.f32 %v14346_v5, %v1086_v25  ;;  %v14512_v61 = vpop.permute.xlu1 %2044 }
 0x174   : > { %v14515_v20 = vsel %vm1674_vm9, %v1789_v42, %v1793_v17  ;;  %v1393_v58 = vpack.c.b16 %v1377_v16, %v1265_v2  ;;  %v1553_v41 = vpack.c.b16 %v1377_v16, %v1377_v16  ;;  %v1318_v42 = vshrl.u32 %v1281_v45, 16 }
 0x175   : > { %20068 = vst [vmem:[#allocation22_spill] sm:$0xff] %v14510_v50  ;;  %2086 = vrot.lane.b32.xlu0 %v14440_v1, %s19935_s0  ;;  %1966 = vrot.lane.b32.xlu2 %v14515_v20, %s19998_s7  ;;  %vm1133_vm1 = vcmp.gt.f32.partialorder %v14510_v50, 0.0  ;;  %v1165_v25 = vmul.f32 0.2, %v14510_v50 }
 0x176   : > { %20069 = vst [vmem:[#allocation23_spill] sm:$0xff] %v14515_v20  ;;  %v1470_v63 = vshrl.u32 %v1393_v58, 16  ;;  %v1473_v14 = vshll.u32 %v1393_v58, 16  ;;  %v1600_v17 = vshll.u32 %v1553_v41, 16 }
 0x177   : > { %v2041_v46 = vpop.permute.xlu0 %2040  ;;  %v14523_v21 = vpop.permute.xlu2 %2106  ;;  %v1197_v54 = vsel %vm1133_vm1, %v14510_v50, %v1165_v25 }
 0x178   : > { %v2245_v18 = vsel %vm20013_vm11, %v13965_v55, %v2041_v46  ;;  %v1472_v16 = vrot.slane %v1470_v63, 7  ;;  %v1602_v33 = vrot.slane %v1600_v17, 3  ;;  %v1229_v45 = vpack.c.bf16 %v1197_v54, %v1197_v54 }
 0x179   : > { %2058 = vrot.lane.b32.xlu1 %v1915_v34, %s19998_s7  ;;  %v2292_v2 = vsel %vm2163_vm10, %v2245_v18, %v14455_v36 }
 0x17a   : > { %v1088_v26 = vpop.f32.mrf.mxu0  ;;  %v2323_v58 = vsel %vm20021_vm5, %v2292_v2, %v14409_v32  ;;  %v1475_v34 = vor.u32 %v1473_v14, %v1472_v16  ;;  %v1668_v36 = vsel %vm13934_vm8, %v1472_v16, %v1602_v33  ;;  %v2167_v33 = vsel %vm2163_vm10, %v2136_v40, %v14336_v49 }
 0x17b   : > { %v14537_v55 = vadd.f32 %v14346_v5, %v1088_v26  ;;  %v14539_v41 = vpop.permute.xlu1 %1952  ;;  %2659 = vmatmul.bf16.vlgmr.msra.gmra.mxu2 %v2323_v58  ;;  %v1917_v25 = vrot.slane %v1668_v36, 1  ;;  %v1803_v46 = vshll.u32 %v1668_v36, 16  ;;  %v1266_v54 = vunpack.c.l.b16 %v1229_v45 }
 0x17c   : > { %v14549_v24 = vsel %vm13934_vm8, %v1318_v42, %v1475_v34  ;;  %v2199_v40 = vsel %vm20021_vm5, %v2167_v33, %v14370_v59  ;;  %v2248_v59 = vsel %vm20013_vm11, %v14020_v53, %v14475_v62 }
 0x17d   : > { %20070 = vst [vmem:[#allocation24_spill] sm:$0xff] %v14537_v55  ;;  %2026 = vrot.lane.b32.xlu0 %v14488_v57, %s19958_s5  ;;  %2118 = vrot.lane.b32.xlu2 %v14515_v20, %s19958_s5  ;;  %vm1134_vm1 = vcmp.gt.f32.partialorder %v14537_v55, 0.0  ;;  %v1166_v32 = vmul.f32 0.2, %v14537_v55  ;;  %v1916_v29 = vrot.slane %v14549_v24, 1  ;;  %v1796_v26 = vshrl.u32 %v14549_v24, 16 }
 0x17e   : > { %20071 = vst [vmem:[#allocation25_spill] sm:$0xff] %v14549_v24  ;;  %v1798_v63 = vshll.u32 %v14549_v24, 16  ;;  %v1805_v16 = vrot.slane %v1803_v46, 1  ;;  %v1282_v46 = vpack.c.b16 %v1266_v54, %v1266_v54  ;;  %v2294_v53 = vsel %vm2163_vm10, %v2248_v59, %v14442_v51 }
 0x17f   : > { %v14558_v14 = vpop.permute.xlu0 %2012  ;;  %v14560_v17 = vpop.permute.xlu2 %1956  ;;  %v1198_v18 = vsel %vm1134_vm1, %v14537_v55, %v1166_v32  ;;  %v1918_v2 = vsel %vm1885_vm6, %v1916_v29, %v1917_v25  ;;  %v20122_v20 = vrot.slane %v14063_v22, 2 }
 0x180   : > { %v1800_v42 = vrot.slane %v1798_v63, 1  ;;  %v1230_v58 = vpack.c.bf16 %v1198_v18, %v1198_v18 }
 0x181   : > { %1998 = vrot.lane.b32.xlu1 %v1918_v2, %s19935_s0  ;;  %12001 = vmatmul.msk.bf16.gmra.mxu3 %vm20013_vm11, %v1918_v2 }
 0x182   : > { %2575 = vmatmul.bf16.gmra.mxu1 %v2199_v40  ;;  %v1091_v49 = vpop.f32.mrf.mxu0  ;;  %v1801_v34 = vor.u32 %v1800_v42, %v1796_v26  ;;  %v1378_v36 = vunpack.c.l.b16 %v1230_v58 }
 0x183   : > { %v14569_v52 = vadd.f32 %v14346_v5, %v1091_v49  ;;  %v14571_v45 = vpop.permute.xlu1 %1984 }
 0x184   : > { %v14574_v25 = vsel %vm1674_vm9, %v1801_v34, %v1805_v16  ;;  %v1394_v32 = vpack.c.b16 %v1378_v36, %v1266_v54  ;;  %v1554_v29 = vpack.c.b16 %v1378_v36, %v1378_v36  ;;  %v1321_v54 = vshrl.u32 %v1282_v46, 16 }
 0x185   : > { %20072 = vst [vmem:[#allocation26_spill] sm:$0xff] %v14569_v52  ;;  %2088 = vrot.lane.b32.xlu0 %v14488_v57, %s19935_s0  ;;  %1968 = vrot.lane.b32.xlu2 %v14574_v25, %s19998_s7  ;;  %v1167_v18 = vmul.f32 0.2, %v14569_v52  ;;  %vm1135_vm1 = vcmp.gt.f32.partialorder %v14569_v52, 0.0 }
 0x186   : > { %20073 = vst [vmem:[#allocation27_spill] sm:$0xff] %v14574_v25  ;;  %v1477_v33 = vshrl.u32 %v1394_v32, 16  ;;  %v1480_v26 = vshll.u32 %v1394_v32, 16  ;;  %v1604_v63 = vshll.u32 %v1554_v29, 16 }
 0x187   : > { %v2105_v42 = vpop.permute.xlu0 %2104  ;;  %v14584_v16 = vpop.permute.xlu2 %2108  ;;  %v1199_v32 = vsel %vm1135_vm1, %v14569_v52, %v1167_v18 }
 0x188   : > { %v1479_v58 = vrot.slane %v1477_v33, 7  ;;  %v1606_v40 = vrot.slane %v1604_v63, 3  ;;  %v2326_v49 = vsel %vm20021_vm5, %v2294_v53, %v2105_v42  ;;  %v1231_v18 = vpack.c.bf16 %v1199_v32, %v1199_v32 }
 0x189   : > { %2060 = vrot.lane.b32.xlu1 %v1918_v2, %s19998_s7 }
 0x18a   : > { %v1093_v62 = vpop.f32.mrf.mxu0  ;;  %v1482_v34 = vor.u32 %v1480_v26, %v1479_v58  ;;  %v1669_v36 = vsel %vm13934_vm8, %v1479_v58, %v1606_v40  ;;  %v1267_v52 = vunpack.c.l.b16 %v1231_v18 }
 0x18b   : > { %v14595_v29 = vadd.f32 %v14346_v5, %v1093_v62  ;;  %v14597_v46 = vpop.permute.xlu1 %2046  ;;  %2664 = vmatmul.bf16.gmra.mxu2 %v2326_v49  ;;  %v1920_v33 = vrot.slane %v1669_v36, 1  ;;  %v1815_v2 = vshll.u32 %v1669_v36, 16 }
 0x18c   : > { %v14601_v51 = vsel %vm13934_vm8, %v1321_v54, %v1482_v34  ;;  %v2202_v34 = vsel %vm20021_vm5, %v14501_v8, %v14558_v14  ;;  %v1283_v8 = vpack.c.b16 %v1267_v52, %v1267_v52 }
 0x18d   : > { %20074 = vst [vmem:[#allocation28_spill] sm:$0xff] %v14595_v29  ;;  %2028 = vrot.lane.b32.xlu0 %v14549_v24, %s19958_s5  ;;  %2120 = vrot.lane.b32.xlu2 %v14574_v25, %s19958_s5  ;;  %v1919_v59 = vrot.slane %v14601_v51, 1  ;;  %v1808_v26 = vshrl.u32 %v14601_v51, 16  ;;  %v1810_v63 = vshll.u32 %v14601_v51, 16  ;;  %vm1136_vm1 = vcmp.gt.f32.partialorder %v14595_v29, 0.0 }
 0x18e   : > { %20075 = vst [vmem:[#allocation29_spill] sm:$0xff] %v14601_v51  ;;  %v1168_v42 = vmul.f32 0.2, %v14595_v29  ;;  %v1817_v62 = vrot.slane %v1815_v2, 1 }
 0x18f   : > { %v14612_v58 = vpop.permute.xlu0 %2014  ;;  %v14614_v54 = vpop.permute.xlu2 %1958  ;;  %v1921_v40 = vsel %vm1885_vm6, %v1919_v59, %v1920_v33  ;;  %v1812_v53 = vrot.slane %v1810_v63, 1  ;;  %v2251_v63 = vsel %vm20013_vm11, %v14066_v23, %v14512_v61 }
 0x190   : > { %v1200_v49 = vsel %vm1136_vm1, %v14595_v29, %v1168_v42 }
 0x191   : > { %2000 = vrot.lane.b32.xlu1 %v1921_v40, %s19935_s0  ;;  %v1813_v36 = vor.u32 %v1812_v53, %v1808_v26  ;;  %v1232_v32 = vpack.c.bf16 %v1200_v49, %v1200_v49  ;;  %12002 = vmatmul.msk.bf16.gmra.mxu3 %vm20013_vm11, %v1921_v40 }
 0x192   : > { %2580 = vmatmul.bf16.gmra.mxu1 %v2202_v34 }
 0x193   : > { %v1096_v55 = vpop.f32.mrf.mxu0  ;;  %v14623_v19 = vpop.permute.xlu1 %1986  ;;  %v14626_v33 = vsel %vm1674_vm9, %v1813_v36, %v1817_v62  ;;  %v1379_v2 = vunpack.c.l.b16 %v1232_v32  ;;  %v1324_v36 = vshrl.u32 %v1283_v8, 16 }
 0x194   : > { %20076 = vst [vmem:[#allocation30_spill] sm:$0xff] %v14626_v33  ;;  %v14629_v59 = vadd.f32 %v14346_v5, %v1096_v55 }
 0x195   : > { %2090 = vrot.lane.b32.xlu0 %v14549_v24, %s19935_s0  ;;  %1970 = vrot.lane.b32.xlu2 %v14626_v33, %s19998_s7  ;;  %v1395_v14 = vpack.c.b16 %v1379_v2, %v1267_v52  ;;  %v1555_v26 = vpack.c.b16 %v1379_v2, %v1379_v2  ;;  %v12284_v24 = vrot.slane %v14310_v28, 9 }
 0x196   : > { %20077 = vst [vmem:[#allocation31_spill] sm:$0xff] %v14629_v59  ;;  %v1169_v49 = vmul.f32 0.2, %v14629_v59  ;;  %vm1137_vm1 = vcmp.gt.f32.partialorder %v14629_v59, 0.0 }
 0x197   : > { %v2077_v18 = vpop.permute.xlu0 %2076  ;;  %v14638_v42 = vpop.permute.xlu2 %2110  ;;  %v1484_v53 = vshrl.u32 %v1395_v14, 16  ;;  %v1487_v62 = vshll.u32 %v1395_v14, 16  ;;  %v1608_v55 = vshll.u32 %v1555_v26, 16 }
 0x198   : > { %v2296_v34 = vsel %vm2163_vm10, %v2251_v63, %v2077_v18  ;;  %v1201_v63 = vsel %vm1137_vm1, %v14629_v59, %v1169_v49 }
 0x199   : > { %2062 = vrot.lane.b32.xlu1 %v1921_v40, %s19998_s7  ;;  %v2329_v52 = vsel %vm20021_vm5, %v2296_v34, %v14523_v21  ;;  %v1486_v32 = vrot.slane %v1484_v53, 7  ;;  %v1610_v23 = vrot.slane %v1608_v55, 3  ;;  %v2138_v21 = vsel %vm20013_vm11, %v14049_v0, %v14539_v41  ;;  %v14665_v53 = vpop.f32.mrf.mxu3 }
 0x19a   : > { %20080 = vst [vmem:[#allocation34_spill] sm:$0xff] %v14665_v53  ;;  %v1233_v34 = vpack.c.bf16 %v1201_v63, %v1201_v63 }
 0x19b   : > { %v1098_v61 = vpop.f32.mrf.mxu0  ;;  %v14646_v2 = vpop.permute.xlu1 %2048  ;;  %2669 = vmatmul.bf16.gmra.mxu2 %v2329_v52  ;;  %v1489_v14 = vor.u32 %v1487_v62, %v1486_v32  ;;  %v1670_v26 = vsel %vm13934_vm8, %v1486_v32, %v1610_v23  ;;  %v2169_v32 = vsel %vm2163_vm10, %v2138_v21, %v14470_v48 }
 0x19c   : > { %v14652_v18 = vadd.f32 %v14346_v5, %v1098_v61  ;;  %v1923_v40 = vrot.slane %v1670_v26, 1  ;;  %v1827_v29 = vshll.u32 %v1670_v26, 16 }
 0x19d   : > { %2030 = vrot.lane.b32.xlu0 %v14601_v51, %s19958_s5  ;;  %2122 = vrot.lane.b32.xlu2 %v14626_v33, %s19958_s5  ;;  %v14663_v8 = vsel %vm13934_vm8, %v1324_v36, %v1489_v14  ;;  %v2205_v14 = vsel %vm20021_vm5, %v2169_v32, %v14612_v58  ;;  %v1268_v33 = vunpack.c.l.b16 %v1233_v34 }
 0x19e   : > { %20078 = vst [vmem:[#allocation32_spill] sm:$0xff] %v14652_v18  ;;  %v1922_v62 = vrot.slane %v14663_v8, 1  ;;  %v1820_v55 = vshrl.u32 %v14663_v8, 16  ;;  %v1822_v49 = vshll.u32 %v14663_v8, 16  ;;  %vm1138_vm1 = vcmp.gt.f32.partialorder %v14652_v18, 0.0 }
 0x19f   : > { %20079 = vst [vmem:[#allocation33_spill] sm:$0xff] %v14663_v8  ;;  %v14670_v0 = vpop.permute.xlu0 %2016  ;;  %v14672_v41 = vpop.permute.xlu2 %1960  ;;  %v1170_v52 = vmul.f32 0.2, %v14652_v18  ;;  %v1829_v61 = vrot.slane %v1827_v29, 1  ;;  %v1284_v58 = vpack.c.b16 %v1268_v33, %v1268_v33 }
 0x1a0   : > { %v1924_v36 = vsel %vm1885_vm6, %v1922_v62, %v1923_v40  ;;  %v1824_v23 = vrot.slane %v1822_v49, 1 }
 0x1a1   : > { %2002 = vrot.lane.b32.xlu1 %v1924_v36, %s19935_s0  ;;  %v1202_v26 = vsel %vm1138_vm1, %v14652_v18, %v1170_v52  ;;  %12003 = vmatmul.msk.bf16.gmra.mxu3 %vm20013_vm11, %v1924_v36 }
 0x1a2   : > { %2585 = vmatmul.bf16.gmra.mxu1 %v2205_v14  ;;  %v1825_v63 = vor.u32 %v1824_v23, %v1820_v55  ;;  %v1234_v59 = vpack.c.bf16 %v1202_v26, %v1202_v26 }
 0x1a3   : > { %v1101_v50 = vpop.f32.mrf.mxu0  ;;  %v14684_v40 = vpop.permute.xlu1 %1988 }
 0x1a4   : > { %v14687_v48 = vadd.f32 %v14346_v5, %v1101_v50  ;;  %v14690_v29 = vsel %vm1674_vm9, %v1825_v63, %v1829_v61  ;;  %v1380_v21 = vunpack.c.l.b16 %v1234_v59  ;;  %v2254_v50 = vsel %vm20013_vm11, %v14153_v35, %v14597_v46  ;;  %v14703_v59 = vpop.f32.mrf.mxu3 }
 0x1a5   : > { %20082 = vst [vmem:[#allocation36_spill] sm:$0xff] %v14690_v29  ;;  %2092 = vrot.lane.b32.xlu0 %v14601_v51, %s19935_s0  ;;  %1972 = vrot.lane.b32.xlu2 %v14690_v29, %s19998_s7  ;;  %v1327_v63 = vshrl.u32 %v1284_v58, 16 }
 0x1a6   : > { %20081 = vst [vmem:[#allocation35_spill] sm:$0xff] %v14687_v48  ;;  %v1396_v62 = vpack.c.b16 %v1380_v21, %v1268_v33  ;;  %v1556_v55 = vpack.c.b16 %v1380_v21, %v1380_v21  ;;  %vm1139_vm1 = vcmp.gt.f32.partialorder %v14687_v48, 0.0  ;;  %v1171_v49 = vmul.f32 0.2, %v14687_v48 }
 0x1a7   : > { %v2079_v34 = vpop.permute.xlu0 %2078  ;;  %v14701_v52 = vpop.permute.xlu2 %2112  ;;  %20083 = vst [vmem:[#allocation37_spill] sm:$0xff] %v14703_v59 }
 0x1a8   : > { %v2298_v32 = vsel %vm2163_vm10, %v2254_v50, %v2079_v34  ;;  %v1491_v23 = vshrl.u32 %v1396_v62, 16  ;;  %v1494_v61 = vshll.u32 %v1396_v62, 16  ;;  %v1612_v14 = vshll.u32 %v1556_v55, 16 }
 0x1a9   : > { %2064 = vrot.lane.b32.xlu1 %v1924_v36, %s19998_s7  ;;  %v2332_v33 = vsel %vm20021_vm5, %v2298_v32, %v14584_v16  ;;  %v1203_v26 = vsel %vm1139_vm1, %v14687_v48, %v1171_v49  ;;  %v2140_v55 = vsel %vm20013_vm11, %v14112_v9, %v14497_v7 }
 0x1aa   : > { %v1493_v21 = vrot.slane %v1491_v23, 7  ;;  %v1614_v35 = vrot.slane %v1612_v14, 3  ;;  %v1235_v36 = vpack.c.bf16 %v1203_v26, %v1203_v26  ;;  %v2171_v32 = vsel %vm2163_vm10, %v2140_v55, %v14571_v45 }
 0x1ab   : > { %v1103_v46 = vpop.f32.mrf.mxu0  ;;  %v14710_v18 = vpop.permute.xlu1 %2050  ;;  %2674 = vmatmul.bf16.gmra.mxu2 %v2332_v33  ;;  %v2208_v7 = vsel %vm20021_vm5, %v2171_v32, %v14670_v0  ;;  %v2257_v32 = vsel %vm20013_vm11, %v14223_v13, %v14646_v2 }
 0x1ac   : > { %v14713_v51 = vadd.f32 %v14346_v5, %v1103_v46  ;;  %v1496_v50 = vor.u32 %v1494_v61, %v1493_v21  ;;  %v1671_v62 = vsel %vm13934_vm8, %v1493_v21, %v1614_v35 }
 0x1ad   : > { %2032 = vrot.lane.b32.xlu0 %v14663_v8, %s19958_s5  ;;  %2124 = vrot.lane.b32.xlu2 %v14690_v29, %s19958_s5  ;;  %v1926_v16 = vrot.slane %v1671_v62, 1  ;;  %v1839_v58 = vshll.u32 %v1671_v62, 16 }
 0x1ae   : > { %20084 = vst [vmem:[#allocation38_spill] sm:$0xff] %v14713_v51  ;;  %v14726_v49 = vsel %vm13934_vm8, %v1327_v63, %v1496_v50  ;;  %vm1140_vm1 = vcmp.gt.f32.partialorder %v14713_v51, 0.0  ;;  %v1172_v34 = vmul.f32 0.2, %v14713_v51  ;;  %v1269_v63 = vunpack.c.l.b16 %v1235_v36  ;;  %v14743_v50 = vpop.f32.mrf.mxu3 }
 0x1af   : > { %20085 = vst [vmem:[#allocation39_spill] sm:$0xff] %v14726_v49  ;;  %v14732_v23 = vpop.permute.xlu0 %2018  ;;  %v14734_v61 = vpop.permute.xlu2 %1962  ;;  %v1925_v14 = vrot.slane %v14726_v49, 1  ;;  %v1832_v33 = vshrl.u32 %v14726_v49, 16  ;;  %v1834_v9 = vshll.u32 %v14726_v49, 16  ;;  %v1841_v45 = vrot.slane %v1839_v58, 1 }
 0x1b0   : > { %v1204_v26 = vsel %vm1140_vm1, %v14713_v51, %v1172_v34  ;;  %20086 = vst [vmem:[#allocation40_spill] sm:$0xff] %v14743_v50 }
 0x1b1   : > { %v1927_v21 = vsel %vm1885_vm6, %v1925_v14, %v1926_v16  ;;  %v1836_v35 = vrot.slane %v1834_v9, 1  ;;  %v1236_v46 = vpack.c.bf16 %v1204_v26, %v1204_v26  ;;  %v1285_v16 = vpack.c.b16 %v1269_v63, %v1269_v63 }
 0x1b2   : > { %2004 = vrot.lane.b32.xlu1 %v1927_v21, %s19935_s0  ;;  %2590 = vmatmul.bf16.gmra.mxu1 %v2208_v7 }
 0x1b3   : > { %v14746_v62 = vpop.permute.xlu1 %1990  ;;  %v1837_v55 = vor.u32 %v1836_v35, %v1832_v33  ;;  %v1381_v48 = vunpack.c.l.b16 %v1236_v46  ;;  %v1106_v29 = vpop.f32.mrf.mxu0  ;;  %12004 = vmatmul.msk.bf16.gmra.mxu3 %vm20013_vm11, %v1927_v21 }
 0x1b4   : > { %v14750_v0 = vadd.f32 %v14346_v5, %v1106_v29 }
 0x1b5   : > { %2094 = vrot.lane.b32.xlu0 %v14663_v8, %s19935_s0  ;;  %v14755_v36 = vsel %vm1674_vm9, %v1837_v55, %v1841_v45  ;;  %v1397_v58 = vpack.c.b16 %v1381_v48, %v1269_v63  ;;  %v1557_v34 = vpack.c.b16 %v1381_v48, %v1381_v48  ;;  %v1330_v63 = vshrl.u32 %v1285_v16, 16 }
 0x1b6   : > { %20087 = vst [vmem:[#allocation41_spill] sm:$0xff] %v14750_v0  ;;  %1974 = vrot.lane.b32.xlu2 %v14755_v36, %s19998_s7  ;;  %v1173_v26 = vmul.f32 0.2, %v14750_v0  ;;  %vm1141_vm1 = vcmp.gt.f32.partialorder %v14750_v0, 0.0 }
 0x1b7   : > { %20088 = vst [vmem:[#allocation42_spill] sm:$0xff] %v14755_v36  ;;  %v2081_v14 = vpop.permute.xlu0 %2080  ;;  %v14762_v33 = vpop.permute.xlu2 %2114  ;;  %v1498_v29 = vshrl.u32 %v1397_v58, 16  ;;  %v1501_v9 = vshll.u32 %v1397_v58, 16  ;;  %v1616_v7 = vshll.u32 %v1557_v34, 16 }
 0x1b8   : > { %v2300_v35 = vsel %vm2163_vm10, %v2257_v32, %v2081_v14  ;;  %v1205_v34 = vsel %vm1141_vm1, %v14750_v0, %v1173_v26 }
 0x1b9   : > { %v2335_v48 = vsel %vm20021_vm5, %v2300_v35, %v14638_v42  ;;  %v1500_v13 = vrot.slane %v1498_v29, 7  ;;  %v1618_v2 = vrot.slane %v1616_v7, 3  ;;  %v14778_v42 = vpop.f32.mrf.mxu3  ;;  %v1237_v29 = vpack.c.bf16 %v1205_v34, %v1205_v34 }
 0x1ba   : > { %2066 = vrot.lane.b32.xlu1 %v1927_v21, %s19998_s7  ;;  %20090 = vst [vmem:[#allocation44_spill] sm:$0xff] %v14778_v42 }
 0x1bb   : > { %v14770_v45 = vpop.permute.xlu1 %2052  ;;  %2679 = vmatmul.bf16.gmra.mxu2 %v2335_v48  ;;  %v1503_v46 = vor.u32 %v1501_v9, %v1500_v13  ;;  %v1672_v55 = vsel %vm13934_vm8, %v1500_v13, %v1618_v2  ;;  %v1108_v58 = vpop.f32.mrf.mxu0  ;;  %v1270_v2 = vunpack.c.l.b16 %v1237_v29 }
 0x1bc   : > { %v1929_v32 = vrot.slane %v1672_v55, 1  ;;  %v14776_v14 = vadd.f32 %v14346_v5, %v1108_v58  ;;  %v2142_v5 = vsel %vm20013_vm11, %v14188_v15, %v14560_v17 }
 0x1bd   : > { %2034 = vrot.lane.b32.xlu0 %v14726_v49, %s19958_s5  ;;  %v14784_v21 = vsel %vm13934_vm8, %v1330_v63, %v1503_v46  ;;  %v2173_v48 = vsel %vm2163_vm10, %v2142_v5, %v14623_v19  ;;  %v1851_v19 = vshll.u32 %v1672_v55, 16  ;;  %v2260_v5 = vsel %vm20013_vm11, %v14290_v30, %v14710_v18 }
 0x1be   : > { %20089 = vst [vmem:[#allocation43_spill] sm:$0xff] %v14776_v14  ;;  %2126 = vrot.lane.b32.xlu2 %v14755_v36, %s19958_s5  ;;  %v1928_v16 = vrot.slane %v14784_v21, 1  ;;  %v1846_v26 = vshll.u32 %v14784_v21, 16  ;;  %vm1142_vm1 = vcmp.gt.f32.partialorder %v14776_v14, 0.0  ;;  %v1174_v35 = vmul.f32 0.2, %v14776_v14 }
 0x1bf   : > { %20091 = vst [vmem:[#allocation45_spill] sm:$0xff] %v14784_v21  ;;  %v2021_v9 = vpop.permute.xlu0 %2020  ;;  %v14792_v7 = vpop.permute.xlu2 %1964  ;;  %v2211_v13 = vsel %vm20021_vm5, %v2173_v48, %v14732_v23  ;;  %v1844_v58 = vshrl.u32 %v14784_v21, 16  ;;  %v1286_v23 = vpack.c.b16 %v1270_v2, %v1270_v2  ;;  %v1853_v48 = vrot.slane %v1851_v19, 1 }
 0x1c0   : > { %20092 = vst [vmem:[#allocation46_spill] sm:$0xff] %v14792_v7  ;;  %v14800_v63 = vsel %vm1885_vm6, %v1928_v16, %v1929_v32  ;;  %v1206_v15 = vsel %vm1142_vm1, %v14776_v14, %v1174_v35  ;;  %v1848_v34 = vrot.slane %v1846_v26, 1 }
 0x1c1   : > { %v1238_v17 = vpack.c.bf16 %v1206_v15, %v1206_v15  ;;  %v14812_v16 = vpop.f32.mrf.mxu3 }
 0x1c2   : > { %2006 = vrot.lane.b32.xlu1 %v14800_v63, %s19935_s0  ;;  %2595 = vmatmul.bf16.gmra.mxu1 %v2211_v13  ;;  %20093 = vst [vmem:[#allocation47_spill] sm:$0xff] %v14812_v16  ;;  %v1849_v35 = vor.u32 %v1848_v34, %v1844_v58  ;;  %v13338_v34 = vld [vmem:[%s20095_s30 + $0x38] sm:$0xff]  ;;  %s20387_s30 = smov 96  }
 0x1c3   : > { %v14807_v46 = vpop.permute.xlu1 %1992  ;;  %12005 = vmatmul.msk.bf16.gmra.mxu3 %vm20013_vm11, %v14800_v63  ;;  %v1382_v32 = vunpack.c.l.b16 %v1238_v17 }
 0x1c4   : > { %v14827_v36 = vsel %vm1674_vm9, %v1849_v35, %v1853_v48  ;;  %4272 = vmatpush.bf16.msrb.mxu3 %v13338_v34 }
 0x1c5   : > { %2096 = vrot.lane.b32.xlu0 %v14726_v49, %s19935_s0  ;;  %v1398_v29 = vpack.c.b16 %v1382_v32, %v1270_v2  ;;  %v1558_v13 = vpack.c.b16 %v1382_v32, %v1382_v32  ;;  %v1333_v49 = vshrl.u32 %v1286_v23, 16  ;;  %20094 = vst [vmem:[#allocation48_spill] sm:$0xff] %v14827_v36 }
 0x1c6   : > { %2068 = vrot.lane.b32.xlu2 %v14800_v63, %s19998_s7 }
 0x1c7   : > { %v2083_v26 = vpop.permute.xlu0 %2082  ;;  %v14821_v55 = vpop.permute.xlu2 %2116  ;;  %v1505_v17 = vshrl.u32 %v1398_v29, 16  ;;  %v1508_v14 = vshll.u32 %v1398_v29, 16  ;;  %v1620_v51 = vshll.u32 %v1558_v13, 16  ;;  %v19881_v13 = vrot.slane %v14063_v22, 2 }
 0x1c8   : > { %v2302_v15 = vsel %vm2163_vm10, %v2260_v5, %v2083_v26 }
 0x1c9   : > { %v2338_v0 = vsel %vm20021_vm5, %v2302_v15, %v14701_v52  ;;  %v1507_v2 = vrot.slane %v1505_v17, 7  ;;  %v1622_v30 = vrot.slane %v1620_v51, 3  ;;  %v14850_v19 = vpop.f32.mrf.mxu3 }
 0x1ca   : > { %20099 = vst [vmem:[#allocation51_spill] sm:$0xff] %v14850_v19  ;;  %v20113_v19 = vrot.slane %v14220_v47, 6 }
 0x1cb   : > { %2684 = vmatmul.bf16.gmra.mxu2 %v2338_v0  ;;  %v14829_v18 = vpop.permute.xlu1 %2054  ;;  %v1510_v58 = vor.u32 %v1508_v14, %v1507_v2  ;;  %v14838_v52 = vsel %vm13934_vm8, %v1507_v2, %v1622_v30  ;;  %v2144_v14 = vsel %vm20013_vm11, %v14266_v31, %v14614_v54  ;;  %v13346_v31 = vld [vmem:[%s20096_s26 + $0x78] sm:$0xff]  ;;  %v13348_v54 = vld [vmem:[%s20096_s26 + $0x88] sm:$0xff]  ;;  %v19882_v2 = vrot.slane %v14063_v22, 4 }
 0x1cc   : > { %20097 = vst [vmem:[#allocation49_spill] sm:$0xff] %v14838_v52  ;;  %v1946_v0 = vrot.slane %v14838_v52, 1  ;;  %v2175_v29 = vsel %vm2163_vm10, %v2144_v14, %v14684_v40  ;;  %4361 = vmatpush.bf16.msrb.mxu0 %v13346_v31  ;;  %4456 = vmatpush.bf16.msrb.mxu1 %v13348_v54  ;;  %v19883_v30 = vrot.slane %v14063_v22, 6  ;;  %v5471_v31 = vrot.slane %v14220_v47, 2 }
 0x1cd   : > { %2036 = vrot.lane.b32.xlu0 %v14784_v21, %s19958_s5  ;;  %v14844_v51 = vsel %vm13934_vm8, %v1333_v49, %v1510_v58  ;;  %v2214_v49 = vsel %vm20021_vm5, %v2175_v29, %v2021_v9  ;;  %v2263_v9 = vsel %vm20013_vm11, %v14352_v6, %v14770_v45  ;;  %v19890_v58 = vrot.slane %v14146_v43, 2 }
 0x1ce   : > { %1976 = vrot.lane.b32.xlu2 %v14827_v36, %s19998_s7  ;;  %20098 = vst [vmem:[#allocation50_spill] sm:$0xff] %v14844_v51  ;;  %v1945_v23 = vrot.slane %v14844_v51, 1  ;;  %v19886_v6 = vrot.slane %v14100_v60, 2  ;;  %v19888_v45 = vrot.slane %v14100_v60, 4  ;;  %v20112_v52 = vrot.slane %v14220_v47, 4 }
 0x1cf   : > { %v2023_v32 = vpop.permute.xlu0 %2022  ;;  %v14855_v5 = vpop.permute.xlu2 %1966 }
 0x1d0   : > { %20100 = vst [vmem:[#allocation52_spill] sm:$0xff] %v14855_v5  ;;  %v14859_v26 = vsel %vm1885_vm6, %v1945_v23, %v1946_v0  ;;  %v19887_v23 = vrot.slane %v14100_v60, 6  ;;  %v20121_v5 = vrot.slane %v14310_v28, 6 }
 0x1d1   : > { %20101 = vst [vmem:[#allocation53_spill] sm:$0xff] %v14859_v26  ;;  %v14880_v15 = vpop.f32.mrf.mxu3 }
 0x1d2   : > { %2600 = vmatmul.bf16.gmra.mxu1 %v2214_v49  ;;  %20103 = vst [vmem:[#allocation55_spill] sm:$0xff] %v14880_v15  ;;  %v12258_v49 = vrot.slane %v19882_v2, 9  ;;  %v12263_v2 = vrot.slane %v19887_v23, 9  ;;  %v20108_v23 = vrot.slane %v14183_v10, 2  ;;  %v12287_v59 = vrot.slane %v20121_v5, 9 }
 0x1d3   : > { %12006 = vmatmul.msk.bf16.gmra.mxu3 %vm20013_vm11, %v14859_v26  ;;  %v14871_v40 = vpop.permute.xlu1 %1994  ;;  %v20106_v26 = vrot.slane %v14146_v43, 6  ;;  %v20125_v5 = vrot.slane %v14063_v22, 6 }
 0x1d4   : > { %20102 = vst [vmem:[#allocation54_spill] sm:$0xff] %v14871_v40  ;;  %v20123_v40 = vrot.slane %v14146_v43, 2 }
 0x1d5   : > { %2098 = vrot.lane.b32.xlu0 %v14784_v21, %s19935_s0 }
 0x1d6   : > { %2128 = vrot.lane.b32.xlu2 %v14827_v36, %s19958_s5 }
 0x1d7   : > { %v2085_v35 = vpop.permute.xlu0 %2084  ;;  %v14887_v34 = vpop.permute.xlu2 %2118 }
 0x1d8   : > { %v2304_v48 = vsel %vm2163_vm10, %v2263_v9, %v2085_v35  ;;  %20104 = vst [vmem:[#allocation56_spill] sm:$0xff] %v14887_v34  ;;  %v2146_v35 = vsel %vm20013_vm11, %v14317_v12, %v14672_v41  ;;  %v12259_v9 = vrot.slane %v19883_v30, 9  ;;  %v12260_v12 = vrot.slane %v14100_v60, 9 }
 0x1d9   : > { %v2341_v17 = vsel %vm20021_vm5, %v2304_v48, %v14762_v33  ;;  %v5477_v33 = vrot.slane %v14287_v44, 2  ;;  %v12257_v48 = vrot.slane %v19881_v13, 9  ;;  %v2177_v14 = vsel %vm2163_vm10, %v2146_v35, %v14746_v62 }
 0x1da   : > { %v12261_v41 = vrot.slane %v19886_v6, 9  ;;  %v2217_v29 = vsel %vm20021_vm5, %v2177_v14, %v2023_v32  ;;  %v12262_v13 = vrot.slane %v19888_v45, 9  ;;  %v12264_v62 = vrot.slane %v14146_v43, 9  ;;  %v14943_v14 = vpop.f32.mrf.mxu3 }
 0x1db   : > { %2689 = vmatmul.bf16.gmra.mxu2 %v2341_v17  ;;  %v12256_v17 = vrot.slane %v14063_v22, 9  ;;  %v14923_v54 = vpop.permute.xlu1 %2056  ;;  %v12265_v35 = vrot.slane %v19890_v58, 9  ;;  %v20105_v30 = vrot.slane %v14146_v43, 4  ;;  %v12267_v6 = vrot.slane %v20106_v26, 9  ;;  %20107 = vst [vmem:[#allocation57_spill] sm:$0xff] %v14943_v14 }
 0x1dc   : > { %v12268_v32 = vrot.slane %v14183_v10, 9  ;;  %v12269_v45 = vrot.slane %v20108_v23, 9  ;;  %v20110_v58 = vrot.slane %v14183_v10, 6  ;;  %v12273_v26 = vrot.slane %v5471_v31, 9 }
 0x1dd   : > { %2038 = vrot.lane.b32.xlu0 %v14844_v51, %s19958_s5  ;;  %v12266_v36 = vrot.slane %v20105_v30, 9  ;;  %v12272_v30 = vrot.slane %v14220_v47, 9  ;;  %v12274_v14 = vrot.slane %v20112_v52, 9  ;;  %v12276_v51 = vrot.slane %v14254_v27, 9 }
 0x1de   : > { %v12271_v8 = vrot.slane %v20110_v58, 9  ;;  %v20114_v23 = vrot.slane %v14254_v27, 2  ;;  %v20116_v58 = vrot.slane %v14254_v27, 6  ;;  %v12281_v25 = vrot.slane %v5477_v33, 9 }
 0x1df   : > { %v14914_v0 = vpop.permute.xlu0 %2024  ;;  %v14954_v15 = vpop.permute.xlu2 %1968  ;;  %v12282_v52 = vrot.slane %v20117_v11, 9  ;;  %v6044_v53 = vadd.f32 %v12257_v48, %v20122_v20  ;;  %v20126_v20 = vrot.slane %v14100_v60, 2 }
 0x1e0   : > { %20111 = vst [vmem:[#allocation58_spill] sm:$0xff] %v14954_v15  ;;  %v12277_v16 = vrot.slane %v20114_v23, 9  ;;  %v12279_v42 = vrot.slane %v20116_v58, 9  ;;  %v2266_v23 = vsel %vm20013_vm11, %v14418_v56, %v14829_v18  ;;  %v20120_v58 = vrot.slane %v14310_v28, 4 }
 0x1e1   : > { %v6052_v56 = vadd.f32 %v12265_v35, %v20123_v40  ;;  %v6068_v7 = vadd.f32 %v12281_v25, %v5477_v33  ;;  %v6048_v48 = vadd.f32 %v12261_v41, %v20126_v20  ;;  %v20127_v40 = vrot.slane %v14100_v60, 4 }
 0x1e2   : > { %2605 = vmatmul.bf16.gmra.mxu1 %v2217_v29  ;;  %v20109_v29 = vrot.slane %v14183_v10, 4  ;;  %v12286_v57 = vrot.slane %v20120_v58, 9  ;;  %v6060_v58 = vadd.f32 %v12273_v26, %v5471_v31  ;;  %v20129_v25 = vrot.slane %v14146_v43, 4 }
 0x1e3   : > { %12007 = vmatmul.msk.bf16.gmra.mxu3 %vm20013_vm11, %v14800_v63  ;;  %v12275_v63 = vrot.slane %v20113_v19, 9  ;;  %v12283_v19 = vrot.slane %v20118_v3, 9  ;;  %v6043_v3 = vadd.f32 %v12256_v17, %v14063_v22  ;;  %v14992_v34 = vpop.permute.xlu1 %1996  ;;  %v6047_v17 = vadd.f32 %v12260_v12, %v14100_v60 }
 0x1e4   : > { %v12270_v21 = vrot.slane %v20109_v29, 9  ;;  %v20115_v29 = vrot.slane %v14254_v27, 4  ;;  %v6049_v35 = vadd.f32 %v12262_v13, %v20127_v40  ;;  %v6053_v33 = vadd.f32 %v12266_v36, %v20129_v25 }
 0x1e5   : > { %v20131_v12 = vrot.slane %v14220_v47, 4  ;;  %v20132_v26 = vrot.slane %v14287_v44, 4  ;;  %v6164_v36 = vadd.f32 %v6068_v7, %v6060_v58  ;;  %v20137_v7 = vrot.slane %v14254_v27, 2 }
 0x1e6   : > { %v12278_v4 = vrot.slane %v20115_v29, 9  ;;  %v20119_v29 = vrot.slane %v14310_v28, 2 }
 0x1e7   : > { %v2087_v15 = vpop.permute.xlu0 %2086  ;;  %v6061_v41 = vadd.f32 %v12274_v14, %v20131_v12  ;;  %v6069_v13 = vadd.f32 %v12282_v52, %v20132_v26 }
 0x1e8   : > { %v12285_v50 = vrot.slane %v20119_v29, 9  ;;  %v2306_v11 = vsel %vm2163_vm10, %v2266_v23, %v2087_v15  ;;  %v20124_v29 = vrot.slane %v14063_v22, 4  ;;  %v6046_v15 = vadd.f32 %v12259_v9, %v20125_v5 }
 0x1e9   : > { %v2344_v18 = vsel %vm20021_vm5, %v2306_v11, %v14821_v55  ;;  %v20128_v55 = vrot.slane %v14100_v60, 6  ;;  %v20130_v22 = vrot.slane %v14146_v43, 6  ;;  %v6055_v9 = vadd.f32 %v12268_v32, %v14183_v10 }
 0x1ea   : > { %v6045_v1 = vadd.f32 %v12258_v49, %v20124_v29  ;;  %v6051_v49 = vadd.f32 %v12264_v62, %v14146_v43  ;;  %v6156_v11 = vadd.f32 %v6052_v56, %v6044_v53  ;;  %v20133_v60 = vrot.slane %v14183_v10, 2  ;;  %v15017_v29 = vpop.permute.xlu2 %2120 }
 0x1eb   : > { %2694 = vmatmul.bf16.gmra.mxu2 %v2344_v18  ;;  %v6050_v23 = vadd.f32 %v12263_v2, %v20128_v55  ;;  %v6054_v31 = vadd.f32 %v12267_v6, %v20130_v22  ;;  %v6059_v62 = vadd.f32 %v12272_v30, %v14220_v47  ;;  %v6067_v18 = vadd.f32 %v12280_v38, %v14287_v44  ;;  %v15052_v12 = vpop.permute.xlu1 %2058 }
 0x1ec   : > { %v6056_v2 = vadd.f32 %v12269_v45, %v20133_v60  ;;  %v20134_v43 = vrot.slane %v14183_v10, 4  ;;  %v20135_v32 = vrot.slane %v14183_v10, 6  ;;  %v20136_v5 = vrot.slane %v14220_v47, 6 }
 0x1ed   : > { %v6063_v53 = vadd.f32 %v12276_v51, %v14254_v27  ;;  %v2148_v45 = vsel %vm20013_vm11, %v14390_v37, %v14734_v61  ;;  %v6064_v56 = vadd.f32 %v12277_v16, %v20137_v7  ;;  %v6165_v51 = vadd.f32 %v6069_v13, %v6061_v41 }
 0x1ee   : > { %v6057_v6 = vadd.f32 %v12270_v21, %v20134_v43  ;;  %v6058_v14 = vadd.f32 %v12271_v8, %v20135_v32  ;;  %v6062_v52 = vadd.f32 %v12275_v63, %v20136_v5  ;;  %v20138_v21 = vrot.slane %v14287_v44, 6  ;;  %v20145_v32 = vld [vmem:[#allocation56_spill] sm:$0xff] }
 0x1ef   : > { %v15029_v30 = vpop.f32.mrf.mxu1  ;;  %v15031_v38 = vpop.permute.xlu0 %2026  ;;  %v6157_v8 = vadd.f32 %v6053_v33, %v6045_v1  ;;  %v2179_v47 = vsel %vm2163_vm10, %v2148_v45, %v14807_v46  ;;  %v6155_v63 = vadd.f32 %v6051_v49, %v6043_v3  ;;  %v6220_v58 = vmul.f32 0.25, %v6156_v11 }
 0x1f0   : > { %v6070_v10 = vadd.f32 %v12283_v19, %v20138_v21  ;;  %v2220_v37 = vsel %vm20021_vm5, %v2179_v47, %v14914_v0  ;;  %v20139_v61 = vrot.slane %v14254_v27, 4  ;;  %v6163_v40 = vadd.f32 %v6067_v18, %v6059_v62  ;;  %v13345_v47 = vld [vmem:[%s20096_s26 + $0x70] sm:$0xff] }
 0x1f1   : > { %v6228_v55 = vmul.f32 0.25, %v6164_v36  ;;  %v20140_v16 = vrot.slane %v14254_v27, 6  ;;  %v6071_v1 = vadd.f32 %v12284_v24, %v14310_v28  ;;  %v20141_v19 = vrot.slane %v14310_v28, 2  ;;  %v13337_v27 = vld [vmem:[%s20096_s26 + $0x30] sm:$0xff]  ;;  %4362 = vmatpush.bf16.msrb.mxu0 %v13345_v47 }
 0x1f2   : > { %v6065_v20 = vadd.f32 %v12278_v4, %v20139_v61  ;;  %2610 = vmatmul.bf16.gmra.mxu1 %v2220_v37  ;;  %v6158_v3 = vadd.f32 %v6054_v31, %v6046_v15  ;;  %v20142_v49 = vrot.slane %v14310_v28, 4  ;;  %v20143_v0 = vrot.slane %v14310_v28, 6  ;;  %4273 = vmatpush.bf16.msrb.mxu3 %v13337_v27  ;;  %v15062_v43 = vpop.permute.xlu2 %1970 }
 0x1f3   : > { %v6066_v44 = vadd.f32 %v12279_v42, %v20140_v16  ;;  %v6072_v46 = vadd.f32 %v12285_v50, %v20141_v19  ;;  %v6166_v22 = vadd.f32 %v6070_v10, %v6062_v52  ;;  %v6221_v4 = vmul.f32 0.25, %v6157_v8  ;;  %v20146_v16 = vld [vmem:[#allocation46_spill] sm:$0xff]  ;;  %v15082_v19 = vpop.permute.xlu1 %1998 }
 0x1f4   : > { %v6073_v25 = vadd.f32 %v12286_v57, %v20142_v49  ;;  %v6074_v33 = vadd.f32 %v12287_v59, %v20143_v0  ;;  %v6159_v42 = vadd.f32 %v6055_v9, %v6047_v17  ;;  %v6219_v24 = vmul.f32 0.25, %v6155_v63 }
 0x1f5   : > { %v6229_v41 = vmul.f32 0.25, %v6165_v51  ;;  %v6284_v26 = vpack.c.bf16 %v6220_v58, %v6220_v58  ;;  %v6160_v50 = vadd.f32 %v6056_v2, %v6048_v48  ;;  %v6161_v15 = vadd.f32 %v6057_v6, %v6049_v35  ;;  %v15068_v6 = vld [vmem:[%s20144_s11] ss:$0 sm:$0xff] }
 0x1f6   : > { %v6227_v31 = vmul.f32 0.25, %v6163_v40  ;;  %v6292_v13 = vpack.c.bf16 %v6228_v55, %v6228_v55  ;;  %v6162_v57 = vadd.f32 %v6058_v14, %v6050_v23  ;;  %v6167_v28 = vadd.f32 %v6071_v1, %v6063_v53 }
 0x1f7   : > { %v6168_v59 = vadd.f32 %v6072_v46, %v6064_v56  ;;  %v6222_v11 = vmul.f32 0.25, %v6158_v3  ;;  %v2269_v60 = vsel %vm20013_vm11, %v14463_v39, %v14923_v54  ;;  %v15060_v62 = vpop.f32.mrf.mxu1  ;;  %v2089_v18 = vpop.permute.xlu0 %2088  ;;  %v6169_v17 = vadd.f32 %v6073_v25, %v6065_v20 }
 0x1f8   : > { %v6230_v9 = vmul.f32 0.25, %v6166_v22  ;;  %v6285_v36 = vpack.c.bf16 %v6221_v4, %v6221_v4  ;;  %v2308_v48 = vsel %vm2163_vm10, %v2269_v60, %v2089_v18  ;;  %v6283_v35 = vpack.c.bf16 %v6219_v24, %v6219_v24 }
 0x1f9   : > { %v6293_v2 = vpack.c.bf16 %v6229_v41, %v6229_v41  ;;  %v6420_v23 = vunpack.c.l.b16 %v6284_v26  ;;  %v2347_v39 = vsel %vm20021_vm5, %v2308_v48, %v20145_v32  ;;  %v6223_v54 = vmul.f32 0.25, %v6159_v42  ;;  %v20148_v42 = vld [vmem:[#allocation54_spill] sm:$0xff] }
 0x1fa   : > { %v6291_v14 = vpack.c.bf16 %v6227_v31, %v6227_v31  ;;  %v6428_v5 = vunpack.c.l.b16 %v6292_v13  ;;  %v6170_v52 = vadd.f32 %v6074_v33, %v6066_v44  ;;  %v6224_v53 = vmul.f32 0.25, %v6160_v50  ;;  %v20147_v44 = vld [vmem:[#allocation18_spill] sm:$0xff] }
 0x1fb   : > { %v6231_v45 = vmul.f32 0.25, %v6167_v28  ;;  %v6286_v7 = vpack.c.bf16 %v6222_v11, %v6222_v11  ;;  %2699 = vmatmul.bf16.gmra.mxu2 %v2347_v39  ;;  %v6225_v56 = vmul.f32 0.25, %v6161_v15  ;;  %v15072_v21 = vmul.f32 0.25, %v6162_v57  ;;  %v20149_v15 = vld [vmem:[#allocation34_spill] sm:$0xff] }
 0x1fc   : > { %v6294_v10 = vpack.c.bf16 %v6230_v9, %v6230_v9  ;;  %v6421_v8 = vunpack.c.l.b16 %v6285_v36  ;;  %v6232_v63 = vmul.f32 0.25, %v6168_v59  ;;  %v6419_v51 = vunpack.c.l.b16 %v6283_v35  ;;  %v15093_v59 = vpop.permute.xlu2 %2122 }
 0x1fd   : > { %v6429_v58 = vunpack.c.l.b16 %v6293_v2  ;;  %v6502_v37 = vrot.slane %v6420_v23, 7  ;;  %v2572_v61 = vadd.f32 %v15068_v6, %v15029_v30  ;;  %v6287_v20 = vpack.c.bf16 %v6223_v54, %v6223_v54 }
 0x1fe   : > { %v6427_v40 = vunpack.c.l.b16 %v6291_v14  ;;  %v6516_v55 = vrot.slane %v6428_v5, 7  ;;  %v2150_v1 = vsel %vm20013_vm11, %v20147_v44, %v20146_v16  ;;  %v2660_v46 = vpop.f32.mrf.mxu2  ;;  %v6233_v3 = vmul.f32 0.25, %v6169_v17 }
 0x1ff   : > { %v6295_v49 = vpack.c.bf16 %v6231_v45, %v6231_v45  ;;  %v6422_v25 = vunpack.c.l.b16 %v6286_v7  ;;  %v2661_v0 = vadd.f32 %v2660_v46, %v2572_v61  ;;  %v15084_v33 = vpop.permute.xlu0 %2028  ;;  %v2576_v22 = vpop.f32.mrf.mxu1  ;;  %v6288_v4 = vpack.c.bf16 %v6224_v53, %v6224_v53  ;;  %v20150_v45 = vld [vmem:[#allocation23_spill] sm:$0xff] }
 0x200   : > { %v6430_v30 = vunpack.c.l.b16 %v6294_v10  ;;  %v6504_v27 = vrot.slane %v6421_v8, 6  ;;  %v2181_v24 = vsel %vm2163_vm10, %v2150_v1, %v20148_v42  ;;  %v6296_v41 = vpack.c.bf16 %v6232_v63, %v6232_v63  ;;  %v15106_v63 = vpop.permute.xlu1 %2060  ;;  %v20152_v42 = vld [vmem:[#allocation52_spill] sm:$0xff] }
 0x201   : > { %v6503_v26 = vsel %vm20022_vm7, %v6502_v37, %v6419_v51  ;;  %v6518_v50 = vrot.slane %v6429_v58, 6  ;;  %v2750_v31 = vadd.f32 %v20149_v15, %v2661_v0  ;;  %v2223_v13 = vsel %vm20021_vm5, %v2181_v24, %v15031_v38  ;;  %v20153_v24 = vld [vmem:[#allocation21_spill] sm:$0xff] }
 0x202   : > { %v6423_v57 = vunpack.c.l.b16 %v6287_v20  ;;  %v6517_v28 = vsel %vm20022_vm7, %v6516_v55, %v6427_v40  ;;  %2615 = vmatmul.bf16.gmra.mxu1 %v2223_v13  ;;  %v6234_v11 = vmul.f32 0.25, %v6170_v52  ;;  %v6431_v60 = vunpack.c.l.b16 %v6295_v49  ;;  %v20151_v20 = vld [vmem:[#allocation37_spill] sm:$0xff] }
 0x203   : > { %v6506_v18 = vrot.slane %v6422_v25, 5  ;;  %v6289_v17 = vpack.c.bf16 %v6225_v56, %v6225_v56  ;;  %v6505_v9 = vsel %vm6471_vm12, %v6504_v27, %v6503_v26  ;;  %v6520_v36 = vrot.slane %v6430_v30, 5 }
 0x204   : > { %v6297_v48 = vpack.c.bf16 %v6233_v3, %v6233_v3  ;;  %v6424_v35 = vunpack.c.l.b16 %v6288_v4  ;;  %v6432_v2 = vunpack.c.l.b16 %v6296_v41  ;;  %v6519_v23 = vsel %vm6471_vm12, %v6518_v50, %v6517_v28  ;;  %v15115_v25 = vpop.permute.xlu2 %1972 }
 0x205   : > { %v2574_v38 = vadd.f32 %v15068_v6, %v15060_v62  ;;  %v2861_v32 = vmul.f32 0.2, %v2750_v31  ;;  %v6290_v39 = vpack.c.bf16 %v15072_v21, %v15072_v21  ;;  %v6508_v54 = vrot.slane %v6423_v57, 4 }
 0x206   : > { %vm2829_vm1 = vcmp.gt.f32.partialorder %v2750_v31, 0.0  ;;  %v2662_v14 = vpop.f32.mrf.mxu2  ;;  %v6298_v5 = vpack.c.bf16 %v6234_v11, %v6234_v11  ;;  %v6507_v52 = vsel %vm6474_vm13, %v6506_v18, %v6505_v9  ;;  %v6522_v53 = vrot.slane %v6431_v60, 4  ;;  %v20154_v9 = vld [vmem:[#allocation40_spill] sm:$0xff] }
 0x207   : > { %v2272_v7 = vsel %vm20013_vm11, %v20150_v45, %v15052_v12  ;;  %v2663_v56 = vadd.f32 %v2662_v14, %v2574_v38  ;;  %v2091_v10 = vpop.permute.xlu0 %2090  ;;  %v2578_v8 = vpop.f32.mrf.mxu1  ;;  %v6425_v47 = vunpack.c.l.b16 %v6289_v17  ;;  %v6521_v62 = vsel %vm6474_vm13, %v6520_v36, %v6519_v23  ;;  %v20155_v38 = vld [vmem:[#allocation58_spill] sm:$0xff] }
 0x208   : > { %v2310_v21 = vsel %vm2163_vm10, %v2272_v7, %v2091_v10  ;;  %v6433_v51 = vunpack.c.l.b16 %v6297_v48  ;;  %v6510_v58 = vrot.slane %v6424_v35, 3  ;;  %v6524_v37 = vrot.slane %v6432_v2, 3  ;;  %v15134_v35 = vpop.permute.xlu1 %2000  ;;  %v20159_v14 = vld [vmem:[#allocation14_spill] sm:$0xff]  ;;  %v20160_v7 = vld [vmem:[#allocation16_spill] sm:$0xff] }
 0x209   : > { %v2893_v61 = vsel %vm2829_vm1, %v2750_v31, %v2861_v32  ;;  %v2752_v40 = vadd.f32 %v20151_v20, %v2663_v56  ;;  %v2350_v12 = vsel %vm20021_vm5, %v2310_v21, %v15017_v29  ;;  %v6509_v55 = vsel %vm6477_vm14, %v6508_v54, %v6507_v52  ;;  %v20156_v32 = vld [vmem:[#allocation25_spill] sm:$0xff]  ;;  %v15148_v52 = vpop.f32.mrf.mxu3  ;;  %v20161_v21 = vld [vmem:[#allocation19_spill] sm:$0xff] }
 0x20a   : > { %v6426_v16 = vunpack.c.l.b16 %v6290_v39  ;;  %v6523_v44 = vsel %vm6477_vm14, %v6522_v53, %v6521_v62  ;;  %v6434_v46 = vunpack.c.l.b16 %v6298_v5  ;;  %v6512_v3 = vrot.slane %v6425_v47, 2 }
 0x20b   : > { %vm2830_vm0 = vcmp.gt.f32.partialorder %v2752_v40, 0.0  ;;  %v2862_v1 = vmul.f32 0.2, %v2752_v40  ;;  %2704 = vmatmul.bf16.gmra.mxu2 %v2350_v12  ;;  %v2925_v49 = vpack.c.bf16 %v2893_v61, %v2893_v61  ;;  %v6511_v0 = vsel %vm6480_vm15, %v6510_v58, %v6509_v55  ;;  %v13336_v12 = vld [vmem:[%s20096_s26 + $0x28] sm:$0xff] }
 0x20c   : > { %v6526_v4 = vrot.slane %v6433_v51, 2  ;;  %v2577_v30 = vadd.f32 %v15068_v6, %v2576_v22  ;;  %v6525_v29 = vsel %vm6480_vm15, %v6524_v37, %v6523_v44  ;;  %v2152_v41 = vsel %vm20013_vm11, %v20153_v24, %v20152_v42  ;;  %v15154_v58 = vpop.permute.xlu2 %2124  ;;  %v20162_v55 = vld [vmem:[#allocation27_spill] sm:$0xff]  ;;  %4274 = vmatpush.bf16.msrb.mxu3 %v13336_v12  ;;  %v20164_v42 = vld [vmem:[#allocation44_spill] sm:$0xff] }
 0x20d   : > { %v2894_v27 = vsel %vm2830_vm0, %v2752_v40, %v2862_v1  ;;  %v6513_v57 = vsel %vm19963_vm2, %v6512_v3, %v6511_v0  ;;  %v6514_v28 = vrot.slane %v6426_v16, 1  ;;  %v6528_v11 = vrot.slane %v6434_v46, 1 }
 0x20e   : > { %v2926_v26 = vpack.c.bf16 %v2894_v27, %v2894_v27  ;;  %v2665_v50 = vpop.f32.mrf.mxu2  ;;  %v2183_v22 = vsel %vm2163_vm10, %v2152_v41, %v14992_v34  ;;  %v2973_v60 = vunpack.c.l.b16 %v2925_v49  ;;  %v6527_v17 = vsel %vm19963_vm2, %v6526_v4, %v6525_v29 }
 0x20f   : > { %v2666_v15 = vadd.f32 %v2665_v50, %v2577_v30  ;;  %v15123_v31 = vpop.permute.xlu0 %2030  ;;  %v15125_v13 = vpop.f32.mrf.mxu1  ;;  %v2226_v48 = vsel %vm20021_vm5, %v2183_v22, %v15084_v33  ;;  %v15139_v39 = vsel %vm20013_vm11, %v20156_v32, %v20155_v38  ;;  %v15142_v34 = vsel %vm19962_vm3, %v6514_v28, %v6513_v57  ;;  %v20163_v30 = vld [vmem:[#allocation22_spill] sm:$0xff]  ;;  %v20174_v28 = vld [vmem:[#allocation51_spill] sm:$0xff] }
 0x210   : > { %v3085_v18 = vunpack.c.l.b16 %v2926_v26  ;;  %20157 = vst [vmem:[#allocation56_spill] sm:$0xff] %v15142_v34  ;;  %v15145_v54 = vsel %vm19962_vm3, %v6528_v11, %v6527_v17  ;;  %v19911_v5 = vrot.slane %v20159_v14, 2  ;;  %v2989_v33 = vpack.c.b16 %v2973_v60, %v2973_v60  ;;  %v13344_v17 = vld [vmem:[%s20096_s26 + $0x68] sm:$0xff] }
 0x211   : > { %v2755_v36 = vadd.f32 %v20154_v9, %v2666_v15  ;;  %20158 = vst [vmem:[#allocation46_spill] sm:$0xff] %v15145_v54  ;;  %v19909_v56 = vrot.slane %v20160_v7, 2  ;;  %v2579_v10 = vadd.f32 %v15068_v6, %v2578_v8  ;;  %v19910_v62 = vrot.slane %v20159_v14, 4  ;;  %4363 = vmatpush.bf16.msrb.mxu0 %v13344_v17 }
 0x212   : > { %v3101_v2 = vpack.c.b16 %v3085_v18, %v2973_v60  ;;  %v3261_v23 = vpack.c.b16 %v3085_v18, %v3085_v18  ;;  %2620 = vmatmul.bf16.gmra.mxu1 %v2226_v48  ;;  %v19919_v51 = vrot.slane %v20161_v21, 2  ;;  %v2275_v8 = vsel %vm20013_vm11, %v20162_v55, %v15106_v63  ;;  %v2063_v60 = vpop.permute.xlu1 %2062 }
 0x213   : > { %v2863_v47 = vmul.f32 0.2, %v2755_v36  ;;  %vm2831_vm0 = vcmp.gt.f32.partialorder %v2755_v36, 0.0  ;;  %v19916_v46 = vrot.slane %v20160_v7, 4  ;;  %v3006_v0 = vshrl.u32 %v2989_v33, 16  ;;  %v15205_v33 = vpop.f32.mrf.mxu3 }
 0x214   : > { %v3278_v53 = vshll.u32 %v3261_v23, 16  ;;  %v3118_v45 = vshrl.u32 %v3101_v2, 16  ;;  %v3121_v20 = vshll.u32 %v3101_v2, 16  ;;  %v19912_v15 = vrot.slane %v20159_v14, 6 }
 0x215   : > { %v2895_v29 = vsel %vm2831_vm0, %v2755_v36, %v2863_v47  ;;  %v19917_v57 = vrot.slane %v20160_v7, 6  ;;  %v15194_v48 = vrot.slane %v19911_v5, 9  ;;  %v2582_v2 = vadd.f32 %v15068_v6, %v15125_v13 }
 0x216   : > { %v2667_v37 = vpop.f32.mrf.mxu2  ;;  %v3120_v61 = vrot.slane %v3118_v45, 7  ;;  %v3280_v40 = vrot.slane %v3278_v53, 3  ;;  %v2927_v18 = vpack.c.bf16 %v2895_v29, %v2895_v29  ;;  %v15203_v32 = vrot.slane %v19910_v62, 9 }
 0x217   : > { %v2668_v16 = vadd.f32 %v2667_v37, %v2579_v10  ;;  %v2093_v44 = vpop.permute.xlu0 %2092  ;;  %v15162_v1 = vpop.f32.mrf.mxu1  ;;  %v20167_v10 = vld [vmem:[#allocation15_spill] sm:$0xff]  ;;  %v20168_v37 = vld [vmem:[#allocation17_spill] sm:$0xff] }
 0x218   : > { %v2312_v49 = vsel %vm2163_vm10, %v2275_v8, %v2093_v44  ;;  %v3123_v4 = vor.u32 %v3121_v20, %v3120_v61  ;;  %v15174_v26 = vsel %vm13934_vm8, %v3120_v61, %v3280_v40  ;;  %v19913_v47 = vrot.slane %v20167_v10, 2 }
 0x219   : > { %v2757_v24 = vadd.f32 %v20164_v42, %v2668_v16  ;;  %v2353_v63 = vsel %vm20021_vm5, %v2312_v49, %v15093_v59  ;;  %v3603_v22 = vrot.slane %v15174_v26, 1  ;;  %v19921_v13 = vrot.slane %v20168_v37, 2  ;;  %v20169_v16 = vld [vmem:[#allocation20_spill] sm:$0xff] }
 0x21a   : > { %v15178_v50 = vsel %vm13934_vm8, %v3006_v0, %v3123_v4  ;;  %v15213_v61 = vrot.slane %v19909_v56, 9  ;;  %v19915_v55 = vrot.slane %v20167_v10, 4  ;;  %v19920_v8 = vrot.slane %v20168_v37, 4  ;;  %v15225_v4 = vpop.permute.xlu2 %1974  ;;  %v20172_v56 = vld [vmem:[#allocation50_spill] sm:$0xff] }
 0x21b   : > { %20166 = vst [vmem:[#allocation18_spill] sm:$0xff] %v15178_v50  ;;  %vm2832_vm1 = vcmp.gt.f32.partialorder %v2757_v24, 0.0  ;;  %v2864_v11 = vmul.f32 0.2, %v2757_v24  ;;  %2709 = vmatmul.bf16.gmra.mxu2 %v2353_v63  ;;  %3721 = vrot.lane.b32.xlu0 %v15178_v50, %s19958_s5  ;;  %v3602_v59 = vrot.slane %v15178_v50, 1  ;;  %v2185_v49 = vsel %vm2163_vm10, %v15139_v39, %v15082_v19  ;;  %v20171_v39 = vld [vmem:[#allocation24_spill] sm:$0xff]  ;;  %v15262_v44 = vpop.f32.mrf.mxu3 }
 0x21c   : > { %v2974_v0 = vunpack.c.l.b16 %v2927_v18  ;;  %v1932_v5 = vshrl.u32 %v20172_v56, 16  ;;  %v20188_v34 = vrot.slane %v20169_v16, 4 }
 0x21d   : > { %v2896_v23 = vsel %vm2832_vm1, %v2757_v24, %v2864_v11  ;;  %v15199_v38 = vsel %vm1885_vm6, %v3602_v59, %v3603_v22  ;;  %v20170_v24 = vld [vmem:[#allocation47_spill] sm:$0xff]  ;;  %v2229_v11 = vsel %vm20021_vm5, %v2185_v49, %v15123_v31  ;;  %v19914_v59 = vrot.slane %v20167_v10, 6 }
 0x21e   : > { %v2928_v53 = vpack.c.bf16 %v2896_v23, %v2896_v23  ;;  %v2670_v45 = vpop.f32.mrf.mxu2  ;;  %3753 = vrot.lane.b32.xlu1 %v15199_v38, %s19998_s7  ;;  %v19918_v22 = vrot.slane %v20168_v37, 6  ;;  %v15240_v31 = vrot.slane %v19912_v15, 9 }
 0x21f   : > { %v2671_v20 = vadd.f32 %v2670_v45, %v2582_v2  ;;  %v15215_v40 = vpop.permute.xlu0 %2032  ;;  %v15217_v12 = vpop.f32.mrf.mxu1 }
 0x220   : > { %v3086_v29 = vunpack.c.l.b16 %v2928_v53  ;;  %v15248_v53 = vrot.slane %v19913_v47, 9  ;;  %v15250_v45 = vpop.permute.xlu1 %2002  ;;  %v15259_v47 = vrot.slane %v19915_v55, 9 }
 0x221   : > { %v2760_v63 = vadd.f32 %v20170_v24, %v2671_v20  ;;  %v2990_v20 = vpack.c.b16 %v2974_v0, %v2974_v0 }
 0x222   : > { %v3102_v17 = vpack.c.b16 %v3086_v29, %v2974_v0  ;;  %v3262_v2 = vpack.c.b16 %v3086_v29, %v3086_v29  ;;  %2625 = vmatmul.bf16.gmra.mxu1 %v2229_v11  ;;  %v1934_v29 = vshll.u32 %v20172_v56, 16  ;;  %v2584_v11 = vadd.f32 %v15068_v6, %v15162_v1 }
 0x223   : > { %v2865_v62 = vmul.f32 0.2, %v2760_v63  ;;  %vm2833_vm0 = vcmp.gt.f32.partialorder %v2760_v63, 0.0  ;;  %v3009_v19 = vshrl.u32 %v2990_v20, 16 }
 0x224   : > { %v3125_v49 = vshrl.u32 %v3102_v17, 16  ;;  %v3282_v24 = vshll.u32 %v3262_v2, 16  ;;  %v3128_v15 = vshll.u32 %v3102_v17, 16  ;;  %v20173_v2 = vld [vmem:[#allocation30_spill] sm:$0xff]  ;;  %v1936_v42 = vrot.slane %v1934_v29, 1 }
 0x225   : > { %v2278_v36 = vsel %vm20013_vm11, %v20173_v2, %v2063_v60  ;;  %v15269_v2 = vpop.permute.xlu2 %2126 }
 0x226   : > { %v3127_v23 = vrot.slane %v3125_v49, 7  ;;  %v2672_v0 = vpop.f32.mrf.mxu2  ;;  %v3284_v18 = vrot.slane %v3282_v24, 3  ;;  %v2897_v24 = vsel %vm2833_vm0, %v2760_v63, %v2865_v62  ;;  %v20177_v63 = vld [vmem:[#allocation29_spill] sm:$0xff] }
 0x227   : > { %v2673_v9 = vadd.f32 %v2672_v0, %v2584_v11  ;;  %v2095_v27 = vpop.permute.xlu0 %2094  ;;  %v15254_v1 = vpop.f32.mrf.mxu1 }
 0x228   : > { %v2314_v49 = vsel %vm2163_vm10, %v2278_v36, %v2095_v27  ;;  %v3130_v17 = vor.u32 %v3128_v15, %v3127_v23  ;;  %v3374_v0 = vsel %vm13934_vm8, %v3127_v23, %v3284_v18  ;;  %v20176_v27 = vld [vmem:[#allocation49_spill] sm:$0xff]  ;;  %v15278_v36 = vrot.slane %v19914_v59, 9 }
 0x229   : > { %v2762_v60 = vadd.f32 %v20174_v28, %v2673_v9  ;;  %v2356_v11 = vsel %vm20021_vm5, %v2314_v49, %v15154_v58  ;;  %v1939_v15 = vshll.u32 %v20176_v27, 16  ;;  %v3600_v9 = vrot.slane %v3374_v0, 1 }
 0x22a   : > { %v15273_v20 = vsel %vm13934_vm8, %v3009_v19, %v3130_v17  ;;  %v2156_v19 = vsel %vm20013_vm11, %v20177_v63, %v15062_v43  ;;  %v2929_v18 = vpack.c.bf16 %v2897_v24, %v2897_v24  ;;  %v3397_v29 = vshll.u32 %v3374_v0, 16 }
 0x22b   : > { %20175 = vst [vmem:[#allocation54_spill] sm:$0xff] %v15273_v20  ;;  %vm2834_vm1 = vcmp.gt.f32.partialorder %v2762_v60, 0.0  ;;  %v2866_v28 = vmul.f32 0.2, %v2762_v60  ;;  %2714 = vmatmul.bf16.gmra.mxu2 %v2356_v11  ;;  %3785 = vrot.lane.b32.xlu0 %v15273_v20, %s19935_s0  ;;  %v3599_v58 = vrot.slane %v15273_v20, 1  ;;  %v3392_v23 = vshll.u32 %v15273_v20, 16 }
 0x22c   : > { %v2587_v49 = vadd.f32 %v15068_v6, %v15217_v12  ;;  %v1937_v27 = vor.u32 %v1936_v42, %v1932_v5  ;;  %v3390_v55 = vshrl.u32 %v15273_v20, 16  ;;  %v1941_v24 = vrot.slane %v1939_v15, 1 }
 0x22d   : > { %v2898_v17 = vsel %vm2834_vm1, %v2762_v60, %v2866_v28  ;;  %v15291_v11 = vsel %vm1885_vm6, %v3599_v58, %v3600_v9  ;;  %v3394_v43 = vrot.slane %v3392_v23, 1  ;;  %v2187_v0 = vsel %vm2163_vm10, %v2156_v19, %v15134_v35  ;;  %v2065_v60 = vpop.permute.xlu1 %2064  ;;  %v20179_v23 = vld [vmem:[#allocation55_spill] sm:$0xff] }
 0x22e   : > { %20178 = vst [vmem:[#allocation34_spill] sm:$0xff] %v15291_v11  ;;  %v2930_v62 = vpack.c.bf16 %v2898_v17, %v2898_v17  ;;  %v2675_v59 = vpop.f32.mrf.mxu2  ;;  %3691 = vrot.lane.b32.xlu2 %v15291_v11, %s19935_s0  ;;  %v15304_v5 = vrot.slane %v19916_v46, 9  ;;  %v15308_v42 = vrot.slane %v19917_v57, 9  ;;  %v2975_v28 = vunpack.c.l.b16 %v2929_v18 }
 0x22f   : > { %v2676_v63 = vadd.f32 %v2675_v59, %v2587_v49  ;;  %v15298_v3 = vpop.permute.xlu0 %2034  ;;  %v15300_v12 = vpop.f32.mrf.mxu1  ;;  %v3395_v15 = vor.u32 %v3394_v43, %v3390_v55  ;;  %v3399_v9 = vrot.slane %v3397_v29, 1  ;;  %v2232_v59 = vsel %vm20021_vm5, %v2187_v0, %v15215_v40 }
 0x230   : > { %v3087_v58 = vunpack.c.l.b16 %v2930_v62  ;;  %v15316_v49 = vrot.slane %v19921_v13, 9  ;;  %v15322_v55 = vsel %vm1674_vm9, %v1937_v27, %v1941_v24  ;;  %v15324_v62 = vpop.f32.mrf.mxu3  ;;  %v15332_v40 = vrot.slane %v19920_v8, 9  ;;  %v15343_v24 = vpop.permute.xlu2 %2068 }
 0x231   : > { %v2765_v35 = vadd.f32 %v20179_v23, %v2676_v63  ;;  %v15319_v57 = vsel %vm1674_vm9, %v3395_v15, %v3399_v9  ;;  %20181 = vst [vmem:[#allocation37_spill] sm:$0xff] %v15322_v55  ;;  %v15336_v18 = vrot.slane %v19918_v22, 9  ;;  %v15341_v27 = vrot.slane %v19919_v51, 9 }
 0x232   : > { %v3103_v17 = vpack.c.b16 %v3087_v58, %v2975_v28  ;;  %v3263_v46 = vpack.c.b16 %v3087_v58, %v3087_v58  ;;  %2630 = vmatmul.bf16.gmra.mxu1 %v2232_v59  ;;  %20180 = vst [vmem:[#allocation23_spill] sm:$0xff] %v15319_v57  ;;  %3661 = vrot.lane.b32.xlu1 %v15319_v57, %s19998_s7  ;;  %v20184_v58 = vrot.slane %v20161_v21, 4  ;;  %v3404_v59 = vshll.u32 %v15178_v50, 16 }
 0x233   : > { %20182 = vst [vmem:[#allocation52_spill] sm:$0xff] %v15324_v62  ;;  %2130 = vrot.lane.b32.xlu0 %v15322_v55, %s19958_s5  ;;  %v2991_v43 = vpack.c.b16 %v2975_v28, %v2975_v28  ;;  %v2589_v9 = vadd.f32 %v15068_v6, %v15254_v1  ;;  %v2867_v23 = vmul.f32 0.2, %v2765_v35  ;;  %v20185_v29 = vrot.slane %v20161_v21, 6  ;;  %v20186_v1 = vld [vmem:[#allocation36_spill] sm:$0xff] }
 0x234   : > { %20183 = vst [vmem:[#allocation21_spill] sm:$0xff] %v15343_v24  ;;  %v3286_v0 = vshll.u32 %v3263_v46, 16  ;;  %v3132_v63 = vshrl.u32 %v3103_v17, 16  ;;  %v15347_v15 = vrot.slane %v20184_v58, 9  ;;  %v3135_v51 = vshll.u32 %v3103_v17, 16  ;;  %v13335_v58 = vld [vmem:[%s20096_s26 + $0x20] sm:$0xff] }
 0x235   : > { %v15354_v22 = vrot.slane %v20185_v29, 9  ;;  %vm2835_vm0 = vcmp.gt.f32.partialorder %v2765_v35, 0.0  ;;  %v2281_v13 = vsel %vm20013_vm11, %v20186_v1, %v2065_v60  ;;  %v20187_v29 = vrot.slane %v20169_v16, 2  ;;  %4275 = vmatpush.bf16.msrb.mxu3 %v13335_v58  ;;  %v20189_v60 = vld [vmem:[#allocation57_spill] sm:$0xff] }
 0x236   : > { %v3288_v28 = vrot.slane %v3286_v0, 3  ;;  %v2677_v8 = vpop.f32.mrf.mxu2  ;;  %3815 = vrot.lane.b32.xlu2 %v15319_v57, %s19958_s5  ;;  %v3134_v46 = vrot.slane %v3132_v63, 7  ;;  %v3012_v54 = vshrl.u32 %v2991_v43, 16  ;;  %v15373_v62 = vrot.slane %v20188_v34, 9  ;;  %v15383_v43 = vpop.permute.xlu1 %2004 }
 0x237   : > { %v2678_v19 = vadd.f32 %v2677_v8, %v2589_v9  ;;  %v2097_v55 = vpop.permute.xlu0 %2096  ;;  %v15363_v24 = vpop.f32.mrf.mxu1  ;;  %v15368_v0 = vrot.slane %v20187_v29, 9  ;;  %v2899_v8 = vsel %vm2835_vm0, %v2765_v35, %v2867_v23  ;;  %v20191_v34 = vrot.slane %v20169_v16, 6 }
 0x238   : > { %v2316_v63 = vsel %vm2163_vm10, %v2281_v13, %v2097_v55  ;;  %v3137_v57 = vor.u32 %v3135_v51, %v3134_v46  ;;  %v15381_v29 = vsel %vm13934_vm8, %v3134_v46, %v3288_v28  ;;  %v3406_v13 = vrot.slane %v3404_v59, 1  ;;  %v13343_v28 = vld [vmem:[%s20096_s26 + $0x60] sm:$0xff]  ;;  %v15409_v58 = vpop.f32.mrf.mxu3 }
 0x239   : > { %v2767_v9 = vadd.f32 %v20189_v60, %v2678_v19  ;;  %v2359_v1 = vsel %vm20021_vm5, %v2316_v63, %v15269_v2  ;;  %v15391_v55 = vrot.slane %v20191_v34, 9  ;;  %v3421_v23 = vshll.u32 %v15381_v29, 16  ;;  %20193 = vst [vmem:[#allocation58_spill] sm:$0xff] %v15409_v58  ;;  %v15414_v34 = vpop.permute.xlu2 %1976  ;;  %4364 = vmatpush.bf16.msrb.mxu0 %v13343_v28 }
 0x23a   : > { %v15387_v51 = vsel %vm13934_vm8, %v3012_v54, %v3137_v57  ;;  %2100 = vrot.lane.b32.xlu1 %v20172_v56, %s19935_s0  ;;  %v2931_v59 = vpack.c.bf16 %v2899_v8, %v2899_v8  ;;  %v3402_v54 = vshrl.u32 %v15178_v50, 16  ;;  %v3409_v57 = vshll.u32 %v15174_v26, 16  ;;  %20194 = vst [vmem:[#allocation25_spill] sm:$0xff] %v15414_v34 }
 0x23b   : > { %20190 = vst [vmem:[#allocation40_spill] sm:$0xff] %v15387_v51  ;;  %vm2836_vm1 = vcmp.gt.f32.partialorder %v2767_v9, 0.0  ;;  %v2868_v19 = vmul.f32 0.2, %v2767_v9  ;;  %2719 = vmatmul.bf16.gmra.mxu2 %v2359_v1  ;;  %v3416_v2 = vshll.u32 %v15387_v51, 16  ;;  %3723 = vrot.lane.b32.xlu0 %v15273_v20, %s19958_s5  ;;  %v20192_v46 = vrot.slane %v20163_v30, 2 }
 0x23c   : > { %v2592_v63 = vadd.f32 %v15068_v6, %v15300_v12  ;;  %v3414_v60 = vshrl.u32 %v15387_v51, 16  ;;  %v3407_v17 = vor.u32 %v3406_v13, %v3402_v54  ;;  %v20196_v20 = vrot.slane %v20163_v30, 6 }
 0x23d   : > { %v15407_v56 = vrot.slane %v20192_v46, 9  ;;  %v2900_v8 = vsel %vm2836_vm1, %v2767_v9, %v2868_v19  ;;  %v3418_v1 = vrot.slane %v3416_v2, 1  ;;  %v20195_v46 = vrot.slane %v20163_v30, 4  ;;  %v20198_v9 = vld [vmem:[#allocation33_spill] sm:$0xff] }
 0x23e   : > { %v2932_v26 = vpack.c.bf16 %v2900_v8, %v2900_v8  ;;  %v2680_v35 = vpop.f32.mrf.mxu2  ;;  %3693 = vrot.lane.b32.xlu2 %v15199_v38, %s19935_s0  ;;  %v15424_v12 = vrot.slane %v20196_v20, 9  ;;  %v2158_v19 = vsel %vm20013_vm11, %v20198_v9, %v15115_v25  ;;  %v3423_v13 = vrot.slane %v3421_v23, 1 }
 0x23f   : > { %v15420_v50 = vrot.slane %v20195_v46, 9  ;;  %v2681_v2 = vadd.f32 %v2680_v35, %v2592_v63  ;;  %v15429_v8 = vpop.permute.xlu0 %2036  ;;  %v15431_v58 = vpop.f32.mrf.mxu1  ;;  %v3419_v38 = vor.u32 %v3418_v1, %v3414_v60  ;;  %v2189_v54 = vsel %vm2163_vm10, %v2158_v19, %v15250_v45 }
 0x240   : > { %20197 = vst [vmem:[#allocation14_spill] sm:$0xff] %v15424_v12  ;;  %v2976_v28 = vunpack.c.l.b16 %v2931_v59  ;;  %v3088_v46 = vunpack.c.l.b16 %v2932_v26  ;;  %v3411_v34 = vrot.slane %v3409_v57, 1  ;;  %v2235_v12 = vsel %vm20021_vm5, %v2189_v54, %v15298_v3  ;;  %v2067_v19 = vpop.permute.xlu1 %2066 }
 0x241   : > { %v2770_v20 = vadd.f32 %v15148_v52, %v2681_v2  ;;  %v15439_v25 = vsel %vm1674_vm9, %v3419_v38, %v3423_v13  ;;  %v20201_v45 = vrot.slane %v20171_v39, 2  ;;  %v20202_v57 = vrot.slane %v20171_v39, 4 }
 0x242   : > { %20199 = vst [vmem:[#allocation16_spill] sm:$0xff] %v15439_v25  ;;  %v3104_v63 = vpack.c.b16 %v3088_v46, %v2976_v28  ;;  %2635 = vmatmul.bf16.gmra.mxu1 %v2235_v12  ;;  %v15443_v23 = vsel %vm1674_vm9, %v3407_v17, %v3411_v34  ;;  %v20203_v3 = vrot.slane %v20171_v39, 6  ;;  %v20204_v1 = vrot.slane %v20159_v14, 9 }
 0x243   : > { %20200 = vst [vmem:[#allocation19_spill] sm:$0xff] %v15443_v23  ;;  %v15447_v59 = vrot.slane %v20201_v45, 9  ;;  %v15451_v52 = vrot.slane %v20202_v57, 9  ;;  %3663 = vrot.lane.b32.xlu1 %v15443_v23, %s19998_s7  ;;  %v20205_v34 = vrot.slane %v20159_v14, 2  ;;  %v20206_v12 = vrot.slane %v20159_v14, 4  ;;  %3817 = vrot.lane.b32.xlu0 %v15439_v25, %s19958_s5 }
 0x244   : > { %v15457_v60 = vrot.slane %v20203_v3, 9  ;;  %v15462_v17 = vadd.f32 %v20204_v1, %v20159_v14  ;;  %v2992_v2 = vpack.c.b16 %v2976_v28, %v2976_v28  ;;  %v3139_v38 = vshrl.u32 %v3104_v63, 16 }
 0x245   : > { %v15467_v26 = vadd.f32 %v15194_v48, %v20205_v34  ;;  %v15472_v9 = vadd.f32 %v15203_v32, %v20206_v12  ;;  %v2869_v13 = vmul.f32 0.2, %v2770_v20  ;;  %v20207_v54 = vrot.slane %v20159_v14, 6  ;;  %v15490_v14 = vpop.permute.xlu2 %2128 }
 0x246   : > { %v3264_v57 = vpack.c.b16 %v3088_v46, %v3088_v46  ;;  %v2594_v48 = vadd.f32 %v15068_v6, %v15363_v24  ;;  %vm2837_vm0 = vcmp.gt.f32.partialorder %v2770_v20, 0.0  ;;  %v20208_v32 = vrot.slane %v20167_v10, 9  ;;  %v2682_v34 = vpop.f32.mrf.mxu2  ;;  %3787 = vrot.lane.b32.xlu2 %v15387_v51, %s19935_s0  ;;  %20210 = vst [vmem:[#allocation22_spill] sm:$0xff] %v15490_v14 }
 0x247   : > { %v15479_v45 = vadd.f32 %v15240_v31, %v20207_v54  ;;  %v3141_v28 = vrot.slane %v3139_v38, 7  ;;  %v3142_v1 = vshll.u32 %v3104_v63, 16  ;;  %v20211_v31 = vrot.slane %v20167_v10, 2  ;;  %v20213_v54 = vld [vmem:[#allocation42_spill] sm:$0xff]  ;;  %v15506_v35 = vpop.f32.mrf.mxu1 }
 0x248   : > { %v15486_v3 = vadd.f32 %v20208_v32, %v20167_v10  ;;  %v20212_v24 = vrot.slane %v20167_v10, 4  ;;  %v2284_v38 = vsel %vm20013_vm11, %v20213_v54, %v2067_v19  ;;  %v2683_v63 = vadd.f32 %v2682_v34, %v2594_v48  ;;  %v15504_v32 = vpop.permute.xlu0 %2098  ;;  %v15521_v34 = vpop.f32.mrf.mxu3 }
 0x249   : > { %v15495_v46 = vadd.f32 %v15248_v53, %v20211_v31  ;;  %20214 = vst [vmem:[#allocation44_spill] sm:$0xff] %v15504_v32  ;;  %v20215_v23 = vrot.slane %v20167_v10, 6  ;;  %v20216_v53 = vrot.slane %v20160_v7, 9  ;;  %v2318_v19 = vsel %vm2163_vm10, %v2284_v38, %v15504_v32 }
 0x24a   : > { %20209 = vst [vmem:[#allocation27_spill] sm:$0xff] %v15486_v3  ;;  %v15500_v12 = vadd.f32 %v15259_v47, %v20212_v24  ;;  %v3015_v47 = vshrl.u32 %v2992_v2, 16  ;;  %v2901_v24 = vsel %vm2837_vm0, %v2770_v20, %v2869_v13  ;;  %v3144_v48 = vor.u32 %v3142_v1, %v3141_v28 }
 0x24b   : > { %v15511_v3 = vadd.f32 %v15278_v36, %v20215_v23  ;;  %v15516_v31 = vadd.f32 %v20216_v53, %v20160_v7  ;;  %v3290_v54 = vshll.u32 %v3264_v57, 16  ;;  %v2772_v10 = vadd.f32 %v15205_v33, %v2683_v63  ;;  %3755 = vrot.lane.b32.xlu1 %v15291_v11, %s19998_s7 }
 0x24c   : > { %v2362_v36 = vsel %vm20021_vm5, %v2318_v19, %v15490_v14  ;;  %v3605_v23 = vrot.slane %v15387_v51, 1  ;;  %v15529_v53 = vsel %vm13934_vm8, %v3015_v47, %v3144_v48  ;;  %v20218_v20 = vrot.slane %v20160_v7, 2 }
 0x24d   : > { %20217 = vst [vmem:[#allocation15_spill] sm:$0xff] %v15529_v53  ;;  %v20219_v13 = vrot.slane %v20160_v7, 4  ;;  %v20220_v33 = vrot.slane %v20160_v7, 6  ;;  %v2933_v38 = vpack.c.bf16 %v2901_v24, %v2901_v24  ;;  %vm2838_vm1 = vcmp.gt.f32.partialorder %v2772_v10, 0.0  ;;  %2724 = vmatmul.bf16.gmra.mxu2 %v2362_v36  ;;  %3789 = vrot.lane.b32.xlu0 %v15529_v53, %s19935_s0 }
 0x24e   : > { %v15534_v2 = vadd.f32 %v15213_v61, %v20218_v20  ;;  %v2870_v63 = vmul.f32 0.2, %v2772_v10  ;;  %v3606_v61 = vrot.slane %v15381_v29, 1  ;;  %v20222_v7 = vrot.slane %v20168_v37, 2 }
 0x24f   : > { %v15539_v57 = vadd.f32 %v15304_v5, %v20219_v13  ;;  %v15544_v1 = vadd.f32 %v15308_v42, %v20220_v33  ;;  %v20221_v5 = vrot.slane %v20168_v37, 9  ;;  %v20223_v24 = vrot.slane %v20168_v37, 4 }
 0x250   : > { %v15559_v42 = vadd.f32 %v15316_v49, %v20222_v7  ;;  %v20224_v29 = vrot.slane %v20168_v37, 6  ;;  %v3292_v36 = vrot.slane %v3290_v54, 3  ;;  %v2597_v20 = vadd.f32 %v15068_v6, %v15431_v58 }
 0x251   : > { %v15554_v47 = vadd.f32 %v20221_v5, %v20168_v37  ;;  %v15564_v19 = vadd.f32 %v15332_v40, %v20223_v24  ;;  %v2902_v13 = vsel %vm2838_vm1, %v2772_v10, %v2870_v63  ;;  %v15574_v33 = vsel %vm1885_vm6, %v3605_v23, %v3606_v61  ;;  %v2685_v5 = vpop.f32.mrf.mxu2  ;;  %v13347_v37 = vld [vmem:[%s20096_s26 + $0x80] sm:$0xff]  ;;  %v20228_v23 = vld [vmem:[#allocation39_spill] sm:$0xff]  ;;  %v15595_v24 = vpop.f32.mrf.mxu1 }
 0x252   : > { %v15569_v48 = vadd.f32 %v15336_v18, %v20224_v29  ;;  %20225 = vst [vmem:[#allocation17_spill] sm:$0xff] %v15574_v33  ;;  %v2934_v49 = vpack.c.bf16 %v2902_v13, %v2902_v13  ;;  %3757 = vrot.lane.b32.xlu2 %v15574_v33, %s19998_s7  ;;  %v3428_v40 = vshll.u32 %v15529_v53, 16  ;;  %v20226_v18 = vrot.slane %v20161_v21, 9  ;;  %4457 = vmatpush.bf16.msrb.mxu1 %v13347_v37 }
 0x253   : > { %v20227_v58 = vrot.slane %v20161_v21, 2  ;;  %v2160_v63 = vsel %vm20013_vm11, %v20228_v23, %v15225_v4  ;;  %v2977_v61 = vunpack.c.l.b16 %v2933_v38  ;;  %v2686_v7 = vadd.f32 %v2685_v5, %v2597_v20  ;;  %3725 = vrot.lane.b32.xlu1 %v15387_v51, %s19958_s5 }
 0x254   : > { %v15585_v54 = vadd.f32 %v20226_v18, %v20161_v21  ;;  %v20229_v29 = vrot.slane %v20161_v21, 4  ;;  %v2191_v18 = vsel %vm2163_vm10, %v2160_v63, %v15383_v43  ;;  %v3089_v14 = vunpack.c.l.b16 %v2934_v49 }
 0x255   : > { %v15590_v10 = vadd.f32 %v15341_v27, %v20227_v58  ;;  %v20230_v27 = vrot.slane %v20161_v21, 6  ;;  %v20231_v4 = vrot.slane %v20169_v16, 9  ;;  %v2775_v20 = vadd.f32 %v15262_v44, %v2686_v7  ;;  %3695 = vrot.lane.b32.xlu0 %v15574_v33, %s19935_s0 }
 0x256   : > { %v15600_v13 = vadd.f32 %v15347_v15, %v20229_v29  ;;  %v2238_v15 = vsel %vm20021_vm5, %v2191_v18, %v15429_v8  ;;  %v15619_v43 = vsel %vm13934_vm8, %v3141_v28, %v3292_v36  ;;  %v20232_v49 = vrot.slane %v20169_v16, 2  ;;  %v15636_v28 = vpop.f32.mrf.mxu3 }
 0x257   : > { %v15607_v58 = vadd.f32 %v15354_v22, %v20230_v27  ;;  %v15612_v38 = vadd.f32 %v20231_v4, %v20169_v16  ;;  %v3105_v22 = vpack.c.b16 %v3089_v14, %v2977_v61  ;;  %2640 = vmatmul.bf16.gmra.mxu1 %v2238_v15  ;;  %v3430_v5 = vrot.slane %v3428_v40, 1  ;;  %v20239_v15 = vld [vmem:[#allocation14_spill] sm:$0xff] }
 0x258   : > { %v15624_v21 = vadd.f32 %v15368_v0, %v20232_v49  ;;  %v20233_v37 = vrot.slane %v20169_v16, 4  ;;  %v20234_v44 = vrot.slane %v20169_v16, 6  ;;  %v2993_v36 = vpack.c.b16 %v2977_v61, %v2977_v61 }
 0x259   : > { %v20235_v0 = vrot.slane %v20163_v30, 9  ;;  %v20236_v63 = vrot.slane %v20163_v30, 2  ;;  %v20237_v16 = vrot.slane %v20163_v30, 4  ;;  %v3146_v7 = vshrl.u32 %v3105_v22, 16 }
 0x25a   : > { %v15629_v23 = vadd.f32 %v15373_v62, %v20233_v37  ;;  %v15634_v8 = vadd.f32 %v15391_v55, %v20234_v44  ;;  %v3265_v29 = vpack.c.b16 %v3089_v14, %v3089_v14  ;;  %v3426_v61 = vshrl.u32 %v15529_v53, 16  ;;  %3665 = vrot.lane.b32.xlu2 %v15439_v25, %s19998_s7 }
 0x25b   : > { %v6099_v40 = vadd.f32 %v20235_v0, %v20163_v30  ;;  %v15646_v62 = vadd.f32 %v15407_v56, %v20236_v63  ;;  %v15651_v55 = vadd.f32 %v15420_v50, %v20237_v16  ;;  %v3433_v18 = vshll.u32 %v15619_v43, 16  ;;  %v2687_v0 = vpop.f32.mrf.mxu2  ;;  %v15674_v16 = vpop.f32.mrf.mxu1 }
 0x25c   : > { %v2599_v27 = vadd.f32 %v15068_v6, %v15506_v35  ;;  %v2871_v4 = vmul.f32 0.2, %v2775_v20  ;;  %v20238_v56 = vrot.slane %v20163_v30, 6  ;;  %v20240_v50 = vrot.slane %v20171_v39, 9  ;;  %v13334_v30 = vld [vmem:[%s20096_s26 + $0x18] sm:$0xff] }
 0x25d   : > { %v3148_v37 = vrot.slane %v3146_v7, 7  ;;  %v3149_v44 = vshll.u32 %v3105_v22, 16  ;;  %vm2839_vm0 = vcmp.gt.f32.partialorder %v2775_v20, 0.0  ;;  %v3431_v63 = vor.u32 %v3430_v5, %v3426_v61  ;;  %4276 = vmatpush.bf16.msrb.mxu3 %v13334_v30 }
 0x25e   : > { %v15662_v49 = vadd.f32 %v20239_v15, %v20238_v56  ;;  %v15667_v14 = vadd.f32 %v20240_v50, %v20171_v39  ;;  %v2688_v35 = vadd.f32 %v2687_v0, %v2599_v27  ;;  %v20241_v56 = vrot.slane %v20171_v39, 2  ;;  %v20244_v0 = vld [vmem:[#allocation52_spill] sm:$0xff] }
 0x25f   : > { %v20242_v7 = vrot.slane %v20171_v39, 4  ;;  %v20243_v50 = vrot.slane %v20171_v39, 6  ;;  %v3018_v5 = vshrl.u32 %v2993_v36, 16  ;;  %v3294_v61 = vshll.u32 %v3265_v29, 16 }
 0x260   : > { %v6104_v15 = vadd.f32 %v15447_v59, %v20241_v56  ;;  %v3435_v25 = vrot.slane %v3433_v18, 1  ;;  %v3151_v32 = vor.u32 %v3149_v44, %v3148_v37  ;;  %v2903_v27 = vsel %vm2839_vm0, %v2775_v20, %v2871_v4  ;;  %v2039_v4 = vpop.permute.xlu0 %2038 }
 0x261   : > { %v6105_v22 = vadd.f32 %v15451_v52, %v20242_v7  ;;  %v6106_v51 = vadd.f32 %v15457_v60, %v20243_v50  ;;  %v2777_v33 = vadd.f32 %v20244_v0, %v2688_v35  ;;  %v3608_v11 = vrot.slane %v15529_v53, 1  ;;  %v20250_v35 = vld [vmem:[#allocation58_spill] sm:$0xff] }
 0x262   : > { %v6171_v59 = vadd.f32 %v15516_v31, %v15462_v17  ;;  %v15690_v56 = vsel %vm1674_vm9, %v3431_v63, %v3435_v25  ;;  %v15694_v39 = vsel %vm13934_vm8, %v3018_v5, %v3151_v32  ;;  %v6172_v52 = vadd.f32 %v15534_v2, %v15467_v26  ;;  %v13342_v26 = vld [vmem:[%s20096_s26 + $0x58] sm:$0xff] }
 0x263   : > { %20245 = vst [vmem:[#allocation20_spill] sm:$0xff] %v15690_v56  ;;  %v6173_v60 = vadd.f32 %v15539_v57, %v15472_v9  ;;  %vm2840_vm1 = vcmp.gt.f32.partialorder %v2777_v33, 0.0  ;;  %v2872_v20 = vmul.f32 0.2, %v2777_v33  ;;  %3819 = vrot.lane.b32.xlu1 %v15690_v56, %s19958_s5  ;;  %v3609_v17 = vrot.slane %v15619_v43, 1  ;;  %3791 = vrot.lane.b32.xlu0 %v15694_v39, %s19935_s0  ;;  %v20247_v9 = vld [vmem:[#allocation27_spill] sm:$0xff]  ;;  %v15716_v57 = vpop.f32.mrf.mxu3  ;;  %v2007_v43 = vpop.permute.xlu1 %2006 }
 0x264   : > { %20246 = vst [vmem:[#allocation47_spill] sm:$0xff] %v15694_v39  ;;  %v6174_v25 = vadd.f32 %v15544_v1, %v15479_v45  ;;  %v3296_v31 = vrot.slane %v3294_v61, 3  ;;  %v2935_v36 = vpack.c.bf16 %v2903_v27, %v2903_v27  ;;  %v6175_v32 = vadd.f32 %v15554_v47, %v20247_v9  ;;  %v2690_v44 = vpop.f32.mrf.mxu2  ;;  %4365 = vmatpush.bf16.msrb.mxu0 %v13342_v26 }
 0x265   : > { %v15714_v2 = vadd.f32 %v15559_v42, %v15495_v46  ;;  %v2602_v45 = vadd.f32 %v15068_v6, %v15595_v24  ;;  %v2904_v1 = vsel %vm2840_vm1, %v2777_v33, %v2872_v20  ;;  %v15721_v29 = vsel %vm1885_vm6, %v3608_v11, %v3609_v17  ;;  %v20248_v11 = vld [vmem:[#allocation25_spill] sm:$0xff]  ;;  %v15738_v24 = vpop.f32.mrf.mxu1 }
 0x266   : > { %v15725_v18 = vadd.f32 %v15564_v19, %v15500_v12  ;;  %v2936_v47 = vpack.c.bf16 %v2904_v1, %v2904_v1  ;;  %3759 = vrot.lane.b32.xlu2 %v15721_v29, %s19998_s7  ;;  %v3440_v46 = vshll.u32 %v15694_v39, 16  ;;  %v6178_v6 = vadd.f32 %v15569_v48, %v15511_v3  ;;  %v20249_v33 = vld [vmem:[#allocation45_spill] sm:$0xff] }
 0x267   : > { %v15733_v42 = vadd.f32 %v6099_v40, %v15585_v54  ;;  %v2162_v12 = vsel %vm20013_vm11, %v20249_v33, %v20248_v11  ;;  %v2691_v19 = vadd.f32 %v2690_v44, %v2602_v45  ;;  %v15742_v63 = vadd.f32 %v15646_v62, %v15590_v10 }
 0x268   : > { %v15746_v30 = vadd.f32 %v15651_v55, %v15600_v13  ;;  %v2193_v3 = vsel %vm2163_vm10, %v2162_v12, %v2007_v43  ;;  %v2978_v48 = vunpack.c.l.b16 %v2935_v36  ;;  %v3090_v54 = vunpack.c.l.b16 %v2936_v47 }
 0x269   : > { %v3377_v40 = vsel %vm13934_vm8, %v3148_v37, %v3296_v31  ;;  %v2780_v7 = vadd.f32 %v20250_v35, %v2691_v19  ;;  %v2241_v50 = vsel %vm20021_vm5, %v2193_v3, %v2039_v4  ;;  %v6182_v5 = vadd.f32 %v15662_v49, %v15607_v58 }
 0x26a   : > { %v6183_v10 = vadd.f32 %v15667_v14, %v15612_v38  ;;  %v3106_v62 = vpack.c.b16 %v3090_v54, %v2978_v48  ;;  %v3266_v13 = vpack.c.b16 %v3090_v54, %v3090_v54  ;;  %2645 = vmatmul.bf16.gmra.mxu1 %v2241_v50  ;;  %v3442_v55 = vrot.slane %v3440_v46, 1 }
 0x26b   : > { %v6184_v61 = vadd.f32 %v6104_v15, %v15624_v21  ;;  %3727 = vrot.lane.b32.xlu1 %v15529_v53, %s19958_s5  ;;  %v3445_v37 = vshll.u32 %v3377_v40, 16  ;;  %v6185_v27 = vadd.f32 %v6105_v22, %v15629_v23  ;;  %v6186_v0 = vadd.f32 %v6106_v51, %v15634_v8  ;;  %3697 = vrot.lane.b32.xlu0 %v15721_v29, %s19935_s0  ;;  %v15770_v21 = vld [vmem:[%s20144_s11] ss:$0 sm:$0xff] }
 0x26c   : > { %v15762_v20 = vmul.f32 0.25, %v6171_v59  ;;  %v2994_v58 = vpack.c.b16 %v2978_v48, %v2978_v48  ;;  %v3298_v49 = vshll.u32 %v3266_v13, 16  ;;  %v3438_v38 = vshrl.u32 %v15694_v39, 16  ;;  %v2692_v59 = vpop.f32.mrf.mxu2  ;;  %v20253_v13 = vld [vmem:[#allocation53_spill] sm:$0xff] }
 0x26d   : > { %v3153_v14 = vshrl.u32 %v3106_v62, 16  ;;  %v2604_v23 = vadd.f32 %v15770_v21, %v15674_v16  ;;  %v2873_v15 = vmul.f32 0.2, %v2780_v7  ;;  %v15774_v51 = vmul.f32 0.25, %v6172_v52  ;;  %v15780_v26 = vpop.f32.mrf.mxu1  ;;  %v15787_v52 = vpop.f32.mrf.mxu3 }
 0x26e   : > { %v15776_v8 = vmul.f32 0.25, %v6173_v60  ;;  %v3156_v22 = vshll.u32 %v3106_v62, 16  ;;  %vm2841_vm0 = vcmp.gt.f32.partialorder %v2780_v7, 0.0  ;;  %3667 = vrot.lane.b32.xlu2 %v15690_v56, %s19998_s7  ;;  %v3443_v17 = vor.u32 %v3442_v55, %v3438_v38 }
 0x26f   : > { %v3155_v31 = vrot.slane %v3153_v14, 7  ;;  %v2693_v36 = vadd.f32 %v2692_v59, %v2604_v23  ;;  %v3611_v9 = vrot.slane %v15694_v39, 1  ;;  %v15783_v43 = vmul.f32 0.25, %v6174_v25 }
 0x270   : > { %v15785_v16 = vmul.f32 0.25, %v6175_v32  ;;  %v3021_v60 = vshrl.u32 %v2994_v58, 16  ;;  %v3300_v45 = vrot.slane %v3298_v49, 3  ;;  %v3447_v1 = vrot.slane %v3445_v37, 1 }
 0x271   : > { %v3158_v4 = vor.u32 %v3156_v22, %v3155_v31  ;;  %v2905_v47 = vsel %vm2841_vm0, %v2780_v7, %v2873_v15  ;;  %v2782_v44 = vadd.f32 %v15521_v34, %v2693_v36  ;;  %v3612_v46 = vrot.slane %v3377_v40, 1 }
 0x272   : > { %v15791_v11 = vmul.f32 0.25, %v15714_v2  ;;  %v15794_v33 = vsel %vm1674_vm9, %v3443_v17, %v3447_v1  ;;  %v15801_v32 = vmul.f32 0.25, %v15725_v18  ;;  %v15803_v12 = vmul.f32 0.25, %v6178_v6 }
 0x273   : > { %20251 = vst [vmem:[#allocation24_spill] sm:$0xff] %v15794_v33  ;;  %v15798_v25 = vsel %vm13934_vm8, %v3021_v60, %v3158_v4  ;;  %vm2842_vm1 = vcmp.gt.f32.partialorder %v2782_v44, 0.0  ;;  %v2874_v19 = vmul.f32 0.2, %v2782_v44  ;;  %3821 = vrot.lane.b32.xlu1 %v15794_v33, %s19958_s5  ;;  %v15808_v34 = vsel %vm1885_vm6, %v3611_v9, %v3612_v46 }
 0x274   : > { %20252 = vst [vmem:[#allocation50_spill] sm:$0xff] %v15798_v25  ;;  %v3452_v2 = vshll.u32 %v15798_v25, 16  ;;  %v2937_v3 = vpack.c.bf16 %v2905_v47, %v2905_v47  ;;  %3761 = vrot.lane.b32.xlu0 %v15808_v34, %s19998_s7  ;;  %v15815_v18 = vsel %vm13934_vm8, %v3155_v31, %v3300_v45  ;;  %v15818_v6 = vmul.f32 0.25, %v15733_v42  ;;  %v2695_v62 = vpop.f32.mrf.mxu2  ;;  %v20254_v31 = vld [vmem:[#allocation34_spill] sm:$0xff]  ;;  %v13341_v45 = vld [vmem:[%s20096_s26 + $0x50] sm:$0xff] }
 0x275   : > { %v15821_v48 = vmul.f32 0.25, %v15742_v63  ;;  %v2607_v54 = vadd.f32 %v15770_v21, %v15738_v24  ;;  %v2906_v40 = vsel %vm2842_vm1, %v2782_v44, %v2874_v19  ;;  %v15826_v7 = vmul.f32 0.25, %v15746_v30  ;;  %v15836_v58 = vpop.f32.mrf.mxu1  ;;  %v15851_v59 = vpop.f32.mrf.mxu3  ;;  %4366 = vmatpush.bf16.msrb.mxu0 %v13341_v45 }
 0x276   : > { %v3454_v35 = vrot.slane %v3452_v2, 1  ;;  %v2938_v50 = vpack.c.bf16 %v2906_v40, %v2906_v40  ;;  %2070 = vrot.lane.b32.xlu2 %v20253_v13, %s19998_s7  ;;  %v15830_v55 = vmul.f32 0.25, %v6182_v5  ;;  %v15832_v42 = vmul.f32 0.25, %v6183_v10 }
 0x277   : > { %v15834_v37 = vmul.f32 0.25, %v6184_v61  ;;  %v2696_v63 = vadd.f32 %v2695_v62, %v2607_v54  ;;  %v3450_v24 = vshrl.u32 %v15798_v25, 16  ;;  %v3457_v49 = vshll.u32 %v15815_v18, 16 }
 0x278   : > { %v15840_v30 = vmul.f32 0.25, %v6185_v27  ;;  %v2979_v38 = vunpack.c.l.b16 %v2937_v3  ;;  %v3091_v14 = vunpack.c.l.b16 %v2938_v50  ;;  %v15842_v23 = vmul.f32 0.25, %v6186_v0  ;;  %v13333_v3 = vld [vmem:[%s20096_s26 + $0x10] sm:$0xff] }
 0x279   : > { %v6299_v5 = vpack.c.bf16 %v15762_v20, %v15762_v20  ;;  %v2785_v10 = vadd.f32 %v15636_v28, %v2696_v63  ;;  %v3455_v61 = vor.u32 %v3454_v35, %v3450_v24  ;;  %v6300_v15 = vpack.c.bf16 %v15774_v51, %v15774_v51  ;;  %4277 = vmatpush.bf16.msrb.mxu3 %v13333_v3  ;;  %v13340_v24 = vld [vmem:[%s20096_s26 + $0x48] sm:$0xff] }
 0x27a   : > { %v6301_v22 = vpack.c.bf16 %v15776_v8, %v15776_v8  ;;  %v3107_v27 = vpack.c.b16 %v3091_v14, %v2979_v38  ;;  %v3267_v17 = vpack.c.b16 %v3091_v14, %v3091_v14  ;;  %12080 = vmatmul.msk.bf16.vlgmr.msrb.gmra.mxu1 %vm20013_vm11, %v20254_v31  ;;  %v6302_v0 = vpack.c.bf16 %v15783_v43, %v15783_v43 }
 0x27b   : > { %v6303_v28 = vpack.c.bf16 %v15785_v16, %v15785_v16  ;;  %3729 = vrot.lane.b32.xlu1 %v15694_v39, %s19958_s5  ;;  %v3459_v20 = vrot.slane %v3457_v49, 1  ;;  %v6304_v51 = vpack.c.bf16 %v15791_v11, %v15791_v11  ;;  %v6305_v8 = vpack.c.bf16 %v15801_v32, %v15801_v32  ;;  %4367 = vmatpush.bf16.msrb.mxu0 %v13340_v24  ;;  %v13332_v16 = vld [vmem:[%s20096_s26 + $0x8] sm:$0xff] }
 0x27c   : > { %v6306_v36 = vpack.c.bf16 %v15803_v12, %v15803_v12  ;;  %v2995_v9 = vpack.c.b16 %v2979_v38, %v2979_v38  ;;  %v3302_v60 = vshll.u32 %v3267_v17, 16  ;;  %3669 = vrot.lane.b32.xlu0 %v15794_v33, %s19998_s7  ;;  %v3160_v43 = vshrl.u32 %v3107_v27, 16  ;;  %v2697_v19 = vpop.f32.mrf.mxu2 }
 0x27d   : > { %v6307_v1 = vpack.c.bf16 %v15818_v6, %v15818_v6  ;;  %v2609_v4 = vadd.f32 %v15770_v21, %v15780_v26  ;;  %v2875_v47 = vmul.f32 0.2, %v2785_v10  ;;  %v15877_v44 = vsel %vm1674_vm9, %v3455_v61, %v3459_v20  ;;  %v15888_v40 = vpop.f32.mrf.mxu1  ;;  %4278 = vmatpush.bf16.msrb.mxu3 %v13332_v16 }
 0x27e   : > { %20255 = vst [vmem:[#allocation30_spill] sm:$0xff] %v15877_v44  ;;  %v6308_v46 = vpack.c.bf16 %v15821_v48, %v15821_v48  ;;  %v3163_v11 = vshll.u32 %v3107_v27, 16  ;;  %vm2843_vm0 = vcmp.gt.f32.partialorder %v2785_v10, 0.0  ;;  %3823 = vrot.lane.b32.xlu2 %v15877_v44, %s19958_s5  ;;  %v3162_v2 = vrot.slane %v3160_v43, 7 }
 0x27f   : > { %v6309_v26 = vpack.c.bf16 %v15826_v7, %v15826_v7  ;;  %v2698_v54 = vadd.f32 %v2697_v19, %v2609_v4  ;;  %v3614_v48 = vrot.slane %v15798_v25, 1  ;;  %v6310_v35 = vpack.c.bf16 %v15830_v55, %v15830_v55 }
 0x280   : > { %v6311_v50 = vpack.c.bf16 %v15832_v42, %v15832_v42  ;;  %v3024_v62 = vshrl.u32 %v2995_v9, 16  ;;  %v3304_v13 = vrot.slane %v3302_v60, 3  ;;  %v3165_v63 = vor.u32 %v3163_v11, %v3162_v2  ;;  %v13339_v9 = vld [vmem:[%s20096_s26 + $0x40] sm:$0xff] }
 0x281   : > { %v6312_v7 = vpack.c.bf16 %v15834_v37, %v15834_v37  ;;  %v2907_v49 = vsel %vm2843_vm0, %v2785_v10, %v2875_v47  ;;  %v2787_v38 = vadd.f32 %v15716_v57, %v2698_v54  ;;  %v3615_v55 = vrot.slane %v15815_v18, 1  ;;  %v15917_v10 = vpop.f32.mrf.mxu3  ;;  %4368 = vmatpush.bf16.msrb.mxu0 %v13339_v9 }
 0x282   : > { %v6313_v42 = vpack.c.bf16 %v15840_v30, %v15840_v30  ;;  %v15907_v14 = vsel %vm13934_vm8, %v3024_v62, %v3165_v63  ;;  %v6314_v61 = vpack.c.bf16 %v15842_v23, %v15842_v23  ;;  %v6435_v27 = vunpack.c.l.b16 %v6299_v5 }
 0x283   : > { %20256 = vst [vmem:[#allocation51_spill] sm:$0xff] %v15907_v14  ;;  %v6436_v17 = vunpack.c.l.b16 %v6300_v15  ;;  %vm2844_vm1 = vcmp.gt.f32.partialorder %v2787_v38, 0.0  ;;  %v2876_v31 = vmul.f32 0.2, %v2787_v38  ;;  %3793 = vrot.lane.b32.xlu1 %v15798_v25, %s19935_s0  ;;  %v15914_v57 = vsel %vm1885_vm6, %v3614_v48, %v3615_v55  ;;  %v13350_v15 = vld [vmem:[%s20257_s8 + $0x8] sm:$0xff]  ;;  %s20378_s8 = sld [smem:[#allocation65_spill]] }
 0x284   : > { %v3464_v18 = vshll.u32 %v15907_v14, 16  ;;  %v2939_v20 = vpack.c.bf16 %v2907_v49, %v2907_v49  ;;  %3763 = vrot.lane.b32.xlu0 %v15914_v57, %s19998_s7  ;;  %v15923_v5 = vsel %vm13934_vm8, %v3162_v2, %v3304_v13  ;;  %v6437_v60 = vunpack.c.l.b16 %v6301_v22  ;;  %v2700_v2 = vpop.f32.mrf.mxu2  ;;  %6620 = vmatpush.bf16.msrb.mxu2 %v13350_v15  ;;  %s20446_s0 = sld [smem:[#allocation68_spill]] }
 0x285   : > { %v6444_v43 = vunpack.c.l.b16 %v6308_v46  ;;  %v2612_v45 = vadd.f32 %v15770_v21, %v15836_v58  ;;  %v2908_v4 = vsel %vm2844_vm1, %v2787_v38, %v2876_v31  ;;  %v15933_v11 = vunpack.c.l.b16 %v6302_v0  ;;  %v15944_v58 = vpop.f32.mrf.mxu1  ;;  %v20259_v31 = vld [vmem:[#allocation17_spill] sm:$0xff] }
 0x286   : > { %v3466_v47 = vrot.slane %v3464_v18, 1  ;;  %v2940_v19 = vpack.c.bf16 %v2908_v4, %v2908_v4  ;;  %3731 = vrot.lane.b32.xlu2 %v15798_v25, %s19958_s5  ;;  %v15940_v3 = vunpack.c.l.b16 %v6303_v28  ;;  %v15942_v22 = vunpack.c.l.b16 %v6304_v51 }
 0x287   : > { %v6530_v46 = vrot.slane %v6436_v17, 7  ;;  %v2701_v54 = vadd.f32 %v2700_v2, %v2612_v45  ;;  %v3462_v0 = vshrl.u32 %v15907_v14, 16  ;;  %v3469_v48 = vshll.u32 %v15923_v5, 16 }
 0x288   : > { %v6445_v62 = vunpack.c.l.b16 %v6309_v26  ;;  %v2980_v13 = vunpack.c.l.b16 %v2939_v20  ;;  %v3092_v63 = vunpack.c.l.b16 %v2940_v19  ;;  %v6443_v28 = vunpack.c.l.b16 %v6307_v1 }
 0x289   : > { %v6544_v51 = vrot.slane %v6444_v43, 7  ;;  %v2790_v24 = vadd.f32 %v15787_v52, %v2701_v54  ;;  %v3467_v49 = vor.u32 %v3466_v47, %v3462_v0  ;;  %v15958_v38 = vunpack.c.l.b16 %v6305_v8  ;;  %v15978_v4 = vpop.f32.mrf.mxu3 }
 0x28a   : > { %v6532_v26 = vrot.slane %v6437_v60, 6  ;;  %v3108_v55 = vpack.c.b16 %v3092_v63, %v2980_v13  ;;  %v3268_v17 = vpack.c.b16 %v3092_v63, %v3092_v63  ;;  %12081 = vmatmul.msk.bf16.gmra.mxu1 %vm20013_vm11, %v20259_v31  ;;  %v6446_v18 = vunpack.c.l.b16 %v6310_v35  ;;  %v13331_v35 = vld [vmem:[%s20096_s26] sm:$0xff]  ;;  %v15989_v63 = vpop.permute.xlu2 %3691  ;;  %s20530_s26 = sld [smem:[#allocation70_spill]] }
 0x28b   : > { %v6531_v6 = vsel %vm20022_vm7, %v6530_v46, %v6435_v27  ;;  %3699 = vrot.lane.b32.xlu1 %v15808_v34, %s20260_s2  ;;  %v3471_v52 = vrot.slane %v3469_v48, 1  ;;  %v6447_v1 = vunpack.c.l.b16 %v6311_v50  ;;  %v6534_v20 = vrot.slane %v15933_v11, 5  ;;  %4279 = vmatpush.bf16.msrb.mxu3 %v13331_v35 }
 0x28c   : > { %v6546_v32 = vrot.slane %v6445_v62, 6  ;;  %v2996_v8 = vpack.c.b16 %v2980_v13, %v2980_v13  ;;  %v3306_v15 = vshll.u32 %v3268_v17, 16  ;;  %3671 = vrot.lane.b32.xlu0 %v15877_v44, %s19998_s7  ;;  %v3167_v9 = vshrl.u32 %v3108_v55, 16  ;;  %v2702_v11 = vpop.f32.mrf.mxu2 }
 0x28d   : > { %v6545_v27 = vsel %vm20022_vm7, %v6544_v51, %v6443_v28  ;;  %v2614_v60 = vadd.f32 %v15770_v21, %v15888_v40  ;;  %v2877_v43 = vmul.f32 0.2, %v2790_v24  ;;  %v15975_v50 = vsel %vm1674_vm9, %v3467_v49, %v3471_v52  ;;  %v15982_v54 = vpop.f32.mrf.mxu1 }
 0x28e   : > { %20261 = vst [vmem:[#allocation49_spill] sm:$0xff] %v15975_v50  ;;  %v6533_v45 = vsel %vm6471_vm12, %v6532_v26, %v6531_v6  ;;  %v3170_v47 = vshll.u32 %v3108_v55, 16  ;;  %vm2845_vm0 = vcmp.gt.f32.partialorder %v2790_v24, 0.0  ;;  %3825 = vrot.lane.b32.xlu2 %v15975_v50, %s19958_s5  ;;  %v3169_v19 = vrot.slane %v3167_v9, 7 }
 0x28f   : > { %v6548_v2 = vrot.slane %v6446_v18, 5  ;;  %v2703_v46 = vadd.f32 %v2702_v11, %v2614_v60  ;;  %v3617_v40 = vrot.slane %v15907_v14, 1  ;;  %v6448_v0 = vunpack.c.l.b16 %v6312_v7 }
 0x290   : > { %v6547_v48 = vsel %vm6471_vm12, %v6546_v32, %v6545_v27  ;;  %v3027_v62 = vshrl.u32 %v2996_v8, 16  ;;  %v3308_v13 = vrot.slane %v3306_v15, 3  ;;  %v3172_v16 = vor.u32 %v3170_v47, %v3169_v19 }
 0x291   : > { %v6536_v28 = vrot.slane %v15940_v3, 4  ;;  %v2909_v51 = vsel %vm2845_vm0, %v2790_v24, %v2877_v43  ;;  %v2792_v49 = vadd.f32 %v15851_v59, %v2703_v46  ;;  %v3618_v26 = vrot.slane %v15923_v5, 1 }
 0x292   : > { %v6535_v55 = vsel %vm6474_vm13, %v6534_v20, %v6533_v45  ;;  %v15998_v37 = vsel %vm13934_vm8, %v3027_v62, %v3172_v16  ;;  %v6449_v7 = vunpack.c.l.b16 %v6313_v42  ;;  %v6549_v17 = vsel %vm6474_vm13, %v6548_v2, %v6547_v48  ;;  %v16034_v45 = vpop.f32.mrf.mxu3  ;;  %v20303_v48 = vld [vmem:[#allocation23_spill] sm:$0xff] }
 0x293   : > { %20262 = vst [vmem:[#allocation29_spill] sm:$0xff] %v15998_v37  ;;  %v6550_v31 = vrot.slane %v6447_v1, 4  ;;  %vm2846_vm1 = vcmp.gt.f32.partialorder %v2792_v49, 0.0  ;;  %v2878_v3 = vmul.f32 0.2, %v2792_v49  ;;  %3795 = vrot.lane.b32.xlu1 %v15907_v14, %s20260_s2  ;;  %v16007_v59 = vsel %vm1885_vm6, %v3617_v40, %v3618_v26 }
 0x294   : > { %v3476_v5 = vshll.u32 %v15998_v37, 16  ;;  %v2941_v24 = vpack.c.bf16 %v2909_v51, %v2909_v51  ;;  %3765 = vrot.lane.b32.xlu0 %v16007_v59, %s19998_s7  ;;  %v16014_v30 = vsel %vm13934_vm8, %v3169_v19, %v3308_v13  ;;  %v6537_v42 = vsel %vm6477_vm14, %v6536_v28, %v6535_v55  ;;  %v2705_v8 = vpop.f32.mrf.mxu2  ;;  %v20266_v55 = vld [vmem:[#allocation48_spill] sm:$0xff] }
 0x295   : > { %v6538_v18 = vrot.slane %v15942_v22, 3  ;;  %v2617_v6 = vadd.f32 %v15770_v21, %v15944_v58  ;;  %v2910_v52 = vsel %vm2846_vm1, %v2792_v49, %v2878_v3  ;;  %v6552_v20 = vrot.slane %v6448_v0, 3  ;;  %v16029_v58 = vpop.f32.mrf.mxu1 }
 0x296   : > { %v3478_v1 = vrot.slane %v3476_v5, 1  ;;  %v2942_v32 = vpack.c.bf16 %v2910_v52, %v2910_v52  ;;  %3733 = vrot.lane.b32.xlu2 %v15907_v14, %s19958_s5  ;;  %v6442_v15 = vunpack.c.l.b16 %v6306_v36  ;;  %v6450_v9 = vunpack.c.l.b16 %v6314_v61  ;;  %v16036_v36 = vpop.permute.xlu2 %3815 }
 0x297   : > { %v6551_v22 = vsel %vm6477_vm14, %v6550_v31, %v6549_v17  ;;  %v2706_v35 = vadd.f32 %v2705_v8, %v2617_v6  ;;  %v3474_v27 = vshrl.u32 %v15998_v37, 16  ;;  %v3481_v60 = vshll.u32 %v16014_v30, 16  ;;  %v16058_v31 = vpop.permute.xlu0 %3721 }
 0x298   : > { %v6540_v43 = vrot.slane %v15958_v38, 2  ;;  %v2981_v47 = vunpack.c.l.b16 %v2941_v24  ;;  %v3093_v12 = vunpack.c.l.b16 %v2942_v32  ;;  %v6539_v23 = vsel %vm6480_vm15, %v6538_v18, %v6537_v42  ;;  %v20270_v32 = vld [vmem:[#allocation26_spill] sm:$0xff] }
 0x299   : > { %v6554_v61 = vrot.slane %v6449_v7, 2  ;;  %v2795_v11 = vadd.f32 %v15917_v10, %v2706_v35  ;;  %v3479_v19 = vor.u32 %v3478_v1, %v3474_v27  ;;  %v6553_v2 = vsel %vm6480_vm15, %v6552_v20, %v6551_v22  ;;  %v20271_v27 = vld [vmem:[#allocation31_spill] sm:$0xff] }
 0x29a   : > { %v3109_v46 = vpack.c.b16 %v3093_v12, %v2981_v47  ;;  %v3269_v40 = vpack.c.b16 %v3093_v12, %v3093_v12  ;;  %12082 = vmatmul.msk.bf16.gmra.mxu1 %vm20013_vm11, %v15721_v29  ;;  %v6542_v38 = vrot.slane %v6442_v15, 1  ;;  %v3483_v0 = vrot.slane %v3481_v60, 1  ;;  %v20265_v29 = vld [vmem:[#allocation21_spill] sm:$0xff] }
 0x29b   : > { %3701 = vrot.lane.b32.xlu1 %v15914_v57, %s20260_s2  ;;  %v6541_v16 = vsel %vm19963_vm2, %v6540_v43, %v6539_v23  ;;  %v6556_v28 = vrot.slane %v6450_v9, 1  ;;  %v2997_v10 = vpack.c.b16 %v2981_v47, %v2981_v47  ;;  %v6555_v26 = vsel %vm19963_vm2, %v6554_v61, %v6553_v2  ;;  %v16081_v61 = vpop.f32.mrf.mxu3 }
 0x29c   : > { %v3310_v51 = vshll.u32 %v3269_v40, 16  ;;  %3673 = vrot.lane.b32.xlu0 %v15975_v50, %s19998_s7  ;;  %v3174_v49 = vshrl.u32 %v3109_v46, 16  ;;  %v16054_v7 = vsel %vm20013_vm11, %v20266_v55, %v20265_v29  ;;  %v2619_v17 = vadd.f32 %v15770_v21, %v15982_v54  ;;  %v2707_v42 = vpop.f32.mrf.mxu2  ;;  %v20275_v29 = vld [vmem:[#allocation19_spill] sm:$0xff] }
 0x29d   : > { %v2879_v3 = vmul.f32 0.2, %v2795_v11  ;;  %v16061_v5 = vsel %vm1674_vm9, %v3479_v19, %v3483_v0  ;;  %v3177_v24 = vshll.u32 %v3109_v46, 16  ;;  %vm2847_vm0 = vcmp.gt.f32.partialorder %v2795_v11, 0.0  ;;  %v16068_v1 = vpop.f32.mrf.mxu1  ;;  %v3754_v19 = vpop.permute.xlu1 %3753 }
 0x29e   : > { %20267 = vst [vmem:[#allocation55_spill] sm:$0xff] %v16061_v5  ;;  %3827 = vrot.lane.b32.xlu2 %v16061_v5, %s19958_s5  ;;  %v3176_v18 = vrot.slane %v3174_v49, 7  ;;  %v16066_v6 = vsel %vm19962_vm3, %v6542_v38, %v6541_v16  ;;  %v2708_v52 = vadd.f32 %v2707_v42, %v2619_v17  ;;  %v3620_v54 = vrot.slane %v15998_v37, 1  ;;  %v16075_v22 = vpop.permute.xlu2 %3693 }
 0x29f   : > { %20268 = vst [vmem:[#allocation36_spill] sm:$0xff] %v16066_v6  ;;  %v16072_v20 = vsel %vm19962_vm3, %v6556_v28, %v6555_v26  ;;  %v19937_v8 = vrot.slane %v20270_v32, 2  ;;  %v3030_v15 = vshrl.u32 %v2997_v10, 16  ;;  %v3312_v9 = vrot.slane %v3310_v51, 3  ;;  %v20273_v28 = vld [vmem:[#allocation28_spill] sm:$0xff]  ;;  %v20274_v51 = vld [vmem:[#allocation35_spill] sm:$0xff] }
 0x2a0   : > { %20269 = vst [vmem:[#allocation57_spill] sm:$0xff] %v16072_v20  ;;  %v3179_v35 = vor.u32 %v3177_v24, %v3176_v18  ;;  %v2911_v43 = vsel %vm2847_vm0, %v2795_v11, %v2879_v3  ;;  %v2797_v47 = vadd.f32 %v15978_v4, %v2708_v52  ;;  %v3621_v12 = vrot.slane %v16014_v30, 1  ;;  %v3786_v3 = vpop.permute.xlu0 %3785 }
 0x2a1   : > { %v19939_v23 = vrot.slane %v20270_v32, 4  ;;  %v19938_v46 = vrot.slane %v20270_v32, 6  ;;  %v2943_v0 = vpack.c.bf16 %v2911_v43, %v2911_v43  ;;  %v16100_v16 = vsel %vm13934_vm8, %v3176_v18, %v3312_v9 }
 0x2a2   : > { %v16085_v2 = vsel %vm13934_vm8, %v3030_v15, %v3179_v35  ;;  %vm2848_vm1 = vcmp.gt.f32.partialorder %v2797_v47, 0.0  ;;  %v2880_v11 = vmul.f32 0.2, %v2797_v47  ;;  %v16093_v4 = vsel %vm1885_vm6, %v3620_v54, %v3621_v12  ;;  %v20276_v15 = vld [vmem:[#allocation32_spill] sm:$0xff] }
 0x2a3   : > { %20272 = vst [vmem:[#allocation33_spill] sm:$0xff] %v16085_v2  ;;  %3797 = vrot.lane.b32.xlu1 %v15998_v37, %s20260_s2  ;;  %v3488_v30 = vshll.u32 %v16085_v2, 16  ;;  %v19940_v10 = vrot.slane %v20273_v28, 2  ;;  %v2622_v26 = vadd.f32 %v15770_v21, %v16029_v58  ;;  %v3955_v55 = vsel %vm20013_vm11, %v20275_v29, %v3754_v19 }
 0x2a4   : > { %3767 = vrot.lane.b32.xlu0 %v16093_v4, %s19998_s7  ;;  %v2912_v17 = vsel %vm2848_vm1, %v2797_v47, %v2880_v11  ;;  %v4002_v52 = vsel %vm2163_vm10, %v3955_v55, %v3786_v3  ;;  %v2710_v54 = vpop.f32.mrf.mxu2  ;;  %v3486_v47 = vshrl.u32 %v16085_v2, 16  ;;  %v3493_v12 = vshll.u32 %v16100_v16, 16 }
 0x2a5   : > { %v3490_v24 = vrot.slane %v3488_v30, 1  ;;  %v2944_v42 = vpack.c.bf16 %v2912_v17, %v2912_v17  ;;  %v2711_v35 = vadd.f32 %v2710_v54, %v2622_v26  ;;  %v16113_v43 = vpop.f32.mrf.mxu1  ;;  %v4033_v58 = vsel %vm20021_vm5, %v4002_v52, %v16036_v36  ;;  %v16135_v36 = vpop.f32.mrf.mxu3 }
 0x2a6   : > { %3735 = vrot.lane.b32.xlu2 %v15998_v37, %s19958_s5  ;;  %v2982_v19 = vunpack.c.l.b16 %v2943_v0  ;;  %v16119_v30 = vpop.permute.xlu2 %3787  ;;  %4369 = vmatmul.bf16.vlgmr.msrb.gmra.mxu0 %v4033_v58  ;;  %v3495_v13 = vrot.slane %v3493_v12, 1  ;;  %v2624_v0 = vadd.f32 %v15770_v21, %v16068_v1  ;;  %v3662_v3 = vpop.permute.xlu1 %3661 }
 0x2a7   : > { %v3094_v11 = vunpack.c.l.b16 %v2944_v42  ;;  %v2800_v26 = vadd.f32 %v16034_v45, %v2711_v35  ;;  %v3491_v17 = vor.u32 %v3490_v24, %v3486_v47  ;;  %v20277_v42 = vld [vmem:[#allocation38_spill] sm:$0xff]  ;;  %v20278_v35 = vld [vmem:[#allocation41_spill] sm:$0xff] }
 0x2a8   : > { %v2131_v45 = vpop.permute.xlu0 %2130 }
 0x2a9   : > { %v3110_v52 = vpack.c.b16 %v3094_v11, %v2982_v19  ;;  %v3270_v54 = vpack.c.b16 %v3094_v11, %v3094_v11  ;;  %v2998_v11 = vpack.c.b16 %v2982_v19, %v2982_v19  ;;  %v2881_v12 = vmul.f32 0.2, %v2800_v26  ;;  %v20280_v19 = vld [vmem:[#allocation54_spill] sm:$0xff] }
 0x2aa   : > { %12083 = vmatmul.msk.bf16.gmra.mxu1 %vm20013_vm11, %v15808_v34  ;;  %v16143_v24 = vsel %vm1674_vm9, %v3491_v17, %v3495_v13  ;;  %vm2849_vm0 = vcmp.gt.f32.partialorder %v2800_v26, 0.0  ;;  %v3623_v13 = vrot.slane %v16085_v2, 1  ;;  %v20281_v17 = vld [vmem:[#allocation43_spill] sm:$0xff] }
 0x2ab   : > { %3703 = vrot.lane.b32.xlu1 %v16007_v59, %s20260_s2  ;;  %v3314_v49 = vshll.u32 %v3270_v54, 16  ;;  %v3181_v34 = vshrl.u32 %v3110_v52, 16  ;;  %20279 = vst [vmem:[#allocation42_spill] sm:$0xff] %v16143_v24  ;;  %v3184_v55 = vshll.u32 %v3110_v52, 16  ;;  %v3846_v54 = vsel %vm20013_vm11, %v20280_v19, %v3662_v3 }
 0x2ac   : > { %3675 = vrot.lane.b32.xlu0 %v16061_v5, %s19998_s7  ;;  %v2712_v9 = vpop.f32.mrf.mxu2  ;;  %v16152_v1 = vsel %vm2163_vm10, %v3846_v54, %v15989_v63  ;;  %v3033_v47 = vshrl.u32 %v2998_v11, 16  ;;  %v2913_v29 = vsel %vm2849_vm0, %v2800_v26, %v2881_v12  ;;  %v3624_v63 = vrot.slane %v16100_v16, 1 }
 0x2ad   : > { %v3183_v58 = vrot.slane %v3181_v34, 7  ;;  %v2713_v38 = vadd.f32 %v2712_v9, %v2624_v0  ;;  %v3316_v52 = vrot.slane %v3314_v49, 3  ;;  %v3906_v3 = vsel %vm20021_vm5, %v16152_v1, %v16058_v31  ;;  %v2628_v18 = vpop.f32.mrf.mxu1 }
 0x2ae   : > { %3829 = vrot.lane.b32.xlu2 %v16143_v24, %s19958_s5  ;;  %v16156_v60 = vpop.permute.xlu2 %3757  ;;  %4280 = vmatmul.bf16.vlgmr.msrb.gmra.mxu3 %v3906_v3  ;;  %v16172_v31 = vrot.slane %v19937_v8, 9  ;;  %v16192_v12 = vrot.slane %v19938_v46, 9  ;;  %v2627_v54 = vadd.f32 %v15770_v21, %v16113_v43  ;;  %v16203_v46 = vrot.slane %v19940_v10, 9 }
 0x2af   : > { %v3186_v19 = vor.u32 %v3184_v55, %v3183_v58  ;;  %v2802_v34 = vadd.f32 %v16081_v61, %v2713_v38  ;;  %v16177_v38 = vsel %vm1885_vm6, %v3623_v13, %v3624_v63  ;;  %v2945_v55 = vpack.c.bf16 %v2913_v29, %v2913_v29  ;;  %v2101_v29 = vpop.permute.xlu1 %2100 }
 0x2b0   : > { %20283 = vst [vmem:[#allocation14_spill] sm:$0xff] %v16177_v38  ;;  %v16184_v26 = vsel %vm13934_vm8, %v3183_v58, %v3316_v52  ;;  %v2320_v58 = vsel %vm2163_vm10, %v16054_v7, %v2101_v29  ;;  %v3724_v52 = vpop.permute.xlu0 %3723  ;;  %v20284_v43 = vrot.slane %v20273_v28, 4  ;;  %v20285_v10 = vrot.slane %v20273_v28, 6 }
 0x2b1   : > { %v16166_v0 = vsel %vm13934_vm8, %v3033_v47, %v3186_v19  ;;  %vm2850_vm1 = vcmp.gt.f32.partialorder %v2802_v34, 0.0  ;;  %v2882_v61 = vmul.f32 0.2, %v2802_v34  ;;  %v16188_v47 = vrot.slane %v19939_v23, 9 }
 0x2b2   : > { %20282 = vst [vmem:[#allocation39_spill] sm:$0xff] %v16166_v0  ;;  %v3500_v16 = vshll.u32 %v16166_v0, 16  ;;  %v3498_v19 = vshrl.u32 %v16166_v0, 16  ;;  %v3505_v7 = vshll.u32 %v16184_v26, 16  ;;  %v2983_v29 = vunpack.c.l.b16 %v2945_v55 }
 0x2b3   : > { %3799 = vrot.lane.b32.xlu1 %v16085_v2, %s20260_s2  ;;  %v2914_v13 = vsel %vm2850_vm1, %v2802_v34, %v2882_v61  ;;  %v16207_v34 = vrot.slane %v20284_v43, 9  ;;  %v2806_v61 = vpop.f32.mrf.mxu3  ;;  %v16216_v49 = vrot.slane %v20285_v10, 9  ;;  %v20288_v10 = vrot.slane %v20271_v27, 6 }
 0x2b4   : > { %3769 = vrot.lane.b32.xlu0 %v16177_v38, %s19998_s7  ;;  %v3502_v3 = vrot.slane %v3500_v16, 1  ;;  %v2946_v63 = vpack.c.bf16 %v2914_v13, %v2914_v13  ;;  %v2715_v8 = vpop.f32.mrf.mxu2  ;;  %v2365_v13 = vsel %vm20021_vm5, %v2320_v58, %v2131_v45  ;;  %v20286_v45 = vrot.slane %v20271_v27, 2 }
 0x2b5   : > { %v2716_v16 = vadd.f32 %v2715_v8, %v2627_v54  ;;  %2729 = vmatmul.bf16.gmra.mxu2 %v2365_v13  ;;  %v20287_v58 = vrot.slane %v20271_v27, 4  ;;  %v16232_v40 = vrot.slane %v20288_v10, 9  ;;  %v2999_v10 = vpack.c.b16 %v2983_v29, %v2983_v29 }
 0x2b6   : > { %3737 = vrot.lane.b32.xlu2 %v16085_v2, %s19958_s5  ;;  %v3095_v23 = vunpack.c.l.b16 %v2946_v63  ;;  %v16212_v11 = vpop.permute.xlu2 %3665  ;;  %v3503_v8 = vor.u32 %v3502_v3, %v3498_v19  ;;  %v16222_v54 = vrot.slane %v20286_v45, 9  ;;  %v2631_v3 = vpop.f32.mrf.mxu1  ;;  %v3507_v19 = vrot.slane %v3505_v7, 1 }
 0x2b7   : > { %v2805_v9 = vadd.f32 %v16135_v36, %v2716_v16  ;;  %v16226_v55 = vrot.slane %v20287_v58, 9  ;;  %v20289_v16 = vrot.slane %v20276_v15, 2  ;;  %v2629_v37 = vadd.f32 %v15770_v21, %v2628_v18  ;;  %v3664_v5 = vpop.permute.xlu1 %3663 }
 0x2b8   : > { %v3111_v63 = vpack.c.b16 %v3095_v23, %v2983_v29  ;;  %v3271_v13 = vpack.c.b16 %v3095_v23, %v3095_v23  ;;  %v20290_v23 = vrot.slane %v20276_v15, 4  ;;  %v16254_v14 = vsel %vm1674_vm9, %v3503_v8, %v3507_v19 }
 0x2b9   : > { %v16239_v45 = vrot.slane %v20289_v16, 9  ;;  %v2883_v16 = vmul.f32 0.2, %v2805_v9  ;;  %20292 = vst [vmem:[#allocation52_spill] sm:$0xff] %v16254_v14  ;;  %vm2851_vm0 = vcmp.gt.f32.partialorder %v2805_v9, 0.0  ;;  %v3626_v19 = vrot.slane %v16166_v0, 1 }
 0x2ba   : > { %12084 = vmatmul.msk.bf16.gmra.mxu1 %vm20013_vm11, %v15914_v57  ;;  %v16243_v58 = vrot.slane %v20290_v23, 9  ;;  %v20291_v57 = vrot.slane %v20276_v15, 6  ;;  %v3188_v2 = vshrl.u32 %v3111_v63, 16  ;;  %v3318_v36 = vshll.u32 %v3271_v13, 16  ;;  %v20294_v13 = vld [vmem:[#allocation18_spill] sm:$0xff] }
 0x2bb   : > { %3705 = vrot.lane.b32.xlu1 %v16093_v4, %s20260_s2  ;;  %v20293_v23 = vrot.slane %v20274_v51, 2  ;;  %v3191_v29 = vshll.u32 %v3111_v63, 16  ;;  %v3848_v25 = vsel %vm20013_vm11, %v20294_v13, %v3664_v5  ;;  %v3627_v13 = vrot.slane %v16184_v26, 1 }
 0x2bc   : > { %v16247_v43 = vrot.slane %v20291_v57, 9  ;;  %3677 = vrot.lane.b32.xlu0 %v16143_v24, %s19998_s7  ;;  %v3190_v57 = vrot.slane %v3188_v2, 7  ;;  %v3818_v24 = vpop.permute.xlu0 %3817  ;;  %v2717_v44 = vpop.f32.mrf.mxu2  ;;  %v3878_v8 = vsel %vm2163_vm10, %v3848_v25, %v16075_v22  ;;  %v3036_v2 = vshrl.u32 %v2999_v10, 16 }
 0x2bd   : > { %v16258_v50 = vrot.slane %v20293_v23, 9  ;;  %v2718_v18 = vadd.f32 %v2717_v44, %v2629_v37  ;;  %v20295_v23 = vrot.slane %v20274_v51, 4  ;;  %v3320_v20 = vrot.slane %v3318_v36, 3  ;;  %v13349_v44 = vld [vmem:[%s20258_s29] sm:$0xff]  ;;  %v2809_v37 = vpop.f32.mrf.mxu3  ;;  %s809_s29 = sand.u32 1, %s13657_s4  }
 0x2be   : > { %3831 = vrot.lane.b32.xlu2 %v16254_v14, %s19958_s5  ;;  %v3193_v63 = vor.u32 %v3191_v29, %v3190_v57  ;;  %v3909_v5 = vsel %vm20021_vm5, %v3878_v8, %v3724_v52  ;;  %v2915_v25 = vsel %vm2851_vm0, %v2805_v9, %v2883_v16  ;;  %6621 = vmatpush.bf16.msrb.mxu2 %v13349_v44  ;;  %v20299_v29 = vrot.slane %v20277_v42, 2  ;;  %s11751_s10 = scalar_lea.sflag [#allocation3], %s809_s29 }
 0x2bf   : > { %v16269_v7 = vrot.slane %v20295_v23, 9  ;;  %v2807_v22 = vadd.f32 %v2806_v61, %v2718_v18  ;;  %4285 = vmatmul.bf16.gmra.mxu3 %v3909_v5  ;;  %v20297_v23 = vrot.slane %v20274_v51, 6  ;;  %v20300_v9 = vrot.slane %v20277_v42, 4 }
 0x2c0   : > { %v16271_v6 = vpop.permute.xlu2 %3759  ;;  %v16285_v36 = vsel %vm13934_vm8, %v3036_v2, %v3193_v63  ;;  %v16290_v8 = vrot.slane %v20299_v29, 9  ;;  %v16299_v16 = vsel %vm1885_vm6, %v3626_v19, %v3627_v13  ;;  %v2947_v2 = vpack.c.bf16 %v2915_v25, %v2915_v25  ;;  %v2633_v13 = vpop.f32.mrf.mxu1 }
 0x2c1   : > { %20296 = vst [vmem:[#allocation27_spill] sm:$0xff] %v16271_v6  ;;  %v16281_v10 = vrot.slane %v20297_v23, 9  ;;  %v16294_v61 = vrot.slane %v20300_v9, 9  ;;  %vm2852_vm1 = vcmp.gt.f32.partialorder %v2807_v22, 0.0  ;;  %v2884_v26 = vmul.f32 0.2, %v2807_v22  ;;  %v3756_v9 = vpop.permute.xlu1 %3755 }
 0x2c2   : > { %20298 = vst [vmem:[#allocation25_spill] sm:$0xff] %v16285_v36  ;;  %v3512_v18 = vshll.u32 %v16285_v36, 16  ;;  %v16306_v63 = vsel %vm13934_vm8, %v3190_v57, %v3320_v20  ;;  %v20301_v5 = vrot.slane %v20277_v42, 6  ;;  %v2632_v29 = vadd.f32 %v15770_v21, %v2631_v3 }
 0x2c3   : > { %3801 = vrot.lane.b32.xlu1 %v16166_v0, %s20260_s2  ;;  %v2916_v19 = vsel %vm2852_vm1, %v2807_v22, %v2884_v26  ;;  %v20302_v25 = vrot.slane %v20278_v35, 2  ;;  %v3958_v20 = vsel %vm20013_vm11, %v20303_v48, %v3756_v9  ;;  %v20304_v3 = vrot.slane %v20278_v35, 4 }
 0x2c4   : > { %3771 = vrot.lane.b32.xlu0 %v16299_v16, %s19998_s7  ;;  %v16310_v44 = vrot.slane %v20301_v5, 9  ;;  %v3514_v52 = vrot.slane %v3512_v18, 1  ;;  %v2948_v33 = vpack.c.bf16 %v2916_v19, %v2916_v19  ;;  %v16320_v57 = vpop.permute.xlu0 %3789  ;;  %v2720_v5 = vpop.f32.mrf.mxu2  ;;  %v20305_v26 = vrot.slane %v20278_v35, 6 }
 0x2c5   : > { %v16316_v39 = vrot.slane %v20302_v25, 9  ;;  %v16326_v22 = vrot.slane %v20304_v3, 9  ;;  %v2721_v25 = vadd.f32 %v2720_v5, %v2632_v29  ;;  %v4004_v19 = vsel %vm2163_vm10, %v3958_v20, %v16119_v30 }
 0x2c6   : > { %3739 = vrot.lane.b32.xlu2 %v16166_v0, %s19958_s5  ;;  %v16330_v18 = vrot.slane %v20305_v26, 9  ;;  %v3510_v48 = vshrl.u32 %v16285_v36, 16  ;;  %v3517_v9 = vshll.u32 %v16306_v63, 16  ;;  %v2984_v23 = vunpack.c.l.b16 %v2947_v2 }
 0x2c7   : > { %v3096_v62 = vunpack.c.l.b16 %v2948_v33  ;;  %v4036_v0 = vsel %vm20021_vm5, %v4004_v19, %v3818_v24  ;;  %v2810_v56 = vadd.f32 %v2809_v37, %v2721_v25  ;;  %v20307_v29 = vrot.slane %v20281_v17, 2 }
 0x2c8   : > { %v16336_v53 = vpop.permute.xlu2 %3667  ;;  %4374 = vmatmul.bf16.gmra.mxu0 %v4036_v0  ;;  %v3515_v26 = vor.u32 %v3514_v52, %v3510_v48  ;;  %v20308_v30 = vrot.slane %v20281_v17, 4  ;;  %v20309_v33 = vrot.slane %v20281_v17, 6  ;;  %v20310_v0 = vrot.slane %v20270_v32, 9  ;;  %v2811_v52 = vpop.f32.mrf.mxu3 }
 0x2c9   : > { %20306 = vst [vmem:[#allocation45_spill] sm:$0xff] %v16336_v53  ;;  %v16342_v5 = vrot.slane %v20307_v29, 9  ;;  %v3112_v6 = vpack.c.b16 %v3096_v62, %v2984_v23  ;;  %v3272_v2 = vpack.c.b16 %v3096_v62, %v3096_v62  ;;  %v3519_v25 = vrot.slane %v3517_v9, 1 }
 0x2ca   : > { %v16346_v20 = vrot.slane %v20308_v30, 9  ;;  %12085 = vmatmul.msk.bf16.gmra.mxu1 %vm20013_vm11, %v16007_v59  ;;  %v16352_v24 = vrot.slane %v20309_v33, 9  ;;  %v16357_v37 = vadd.f32 %v20310_v0, %v20270_v32  ;;  %v20311_v19 = vrot.slane %v20270_v32, 2 }
 0x2cb   : > { %3707 = vrot.lane.b32.xlu1 %v16177_v38, %s20260_s2  ;;  %v20312_v59 = vrot.slane %v20270_v32, 4  ;;  %v20313_v29 = vrot.slane %v20270_v32, 6  ;;  %v3000_v33 = vpack.c.b16 %v2984_v23, %v2984_v23  ;;  %v3195_v0 = vshrl.u32 %v3112_v6, 16 }
 0x2cc   : > { %v16364_v62 = vadd.f32 %v16172_v31, %v20311_v19  ;;  %v3322_v3 = vshll.u32 %v3272_v2, 16  ;;  %3679 = vrot.lane.b32.xlu0 %v16254_v14, %s19998_s7  ;;  %v20315_v31 = vrot.slane %v20273_v28, 9  ;;  %v2634_v19 = vadd.f32 %v15770_v21, %v2633_v13  ;;  %v16392_v14 = vpop.permute.xlu0 %3695  ;;  %v2722_v53 = vpop.f32.mrf.mxu2 }
 0x2cd   : > { %v16369_v48 = vadd.f32 %v16188_v47, %v20312_v59  ;;  %v16374_v30 = vadd.f32 %v16192_v12, %v20313_v29  ;;  %v2885_v47 = vmul.f32 0.2, %v2810_v56  ;;  %v3726_v59 = vpop.permute.xlu1 %3725  ;;  %v16385_v32 = vsel %vm1674_vm9, %v3515_v26, %v3519_v25 }
 0x2ce   : > { %v16381_v9 = vadd.f32 %v20315_v31, %v20273_v28  ;;  %20317 = vst [vmem:[#allocation34_spill] sm:$0xff] %v16385_v32  ;;  %v20318_v12 = vrot.slane %v20273_v28, 2  ;;  %v3197_v2 = vrot.slane %v3195_v0, 7  ;;  %v3198_v29 = vshll.u32 %v3112_v6, 16  ;;  %3833 = vrot.lane.b32.xlu2 %v16385_v32, %s19958_s5 }
 0x2cf   : > { %20314 = vst [vmem:[#allocation58_spill] sm:$0xff] %v16374_v30  ;;  %vm2853_vm0 = vcmp.gt.f32.partialorder %v2810_v56, 0.0  ;;  %v20320_v21 = vrot.slane %v20273_v28, 4  ;;  %v2723_v26 = vadd.f32 %v2722_v53, %v2634_v19  ;;  %v3629_v25 = vrot.slane %v16285_v36, 1 }
 0x2d0   : > { %20316 = vst [vmem:[#allocation53_spill] sm:$0xff] %v16381_v9  ;;  %v16390_v23 = vadd.f32 %v16203_v46, %v20318_v12  ;;  %v20321_v46 = vrot.slane %v20273_v28, 6  ;;  %v20322_v6 = vrot.slane %v20271_v27, 9  ;;  %v3039_v12 = vshrl.u32 %v3000_v33, 16  ;;  %v2636_v9 = vpop.f32.mrf.mxu1  ;;  %v2071_v30 = vpop.permute.xlu2 %2070 }
 0x2d1   : > { %v16399_v13 = vadd.f32 %v16207_v34, %v20320_v21  ;;  %v3200_v38 = vor.u32 %v3198_v29, %v3197_v2  ;;  %v3912_v53 = vsel %vm20021_vm5, %v16152_v1, %v3726_v59  ;;  %v2917_v34 = vsel %vm2853_vm0, %v2810_v56, %v2885_v47  ;;  %v20323_v21 = vld [vmem:[#allocation37_spill] sm:$0xff] }
 0x2d2   : > { %20319 = vst [vmem:[#allocation17_spill] sm:$0xff] %v16390_v23  ;;  %v16405_v0 = vadd.f32 %v16216_v49, %v20321_v46  ;;  %v16410_v31 = vadd.f32 %v20322_v6, %v20271_v27  ;;  %v3324_v23 = vrot.slane %v3322_v3, 3  ;;  %v2812_v19 = vadd.f32 %v2811_v52, %v2723_v26  ;;  %4290 = vmatmul.bf16.gmra.mxu3 %v3912_v53  ;;  %v20324_v46 = vld [vmem:[#allocation44_spill] sm:$0xff] }
 0x2d3   : > { %v2290_v28 = vsel %vm20013_vm11, %v20323_v21, %v2071_v30  ;;  %v3630_v49 = vrot.slane %v16306_v63, 1  ;;  %v16421_v33 = vsel %vm13934_vm8, %v3039_v12, %v3200_v38  ;;  %v20325_v3 = vrot.slane %v20271_v27, 2  ;;  %3803 = vrot.lane.b32.xlu1 %v16285_v36, %s20260_s2  ;;  %v20327_v38 = vld [vmem:[#allocation22_spill] sm:$0xff]  ;;  %v16455_v12 = vld [vmem:[%s20144_s11] ss:$0 sm:$0xff]  ;;  %s13623_s11 = scalar_lea.hbm %s19831_s27, 2 }
 0x2d4   : > { %v2321_v6 = vsel %vm2163_vm10, %v2290_v28, %v20324_v46  ;;  %v20326_v56 = vrot.slane %v20271_v27, 4  ;;  %vm2854_vm1 = vcmp.gt.f32.partialorder %v2812_v19, 0.0  ;;  %v2886_v52 = vmul.f32 0.2, %v2812_v19  ;;  %v20331_v28 = vld [vmem:[#allocation16_spill] sm:$0xff] }
 0x2d5   : > { %v16426_v29 = vadd.f32 %v16222_v54, %v20325_v3  ;;  %v16436_v63 = vsel %vm1885_vm6, %v3629_v25, %v3630_v49  ;;  %v2367_v30 = vsel %vm20021_vm5, %v2321_v6, %v20327_v38  ;;  %v2949_v47 = vpack.c.bf16 %v2917_v34, %v2917_v34  ;;  %v2814_v25 = vpop.f32.mrf.mxu3  ;;  %v3820_v21 = vpop.permute.xlu1 %3819 }
 0x2d6   : > { %v16431_v1 = vadd.f32 %v16226_v55, %v20326_v56  ;;  %3773 = vrot.lane.b32.xlu0 %v16436_v63, %s19998_s7  ;;  %2734 = vmatmul.bf16.gmra.mxu2 %v2367_v30  ;;  %v16444_v54 = vsel %vm13934_vm8, %v3197_v2, %v3324_v23  ;;  %v3524_v55 = vshll.u32 %v16421_v33, 16  ;;  %v20328_v59 = vrot.slane %v20271_v27, 6  ;;  %v16471_v6 = vpop.permute.xlu0 %3791 }
 0x2d7   : > { %v2637_v53 = vadd.f32 %v16455_v12, %v2636_v9  ;;  %v2918_v34 = vsel %vm2854_vm1, %v2812_v19, %v2886_v52  ;;  %v20329_v23 = vrot.slane %v20276_v15, 9  ;;  %v20330_v27 = vrot.slane %v20276_v15, 2  ;;  %v2725_v9 = vpop.f32.mrf.mxu2  ;;  %3741 = vrot.lane.b32.xlu2 %v16285_v36, %s19958_s5 }
 0x2d8   : > { %v16450_v26 = vadd.f32 %v16232_v40, %v20328_v59  ;;  %v3961_v49 = vsel %vm20013_vm11, %v20331_v28, %v16156_v60  ;;  %v2950_v46 = vpack.c.bf16 %v2918_v34, %v2918_v34  ;;  %v3526_v19 = vrot.slane %v3524_v55, 1 }
 0x2d9   : > { %v16461_v2 = vadd.f32 %v20329_v23, %v20276_v15  ;;  %v16466_v40 = vadd.f32 %v16239_v45, %v20330_v27  ;;  %v20332_v3 = vrot.slane %v20276_v15, 4  ;;  %v4006_v45 = vsel %vm2163_vm10, %v3961_v49, %v16320_v57 }
 0x2da   : > { %v2726_v52 = vadd.f32 %v2725_v9, %v2637_v53  ;;  %v3522_v38 = vshrl.u32 %v16421_v33, 16  ;;  %v3529_v60 = vshll.u32 %v16444_v54, 16  ;;  %v2985_v30 = vunpack.c.l.b16 %v2949_v47  ;;  %12086 = vmatmul.msk.bf16.gmra.mxu1 %vm20013_vm11, %v16093_v4 }
 0x2db   : > { %v16478_v56 = vadd.f32 %v16243_v58, %v20332_v3  ;;  %v3097_v59 = vunpack.c.l.b16 %v2950_v46  ;;  %v4039_v34 = vsel %vm20021_vm5, %v4006_v45, %v3820_v21  ;;  %v20333_v23 = vrot.slane %v20276_v15, 6  ;;  %v2638_v46 = vpop.f32.mrf.mxu1  ;;  %3709 = vrot.lane.b32.xlu1 %v16299_v16, %s20260_s2 }
 0x2dc   : > { %v2815_v27 = vadd.f32 %v2814_v25, %v2726_v52  ;;  %4379 = vmatmul.bf16.gmra.mxu0 %v4039_v34  ;;  %v3527_v58 = vor.u32 %v3526_v19, %v3522_v38  ;;  %v20334_v57 = vrot.slane %v20274_v51, 9  ;;  %v20335_v28 = vrot.slane %v20274_v51, 2 }
 0x2dd   : > { %v16488_v55 = vadd.f32 %v16247_v43, %v20333_v23  ;;  %v3113_v49 = vpack.c.b16 %v3097_v59, %v2985_v30  ;;  %v3273_v21 = vpack.c.b16 %v3097_v59, %v3097_v59  ;;  %v20336_v15 = vrot.slane %v20274_v51, 4  ;;  %v16537_v23 = vpop.permute.xlu2 %3823 }
 0x2de   : > { %v16493_v53 = vadd.f32 %v20334_v57, %v20274_v51  ;;  %v16498_v47 = vadd.f32 %v16258_v50, %v20335_v28  ;;  %v20337_v25 = vrot.slane %v20274_v51, 6  ;;  %v3531_v50 = vrot.slane %v3529_v60, 1  ;;  %3681 = vrot.lane.b32.xlu0 %v16385_v32, %s19998_s7  ;;  %v3728_v57 = vpop.permute.xlu1 %3727 }
 0x2df   : > { %v16505_v43 = vadd.f32 %v16269_v7, %v20336_v15  ;;  %v20338_v19 = vrot.slane %v20277_v42, 9  ;;  %v20339_v4 = vrot.slane %v20277_v42, 2  ;;  %v20340_v7 = vrot.slane %v20277_v42, 4 }
 0x2e0   : > { %v16510_v9 = vadd.f32 %v16281_v10, %v20337_v25  ;;  %v3001_v10 = vpack.c.b16 %v2985_v30, %v2985_v30  ;;  %v3202_v52 = vshrl.u32 %v3113_v49, 16  ;;  %v3326_v38 = vshll.u32 %v3273_v21, 16  ;;  %v20343_v21 = vld [vmem:[#allocation40_spill] sm:$0xff]  ;;  %v2727_v25 = vpop.f32.mrf.mxu2 }
 0x2e1   : > { %v16517_v3 = vadd.f32 %v20338_v19, %v20277_v42  ;;  %v16522_v45 = vadd.f32 %v16290_v8, %v20339_v4  ;;  %v16527_v51 = vadd.f32 %v16294_v61, %v20340_v7  ;;  %v20341_v60 = vrot.slane %v20277_v42, 6 }
 0x2e2   : > { %v2639_v34 = vadd.f32 %v16455_v12, %v2638_v46  ;;  %v2887_v8 = vmul.f32 0.2, %v2815_v27  ;;  %v16540_v61 = vsel %vm1674_vm9, %v3527_v58, %v3531_v50  ;;  %v20342_v30 = vrot.slane %v20278_v35, 9  ;;  %v16550_v46 = vpop.permute.xlu0 %3697 }
 0x2e3   : > { %v16534_v59 = vadd.f32 %v16310_v44, %v20341_v60  ;;  %v3850_v42 = vsel %vm20013_vm11, %v20343_v21, %v16212_v11  ;;  %v3204_v44 = vrot.slane %v3202_v52, 7  ;;  %v3205_v15 = vshll.u32 %v3113_v49, 16  ;;  %3835 = vrot.lane.b32.xlu2 %v16540_v61, %s19958_s5  ;;  %v2816_v11 = vpop.f32.mrf.mxu3  ;;  %3805 = vrot.lane.b32.xlu1 %v16421_v33, %s20260_s2 }
 0x2e4   : > { %v16545_v28 = vadd.f32 %v20342_v30, %v20278_v35  ;;  %vm2855_vm0 = vcmp.gt.f32.partialorder %v2815_v27, 0.0  ;;  %v3880_v58 = vsel %vm2163_vm10, %v3850_v42, %v16392_v14  ;;  %v2728_v50 = vadd.f32 %v2727_v25, %v2639_v34  ;;  %v20350_v25 = vld [vmem:[#allocation12_spill] sm:$0xff] }
 0x2e5   : > { %v3632_v19 = vrot.slane %v16421_v33, 1  ;;  %v20344_v4 = vrot.slane %v20278_v35, 2  ;;  %v3042_v52 = vshrl.u32 %v3001_v10, 16  ;;  %v3207_v49 = vor.u32 %v3205_v15, %v3204_v44 }
 0x2e6   : > { %v3328_v60 = vrot.slane %v3326_v38, 3  ;;  %v3915_v30 = vsel %vm20021_vm5, %v3880_v58, %v3728_v57  ;;  %v2919_v21 = vsel %vm2855_vm0, %v2815_v27, %v2887_v8  ;;  %v2817_v36 = vadd.f32 %v2816_v11, %v2728_v50 }
 0x2e7   : > { %v6132_v7 = vadd.f32 %v16316_v39, %v20344_v4  ;;  %4295 = vmatmul.bf16.gmra.mxu3 %v3915_v30  ;;  %v3633_v32 = vrot.slane %v16444_v54, 1  ;;  %v20345_v14 = vrot.slane %v20278_v35, 4  ;;  %v16567_v42 = vsel %vm13934_vm8, %v3042_v52, %v3207_v49  ;;  %v3822_v4 = vpop.permute.xlu1 %3821 }
 0x2e8   : > { %v20346_v39 = vrot.slane %v20278_v35, 6  ;;  %v20347_v38 = vrot.slane %v20281_v17, 9  ;;  %v20348_v8 = vrot.slane %v20281_v17, 2  ;;  %vm2856_vm1 = vcmp.gt.f32.partialorder %v2817_v36, 0.0 }
 0x2e9   : > { %v6133_v34 = vadd.f32 %v16326_v22, %v20345_v14  ;;  %v2888_v57 = vmul.f32 0.2, %v2817_v36  ;;  %v16581_v22 = vsel %vm1885_vm6, %v3632_v19, %v3633_v32  ;;  %v3536_v35 = vshll.u32 %v16567_v42, 16  ;;  %v20355_v14 = vld [vmem:[#allocation20_spill] sm:$0xff] }
 0x2ea   : > { %v6134_v10 = vadd.f32 %v16330_v18, %v20346_v39  ;;  %v6135_v27 = vadd.f32 %v20347_v38, %v20281_v17  ;;  %v6136_v54 = vadd.f32 %v16342_v5, %v20348_v8  ;;  %v2951_v15 = vpack.c.bf16 %v2919_v21, %v2919_v21  ;;  %3775 = vrot.lane.b32.xlu0 %v16581_v22, %s19998_s7  ;;  %v20349_v18 = vld [vmem:[#allocation13_spill] sm:$0xff]  ;;  %v20354_v21 = vld [vmem:[#allocation27_spill] sm:$0xff]  ;;  %v16607_v39 = vpop.permute.xlu0 %3761 }
 0x2eb   : > { %v20351_v58 = vpack.c.b16 %v20349_v18, %v20350_v25  ;;  %v16592_v5 = vsel %vm13934_vm8, %v3204_v44, %v3328_v60  ;;  %v20352_v50 = vrot.slane %v20281_v17, 4  ;;  %v2920_v19 = vsel %vm2856_vm1, %v2817_v36, %v2888_v57  ;;  %3743 = vrot.lane.b32.xlu2 %v16421_v33, %s19958_s5  ;;  %3711 = vrot.lane.b32.xlu1 %v16436_v63, %s20260_s2 }
 0x2ec   : > { %v3538_v11 = vrot.slane %v3536_v35, 1  ;;  %v20353_v52 = vrot.slane %v20281_v17, 6  ;;  %v6187_v30 = vadd.f32 %v16410_v31, %v16357_v37  ;;  %v3964_v44 = vsel %vm20013_vm11, %v20355_v14, %v20354_v21  ;;  %v20356_v31 = vld [vmem:[#allocation58_spill] sm:$0xff]  ;;  %v16621_v35 = vpop.permute.xlu2 %3731 }
 0x2ed   : > { %12360 = vmatmul.msk.bf16.vlgmr.msrb.gmra.mxu2 %vm20013_vm11, %v20351_v58  ;;  %v6137_v32 = vadd.f32 %v16346_v20, %v20352_v50  ;;  %v2952_v60 = vpack.c.bf16 %v2920_v19, %v2920_v19  ;;  %v6188_v36 = vadd.f32 %v16426_v29, %v16364_v62  ;;  %v6189_v17 = vadd.f32 %v16431_v1, %v16369_v48  ;;  %v20357_v62 = vld [vmem:[#allocation53_spill] sm:$0xff]  ;;  %v20359_v50 = vld [vmem:[#allocation14_spill] sm:$0xff] }
 0x2ee   : > { %v16600_v49 = vadd.f32 %v16352_v24, %v20353_v52  ;;  %v4008_v20 = vsel %vm2163_vm10, %v3964_v44, %v16471_v6  ;;  %v3534_v24 = vshrl.u32 %v16567_v42, 16  ;;  %v3541_v37 = vshll.u32 %v16592_v5, 16  ;;  %v20358_v1 = vld [vmem:[#allocation17_spill] sm:$0xff]  ;;  %12087 = vmatmul.msk.bf16.gmra.mxu1 %vm20013_vm11, %v20359_v50 }
 0x2ef   : > { %v6190_v38 = vadd.f32 %v16450_v26, %v20356_v31  ;;  %v2986_v8 = vunpack.c.l.b16 %v2951_v15  ;;  %v3098_v57 = vunpack.c.l.b16 %v2952_v60  ;;  %v4042_v18 = vsel %vm20021_vm5, %v4008_v20, %v3822_v4 }
 0x2f0   : > { %v6191_v29 = vadd.f32 %v16461_v2, %v20357_v62  ;;  %4384 = vmatmul.bf16.gmra.mxu0 %v4042_v18  ;;  %v3539_v48 = vor.u32 %v3538_v11, %v3534_v24  ;;  %v16628_v6 = vadd.f32 %v16466_v40, %v20358_v1  ;;  %v16632_v25 = vadd.f32 %v16478_v56, %v16399_v13 }
 0x2f1   : > { %v6196_v26 = vadd.f32 %v6132_v7, %v16498_v47  ;;  %v3114_v15 = vpack.c.b16 %v3098_v57, %v2986_v8  ;;  %v3274_v58 = vpack.c.b16 %v3098_v57, %v3098_v57  ;;  %v16639_v2 = vadd.f32 %v16488_v55, %v16405_v0  ;;  %v3730_v55 = vpop.permute.xlu1 %3729 }
 0x2f2   : > { %v6195_v19 = vadd.f32 %v16545_v28, %v16493_v53  ;;  %v3543_v40 = vrot.slane %v3541_v37, 1  ;;  %v6197_v13 = vadd.f32 %v6133_v34, %v16505_v43  ;;  %v6198_v56 = vadd.f32 %v6134_v10, %v16510_v9  ;;  %3683 = vrot.lane.b32.xlu0 %v16540_v61, %s19998_s7  ;;  %v20360_v43 = vld [vmem:[#allocation45_spill] sm:$0xff]  ;;  %v20361_v34 = vld [vmem:[#allocation15_spill] sm:$0xff]  ;;  %v16657_v14 = vpop.permute.xlu0 %3669 }
 0x2f3   : > { %v6251_v47 = vmul.f32 0.25, %v6187_v30  ;;  %v3002_v7 = vpack.c.b16 %v2986_v8, %v2986_v8  ;;  %v3209_v4 = vshrl.u32 %v3114_v15, 16  ;;  %v3330_v11 = vshll.u32 %v3274_v58, 16  ;;  %3807 = vrot.lane.b32.xlu1 %v16567_v42, %s20260_s2 }
 0x2f4   : > { %v6199_v0 = vadd.f32 %v6135_v27, %v16517_v3  ;;  %v16651_v53 = vsel %vm1674_vm9, %v3539_v48, %v3543_v40  ;;  %v6200_v28 = vadd.f32 %v6136_v54, %v16522_v45  ;;  %v6252_v52 = vmul.f32 0.25, %v6188_v36 }
 0x2f5   : > { %v6260_v21 = vmul.f32 0.25, %v6196_v26  ;;  %v3852_v9 = vsel %vm20013_vm11, %v20361_v34, %v20360_v43  ;;  %v3211_v10 = vrot.slane %v3209_v4, 7  ;;  %v3212_v30 = vshll.u32 %v3114_v15, 16  ;;  %3837 = vrot.lane.b32.xlu2 %v16651_v53, %s19958_s5  ;;  %v20363_v26 = vld [vmem:[#allocation46_spill] sm:$0xff]  ;;  %v20364_v15 = vld [vmem:[#allocation56_spill] sm:$0xff] }
 0x2f6   : > { %v6253_v3 = vmul.f32 0.25, %v6189_v17  ;;  %v3882_v27 = vsel %vm2163_vm10, %v3852_v9, %v16550_v46  ;;  %v3635_v44 = vrot.slane %v16567_v42, 1  ;;  %v6259_v45 = vmul.f32 0.25, %v6195_v19  ;;  %v16667_v17 = vpop.permute.xlu2 %3825  ;;  %v20366_v19 = vld [vmem:[#allocation24_spill] sm:$0xff] }
 0x2f7   : > { %v6261_v54 = vmul.f32 0.25, %v6197_v13  ;;  %v3045_v60 = vshrl.u32 %v3002_v7, 16  ;;  %v3214_v36 = vor.u32 %v3212_v30, %v3211_v10  ;;  %v3332_v20 = vrot.slane %v3330_v11, 3 }
 0x2f8   : > { %v3918_v24 = vsel %vm20021_vm5, %v3882_v27, %v3730_v55  ;;  %v3636_v37 = vrot.slane %v16592_v5, 1  ;;  %v6201_v31 = vadd.f32 %v6137_v32, %v16527_v51  ;;  %v6316_v8 = vpack.c.bf16 %v6252_v52, %v6252_v52 }
 0x2f9   : > { %4300 = vmatmul.bf16.gmra.mxu3 %v3918_v24  ;;  %v6324_v57 = vpack.c.bf16 %v6260_v21, %v6260_v21  ;;  %v16671_v46 = vsel %vm13934_vm8, %v3045_v60, %v3214_v36  ;;  %v6202_v18 = vadd.f32 %v16600_v49, %v16534_v59  ;;  %v6254_v62 = vmul.f32 0.25, %v6190_v38  ;;  %v3794_v13 = vpop.permute.xlu1 %3793 }
 0x2fa   : > { %20362 = vst [vmem:[#allocation21_spill] sm:$0xff] %v16671_v46  ;;  %v6262_v48 = vmul.f32 0.25, %v6198_v56  ;;  %v16678_v5 = vsel %vm1885_vm6, %v3635_v44, %v3636_v37  ;;  %v3548_v51 = vshll.u32 %v16671_v46, 16  ;;  %v6315_v32 = vpack.c.bf16 %v6251_v47, %v6251_v47  ;;  %v16695_v11 = vpop.permute.xlu0 %3763 }
 0x2fb   : > { %v6317_v1 = vpack.c.bf16 %v6253_v3, %v6253_v3  ;;  %3777 = vrot.lane.b32.xlu0 %v16678_v5, %s19998_s7  ;;  %v20365_v58 = vpack.c.b16 %v20363_v26, %v20364_v15  ;;  %v16689_v59 = vsel %vm13934_vm8, %v3211_v10, %v3332_v20  ;;  %v6255_v49 = vmul.f32 0.25, %v6191_v29  ;;  %3713 = vrot.lane.b32.xlu1 %v16581_v22, %s20260_s2 }
 0x2fc   : > { %v6323_v38 = vpack.c.bf16 %v6259_v45, %v6259_v45  ;;  %v6325_v50 = vpack.c.bf16 %v6261_v54, %v6261_v54  ;;  %v3967_v40 = vsel %vm20013_vm11, %v20366_v19, %v16607_v39  ;;  %v3550_v56 = vrot.slane %v3548_v51, 1 }
 0x2fd   : > { %12361 = vmatmul.msk.bf16.gmra.mxu2 %vm20013_vm11, %v20365_v58  ;;  %v6452_v47 = vunpack.c.l.b16 %v6316_v8  ;;  %v6460_v7 = vunpack.c.l.b16 %v6324_v57  ;;  %v4010_v4 = vsel %vm2163_vm10, %v3967_v40, %v3794_v13  ;;  %3745 = vrot.lane.b32.xlu2 %v16567_v42, %s19958_s5  ;;  %v6256_v55 = vmul.f32 0.25, %v16628_v6 }
 0x2fe   : > { %v6263_v29 = vmul.f32 0.25, %v6199_v0  ;;  %v6318_v52 = vpack.c.bf16 %v6254_v62, %v6254_v62  ;;  %v4045_v21 = vsel %vm20021_vm5, %v4010_v4, %v16537_v23  ;;  %v3546_v39 = vshrl.u32 %v16671_v46, 16  ;;  %12088 = vmatmul.msk.bf16.gmra.mxu1 %vm20013_vm11, %v16299_v16  ;;  %v16710_v37 = vpop.permute.xlu2 %3733 }
 0x2ff   : > { %v3553_v43 = vshll.u32 %v16689_v59, 16  ;;  %v6326_v34 = vpack.c.bf16 %v6262_v48, %v6262_v48  ;;  %v6264_v9 = vmul.f32 0.25, %v6200_v28  ;;  %v6451_v10 = vunpack.c.l.b16 %v6315_v32 }
 0x300   : > { %v6453_v30 = vunpack.c.l.b16 %v6317_v1  ;;  %v6461_v3 = vunpack.c.l.b16 %v6325_v50  ;;  %4389 = vmatmul.bf16.gmra.mxu0 %v4045_v21  ;;  %v3551_v27 = vor.u32 %v3550_v56, %v3546_v39  ;;  %v6459_v44 = vunpack.c.l.b16 %v6323_v38 }
 0x301   : > { %v6558_v45 = vrot.slane %v6452_v47, 7  ;;  %v6572_v54 = vrot.slane %v6460_v7, 7  ;;  %v6257_v6 = vmul.f32 0.25, %v16632_v25  ;;  %v6258_v23 = vmul.f32 0.25, %v16639_v2  ;;  %v20367_v2 = vld [vmem:[#allocation47_spill] sm:$0xff]  ;;  %v3700_v48 = vpop.permute.xlu1 %3699 }
 0x302   : > { %v6319_v0 = vpack.c.bf16 %v6255_v49, %v6255_v49  ;;  %v6327_v60 = vpack.c.bf16 %v6263_v29, %v6263_v29  ;;  %v3555_v28 = vrot.slane %v3553_v43, 1  ;;  %v6265_v36 = vmul.f32 0.25, %v6201_v31  ;;  %v3672_v26 = vpop.permute.xlu0 %3671  ;;  %v20370_v29 = vld [vmem:[#allocation57_spill] sm:$0xff] }
 0x303   : > { %v6454_v20 = vunpack.c.l.b16 %v6318_v52  ;;  %v6462_v24 = vunpack.c.l.b16 %v6326_v34  ;;  %3685 = vrot.lane.b32.xlu0 %v16651_v53, %s19998_s7  ;;  %v6320_v8 = vpack.c.bf16 %v6256_v55, %v6256_v55  ;;  %v6328_v16 = vpack.c.bf16 %v6264_v9, %v6264_v9  ;;  %v20369_v55 = vld [vmem:[#allocation36_spill] sm:$0xff]  ;;  %3809 = vrot.lane.b32.xlu1 %v16671_v46, %s20260_s2 }
 0x304   : > { %v6560_v57 = vrot.slane %v6453_v30, 6  ;;  %v6574_v25 = vrot.slane %v6461_v3, 6  ;;  %v3854_v62 = vsel %vm20013_vm11, %v20367_v2, %v16657_v14  ;;  %v16718_v51 = vsel %vm1674_vm9, %v3551_v27, %v3555_v28  ;;  %v20371_v3 = vld [vmem:[#allocation30_spill] sm:$0xff] }
 0x305   : > { %20368 = vst [vmem:[#allocation48_spill] sm:$0xff] %v16718_v51  ;;  %v6559_v31 = vsel %vm20022_vm7, %v6558_v45, %v6451_v10  ;;  %v6573_v32 = vsel %vm20022_vm7, %v6572_v54, %v6459_v44  ;;  %v3884_v1 = vsel %vm2163_vm10, %v3854_v62, %v3700_v48  ;;  %3839 = vrot.lane.b32.xlu2 %v16718_v51, %s19958_s5  ;;  %v6266_v15 = vmul.f32 0.25, %v6202_v18 }
 0x306   : > { %v6455_v58 = vunpack.c.l.b16 %v6319_v0  ;;  %v6463_v49 = vunpack.c.l.b16 %v6327_v60  ;;  %v3921_v14 = vsel %vm20021_vm5, %v3884_v1, %v16621_v35  ;;  %v3638_v38 = vrot.slane %v16671_v46, 1 }
 0x307   : > { %v6562_v50 = vrot.slane %v6454_v20, 5  ;;  %v6576_v19 = vrot.slane %v6462_v24, 5  ;;  %v6321_v40 = vpack.c.bf16 %v6257_v6, %v6257_v6  ;;  %v6329_v13 = vpack.c.bf16 %v6265_v36, %v6265_v36  ;;  %v3828_v6 = vpop.permute.xlu2 %3827 }
 0x308   : > { %v6561_v56 = vsel %vm6471_vm12, %v6560_v57, %v6559_v31  ;;  %v6575_v47 = vsel %vm6471_vm12, %v6574_v25, %v6573_v32  ;;  %v3639_v7 = vrot.slane %v16689_v59, 1  ;;  %v6456_v4 = vunpack.c.l.b16 %v6320_v8  ;;  %v20372_v31 = vld [vmem:[#allocation50_spill] sm:$0xff] }
 0x309   : > { %4305 = vmatmul.bf16.gmra.mxu3 %v3921_v14  ;;  %v6464_v18 = vunpack.c.l.b16 %v6328_v16  ;;  %v6588_v52 = vpack.c.b16 %v20370_v29, %v20369_v55  ;;  %v6322_v21 = vpack.c.bf16 %v6258_v23, %v6258_v23  ;;  %v6564_v35 = vrot.slane %v6455_v58, 4  ;;  %v3796_v44 = vpop.permute.xlu1 %3795  ;;  %v20374_v29 = vld [vmem:[#allocation51_spill] sm:$0xff] }
 0x30a   : > { %v6578_v39 = vrot.slane %v6463_v49, 4  ;;  %v16736_v43 = vsel %vm1885_vm6, %v3638_v38, %v3639_v7  ;;  %v6330_v34 = vpack.c.bf16 %v6266_v15, %v6266_v15  ;;  %v6563_v9 = vsel %vm6474_vm13, %v6562_v50, %v6561_v56  ;;  %v3766_v0 = vpop.permute.xlu0 %3765  ;;  %v16767_v15 = vpop.f32.mrf.mxu3 }
 0x30b   : > { %v6577_v10 = vsel %vm6474_vm13, %v6576_v19, %v6575_v47  ;;  %3779 = vrot.lane.b32.xlu0 %v16736_v43, %s19998_s7  ;;  %v6457_v59 = vunpack.c.l.b16 %v6321_v40  ;;  %v6465_v30 = vunpack.c.l.b16 %v6329_v13  ;;  %v3970_v27 = vsel %vm20013_vm11, %v20371_v3, %v16695_v11  ;;  %v16753_v11 = vpop.f32.mrf.mxu1  ;;  %3715 = vrot.lane.b32.xlu1 %v16678_v5, %s20260_s2 }
 0x30c   : > { %v6566_v45 = vrot.slane %v6456_v4, 3  ;;  %v6580_v54 = vrot.slane %v6464_v18, 3  ;;  %v4012_v23 = vsel %vm2163_vm10, %v3970_v27, %v3796_v44  ;;  %v6565_v60 = vsel %vm6477_vm14, %v6564_v35, %v6563_v9 }
 0x30d   : > { %12362 = vmatmul.msk.bf16.gmra.mxu2 %vm20013_vm11, %v6588_v52  ;;  %3747 = vrot.lane.b32.xlu2 %v16671_v46, %s19958_s5  ;;  %v6579_v28 = vsel %vm6477_vm14, %v6578_v39, %v6577_v10  ;;  %v4048_v36 = vsel %vm20021_vm5, %v4012_v23, %v16667_v17  ;;  %v6458_v20 = vunpack.c.l.b16 %v6322_v21  ;;  %v6466_v24 = vunpack.c.l.b16 %v6330_v34  ;;  %s20379_s5 = smov %s20378_s8 }
 0x30e   : > { %v6568_v8 = vrot.slane %v6457_v59, 2  ;;  %v6582_v16 = vrot.slane %v6465_v30, 2  ;;  %v6567_v57 = vsel %vm6480_vm15, %v6566_v45, %v6565_v60  ;;  %v6581_v25 = vsel %vm6480_vm15, %v6580_v54, %v6579_v28  ;;  %12089 = vmatmul.msk.bf16.gmra.mxu1 %vm20013_vm11, %v16436_v63  ;;  %v20375_v59 = vld [vmem:[#allocation55_spill] sm:$0xff] }
 0x30f   : > { %v6570_v2 = vrot.slane %v6458_v20, 1  ;;  %v6584_v62 = vrot.slane %v6466_v24, 1  ;;  %v3856_v32 = vsel %vm20013_vm11, %v20372_v31, %v3672_v26  ;;  %v3736_v50 = vpop.permute.xlu2 %3735  ;;  %v20373_v26 = vld [vmem:[#allocation49_spill] sm:$0xff]  ;;  %v2642_v31 = vadd.f32 %v16455_v12, %v16753_v11 }
 0x310   : > { %4394 = vmatmul.bf16.gmra.mxu0 %v4048_v36  ;;  %v6569_v17 = vsel %vm19963_vm2, %v6568_v8, %v6567_v57  ;;  %v6583_v48 = vsel %vm19963_vm2, %v6582_v16, %v6581_v25  ;;  %v3973_v13 = vsel %vm20013_vm11, %v20373_v26, %v3766_v0  ;;  %v20377_v57 = vld [vmem:[#allocation42_spill] sm:$0xff] }
 0x311   : > { %v3702_v1 = vpop.permute.xlu1 %3701  ;;  %v6571_v14 = vsel %vm19962_vm3, %v6570_v2, %v6569_v17  ;;  %v6585_v38 = vsel %vm19962_vm3, %v6584_v62, %v6583_v48  ;;  %v16814_v48 = vld [vmem:[%s20378_s8] ss:$0 sm:$0xff]  ;;  %s20388_s8 = sld [smem:[#allocation67_spill]] }
 0x312   : > { %v3886_v63 = vsel %vm2163_vm10, %v3856_v32, %v3702_v1  ;;  %v3674_v58 = vpop.permute.xlu0 %3673  ;;  %v6589_v40 = vpack.c.b16 %v6585_v38, %v6571_v14  ;;  %v16781_v4 = vpop.f32.mrf.mxu3  ;;  %v20380_v14 = vld [vmem:[#allocation33_spill] sm:$0xff] }
 0x313   : > { %3687 = vrot.lane.b32.xlu0 %v16718_v51, %s19998_s7  ;;  %v3924_v49 = vsel %vm20021_vm5, %v3886_v63, %v16710_v37  ;;  %v16774_v19 = vpop.f32.mrf.mxu1  ;;  %v3858_v52 = vsel %vm20013_vm11, %v20374_v29, %v3674_v58 }
 0x317   : > { %v3830_v18 = vpop.permute.xlu2 %3829  ;;  %s20389_s3 = smov %s20388_s8 }
 0x319   : > { %4310 = vmatmul.bf16.gmra.mxu3 %v3924_v49  ;;  %v3798_v56 = vpop.permute.xlu1 %3797 }
 0x31a   : > { %v4014_v47 = vsel %vm2163_vm10, %v3973_v13, %v3798_v56  ;;  %v3768_v7 = vpop.permute.xlu0 %3767  ;;  %v16791_v9 = vpop.f32.mrf.mxu3 }
 0x31b   : > { %v4051_v37 = vsel %vm20021_vm5, %v4014_v47, %v3828_v6  ;;  %v16785_v55 = vpop.f32.mrf.mxu1  ;;  %v3976_v30 = vsel %vm20013_vm11, %v20375_v59, %v3768_v7  ;;  %v20376_v6 = vld [vmem:[#allocation29_spill] sm:$0xff] }
 0x31d   : > { %12363 = vmatmul.msk.bf16.gmra.mxu2 %vm20013_vm11, %v6589_v40 }
 0x31e   : > { %12090 = vmatmul.msk.bf16.gmra.mxu1 %vm20013_vm11, %v16581_v22 }
 0x31f   : > { %v3738_v10 = vpop.permute.xlu2 %3737 }
 0x320   : > { %4399 = vmatmul.bf16.gmra.mxu0 %v4051_v37 }
 0x321   : > { %v3704_v21 = vpop.permute.xlu1 %3703 }
 0x322   : > { %v3888_v35 = vsel %vm2163_vm10, %v3858_v52, %v3704_v21  ;;  %v3676_v39 = vpop.permute.xlu0 %3675  ;;  %v16801_v54 = vpop.f32.mrf.mxu3 }
 0x323   : > { %v3927_v34 = vsel %vm20021_vm5, %v3888_v35, %v3736_v50  ;;  %v16795_v22 = vpop.f32.mrf.mxu1  ;;  %v3860_v23 = vsel %vm20013_vm11, %v20376_v6, %v3676_v39  ;;  %v4370_v8 = vpop.f32.mrf.mxu0 }
 0x327   : > { %v3832_v60 = vpop.permute.xlu2 %3831 }
 0x329   : > { %4315 = vmatmul.bf16.gmra.mxu3 %v3927_v34  ;;  %v3800_v3 = vpop.permute.xlu1 %3799  ;;  %v20381_v34 = vld [vmem:[#allocation52_spill] sm:$0xff] }
 0x32a   : > { %v4016_v27 = vsel %vm2163_vm10, %v3976_v30, %v3800_v3  ;;  %v3770_v45 = vpop.permute.xlu0 %3769 }
 0x32b   : > { %v4054_v44 = vsel %vm20021_vm5, %v4016_v27, %v3830_v18  ;;  %v4459_v20 = vpop.f32.mrf.mxu1  ;;  %v3979_v25 = vsel %vm20013_vm11, %v20377_v57, %v3770_v45  ;;  %v16827_v26 = vpop.f32.mrf.mxu0  ;;  %v2644_v18 = vadd.f32 %v16455_v12, %v16774_v19 }
 0x32e   : > { %12091 = vmatmul.msk.bf16.gmra.mxu1 %vm20013_vm11, %v16678_v5 }
 0x32f   : > { %v3740_v17 = vpop.permute.xlu2 %3739 }
 0x330   : > { %4404 = vmatmul.bf16.gmra.mxu0 %v4054_v44 }
 0x331   : > { %v3706_v0 = vpop.permute.xlu1 %3705  ;;  %v4281_v16 = vpop.f32.mrf.mxu3 }
 0x332   : > { %v3890_v28 = vsel %vm2163_vm10, %v3860_v23, %v3706_v0  ;;  %v3678_v24 = vpop.permute.xlu0 %3677  ;;  %v4282_v50 = vadd.f32 %v16814_v48, %v4281_v16 }
 0x333   : > { %v3930_v36 = vsel %vm20021_vm5, %v3890_v28, %v3738_v10  ;;  %v16818_v32 = vpop.f32.mrf.mxu1  ;;  %v3862_v38 = vsel %vm20013_vm11, %v20380_v14, %v3678_v24 }
 0x334   : > { %v4371_v47 = vadd.f32 %v4370_v8, %v4282_v50 }
 0x336   : > { %v16834_v21 = vadd.f32 %v4459_v20, %v4371_v47 }
 0x337   : > { %v3834_v7 = vpop.permute.xlu2 %3833 }
 0x338   : > { %v2730_v1 = vpop.f32.mrf.mxu2  ;;  %v4573_v23 = vrot.slane %v16834_v21, 6  ;;  %v12096_v47 = vrot.slane %v16834_v21, 9 }
 0x339   : > { %4320 = vmatmul.bf16.gmra.mxu3 %v3930_v36  ;;  %v3802_v5 = vpop.permute.xlu1 %3801  ;;  %v2731_v58 = vadd.f32 %v2730_v1, %v2642_v31  ;;  %v16822_v49 = vpop.f32.mrf.mxu3 }
 0x33a   : > { %v4018_v2 = vsel %vm2163_vm10, %v3979_v25, %v3802_v5  ;;  %v3772_v63 = vpop.permute.xlu0 %3771  ;;  %v12099_v16 = vrot.slane %v4573_v23, 9  ;;  %v20382_v25 = vld [vmem:[#allocation39_spill] sm:$0xff] }
 0x33b   : > { %v4057_v62 = vsel %vm20021_vm5, %v4018_v2, %v3832_v60  ;;  %v2820_v11 = vadd.f32 %v16767_v15, %v2731_v58  ;;  %v3982_v10 = vsel %vm20013_vm11, %v20381_v34, %v3772_v63  ;;  %v4464_v6 = vpop.f32.mrf.mxu1  ;;  %v4572_v58 = vrot.slane %v16834_v21, 4 }
 0x33d   : > { %v2889_v37 = vmul.f32 0.2, %v2820_v11  ;;  %vm2857_vm0 = vcmp.gt.f32.partialorder %v2820_v11, 0.0 }
 0x33e   : > { %12092 = vmatmul.msk.bf16.gmra.mxu1 %vm20013_vm11, %v16736_v43 }
 0x33f   : > { %v2921_v59 = vsel %vm2857_vm0, %v2820_v11, %v2889_v37  ;;  %v3742_v20 = vpop.permute.xlu2 %3741 }
 0x340   : > { %4409 = vmatmul.bf16.gmra.mxu0 %v4057_v62  ;;  %v2732_v29 = vpop.f32.mrf.mxu2  ;;  %v2953_v0 = vpack.c.bf16 %v2921_v59, %v2921_v59  ;;  %v2647_v59 = vadd.f32 %v16455_v12, %v16785_v55 }
 0x341   : > { %v3708_v40 = vpop.permute.xlu1 %3707  ;;  %v2733_v35 = vadd.f32 %v2732_v29, %v2644_v18 }
 0x342   : > { %v3892_v13 = vsel %vm2163_vm10, %v3862_v38, %v3708_v40  ;;  %v4286_v52 = vpop.f32.mrf.mxu3  ;;  %v3680_v30 = vpop.permute.xlu0 %3679  ;;  %v2987_v57 = vunpack.c.l.b16 %v2953_v0  ;;  %v5150_v40 = vadd.f32 %v12099_v16, %v4573_v23 }
 0x343   : > { %v3933_v56 = vsel %vm20021_vm5, %v3892_v13, %v3740_v17  ;;  %v4287_v39 = vadd.f32 %v16814_v48, %v4286_v52  ;;  %v2822_v27 = vadd.f32 %v16781_v4, %v2733_v35  ;;  %v3864_v5 = vsel %vm20013_vm11, %v20382_v25, %v3680_v30 }
 0x344   : > { %v4571_v17 = vrot.slane %v16834_v21, 2  ;;  %v3003_v11 = vpack.c.b16 %v2987_v57, %v2987_v57  ;;  %v12098_v30 = vrot.slane %v4572_v58, 9 }
 0x345   : > { %v4375_v3 = vpop.f32.mrf.mxu0  ;;  %vm2858_vm1 = vcmp.gt.f32.partialorder %v2822_v27, 0.0  ;;  %v2890_v60 = vmul.f32 0.2, %v2822_v27 }
 0x346   : > { %v4376_v19 = vadd.f32 %v4375_v3, %v4287_v39  ;;  %v12097_v29 = vrot.slane %v4571_v17, 9  ;;  %v3048_v3 = vshrl.u32 %v3003_v11, 16 }
 0x347   : > { %v2922_v36 = vsel %vm2858_vm1, %v2822_v27, %v2890_v60  ;;  %v20383_v27 = vld [vmem:[#allocation34_spill] sm:$0xff] }
 0x348   : > { %v4465_v28 = vadd.f32 %v4464_v6, %v4376_v19  ;;  %v2954_v24 = vpack.c.bf16 %v2922_v36, %v2922_v36  ;;  %v3836_v6 = vpop.permute.xlu2 %3835 }
 0x349   : > { %4325 = vmatmul.bf16.gmra.mxu3 %v3933_v56  ;;  %v3804_v15 = vpop.permute.xlu1 %3803 }
 0x34a   : > { %v4020_v44 = vsel %vm2163_vm10, %v3982_v10, %v3804_v15  ;;  %v4579_v8 = vrot.slane %v4465_v28, 6  ;;  %v3099_v2 = vunpack.c.l.b16 %v2954_v24  ;;  %v4577_v31 = vrot.slane %v4465_v28, 2  ;;  %v3774_v50 = vpop.permute.xlu0 %3773  ;;  %v4288_v19 = vpop.f32.mrf.mxu3 }
 0x34b   : > { %v4060_v45 = vsel %vm20021_vm5, %v4020_v44, %v3834_v7  ;;  %v4578_v1 = vrot.slane %v4465_v28, 4  ;;  %v12104_v18 = vrot.slane %v4465_v28, 9  ;;  %v3985_v44 = vsel %vm20013_vm11, %v20383_v27, %v3774_v50  ;;  %v4466_v50 = vpop.f32.mrf.mxu1 }
 0x34c   : > { %v12107_v62 = vrot.slane %v4579_v8, 9  ;;  %v3115_v14 = vpack.c.b16 %v3099_v2, %v2987_v57  ;;  %v3275_v38 = vpack.c.b16 %v3099_v2, %v3099_v2  ;;  %v12105_v52 = vrot.slane %v4577_v31, 9 }
 0x34d   : > { %v12106_v35 = vrot.slane %v4578_v1, 9  ;;  %v5155_v23 = vadd.f32 %v12104_v18, %v4465_v28  ;;  %v5148_v24 = vadd.f32 %v12097_v29, %v4571_v17  ;;  %v4289_v57 = vadd.f32 %v16814_v48, %v4288_v19  ;;  %v4377_v2 = vpop.f32.mrf.mxu0 }
 0x34e   : > { %v5158_v13 = vadd.f32 %v12107_v62, %v4579_v8  ;;  %v3216_v7 = vshrl.u32 %v3115_v14, 16  ;;  %v3334_v37 = vshll.u32 %v3275_v38, 16  ;;  %v3219_v34 = vshll.u32 %v3115_v14, 16 }
 0x34f   : > { %v5156_v8 = vadd.f32 %v12105_v52, %v4577_v31  ;;  %v5157_v55 = vadd.f32 %v12106_v35, %v4578_v1  ;;  %v4284_v31 = vadd.f32 %v16814_v48, %v16822_v49  ;;  %v2649_v29 = vadd.f32 %v16455_v12, %v16795_v22 }
 0x350   : > { %4414 = vmatmul.bf16.gmra.mxu0 %v4060_v45  ;;  %v16850_v39 = vadd.f32 %v5158_v13, %v5150_v40  ;;  %v3218_v15 = vrot.slane %v3216_v7, 7  ;;  %v3336_v10 = vrot.slane %v3334_v37, 3  ;;  %v4378_v40 = vadd.f32 %v4377_v2, %v4289_v57  ;;  %v3744_v35 = vpop.permute.xlu2 %3743 }
 0x351   : > { %v3710_v4 = vpop.permute.xlu1 %3709 }
 0x352   : > { %v3894_v63 = vsel %vm2163_vm10, %v3864_v5, %v3710_v4  ;;  %v3221_v60 = vor.u32 %v3219_v34, %v3218_v15  ;;  %v3387_v36 = vsel %vm13934_vm8, %v3218_v15, %v3336_v10  ;;  %v5149_v5 = vadd.f32 %v12098_v30, %v4572_v58  ;;  %v3682_v1 = vpop.permute.xlu0 %3681 }
 0x353   : > { %v3936_v56 = vsel %vm20021_vm5, %v3894_v63, %v3742_v20  ;;  %v5147_v20 = vadd.f32 %v12096_v47, %v16834_v21  ;;  %v3642_v62 = vrot.slane %v3387_v36, 1  ;;  %v16877_v58 = vadd.f32 %v5156_v8, %v5148_v24  ;;  %v20385_v47 = vld [vmem:[#allocation25_spill] sm:$0xff] }
 0x354   : > { %v16863_v25 = vsel %vm13934_vm8, %v3048_v3, %v3221_v60  ;;  %v16879_v38 = vadd.f32 %v5157_v55, %v5149_v5  ;;  %v3866_v7 = vsel %vm20013_vm11, %v20385_v47, %v3682_v1  ;;  %v3565_v18 = vshll.u32 %v3387_v36, 16 }
 0x355   : > { %20384 = vst [vmem:[#allocation26_spill] sm:$0xff] %v16863_v25  ;;  %3811 = vrot.lane.b32.xlu1 %v16863_v25, %s20260_s2  ;;  %v3641_v21 = vrot.slane %v16863_v25, 1  ;;  %v3560_v17 = vshll.u32 %v16863_v25, 16  ;;  %v16872_v63 = vadd.f32 %v5155_v23, %v5147_v20  ;;  %v3558_v37 = vshrl.u32 %v16863_v25, 16  ;;  %v4291_v34 = vpop.f32.mrf.mxu3 }
 0x356   : > { %v16893_v15 = vadd.f32 %v4466_v50, %v4378_v40  ;;  %v3567_v12 = vrot.slane %v3565_v18, 1 }
 0x357   : > { %v16875_v14 = vsel %vm1885_vm6, %v3641_v21, %v3642_v62  ;;  %v3562_v49 = vrot.slane %v3560_v17, 1 }
 0x358   : > { %3781 = vrot.lane.b32.xlu0 %v16875_v14, %s19998_s7  ;;  %12093 = vmatmul.msk.bf16.gmra.mxu1 %vm20013_vm11, %v16875_v14  ;;  %v12108_v27 = vrot.slane %v16893_v15, 9  ;;  %v4580_v24 = vrot.slane %v16893_v15, 2  ;;  %v3838_v2 = vpop.permute.xlu2 %3837  ;;  %v4581_v21 = vrot.slane %v16893_v15, 4  ;;  %v4582_v62 = vrot.slane %v16893_v15, 6 }
 0x359   : > { %4330 = vmatmul.bf16.gmra.mxu3 %v3936_v56  ;;  %v3806_v45 = vpop.permute.xlu1 %3805  ;;  %v2735_v16 = vpop.f32.mrf.mxu2  ;;  %v4373_v56 = vadd.f32 %v16827_v26, %v4284_v31 }
 0x35a   : > { %v4022_v0 = vsel %vm2163_vm10, %v3985_v44, %v3806_v45  ;;  %v2736_v4 = vadd.f32 %v2735_v16, %v2647_v59  ;;  %v3563_v59 = vor.u32 %v3562_v49, %v3558_v37  ;;  %v16901_v22 = vpop.f32.mrf.mxu0  ;;  %v5159_v8 = vadd.f32 %v12108_v27, %v16893_v15 }
 0x35b   : > { %v4063_v28 = vsel %vm20021_vm5, %v4022_v0, %v3836_v6  ;;  %v16899_v3 = vadd.f32 %v16818_v32, %v4373_v56  ;;  %v16913_v0 = vpop.f32.mrf.mxu1  ;;  %v12109_v49 = vrot.slane %v4580_v24, 9  ;;  %v5339_v15 = vmul.f32 0.25, %v16872_v63 }
 0x35c   : > { %v2825_v11 = vadd.f32 %v16791_v9, %v2736_v4  ;;  %v3776_v44 = vpop.permute.xlu0 %3775  ;;  %v16905_v45 = vsel %vm1674_vm9, %v3563_v59, %v3567_v12  ;;  %v5342_v12 = vmul.f32 0.25, %v16850_v39 }
 0x35d   : > { %3717 = vrot.lane.b32.xlu1 %v16736_v43, %s20260_s2  ;;  %20386 = vst [vmem:[#allocation31_spill] sm:$0xff] %v16905_v45  ;;  %3841 = vrot.lane.b32.xlu2 %v16905_v45, %s20387_s30  ;;  %v12100_v32 = vrot.slane %v16899_v3, 9  ;;  %v4574_v60 = vrot.slane %v16899_v3, 2  ;;  %v3988_v36 = vsel %vm20013_vm11, %v16540_v61, %v3776_v44  ;;  %v4575_v4 = vrot.slane %v16899_v3, 4  ;;  %v4293_v17 = vpop.f32.mrf.mxu3 }
 0x35e   : > { %v2891_v10 = vmul.f32 0.2, %v2825_v11  ;;  %vm2859_vm0 = vcmp.gt.f32.partialorder %v2825_v11, 0.0 }
 0x35f   : > { %v5151_v61 = vadd.f32 %v12100_v32, %v16899_v3  ;;  %v12102_v56 = vrot.slane %v4575_v4, 9 }
 0x360   : > { %4419 = vmatmul.bf16.gmra.mxu0 %v4063_v28  ;;  %v2923_v19 = vsel %vm2859_vm0, %v2825_v11, %v2891_v10  ;;  %3689 = vrot.lane.b32.xlu0 %v16905_v45, %s19998_s7  ;;  %v4576_v28 = vrot.slane %v16899_v3, 6  ;;  %v12101_v11 = vrot.slane %v4574_v60, 9  ;;  %v5340_v10 = vmul.f32 0.25, %v16877_v58 }
 0x361   : > { %v3712_v13 = vpop.permute.xlu1 %3711  ;;  %v2737_v52 = vpop.f32.mrf.mxu2  ;;  %v2955_v20 = vpack.c.bf16 %v2923_v19, %v2923_v19  ;;  %v5341_v3 = vmul.f32 0.25, %v16879_v38  ;;  %v4294_v38 = vadd.f32 %v16814_v48, %v4293_v17 }
 0x362   : > { %v3896_v9 = vsel %vm2163_vm10, %v3866_v7, %v3712_v13  ;;  %v2738_v26 = vadd.f32 %v2737_v52, %v2649_v29  ;;  %v5279_v13 = vadd.f32 %v5159_v8, %v5151_v61  ;;  %v12103_v47 = vrot.slane %v4576_v28, 9  ;;  %v16939_v7 = vpop.f32.mrf.mxu0 }
 0x363   : > { %v3939_v30 = vsel %vm20021_vm5, %v3896_v9, %v3744_v35  ;;  %v16931_v31 = vunpack.c.l.b16 %v2955_v20  ;;  %v12110_v29 = vrot.slane %v4581_v21, 9  ;;  %v12111_v9 = vrot.slane %v4582_v62, 9  ;;  %v16955_v44 = vpop.f32.mrf.mxu1 }
 0x364   : > { %v2827_v6 = vadd.f32 %v16801_v54, %v2738_v26  ;;  %v16921_v54 = vld [vmem:[%s20388_s8] ss:$0 sm:$0xff]  ;;  %v4292_v52 = vadd.f32 %v16814_v48, %v4291_v34  ;;  %v5343_v27 = vmul.f32 0.25, %v5279_v13  ;;  %v5152_v19 = vadd.f32 %v12101_v11, %v4574_v60  ;;  %s11759_s8 = scalar_lea.hbm %s19831_s27, %s13832_s9 }
 0x365   : > { %3749 = vrot.lane.b32.xlu2 %v16863_v25, %s20387_s30  ;;  %v5161_v58 = vadd.f32 %v12110_v29, %v4581_v21 }
 0x366   : > { %vm2860_vm1 = vcmp.gt.f32.partialorder %v2827_v6, 0.0  ;;  %v2892_v23 = vmul.f32 0.2, %v2827_v6  ;;  %v4381_v20 = vadd.f32 %v16901_v22, %v4292_v52 }
 0x368   : > { %v2924_v55 = vsel %vm2860_vm1, %v2827_v6, %v2892_v23 }
 0x369   : > { %4335 = vmatmul.bf16.gmra.mxu3 %v3939_v30  ;;  %v3808_v43 = vpop.permute.xlu1 %3807  ;;  %v2956_v5 = vpack.c.bf16 %v2924_v55, %v2924_v55  ;;  %v5160_v30 = vadd.f32 %v12109_v49, %v4580_v24  ;;  %v5153_v24 = vadd.f32 %v12102_v56, %v4575_v4 }
 0x36a   : > { %v4024_v16 = vsel %vm2163_vm10, %v3988_v36, %v3808_v43  ;;  %v5154_v43 = vadd.f32 %v12103_v47, %v4576_v28  ;;  %v5162_v36 = vadd.f32 %v12111_v9, %v4582_v62  ;;  %v4296_v8 = vpop.f32.mrf.mxu3 }
 0x36b   : > { %v16933_v1 = vunpack.c.l.b16 %v2956_v5  ;;  %v4066_v40 = vsel %vm20021_vm5, %v4024_v16, %v3838_v2  ;;  %v5280_v39 = vadd.f32 %v5160_v30, %v5152_v19  ;;  %v4297_v5 = vadd.f32 %v16814_v48, %v4296_v8  ;;  %v4474_v9 = vpop.f32.mrf.mxu1 }
 0x36c   : > { %v5282_v21 = vadd.f32 %v5162_v36, %v5154_v43 }
 0x36d   : > { %v16943_v37 = vpack.c.b16 %v16933_v1, %v16931_v31  ;;  %v4385_v22 = vpop.f32.mrf.mxu0  ;;  %v5344_v56 = vmul.f32 0.25, %v5280_v39 }
 0x36e   : > { %v4386_v52 = vadd.f32 %v4385_v22, %v4297_v5 }
 0x370   : > { %v6623_v57 = vpop.f32.mrf.mxu2  ;;  %4424 = vmatmul.bf16.gmra.mxu0 %v4066_v40  ;;  %v5281_v40 = vadd.f32 %v5161_v58, %v5153_v24  ;;  %v16979_v58 = vadd.f32 %v4474_v9, %v4386_v52 }
 0x371   : > { %v16936_v50 = vadd.f32 %v16921_v54, %v6623_v57 }
 0x372   : > { %v4298_v39 = vpop.f32.mrf.mxu3 }
 0x373   : > { %v6651_v18 = vrot.slane %v16936_v50, 2  ;;  %v6652_v35 = vrot.slane %v16936_v50, 4  ;;  %v6675_v59 = vrot.slane %v16936_v50, 1  ;;  %v6771_v34 = vadd.f32 %v16936_v50, %v5339_v15 }
 0x374   : > { %v6653_v55 = vrot.slane %v16936_v50, 6 }
 0x375   : > { %v6676_v26 = vrot.slane %v6651_v18, 1  ;;  %v6772_v6 = vadd.f32 %v6675_v59, %v5340_v10  ;;  %v6773_v32 = vadd.f32 %v6651_v18, %v5341_v3  ;;  %v6775_v23 = vadd.f32 %v6652_v35, %v5343_v27 }
 0x376   : > { %vm6835_vm0 = vcmp.gt.f32.partialorder %v6771_v34, 0.0  ;;  %v6899_v60 = vmul.f32 0.2, %v6771_v34  ;;  %v6677_v62 = vrot.slane %v6652_v35, 1  ;;  %v6678_v47 = vrot.slane %v6653_v55, 1 }
 0x377   : > { %v6774_v63 = vadd.f32 %v6676_v26, %v5342_v12  ;;  %vm6836_vm1 = vcmp.gt.f32.partialorder %v6772_v6, 0.0  ;;  %vm6837_vm4 = vcmp.gt.f32.partialorder %v6773_v32, 0.0  ;;  %vm6839_vm2 = vcmp.gt.f32.partialorder %v6775_v23, 0.0 }
 0x378   : > { %v6900_v16 = vmul.f32 0.2, %v6772_v6  ;;  %v6901_v57 = vmul.f32 0.2, %v6773_v32  ;;  %v16961_v28 = vadd.f32 %v6772_v6, %v6771_v34  ;;  %v6903_v61 = vmul.f32 0.2, %v6775_v23 }
 0x379   : > { %vm6838_vm3 = vcmp.gt.f32.partialorder %v6774_v63, 0.0  ;;  %v6902_v4 = vmul.f32 0.2, %v6774_v63  ;;  %v16964_v2 = vadd.f32 %v6774_v63, %v6773_v32  ;;  %v6963_v17 = vsel %vm6835_vm0, %v6771_v34, %v6899_v60 }
 0x37a   : > { %v6964_v50 = vsel %vm6836_vm1, %v6772_v6, %v6900_v16  ;;  %v6965_v11 = vsel %vm6837_vm4, %v6773_v32, %v6901_v57  ;;  %v6967_v13 = vsel %vm6839_vm2, %v6775_v23, %v6903_v61  ;;  %v7027_v18 = vpack.c.bf16 %v6963_v17, %v6963_v17 }
 0x37b   : > { %v6966_v49 = vsel %vm6838_vm3, %v6774_v63, %v6902_v4  ;;  %v16971_v29 = vpack.c.bf16 %v6964_v50, %v6964_v50  ;;  %v7029_v15 = vpack.c.bf16 %v6965_v11, %v6965_v11  ;;  %v7031_v10 = vpack.c.bf16 %v6967_v13, %v6967_v13  ;;  %v4387_v4 = vpop.f32.mrf.mxu0 }
 0x37c   : > { %v7030_v35 = vpack.c.bf16 %v6966_v49, %v6966_v49  ;;  %v5346_v59 = vmul.f32 0.25, %v5282_v21  ;;  %v16973_v26 = vadd.f32 %v6677_v62, %v5344_v56  ;;  %v7155_v30 = vunpack.c.l.b16 %v7027_v18 }
 0x37d   : > { %20390 = vst [vmem:[#allocation28_spill] sm:$0xff] %v16971_v29  ;;  %v7156_v3 = vunpack.c.l.b16 %v16971_v29  ;;  %v4383_v12 = vadd.f32 %v16939_v7, %v4294_v38  ;;  %v7157_v27 = vunpack.c.l.b16 %v7029_v15  ;;  %v7159_v34 = vunpack.c.l.b16 %v7031_v10 }
 0x37e   : > { %20391 = vst [vmem:[#allocation35_spill] sm:$0xff] %v16973_v26  ;;  %v7158_v19 = vunpack.c.l.b16 %v7030_v35  ;;  %v5345_v6 = vmul.f32 0.25, %v5281_v40  ;;  %v16977_v43 = vadd.f32 %v6678_v47, %v5346_v59  ;;  %v12364_v32 = vunpack.i.l.s16 %v7155_v30  ;;  %v4476_v40 = vpop.f32.mrf.mxu1 }
 0x37f   : > { %v12365_v63 = vunpack.i.l.s16 %v7156_v3  ;;  %v12366_v36 = vunpack.i.l.s16 %v7157_v27  ;;  %v12368_v8 = vunpack.i.l.s16 %v7159_v34  ;;  %v16984_v7 = vadd.f32 %v16973_v26, %v6775_v23 }
 0x380   : > { %20392 = vst [vmem:[#allocation19_spill] sm:$0xff] %v16977_v43  ;;  %v12367_v24 = vunpack.i.l.s16 %v7158_v19  ;;  %v16981_v60 = vadd.f32 %v6653_v55, %v5345_v6  ;;  %v7347_v16 = vrot.slane %v12364_v32, 7  ;;  %v4470_v38 = vadd.f32 %v16913_v0, %v4381_v20  ;;  %v6625_v6 = vpop.f32.mrf.mxu2 }
 0x381   : > { %v7348_v57 = vrot.slane %v12365_v63, 6  ;;  %v7350_v5 = vrot.slane %v12366_v36, 5  ;;  %v4299_v62 = vadd.f32 %v16814_v48, %v4298_v39  ;;  %v4472_v55 = vadd.f32 %v16955_v44, %v4383_v12 }
 0x382   : > { %20393 = vst [vmem:[#allocation32_spill] sm:$0xff] %v16981_v60  ;;  %v7352_v22 = vrot.slane %v12367_v24, 4  ;;  %v16990_v21 = vadd.f32 %v16977_v43, %v16981_v60  ;;  %v7354_v50 = vrot.slane %v12368_v8, 3  ;;  %v4589_v23 = vrot.slane %v16979_v58, 2 }
 0x383   : > { %v7349_v61 = vsel %vm6471_vm12, %v7348_v57, %v7347_v16  ;;  %v4388_v20 = vadd.f32 %v4387_v4, %v4299_v62  ;;  %v4583_v11 = vrot.slane %v4470_v38, 2  ;;  %v4584_v49 = vrot.slane %v4470_v38, 4 }
 0x384   : > { %v7351_v17 = vsel %vm6474_vm13, %v7350_v5, %v7349_v61  ;;  %v4590_v13 = vrot.slane %v16979_v58, 4  ;;  %v4585_v47 = vrot.slane %v4470_v38, 6  ;;  %v4591_v18 = vrot.slane %v16979_v58, 6 }
 0x385   : > { %v7353_v0 = vsel %vm6477_vm14, %v7352_v22, %v7351_v17  ;;  %v4477_v44 = vadd.f32 %v4476_v40, %v4388_v20  ;;  %v12112_v9 = vrot.slane %v4470_v38, 9  ;;  %v4586_v52 = vrot.slane %v4472_v55, 2 }
 0x386   : > { %v16999_v56 = vsel %vm6480_vm15, %v7354_v50, %v7353_v0  ;;  %v4587_v15 = vrot.slane %v4472_v55, 4  ;;  %v4588_v35 = vrot.slane %v4472_v55, 6  ;;  %v12121_v10 = vrot.slane %v4589_v23, 9 }
 0x387   : > { %20394 = vst [vmem:[#allocation38_spill] sm:$0xff] %v16999_v56  ;;  %v4592_v59 = vrot.slane %v4477_v44, 2  ;;  %v4593_v30 = vrot.slane %v4477_v44, 4  ;;  %v4594_v3 = vrot.slane %v4477_v44, 6  ;;  %v12113_v12 = vrot.slane %v4583_v11, 9 }
 0x388   : > { %v12114_v27 = vrot.slane %v4584_v49, 9  ;;  %v12120_v19 = vrot.slane %v16979_v58, 9  ;;  %v12122_v34 = vrot.slane %v4590_v13, 9  ;;  %v12123_v32 = vrot.slane %v4591_v18, 9 }
 0x389   : > { %v12125_v63 = vrot.slane %v4592_v59, 9  ;;  %v12126_v36 = vrot.slane %v4593_v30, 9  ;;  %v12127_v24 = vrot.slane %v4594_v3, 9  ;;  %v12117_v8 = vrot.slane %v4586_v52, 9 }
 0x38a   : > { %v12118_v39 = vrot.slane %v4587_v15, 9  ;;  %v12119_v16 = vrot.slane %v4588_v35, 9  ;;  %v12124_v57 = vrot.slane %v4477_v44, 9  ;;  %v12115_v5 = vrot.slane %v4585_v47, 9 }
 0x38b   : > { %v5163_v22 = vadd.f32 %v12112_v9, %v4470_v38  ;;  %v5172_v4 = vadd.f32 %v12121_v10, %v4589_v23  ;;  %v6626_v61 = vadd.f32 %v16921_v54, %v6625_v6  ;;  %v12116_v62 = vrot.slane %v4472_v55, 9 }
 0x38c   : > { %v5176_v17 = vadd.f32 %v12125_v63, %v4592_v59  ;;  %v5177_v50 = vadd.f32 %v12126_v36, %v4593_v30  ;;  %v5178_v0 = vadd.f32 %v12127_v24, %v4594_v3  ;;  %v5164_v20 = vadd.f32 %v12113_v12, %v4583_v11  ;;  %v3746_v63 = vpop.permute.xlu2 %3745 }
 0x38d   : > { %v5171_v40 = vadd.f32 %v12120_v19, %v16979_v58  ;;  %v5173_v25 = vadd.f32 %v12122_v34, %v4590_v13  ;;  %v5174_v45 = vadd.f32 %v12123_v32, %v4591_v18  ;;  %v5168_v46 = vadd.f32 %v12117_v8, %v4586_v52  ;;  %v4390_v32 = vpop.f32.mrf.mxu0 }
 0x38e   : > { %v5169_v51 = vadd.f32 %v12118_v39, %v4587_v15  ;;  %v5170_v29 = vadd.f32 %v12119_v16, %v4588_v35  ;;  %v5175_v56 = vadd.f32 %v12124_v57, %v4477_v44  ;;  %v5165_v43 = vadd.f32 %v12114_v27, %v4584_v49  ;;  %v4301_v49 = vpop.f32.mrf.mxu3 }
 0x38f   : > { %v5166_v60 = vadd.f32 %v12115_v5, %v4585_v47  ;;  %v5284_v26 = vadd.f32 %v5172_v4, %v5164_v20  ;;  %v6654_v38 = vrot.slane %v6626_v61, 2  ;;  %v5167_v23 = vadd.f32 %v12116_v62, %v4472_v55  ;;  %v3684_v47 = vpop.permute.xlu0 %3683 }
 0x390   : > { %v5288_v9 = vadd.f32 %v5176_v17, %v5168_v46  ;;  %v5290_v10 = vadd.f32 %v5178_v0, %v5170_v29  ;;  %v5289_v6 = vadd.f32 %v5177_v50, %v5169_v51  ;;  %v5283_v30 = vadd.f32 %v5171_v40, %v5163_v22  ;;  %v3714_v46 = vpop.permute.xlu1 %3713 }
 0x391   : > { %v5286_v59 = vadd.f32 %v5174_v45, %v5166_v60  ;;  %v5285_v3 = vadd.f32 %v5173_v25, %v5165_v43  ;;  %v5287_v11 = vadd.f32 %v5175_v56, %v5167_v23  ;;  %v6655_v12 = vrot.slane %v6626_v61, 4 }
 0x392   : > { %v6656_v58 = vrot.slane %v6626_v61, 6  ;;  %v5348_v13 = vmul.f32 0.25, %v5284_v26  ;;  %v6679_v18 = vrot.slane %v6626_v61, 1  ;;  %v6680_v52 = vrot.slane %v6654_v38, 1 }
 0x393   : > { %v5352_v15 = vmul.f32 0.25, %v5288_v9  ;;  %v5353_v35 = vmul.f32 0.25, %v5289_v6  ;;  %v5354_v44 = vmul.f32 0.25, %v5290_v10  ;;  %v5350_v27 = vmul.f32 0.25, %v5286_v59 }
 0x394   : > { %v5347_v19 = vmul.f32 0.25, %v5283_v30  ;;  %v5349_v55 = vmul.f32 0.25, %v5285_v3  ;;  %v5351_v29 = vmul.f32 0.25, %v5287_v11  ;;  %v6681_v51 = vrot.slane %v6655_v12, 1  ;;  %v3840_v3 = vpop.permute.xlu2 %3839 }
 0x395   : > { %v6682_v45 = vrot.slane %v6656_v58, 1  ;;  %v17005_v60 = vadd.f32 %v6679_v18, %v5348_v13  ;;  %v17007_v25 = vadd.f32 %v6680_v52, %v5350_v27  ;;  %v3276_v26 = vpack.c.b16 %v16933_v1, %v16933_v1  ;;  %v4392_v30 = vpop.f32.mrf.mxu0 }
 0x396   : > { %v17011_v43 = vadd.f32 %v6681_v51, %v5352_v15  ;;  %v17013_v56 = vadd.f32 %v6656_v58, %v5353_v35  ;;  %v17017_v36 = vadd.f32 %v6626_v61, %v5347_v19  ;;  %v17019_v24 = vadd.f32 %v6654_v38, %v5349_v55  ;;  %v4479_v61 = vpop.f32.mrf.mxu1  ;;  %v4303_v20 = vpop.f32.mrf.mxu3 }
 0x397   : > { %v17015_v34 = vadd.f32 %v6682_v45, %v5354_v44  ;;  %v3868_v8 = vsel %vm20013_vm11, %v16421_v33, %v3684_v47  ;;  %v17023_v39 = vadd.f32 %v6655_v12, %v5351_v29  ;;  %v3338_v5 = vshll.u32 %v3276_v26, 16  ;;  %v3778_v40 = vpop.permute.xlu0 %3777 }
 0x398   : > { %v3898_v16 = vsel %vm2163_vm10, %v3868_v8, %v3714_v46  ;;  %v9414_v1 = vadd.f32 %v17005_v60, %v17017_v36  ;;  %v9415_v57 = vadd.f32 %v17007_v25, %v17019_v24  ;;  %v3004_v9 = vpack.c.b16 %v16931_v31, %v16931_v31 }
 0x399   : > { %v9416_v22 = vadd.f32 %v17011_v43, %v17023_v39  ;;  %v9417_v4 = vadd.f32 %v17015_v34, %v17013_v56  ;;  %v3942_v0 = vsel %vm20021_vm5, %v3898_v16, %v3746_v63  ;;  %v3340_v10 = vrot.slane %v3338_v5, 3 }
 0x39a   : > { %v9442_v33 = vadd.f32 %v9414_v1, %v16961_v28  ;;  %v9443_v62 = vadd.f32 %v9415_v57, %v16964_v2  ;;  %4340 = vmatmul.bf16.gmra.mxu3 %v3942_v0  ;;  %v3223_v28 = vshrl.u32 %v16943_v37, 16  ;;  %v3810_v2 = vpop.permute.xlu1 %3809  ;;  %v4302_v12 = vadd.f32 %v16814_v48, %v4301_v49 }
 0x39b   : > { %v17037_v17 = vadd.f32 %v9416_v22, %v16984_v7  ;;  %v17040_v50 = vadd.f32 %v9417_v4, %v16990_v21  ;;  %v3226_v21 = vshll.u32 %v16943_v37, 16  ;;  %v3051_v58 = vshrl.u32 %v3004_v9, 16 }
 0x39c   : > { %v9458_v38 = vmul.f32 0.25, %v9442_v33  ;;  %v9459_v23 = vmul.f32 0.25, %v9443_v62  ;;  %v3225_v59 = vrot.slane %v3223_v28, 7  ;;  %v4391_v44 = vadd.f32 %v4390_v32, %v4302_v12  ;;  %v3748_v16 = vpop.permute.xlu2 %3747 }
 0x39d   : > { %v3991_v49 = vsel %vm20013_vm11, %v16651_v53, %v3778_v40  ;;  %v4395_v8 = vpop.f32.mrf.mxu0  ;;  %v4304_v62 = vadd.f32 %v16814_v48, %v4303_v20  ;;  %vm6843_vm4 = vcmp.gt.f32.partialorder %v17017_v36, 0.0  ;;  %vm6845_vm2 = vcmp.gt.f32.partialorder %v17019_v24, 0.0 }
 0x39e   : > { %v9474_v6 = vpack.c.bf16 %v9458_v38, %v9458_v38  ;;  %v9475_v7 = vpack.c.bf16 %v9459_v23, %v9459_v23  ;;  %v3228_v13 = vor.u32 %v3226_v21, %v3225_v59  ;;  %v3388_v18 = vsel %vm13934_vm8, %v3225_v59, %v3340_v10  ;;  %v17054_v35 = vpop.f32.mrf.mxu1  ;;  %v4306_v19 = vpop.f32.mrf.mxu3 }
 0x39f   : > { %v3659_v27 = vrot.slane %v3388_v18, 1  ;;  %v3686_v55 = vpop.permute.xlu0 %3685  ;;  %v4026_v46 = vsel %vm2163_vm10, %v3991_v49, %v3810_v2  ;;  %v17066_v45 = vadd.f32 %v4479_v61, %v4391_v44  ;;  %v3652_v63 = vshll.u32 %v3388_v18, 16  ;;  %v6628_v23 = vpop.f32.mrf.mxu2 }
 0x3a0   : > { %v9519_v11 = vunpack.c.l.b16 %v9475_v7  ;;  %v9518_v31 = vunpack.c.l.b16 %v9474_v6  ;;  %v17052_v15 = vsel %vm13934_vm8, %v3051_v58, %v3228_v13  ;;  %v3870_v26 = vsel %vm20013_vm11, %v16567_v42, %v3686_v55 }
 0x3a1   : > { %3813 = vrot.lane.b32.xlu1 %v17052_v15, %s20260_s2  ;;  %v3658_v47 = vrot.slane %v17052_v15, 1  ;;  %v4069_v53 = vsel %vm20021_vm5, %v4026_v46, %v3840_v3  ;;  %v3647_v32 = vshll.u32 %v17052_v15, 16  ;;  %v4307_v57 = vadd.f32 %v16814_v48, %v4306_v19  ;;  %v20396_v19 = vld [vmem:[#allocation35_spill] sm:$0xff] }
 0x3a2   : > { %v9534_v52 = vrot.slane %v9519_v11, 7  ;;  %v3716_v51 = vpop.permute.xlu1 %3715  ;;  %4429 = vmatmul.bf16.gmra.mxu0 %v4069_v53  ;;  %v3645_v5 = vshrl.u32 %v17052_v15, 16  ;;  %v4596_v61 = vrot.slane %v17066_v45, 4  ;;  %v3654_v33 = vrot.slane %v3652_v63, 1 }
 0x3a3   : > { %v3660_v29 = vsel %vm1885_vm6, %v3658_v47, %v3659_v27  ;;  %v3900_v1 = vsel %vm2163_vm10, %v3870_v26, %v3716_v51  ;;  %v3649_v22 = vrot.slane %v3647_v32, 1  ;;  %v4396_v0 = vadd.f32 %v4395_v8, %v4307_v57  ;;  %v20397_v51 = vld [vmem:[#allocation32_spill] sm:$0xff] }
 0x3a4   : > { %v17057_v37 = vsel %vm20022_vm7, %v9534_v52, %v9518_v31  ;;  %12094 = vmatmul.msk.bf16.gmra.mxu1 %vm20013_vm11, %v3660_v29  ;;  %3783 = vrot.lane.b32.xlu0 %v3660_v29, %s19998_s7  ;;  %v3945_v4 = vsel %vm20021_vm5, %v3900_v1, %v3748_v16  ;;  %v4597_v38 = vrot.slane %v17066_v45, 6  ;;  %vm6844_vm6 = vcmp.gt.f32.partialorder %v17005_v60, 0.0 }
 0x3a5   : > { %20395 = vst [vmem:[#allocation41_spill] sm:$0xff] %v17057_v37  ;;  %v3650_v42 = vor.u32 %v3649_v22, %v3645_v5  ;;  %v6907_v28 = vmul.f32 0.2, %v17017_v36  ;;  %v6908_v2 = vmul.f32 0.2, %v17005_v60  ;;  %v12130_v7 = vrot.slane %v4596_v61, 9  ;;  %v4397_v18 = vpop.f32.mrf.mxu0 }
 0x3a6   : > { %v4484_v40 = vpop.f32.mrf.mxu1  ;;  %v4308_v10 = vpop.f32.mrf.mxu3  ;;  %v6909_v6 = vmul.f32 0.2, %v17019_v24  ;;  %v17097_v59 = vadd.f32 %v16921_v54, %v6628_v23  ;;  %v4393_v21 = vadd.f32 %v4392_v30, %v4304_v62  ;;  %v12131_v3 = vrot.slane %v4597_v38, 9 }
 0x3a7   : > { %v17086_v9 = vsel %vm1674_vm9, %v3650_v42, %v3654_v33  ;;  %v17093_v20 = vadd.f32 %v4484_v40, %v4396_v0  ;;  %v4309_v58 = vadd.f32 %v16814_v48, %v4308_v10  ;;  %vm6846_vm9 = vcmp.gt.f32.partialorder %v17007_v25, 0.0 }
 0x3a8   : > { %3843 = vrot.lane.b32.xlu2 %v17086_v9, %s20387_s30  ;;  %v6910_v13 = vmul.f32 0.2, %v17007_v25  ;;  %v6971_v31 = vsel %vm6843_vm4, %v17017_v36, %v6907_v28  ;;  %v6972_v30 = vsel %vm6844_vm6, %v17005_v60, %v6908_v2  ;;  %v6973_v49 = vsel %vm6845_vm2, %v17019_v24, %v6909_v6  ;;  %v20398_v60 = vld [vmem:[#allocation19_spill] sm:$0xff] }
 0x3a9   : > { %3719 = vrot.lane.b32.xlu1 %v16875_v14, %s20260_s2  ;;  %v4602_v11 = vrot.slane %v17093_v20, 4  ;;  %v4603_v12 = vrot.slane %v17093_v20, 6  ;;  %v5181_v48 = vadd.f32 %v12130_v7, %v4596_v61  ;;  %v6657_v47 = vrot.slane %v17097_v59, 2 }
 0x3aa   : > { %4345 = vmatmul.bf16.gmra.mxu3 %v3945_v4  ;;  %v17115_v27 = vadd.f32 %v17054_v35, %v4393_v21  ;;  %vm6840_vm3 = vcmp.gt.f32.partialorder %v20396_v19, 0.0  ;;  %v5182_v55 = vadd.f32 %v12131_v3, %v4597_v38  ;;  %v4398_v29 = vadd.f32 %v4397_v18, %v4309_v58 }
 0x3ab   : > { %v12138_v52 = vrot.slane %v4602_v11, 9  ;;  %v12139_v44 = vrot.slane %v4603_v12, 9  ;;  %vm6841_vm0 = vcmp.gt.f32.partialorder %v20397_v51, 0.0  ;;  %vm6842_vm1 = vcmp.gt.f32.partialorder %v20398_v60, 0.0 }
 0x3ac   : > { %v6911_v26 = vmul.f32 0.2, %v17023_v39  ;;  %v17121_v53 = vpack.c.bf16 %v6972_v30, %v6972_v30  ;;  %vm6847_vm4 = vcmp.gt.f32.partialorder %v17023_v39, 0.0  ;;  %v6974_v35 = vsel %vm6846_vm9, %v17007_v25, %v6910_v13 }
 0x3ad   : > { %v5189_v36 = vadd.f32 %v12138_v52, %v4602_v11  ;;  %v5190_v46 = vadd.f32 %v12139_v44, %v4603_v12  ;;  %v7035_v8 = vpack.c.bf16 %v6971_v31, %v6971_v31  ;;  %v7037_v16 = vpack.c.bf16 %v6973_v49, %v6973_v49  ;;  %v4400_v31 = vpop.f32.mrf.mxu0 }
 0x3ae   : > { %v4486_v24 = vpop.f32.mrf.mxu1  ;;  %v4598_v1 = vrot.slane %v17115_v27, 2  ;;  %vm6848_vm6 = vcmp.gt.f32.partialorder %v17011_v43, 0.0  ;;  %v6684_v5 = vrot.slane %v6657_v47, 1  ;;  %v6912_v25 = vmul.f32 0.2, %v17011_v43  ;;  %v4311_v28 = vpop.f32.mrf.mxu3 }
 0x3af   : > { %v5293_v32 = vadd.f32 %v5189_v36, %v5181_v48  ;;  %v5294_v63 = vadd.f32 %v5190_v46, %v5182_v55  ;;  %v17132_v57 = vadd.f32 %v4486_v24, %v4398_v29  ;;  %v7164_v61 = vunpack.c.l.b16 %v17121_v53 }
 0x3b0   : > { %3751 = vrot.lane.b32.xlu2 %v17052_v15, %s20387_s30  ;;  %v6975_v15 = vsel %vm6847_vm4, %v17023_v39, %v6911_v26  ;;  %v6904_v40 = vmul.f32 0.2, %v20396_v19  ;;  %v6905_v38 = vmul.f32 0.2, %v20397_v51  ;;  %v12133_v23 = vrot.slane %v4598_v1, 9 }
 0x3b1   : > { %v5357_v22 = vmul.f32 0.25, %v5293_v32  ;;  %v5358_v4 = vmul.f32 0.25, %v5294_v63  ;;  %v4604_v42 = vrot.slane %v17132_v57, 2  ;;  %v12140_v0 = vrot.slane %v17132_v57, 9 }
 0x3b2   : > { %v6906_v39 = vmul.f32 0.2, %v20398_v60  ;;  %vm6849_vm2 = vcmp.gt.f32.partialorder %v17013_v56, 0.0  ;;  %v7038_v2 = vpack.c.bf16 %v6974_v35, %v6974_v35  ;;  %v7163_v6 = vunpack.c.l.b16 %v7035_v8 }
 0x3b3   : > { %v17140_v33 = vadd.f32 %v6657_v47, %v5357_v22  ;;  %v17142_v62 = vadd.f32 %v6684_v5, %v5358_v4  ;;  %v12141_v10 = vrot.slane %v4604_v42, 9  ;;  %v6913_v7 = vmul.f32 0.2, %v17013_v56 }
 0x3b4   : > { %12095 = vmatmul.msk.bf16.gmra.mxu1 %vm20013_vm11, %v16875_v14  ;;  %v12132_v14 = vrot.slane %v17115_v27, 9  ;;  %v6976_v21 = vsel %vm6848_vm6, %v17011_v43, %v6912_v25  ;;  %v7039_v3 = vpack.c.bf16 %v6975_v15, %v6975_v15  ;;  %v7165_v12 = vunpack.c.l.b16 %v7037_v16 }
 0x3b5   : > { %v17155_v11 = vadd.f32 %v17142_v62, %v17140_v33  ;;  %v12373_v58 = vunpack.i.l.s16 %v7164_v61  ;;  %v5191_v18 = vadd.f32 %v12140_v0, %v17132_v57  ;;  %v6968_v30 = vsel %vm6840_vm3, %v20396_v19, %v6904_v40 }
 0x3b6   : > { %v5183_v13 = vadd.f32 %v12132_v14, %v17115_v27  ;;  %v6658_v52 = vrot.slane %v17097_v59, 4  ;;  %v5184_v44 = vadd.f32 %v12133_v23, %v4598_v1  ;;  %v5192_v43 = vadd.f32 %v12141_v10, %v4604_v42  ;;  %v4489_v1 = vpop.f32.mrf.mxu1  ;;  %v17179_v61 = vpop.f32.mrf.mxu3 }
 0x3b7   : > { %20399 = vst [vmem:[#allocation54_spill] sm:$0xff] %v17155_v11  ;;  %v6969_v49 = vsel %vm6841_vm0, %v20397_v51, %v6905_v38  ;;  %v6970_v48 = vsel %vm6842_vm1, %v20398_v60, %v6906_v39  ;;  %v12372_v47 = vunpack.i.l.s16 %v7163_v6  ;;  %v6977_v36 = vsel %vm6849_vm2, %v17013_v56, %v6913_v7  ;;  %v6630_v23 = vpop.f32.mrf.mxu2 }
 0x3b8   : > { %v5295_v55 = vadd.f32 %v5191_v18, %v5183_v13  ;;  %v7040_v46 = vpack.c.bf16 %v6976_v21, %v6976_v21  ;;  %v7166_v19 = vunpack.c.l.b16 %v7038_v2  ;;  %v5296_v29 = vadd.f32 %v5192_v43, %v5184_v44  ;;  %v17191_v2 = vld [vmem:[%s20379_s5] ss:$0 sm:$0xff] }
 0x3b9   : > { %v7167_v26 = vunpack.c.l.b16 %v7039_v3  ;;  %v12374_v24 = vunpack.i.l.s16 %v7165_v12  ;;  %v7361_v35 = vrot.slane %v12373_v58, 6  ;;  %v7032_v63 = vpack.c.bf16 %v6968_v30, %v6968_v30  ;;  %v17194_v58 = vpop.f32.mrf.mxu0 }
 0x3ba   : > { %v5359_v32 = vmul.f32 0.25, %v5295_v55  ;;  %v7033_v8 = vpack.c.bf16 %v6969_v49, %v6969_v49  ;;  %v6685_v51 = vrot.slane %v6658_v52, 1  ;;  %v5360_v16 = vmul.f32 0.25, %v5296_v29 }
 0x3bb   : > { %vm6850_vm9 = vcmp.gt.f32.partialorder %v17015_v34, 0.0  ;;  %v6914_v60 = vmul.f32 0.2, %v17015_v34  ;;  %v7041_v5 = vpack.c.bf16 %v6977_v36, %v6977_v36  ;;  %v7360_v22 = vrot.slane %v12372_v47, 7 }
 0x3bc   : > { %v12375_v4 = vunpack.i.l.s16 %v7166_v19  ;;  %v4601_v56 = vrot.slane %v17093_v20, 2  ;;  %v17175_v25 = vadd.f32 %v6658_v52, %v5359_v32  ;;  %v17177_v15 = vadd.f32 %v6685_v51, %v5360_v16 }
 0x3bd   : > { %v7168_v42 = vunpack.c.l.b16 %v7040_v46  ;;  %v12376_v14 = vunpack.i.l.s16 %v7167_v26  ;;  %v7362_v0 = vsel %vm6471_vm12, %v7361_v35, %v7360_v22  ;;  %v7363_v40 = vrot.slane %v12374_v24, 5 }
 0x3be   : > { %v4595_v38 = vrot.slane %v17066_v45, 2  ;;  %v12136_v10 = vrot.slane %v17093_v20, 9  ;;  %v17186_v39 = vadd.f32 %v17177_v15, %v17175_v25  ;;  %v4312_v6 = vadd.f32 %v17191_v2, %v4311_v28  ;;  %v17207_v35 = vpop.f32.mrf.mxu1 }
 0x3bf   : > { %v7034_v7 = vpack.c.bf16 %v6970_v48, %v6970_v48  ;;  %v7160_v21 = vunpack.c.l.b16 %v7032_v63  ;;  %v7161_v3 = vunpack.c.l.b16 %v7033_v8  ;;  %v7169_v12 = vunpack.c.l.b16 %v7041_v5 }
 0x3c0   : > { %20400 = vst [vmem:[#allocation43_spill] sm:$0xff] %v17186_v39  ;;  %v6978_v13 = vsel %vm6850_vm9, %v17015_v34, %v6914_v60  ;;  %v7365_v18 = vrot.slane %v12375_v4, 4  ;;  %v12128_v30 = vrot.slane %v17066_v45, 9  ;;  %v12137_v52 = vrot.slane %v4601_v56, 9  ;;  %v4316_v60 = vpop.f32.mrf.mxu3 }
 0x3c1   : > { %v12377_v44 = vunpack.i.l.s16 %v7168_v42  ;;  %v7364_v43 = vsel %vm6474_vm13, %v7363_v40, %v7362_v0  ;;  %v7367_v49 = vrot.slane %v12376_v14, 3  ;;  %v17202_v28 = vadd.f32 %v16921_v54, %v6630_v23  ;;  %v20401_v23 = vld [vmem:[#allocation38_spill] sm:$0xff] }
 0x3c2   : > { %v12129_v48 = vrot.slane %v4595_v38, 9  ;;  %v5187_v47 = vadd.f32 %v12136_v10, %v17093_v20  ;;  %v4401_v55 = vadd.f32 %v4400_v31, %v4312_v6  ;;  %v12369_v36 = vunpack.i.l.s16 %v7160_v21  ;;  %v4405_v6 = vpop.f32.mrf.mxu0 }
 0x3c3   : > { %v12370_v46 = vunpack.i.l.s16 %v7161_v3  ;;  %v12378_v19 = vunpack.i.l.s16 %v7169_v12  ;;  %v7042_v29 = vpack.c.bf16 %v6978_v13, %v6978_v13  ;;  %v7366_v34 = vsel %vm6477_vm14, %v7365_v18, %v7364_v43 }
 0x3c4   : > { %v5179_v26 = vadd.f32 %v12128_v30, %v17066_v45  ;;  %v5188_v24 = vadd.f32 %v12137_v52, %v4601_v56  ;;  %v7162_v32 = vunpack.c.l.b16 %v7034_v7  ;;  %v7368_v63 = vsel %vm6480_vm15, %v7367_v49, %v7366_v34 }
 0x3c5   : > { %v7369_v54 = vrot.slane %v12377_v44, 2  ;;  %v6660_v8 = vrot.slane %v17202_v28, 2  ;;  %v5180_v51 = vadd.f32 %v12129_v48, %v4595_v38  ;;  %v19975_v20 = vrot.slane %v17115_v27, 4 }
 0x3c6   : > { %v5291_v31 = vadd.f32 %v5187_v47, %v5179_v26  ;;  %v17212_v16 = vadd.f32 %v4489_v1, %v4401_v55  ;;  %v7356_v5 = vrot.slane %v12369_v36, 2  ;;  %v7358_v22 = vrot.slane %v12370_v46, 1 }
 0x3c7   : > { %v7371_v4 = vrot.slane %v12378_v19, 1  ;;  %v7225_v45 = vpack.c.b16 %v7161_v3, %v7161_v3  ;;  %v7170_v56 = vunpack.c.l.b16 %v7042_v29  ;;  %v6683_v42 = vrot.slane %v17097_v59, 1 }
 0x3c8   : > { %v6687_v14 = vrot.slane %v17202_v28, 1  ;;  %v5292_v0 = vadd.f32 %v5188_v24, %v5180_v51  ;;  %v17218_v40 = vrot.slane %v6660_v8, 1  ;;  %v7233_v38 = vpack.c.b16 %v7169_v12, %v7169_v12  ;;  %v4494_v24 = vpop.f32.mrf.mxu1 }
 0x3c9   : > { %vm20402_vm3 = vcmask 1046534   ;;  %v17226_v21 = vrot.slane %v19975_v20, 9  ;;  %v17228_v3 = vmul.f32 0.25, %v5291_v31  ;;  %v4607_v13 = vrot.slane %v17212_v16, 2 }
 0x3ca   : > { %v7357_v1 = vsel %vm20402_vm3, %v7356_v5, %v20401_v23  ;;  %vm20403_vm0 = vmmov %vm20402_vm3  ;;  %vm20404_vm1 = vcmask 1047559   ;;  %v7468_v30 = vshll.u32 %v7225_v45, 16  ;;  %v7472_v52 = vshll.u32 %v7233_v38, 16 }
 0x3cb   : > { %v7370_v10 = vsel %vm20403_vm0, %v7369_v54, %v7368_v63  ;;  %v7359_v18 = vsel %vm20404_vm1, %v7358_v22, %v7357_v1  ;;  %vm20405_vm4 = vmmov %vm20404_vm1  ;;  %v5356_v44 = vmul.f32 0.25, %v5292_v0  ;;  %v19976_v43 = vrot.slane %v17132_v57, 4  ;;  %v20406_v63 = vld [vmem:[#allocation28_spill] sm:$0xff] }
 0x3cc   : > { %v7372_v12 = vsel %vm20405_vm4, %v7371_v4, %v7370_v10  ;;  %v4608_v49 = vrot.slane %v17212_v16, 4  ;;  %v4609_v48 = vrot.slane %v17212_v16, 6  ;;  %v4606_v47 = vrot.slane %v17132_v57, 6  ;;  %v4318_v4 = vpop.f32.mrf.mxu3 }
 0x3cd   : > { %v4314_v55 = vadd.f32 %v17191_v2, %v17179_v61  ;;  %v12428_v36 = vpack.c.b16 %v7162_v32, %v7359_v18  ;;  %v12429_v46 = vpack.c.b16 %v7170_v56, %v7372_v12  ;;  %v12144_v19 = vrot.slane %v17212_v16, 9 }
 0x3ce   : > { %v12145_v29 = vrot.slane %v4607_v13, 9  ;;  %v7470_v34 = vrot.slane %v7468_v30, 4  ;;  %v7474_v26 = vrot.slane %v7472_v52, 4  ;;  %vm7515_vm6 = vcmask 1044480   ;;  %v4407_v30 = vpop.f32.mrf.mxu0 }
 0x3cf   : > { %v7507_v54 = vsel %vm13934_vm8, %v20406_v63, %v12428_v36  ;;  %v7508_v51 = vsel %vm13934_vm8, %v17121_v53, %v12429_v46  ;;  %vm7516_vm2 = vsmask.f32 4352  ;;  %v17246_v31 = vadd.f32 %v6683_v42, %v5356_v44 }
 0x3d0   : > { %v17250_v61 = vrot.slane %v19976_v43, 9  ;;  %v12146_v32 = vrot.slane %v4608_v49, 9  ;;  %v12147_v5 = vrot.slane %v4609_v48, 9  ;;  %vm17252_vm9 = vmand %vm7515_vm6, %vm7516_vm2  ;;  %v20407_v22 = vmov 0 }
 0x3d1   : > { %v20408_v22 = vsel %vm17252_vm9, 4294967295, %v20407_v22  ;;  %v4403_v45 = vadd.f32 %v17194_v58, %v4314_v55  ;;  %v7518_v53 = vsel %vm17252_vm9, %v7507_v54, %v7470_v34  ;;  %v7519_v56 = vsel %vm17252_vm9, %v7508_v51, %v7474_v26 }
 0x3d2   : > { %20409 = vst [vmem:[#allocation18_spill] sm:$0xff] %v20408_v22  ;;  %v4317_v42 = vadd.f32 %v17191_v2, %v4316_v60  ;;  %v17262_v0 = vunpack.c.l.b16 %v7519_v56  ;;  %v7534_v38 = vunpack.c.h.b16 %v7519_v56  ;;  %v17264_v23 = vunpack.c.l.b16 %v7518_v53 }
 0x3d3   : > { %v7536_v1 = vunpack.c.h.b16 %v7518_v53  ;;  %v5195_v10 = vadd.f32 %v12144_v19, %v17212_v16  ;;  %v5196_v18 = vadd.f32 %v12145_v29, %v4607_v13  ;;  %v4319_v58 = vadd.f32 %v17191_v2, %v4318_v4 }
 0x3d4   : > { %20410 = vst [vmem:[#allocation23_spill] sm:$0xff] %v17262_v0  ;;  %v4406_v12 = vadd.f32 %v4405_v6, %v4317_v42  ;;  %v17270_v52 = vpack.c.b16 %v17262_v0, %v17262_v0  ;;  %v17272_v44 = vpack.c.b16 %v7534_v38, %v7534_v38  ;;  %v17276_v60 = vpack.c.b16 %v17264_v23, %v17264_v23 }
 0x3d5   : > { %20411 = vst [vmem:[#allocation37_spill] sm:$0xff] %v17264_v23  ;;  %v17278_v55 = vpack.c.b16 %v7536_v1, %v7536_v1  ;;  %v5197_v36 = vadd.f32 %v12146_v32, %v4608_v49  ;;  %v5198_v46 = vadd.f32 %v12147_v5, %v4609_v48  ;;  %v17281_v16 = vadd.f32 %v17207_v35, %v4403_v45  ;;  %v4496_v32 = vpop.f32.mrf.mxu1 }
 0x3d6   : > { %20412 = vst [vmem:[#allocation44_spill] sm:$0xff] %v17270_v52  ;;  %v4495_v6 = vadd.f32 %v4494_v24, %v4406_v12  ;;  %v7565_v13 = vshrl.u32 %v17270_v52, 16  ;;  %v7568_v19 = vshll.u32 %v17270_v52, 16  ;;  %v7579_v29 = vshrl.u32 %v17276_v60, 16 }
 0x3d7   : > { %20413 = vst [vmem:[#allocation22_spill] sm:$0xff] %v17276_v60  ;;  %v4408_v34 = vadd.f32 %v4407_v30, %v4319_v58  ;;  %vm7561_vm3 = vsmask.f32 3328  ;;  %v7574_v26 = vshll.u32 %v17272_v44, 16  ;;  %v7582_v63 = vshll.u32 %v17276_v60, 16 }
 0x3d8   : > { %20414 = vst [vmem:[#allocation16_spill] sm:$0xff] %v17278_v55  ;;  %v4613_v54 = vrot.slane %v4495_v6, 2  ;;  %v7567_v51 = vrot.slane %v7565_v13, 4  ;;  %v7570_v49 = vrot.slane %v7568_v19, 5  ;;  %v7581_v48 = vrot.slane %v7579_v29, 4 }
 0x3d9   : > { %v7588_v35 = vshll.u32 %v17278_v55, 16  ;;  %vm7562_vm0 = vsmask.f32 7440  ;;  %v7584_v24 = vrot.slane %v7582_v63, 5  ;;  %v4614_v5 = vrot.slane %v4495_v6, 4 }
 0x3da   : > { %v4615_v4 = vrot.slane %v4495_v6, 6  ;;  %v7571_v45 = vor.u32 %v7570_v49, %v7567_v51  ;;  %v12152_v53 = vrot.slane %v4495_v6, 9  ;;  %v12153_v56 = vrot.slane %v4613_v54, 9  ;;  %vm17292_vm1 = vmor %vm7561_vm3, %vm7562_vm0 }
 0x3db   : > { %v17289_v42 = vadd.f32 %v4496_v32, %v4408_v34  ;;  %v7576_v38 = vrot.slane %v7574_v26, 5  ;;  %v7585_v1 = vor.u32 %v7584_v24, %v7581_v48  ;;  %v12154_v12 = vrot.slane %v4614_v5, 9 }
 0x3dc   : > { %v12155_v58 = vrot.slane %v4615_v4, 9  ;;  %v20415_v30 = vmov 0  ;;  %v7572_v13 = vrot.slane %v7571_v45, 4  ;;  %v7590_v19 = vrot.slane %v7588_v35, 5 }
 0x3dd   : > { %v20416_v30 = vsel %vm17292_vm1, 4294967295, %v20415_v30  ;;  %v5203_v29 = vadd.f32 %v12152_v53, %v4495_v6  ;;  %v5204_v63 = vadd.f32 %v12153_v56, %v4613_v54  ;;  %v7586_v20 = vrot.slane %v7585_v1, 4 }
 0x3de   : > { %20417 = vst [vmem:[#allocation40_spill] sm:$0xff] %v20416_v30  ;;  %v5205_v7 = vadd.f32 %v12154_v12, %v4614_v5  ;;  %v5206_v51 = vadd.f32 %v12155_v58, %v4615_v4  ;;  %v4616_v49 = vrot.slane %v17289_v42, 2  ;;  %v4610_v34 = vrot.slane %v17281_v16, 2  ;;  %v13357_v30 = vld [vmem:[%s20446_s0 + $0x30] sm:$0xff] }
 0x3df   : > { %v7577_v26 = vsel %vm17292_vm1, %v7572_v13, %v7576_v38  ;;  %v5299_v48 = vadd.f32 %v5203_v29, %v5195_v10  ;;  %v5300_v32 = vadd.f32 %v5204_v63, %v5196_v18  ;;  %v7591_v24 = vsel %vm17292_vm1, %v7586_v20, %v7590_v19 }
 0x3e0   : > { %v17302_v43 = vunpack.c.l.b16 %v7577_v26  ;;  %v5301_v35 = vadd.f32 %v5205_v7, %v5197_v36  ;;  %v5302_v6 = vadd.f32 %v5206_v51, %v5198_v46  ;;  %v17304_v54 = vunpack.c.l.b16 %v7591_v24 }
 0x3e1   : > { %v5363_v5 = vmul.f32 0.25, %v5299_v48  ;;  %v5364_v4 = vmul.f32 0.25, %v5300_v32  ;;  %v12156_v45 = vrot.slane %v17289_v42, 9  ;;  %v6787_v53 = vadd.f32 %v17097_v59, %v17228_v3 }
 0x3e2   : > { %20418 = vst [vmem:[#allocation13_spill] sm:$0xff] %v17302_v43  ;;  %v5365_v56 = vmul.f32 0.25, %v5301_v35  ;;  %v5366_v38 = vmul.f32 0.25, %v5302_v6  ;;  %v12157_v10 = vrot.slane %v4616_v49, 9  ;;  %v12148_v18 = vrot.slane %v17281_v16, 9  ;;  %v4499_v35 = vpop.f32.mrf.mxu1 }
 0x3e3   : > { %20419 = vst [vmem:[#allocation12_spill] sm:$0xff] %v17304_v54  ;;  %v7727_v20 = vpack.c.b16 %v17304_v54, %v17302_v43  ;;  %v17313_v7 = vadd.f32 %v17202_v28, %v5363_v5  ;;  %v17317_v36 = vadd.f32 %v6687_v14, %v5364_v4  ;;  %v9418_v46 = vadd.f32 %v17246_v31, %v6787_v53 }
 0x3e4   : > { %v12149_v1 = vrot.slane %v4610_v34, 9  ;;  %v17322_v3 = vadd.f32 %v6660_v8, %v5365_v56  ;;  %v17325_v12 = vadd.f32 %v17218_v40, %v5366_v38  ;;  %v12143_v58 = vrot.slane %v4606_v47, 9  ;;  %v4321_v56 = vpop.f32.mrf.mxu3  ;;  %v4410_v38 = vpop.f32.mrf.mxu0 }
 0x3e5   : > { %20420 = vst [vmem:[#allocation27_spill] sm:$0xff] %v17317_v36  ;;  %v20421_v13 = vrot.slane %v17132_v57, 4  ;;  %7731 = vrot.lane.b32.xlu1 %v7727_v20, %s20260_s2  ;;  %v9422_v14 = vadd.f32 %v17317_v36, %v17313_v7  ;;  %v5207_v29 = vadd.f32 %v12156_v45, %v17289_v42  ;;  %v20422_v8 = vrot.slane %v17115_v27, 6 }
 0x3e6   : > { %v6661_v40 = vrot.slane %v17202_v28, 4  ;;  %v5208_v51 = vadd.f32 %v12157_v10, %v4616_v49  ;;  %v20423_v26 = vrot.slane %v17115_v27, 4  ;;  %v5199_v32 = vadd.f32 %v12148_v18, %v17281_v16 }
 0x3e7   : > { %v5193_v19 = vadd.f32 %v17250_v61, %v20421_v13  ;;  %v12135_v63 = vrot.slane %v20422_v8, 9  ;;  %v17345_v61 = vadd.f32 %v17325_v12, %v17322_v3  ;;  %v17347_v24 = vadd.f32 %v9422_v14, %v9418_v46 }
 0x3e8   : > { %v5185_v48 = vadd.f32 %v17226_v21, %v20423_v26  ;;  %v6915_v6 = vmul.f32 0.2, %v6787_v53  ;;  %v5200_v5 = vadd.f32 %v12149_v1, %v4610_v34  ;;  %vm6851_vm4 = vcmp.gt.f32.partialorder %v6787_v53, 0.0 }
 0x3e9   : > { %20424 = vst [vmem:[#allocation20_spill] sm:$0xff] %v17345_v61  ;;  %v5194_v4 = vadd.f32 %v12143_v58, %v4606_v47  ;;  %v5303_v45 = vadd.f32 %v5207_v29, %v5199_v32  ;;  %v6689_v21 = vrot.slane %v6661_v40, 1  ;;  %v20426_v18 = vmov %v20422_v8 }
 0x3ea   : > { %20425 = vst [vmem:[#allocation58_spill] sm:$0xff] %v17347_v24  ;;  %v5297_v49 = vadd.f32 %v5193_v19, %v5185_v48  ;;  %v5304_v10 = vadd.f32 %v5208_v51, %v5200_v5  ;;  %v5186_v20 = vadd.f32 %v12135_v63, %v20426_v18  ;;  %vm6853_vm6 = vcmp.gt.f32.partialorder %v17140_v33, 0.0  ;;  %v6633_v5 = vpop.f32.mrf.mxu2 }
 0x3eb   : > { %v6917_v46 = vmul.f32 0.2, %v17140_v33  ;;  %v5367_v13 = vmul.f32 0.25, %v5303_v45  ;;  %vm6854_vm2 = vcmp.gt.f32.partialorder %v17142_v62, 0.0  ;;  %v6918_v34 = vmul.f32 0.2, %v17142_v62 }
 0x3ec   : > { %v6979_v57 = vsel %vm6851_vm4, %v6787_v53, %v6915_v6  ;;  %v5368_v47 = vmul.f32 0.25, %v5304_v10  ;;  %v5298_v1 = vadd.f32 %v5194_v4, %v5186_v20  ;;  %v5361_v58 = vmul.f32 0.25, %v5297_v49  ;;  %v4412_v10 = vpop.f32.mrf.mxu0 }
 0x3ed   : > { %vm6855_vm3 = vcmp.gt.f32.partialorder %v17175_v25, 0.0  ;;  %v6919_v19 = vmul.f32 0.2, %v17175_v25  ;;  %v6920_v27 = vmul.f32 0.2, %v17177_v15  ;;  %v17360_v14 = vadd.f32 %v6661_v40, %v5367_v13  ;;  %v3780_v13 = vpop.permute.xlu0 %3779 }
 0x3ee   : > { %v17362_v29 = vadd.f32 %v6689_v21, %v5368_v47  ;;  %v4322_v8 = vadd.f32 %v17191_v2, %v4321_v56  ;;  %v6659_v63 = vrot.slane %v17097_v59, 6  ;;  %v6981_v53 = vsel %vm6853_vm6, %v17140_v33, %v6917_v46  ;;  %v17380_v59 = vpop.f32.mrf.mxu1  ;;  %v4323_v21 = vpop.f32.mrf.mxu3 }
 0x3ef   : > { %vm6856_vm0 = vcmp.gt.f32.partialorder %v17177_v15, 0.0  ;;  %v7043_v51 = vpack.c.bf16 %v6979_v57, %v6979_v57  ;;  %v6982_v40 = vsel %vm6854_vm2, %v17142_v62, %v6918_v34  ;;  %v6983_v32 = vsel %vm6855_vm3, %v17175_v25, %v6919_v19  ;;  %v17388_v25 = vld [vmem:[%s20389_s3] ss:$0 sm:$0xff] }
 0x3f0   : > { %v17372_v26 = vadd.f32 %v17362_v29, %v17360_v14  ;;  %v17377_v48 = vadd.f32 %v6659_v63, %v5361_v58  ;;  %v7045_v6 = vpack.c.bf16 %v6981_v53, %v6981_v53  ;;  %v5362_v33 = vmul.f32 0.25, %v5298_v1 }
 0x3f1   : > { %v6984_v4 = vsel %vm6856_vm0, %v17177_v15, %v6920_v27  ;;  %v4411_v49 = vadd.f32 %v4410_v38, %v4322_v8  ;;  %v6686_v45 = vrot.slane %v6659_v63, 1  ;;  %v6916_v56 = vmul.f32 0.2, %v17246_v31  ;;  %v20430_v8 = vld [vmem:[#allocation48_spill] sm:$0xff] }
 0x3f2   : > { %20427 = vst [vmem:[#allocation53_spill] sm:$0xff] %v17372_v26  ;;  %v7046_v18 = vpack.c.bf16 %v6982_v40, %v6982_v40  ;;  %v7171_v20 = vunpack.c.l.b16 %v7043_v51  ;;  %v7047_v62 = vpack.c.bf16 %v6983_v32, %v6983_v32  ;;  %vm6852_vm4 = vcmp.gt.f32.partialorder %v17246_v31, 0.0 }
 0x3f3   : > { %20428 = vst [vmem:[#allocation17_spill] sm:$0xff] %v17377_v48  ;;  %v17391_v46 = vadd.f32 %v17388_v25, %v6633_v5  ;;  %v6921_v15 = vmul.f32 0.2, %v17377_v48  ;;  %v7048_v38 = vpack.c.bf16 %v6984_v4, %v6984_v4  ;;  %v7173_v34 = vunpack.c.l.b16 %v7045_v6 }
 0x3f4   : > { %v17394_v57 = vadd.f32 %v6686_v45, %v5362_v33  ;;  %v4500_v47 = vadd.f32 %v4499_v35, %v4411_v49  ;;  %vm6857_vm6 = vcmp.gt.f32.partialorder %v17377_v48, 0.0  ;;  %v6980_v1 = vsel %vm6852_vm4, %v17246_v31, %v6916_v56 }
 0x3f5   : > { %v7174_v58 = vunpack.c.l.b16 %v7046_v18  ;;  %v12380_v19 = vunpack.i.l.s16 %v7171_v20  ;;  %v7175_v27 = vunpack.c.l.b16 %v7047_v62  ;;  %v17400_v63 = vsel %vm20013_vm11, %v20430_v8, %v3780_v13  ;;  %v4415_v8 = vpop.f32.mrf.mxu0 }
 0x3f6   : > { %20429 = vst [vmem:[#allocation14_spill] sm:$0xff] %v17394_v57  ;;  %v7176_v51 = vunpack.c.l.b16 %v7048_v38  ;;  %v6985_v40 = vsel %vm6857_vm6, %v17377_v48, %v6921_v15  ;;  %v12382_v32 = vunpack.i.l.s16 %v7173_v34  ;;  %v6922_v6 = vmul.f32 0.2, %v17394_v57  ;;  %v4504_v56 = vpop.f32.mrf.mxu1  ;;  %v4326_v34 = vpop.f32.mrf.mxu3 }
 0x3f7   : > { %v4619_v35 = vrot.slane %v4500_v47, 2  ;;  %v17405_v5 = vpack.c.bf16 %v6980_v1, %v6980_v1  ;;  %v4620_v33 = vrot.slane %v4500_v47, 4  ;;  %v4621_v31 = vrot.slane %v4500_v47, 6 }
 0x3f8   : > { %vm6858_vm2 = vcmp.gt.f32.partialorder %v17394_v57, 0.0  ;;  %v7049_v4 = vpack.c.bf16 %v6985_v40, %v6985_v40  ;;  %v12383_v49 = vunpack.i.l.s16 %v7174_v58  ;;  %v7373_v45 = vrot.slane %v12380_v19, 7 }
 0x3f9   : > { %v12384_v18 = vunpack.i.l.s16 %v7175_v27  ;;  %v7172_v20 = vunpack.c.l.b16 %v17405_v5  ;;  %v12385_v62 = vunpack.i.l.s16 %v7176_v51  ;;  %v12160_v38 = vrot.slane %v4500_v47, 9 }
 0x3fa   : > { %v4324_v15 = vadd.f32 %v17191_v2, %v4323_v21  ;;  %v7177_v13 = vunpack.c.l.b16 %v7049_v4  ;;  %v12161_v1 = vrot.slane %v4619_v35, 9  ;;  %v6986_v53 = vsel %vm6858_vm2, %v17394_v57, %v6922_v6 }
 0x3fb   : > { %v12381_v54 = vunpack.i.l.s16 %v7172_v20  ;;  %v4327_v48 = vadd.f32 %v17191_v2, %v4326_v34  ;;  %v7376_v40 = vrot.slane %v12382_v32, 5  ;;  %v12162_v58 = vrot.slane %v4620_v33, 9 }
 0x3fc   : > { %v12163_v19 = vrot.slane %v4621_v31, 9  ;;  %v12386_v26 = vunpack.i.l.s16 %v7177_v13  ;;  %v7378_v27 = vrot.slane %v12383_v49, 4  ;;  %v7380_v39 = vrot.slane %v12384_v18, 3 }
 0x3fd   : > { %v7374_v61 = vrot.slane %v12381_v54, 6  ;;  %v4416_v51 = vadd.f32 %v4415_v8, %v4327_v48  ;;  %v7382_v11 = vrot.slane %v12385_v62, 2  ;;  %v4413_v24 = vadd.f32 %v4412_v10, %v4324_v15 }
 0x3fe   : > { %v7050_v21 = vpack.c.bf16 %v6986_v53, %v6986_v53  ;;  %v7241_v4 = vpack.c.b16 %v7177_v13, %v7177_v13  ;;  %v5211_v37 = vadd.f32 %v12160_v38, %v4500_v47  ;;  %v5212_v55 = vadd.f32 %v12161_v1, %v4619_v35  ;;  %v17416_v47 = vpop.permute.xlu1 %3811  ;;  %v4328_v35 = vpop.f32.mrf.mxu3 }
 0x3ff   : > { %v7375_v52 = vsel %vm6471_vm12, %v7374_v61, %v7373_v45  ;;  %v4505_v6 = vadd.f32 %v4504_v56, %v4416_v51  ;;  %v5213_v20 = vadd.f32 %v12162_v58, %v4620_v33  ;;  %v5214_v57 = vadd.f32 %v12163_v19, %v4621_v31 }
 0x400   : > { %v7377_v32 = vsel %vm6474_vm13, %v7376_v40, %v7375_v52  ;;  %v7384_v34 = vrot.slane %v12386_v26, 1  ;;  %v7178_v48 = vunpack.c.l.b16 %v7050_v21  ;;  %v7476_v53 = vshll.u32 %v7241_v4, 16  ;;  %v4417_v52 = vpop.f32.mrf.mxu0  ;;  %v4506_v26 = vpop.f32.mrf.mxu1 }
 0x401   : > { %v7379_v60 = vsel %vm6477_vm14, %v7378_v27, %v7377_v32  ;;  %v4625_v49 = vrot.slane %v4505_v6, 2  ;;  %v4626_v18 = vrot.slane %v4505_v6, 4  ;;  %v4627_v54 = vrot.slane %v4505_v6, 6 }
 0x402   : > { %v7381_v10 = vsel %vm6480_vm15, %v7380_v39, %v7379_v60  ;;  %v12168_v62 = vrot.slane %v4505_v6, 9  ;;  %vm20431_vm3 = vcmask 1046534   ;;  %vm20432_vm0 = vcmask 1047559   ;;  %v17424_v60 = vpop.permute.xlu2 %3841 }
 0x403   : > { %v7383_v61 = vsel %vm20431_vm3, %v7382_v11, %v7381_v10  ;;  %v12169_v33 = vrot.slane %v4625_v49, 9  ;;  %v12170_v31 = vrot.slane %v4626_v18, 9  ;;  %v12171_v45 = vrot.slane %v4627_v54, 9 }
 0x404   : > { %v7385_v56 = vsel %vm20432_vm0, %v7384_v34, %v7383_v61  ;;  %v5219_v38 = vadd.f32 %v12168_v62, %v4505_v6  ;;  %v4028_v15 = vsel %vm2163_vm10, %v17400_v63, %v17416_v47  ;;  %v4329_v39 = vadd.f32 %v17191_v2, %v4328_v35 }
 0x405   : > { %v12430_v13 = vpack.c.b16 %v7178_v48, %v7385_v56  ;;  %v5220_v8 = vadd.f32 %v12169_v33, %v4625_v49  ;;  %v5221_v1 = vadd.f32 %v12170_v31, %v4626_v18  ;;  %v5222_v11 = vadd.f32 %v12171_v45, %v4627_v54 }
 0x406   : > { %v7478_v40 = vrot.slane %v7476_v53, 4  ;;  %v5307_v58 = vadd.f32 %v5219_v38, %v5211_v37  ;;  %v4072_v19 = vsel %vm20021_vm5, %v4028_v15, %v17424_v60  ;;  %v4418_v27 = vadd.f32 %v4417_v52, %v4329_v39 }
 0x407   : > { %v7509_v51 = vsel %vm13934_vm8, %v17405_v5, %v12430_v13  ;;  %v5308_v21 = vadd.f32 %v5220_v8, %v5212_v55  ;;  %v5309_v63 = vadd.f32 %v5221_v1, %v5213_v20  ;;  %v5310_v4 = vadd.f32 %v5222_v11, %v5214_v57  ;;  %4434 = vmatmul.bf16.gmra.mxu0 %v4072_v19  ;;  %v17439_v57 = vpop.f32.mrf.mxu3 }
 0x408   : > { %v6691_v6 = vrot.slane %v17391_v46, 1  ;;  %v4502_v32 = vadd.f32 %v17380_v59, %v4413_v24  ;;  %v7520_v34 = vsel %vm17252_vm9, %v7509_v51, %v7478_v40  ;;  %v20434_v48 = vrot.slane %v17391_v46, 2  ;;  %v17450_v62 = vpop.f32.mrf.mxu0  ;;  %v17462_v38 = vpop.f32.mrf.mxu1 }
 0x409   : > { %v17435_v37 = vunpack.c.l.b16 %v7520_v34  ;;  %v7538_v49 = vunpack.c.h.b16 %v7520_v34  ;;  %v5372_v18 = vmul.f32 0.25, %v5308_v21  ;;  %v5373_v54 = vmul.f32 0.25, %v5309_v63 }
 0x40a   : > { %v6692_v10 = vrot.slane %v20434_v48, 1  ;;  %v5371_v5 = vmul.f32 0.25, %v5307_v58  ;;  %v5374_v55 = vmul.f32 0.25, %v5310_v4  ;;  %v4507_v20 = vadd.f32 %v4506_v26, %v4418_v27 }
 0x40b   : > { %20433 = vst [vmem:[#allocation45_spill] sm:$0xff] %v17435_v37  ;;  %v17442_v53 = vmul.f32 0.25, %v17037_v17  ;;  %v17446_v24 = vpack.c.b16 %v17435_v37, %v17435_v37  ;;  %v17448_v59 = vpack.c.b16 %v7538_v49, %v7538_v49  ;;  %v4622_v35 = vrot.slane %v4502_v32, 2  ;;  %v3688_v49 = vpop.permute.xlu0 %3687 }
 0x40c   : > { %v17452_v61 = vadd.f32 %v6691_v6, %v5372_v18  ;;  %v20438_v33 = vmov %v20434_v48  ;;  %v17458_v45 = vadd.f32 %v6692_v10, %v5374_v55  ;;  %v4623_v52 = vrot.slane %v4502_v32, 4 }
 0x40d   : > { %20435 = vst [vmem:[#allocation15_spill] sm:$0xff] %v17446_v24  ;;  %v17456_v31 = vadd.f32 %v20438_v33, %v5373_v54  ;;  %v4624_v17 = vrot.slane %v4502_v32, 6  ;;  %v7593_v26 = vshrl.u32 %v17446_v24, 16  ;;  %v7596_v56 = vshll.u32 %v17446_v24, 16 }
 0x40e   : > { %20436 = vst [vmem:[#allocation46_spill] sm:$0xff] %v17448_v59  ;;  %v12164_v15 = vrot.slane %v4502_v32, 9  ;;  %v17465_v39 = vadd.f32 %v17391_v46, %v5371_v5  ;;  %v4628_v13 = vrot.slane %v4507_v20, 2  ;;  %v4629_v8 = vrot.slane %v4507_v20, 4 }
 0x40f   : > { %20437 = vst [vmem:[#allocation56_spill] sm:$0xff] %v17452_v61  ;;  %v7595_v1 = vrot.slane %v7593_v26, 4  ;;  %v7598_v11 = vrot.slane %v7596_v56, 5  ;;  %v7602_v40 = vshll.u32 %v17448_v59, 16  ;;  %v4630_v58 = vrot.slane %v4507_v20, 6  ;;  %v4333_v10 = vpop.f32.mrf.mxu3 }
 0x410   : > { %v17469_v19 = vmul.f32 0.25, %v17040_v50  ;;  %v12165_v27 = vrot.slane %v4622_v35, 9  ;;  %v17473_v51 = vadd.f32 %v17452_v61, %v17465_v39  ;;  %v17477_v21 = vadd.f32 %v17458_v45, %v17456_v31  ;;  %v17481_v24 = vpop.f32.mrf.mxu0 }
 0x411   : > { %v6664_v63 = vrot.slane %v17391_v46, 4  ;;  %v12166_v4 = vrot.slane %v4623_v52, 9  ;;  %v12167_v6 = vrot.slane %v4624_v17, 9  ;;  %v7599_v34 = vor.u32 %v7598_v11, %v7595_v1 }
 0x412   : > { %v6665_v18 = vrot.slane %v17391_v46, 6  ;;  %v12172_v54 = vrot.slane %v4507_v20, 9  ;;  %v12173_v50 = vrot.slane %v4628_v13, 9  ;;  %v12174_v48 = vrot.slane %v4629_v8, 9 }
 0x413   : > { %v5215_v5 = vadd.f32 %v12164_v15, %v4502_v32  ;;  %v7600_v55 = vrot.slane %v7599_v34, 4  ;;  %v7604_v33 = vrot.slane %v7602_v40, 5  ;;  %v12175_v26 = vrot.slane %v4630_v58, 9  ;;  %v3718_v40 = vpop.permute.xlu1 %3717  ;;  %v3750_v34 = vpop.permute.xlu2 %3749 }
 0x414   : > { %v5216_v56 = vadd.f32 %v12165_v27, %v4622_v35  ;;  %v5223_v37 = vadd.f32 %v12172_v54, %v4507_v20  ;;  %v5224_v22 = vadd.f32 %v12173_v50, %v4628_v13  ;;  %v5225_v41 = vadd.f32 %v12174_v48, %v4629_v8  ;;  %v20440_v35 = vld [vmem:[#allocation21_spill] sm:$0xff]  ;;  %v6635_v8 = vpop.f32.mrf.mxu2 }
 0x415   : > { %v5217_v59 = vadd.f32 %v12166_v4, %v4623_v52  ;;  %v5218_v61 = vadd.f32 %v12167_v6, %v4624_v17  ;;  %v7605_v1 = vsel %vm17292_vm1, %v7600_v55, %v7604_v33  ;;  %v5226_v46 = vadd.f32 %v12175_v26, %v4630_v58  ;;  %v17491_v4 = vpop.f32.mrf.mxu1 }
 0x416   : > { %v9476_v11 = vpack.c.bf16 %v17442_v53, %v17442_v53  ;;  %v17487_v36 = vunpack.c.l.b16 %v7605_v1  ;;  %v5311_v32 = vadd.f32 %v5223_v37, %v5215_v5  ;;  %v5312_v15 = vadd.f32 %v5224_v22, %v5216_v56 }
 0x417   : > { %v3872_v20 = vsel %vm20013_vm11, %v20440_v35, %v3688_v49  ;;  %v6693_v13 = vrot.slane %v6664_v63, 1  ;;  %v5313_v27 = vadd.f32 %v5225_v41, %v5217_v59  ;;  %v5314_v52 = vadd.f32 %v5226_v46, %v5218_v61  ;;  %v3782_v59 = vpop.permute.xlu0 %3781 }
 0x418   : > { %20439 = vst [vmem:[#allocation24_spill] sm:$0xff] %v17487_v36  ;;  %v6694_v17 = vrot.slane %v6665_v18, 1  ;;  %v7728_v58 = vpack.c.b16 %v17487_v36, %v17302_v43  ;;  %v5375_v6 = vmul.f32 0.25, %v5311_v32  ;;  %v5376_v53 = vmul.f32 0.25, %v5312_v15  ;;  %v4425_v46 = vpop.f32.mrf.mxu0 }
 0x419   : > { %v5377_v54 = vmul.f32 0.25, %v5313_v27  ;;  %v5378_v37 = vmul.f32 0.25, %v5314_v52  ;;  %v3902_v22 = vsel %vm2163_vm10, %v3872_v20, %v3718_v40  ;;  %v4332_v49 = vadd.f32 %v17191_v2, %v17439_v57 }
 0x41a   : > { %v17499_v50 = vadd.f32 %v17388_v25, %v6635_v8  ;;  %v4611_v41 = vrot.slane %v17281_v16, 4  ;;  %7733 = vrot.lane.b32.xlu2 %v7728_v58, %s20260_s2  ;;  %v17503_v61 = vadd.f32 %v6693_v13, %v5376_v53  ;;  %v3948_v48 = vsel %vm20021_vm5, %v3902_v22, %v3750_v34  ;;  %v4336_v25 = vpop.f32.mrf.mxu3 }
 0x41b   : > { %v17506_v5 = vadd.f32 %v6664_v63, %v5375_v6  ;;  %v17508_v55 = vadd.f32 %v6665_v18, %v5377_v54  ;;  %v17510_v33 = vadd.f32 %v6694_v17, %v5378_v37  ;;  %4350 = vmatmul.bf16.gmra.mxu3 %v3948_v48  ;;  %v4421_v57 = vadd.f32 %v17450_v62, %v4332_v49  ;;  %v3814_v20 = vpop.permute.xlu1 %3813  ;;  %v3844_v52 = vpop.permute.xlu2 %3843 }
 0x41c   : > { %v9477_v26 = vpack.c.bf16 %v17469_v19, %v17469_v19  ;;  %v17515_v56 = vunpack.c.l.b16 %v9476_v11  ;;  %v19997_v62 = vrot.slane %v17499_v50, 2  ;;  %v19994_v32 = vrot.slane %v17281_v16, 6 }
 0x41d   : > { %20441 = vst [vmem:[#allocation47_spill] sm:$0xff] %v17510_v33  ;;  %v17519_v1 = vadd.f32 %v17503_v61, %v17506_v5  ;;  %v17523_v63 = vadd.f32 %v17510_v33, %v17508_v55  ;;  %v17526_v18 = vadd.f32 %v17462_v38, %v4421_v57  ;;  %v12150_v15 = vrot.slane %v4611_v41, 9  ;;  %v4514_v6 = vpop.f32.mrf.mxu1 }
 0x41e   : > { %20442 = vst [vmem:[#allocation36_spill] sm:$0xff] %v17515_v56  ;;  %v4337_v19 = vadd.f32 %v17191_v2, %v4336_v25  ;;  %v19996_v11 = vrot.slane %v17289_v42, 4  ;;  %v7750_v40 = vpack.c.b16 %v17262_v0, %v17264_v23  ;;  %v4334_v35 = vadd.f32 %v17191_v2, %v4333_v10 }
 0x41f   : > { %20443 = vst [vmem:[#allocation57_spill] sm:$0xff] %v17523_v63  ;;  %v17535_v13 = vunpack.c.l.b16 %v9477_v26  ;;  %v19995_v27 = vrot.slane %v17289_v42, 6  ;;  %v4631_v53 = vrot.slane %v17526_v18, 2  ;;  %v17546_v34 = vrot.slane %v19997_v62, 1  ;;  %v3690_v48 = vpop.permute.xlu0 %3689 }
 0x420   : > { %v4426_v10 = vadd.f32 %v4425_v46, %v4337_v19  ;;  %v17550_v54 = vrot.slane %v19994_v32, 9  ;;  %v17552_v37 = vadd.f32 %v12150_v15, %v4611_v41  ;;  %v6923_v22 = vmul.f32 0.2, %v17313_v7  ;;  %v20444_v41 = vld [vmem:[#allocation31_spill] sm:$0xff]  ;;  %v20445_v32 = vld [vmem:[#allocation26_spill] sm:$0xff] }
 0x421   : > { %vm6859_vm4 = vcmp.gt.f32.partialorder %v17313_v7, 0.0  ;;  %v17558_v49 = vrot.slane %v19996_v11, 9  ;;  %v4632_v57 = vrot.slane %v17526_v18, 4  ;;  %v4423_v25 = vadd.f32 %v17481_v24, %v4334_v35 }
 0x422   : > { %7754 = vrot.lane.b32.xlu2 %v7750_v40, %s20260_s2  ;;  %vm6861_vm6 = vcmp.gt.f32.partialorder %v17322_v3, 0.0  ;;  %v17565_v26 = vrot.slane %v19995_v27, 9  ;;  %v3997_v46 = vsel %vm20013_vm11, %v20444_v41, %v3782_v59  ;;  %v4633_v15 = vrot.slane %v17526_v18, 6  ;;  %v4338_v8 = vpop.f32.mrf.mxu3 }
 0x423   : > { %v12176_v19 = vrot.slane %v17526_v18, 9  ;;  %v12177_v40 = vrot.slane %v4631_v53, 9  ;;  %v4515_v38 = vadd.f32 %v4514_v6, %v4426_v10  ;;  %v4030_v17 = vsel %vm2163_vm10, %v3997_v46, %v3814_v20  ;;  %v4427_v20 = vpop.f32.mrf.mxu0 }
 0x424   : > { %v6925_v24 = vmul.f32 0.2, %v17322_v3  ;;  %v17574_v35 = vsel %vm6859_vm4, %v17313_v7, %v6923_v22  ;;  %v3874_v27 = vsel %vm20013_vm11, %v20445_v32, %v3690_v48  ;;  %v4075_v11 = vsel %vm20021_vm5, %v4030_v17, %v3844_v52  ;;  %v3720_v17 = vpop.permute.xlu1 %3719 }
 0x425   : > { %vm6862_vm2 = vcmp.gt.f32.partialorder %v17325_v12, 0.0  ;;  %v12178_v59 = vrot.slane %v4632_v57, 9  ;;  %v17581_v41 = vadd.f32 %v17491_v4, %v4423_v25  ;;  %v4637_v6 = vrot.slane %v4515_v38, 2  ;;  %4439 = vmatmul.bf16.gmra.mxu0 %v4075_v11  ;;  %v13358_v4 = vld [vmem:[%s20446_s0 + $0x38] sm:$0xff]  ;;  %v3752_v25 = vpop.permute.xlu2 %3751 }
 0x426   : > { %v4638_v10 = vrot.slane %v4515_v38, 4  ;;  %v12179_v46 = vrot.slane %v4633_v15, 9  ;;  %v4639_v62 = vrot.slane %v4515_v38, 6  ;;  %v12184_v58 = vrot.slane %v4515_v38, 9  ;;  %v13386_v11 = vld [vmem:[%s20446_s0 + $0x118] sm:$0xff]  ;;  %8138 = vmatpush.bf16.msra.mxu2 %v13358_v4 }
 0x427   : > { %v4339_v7 = vadd.f32 %v17191_v2, %v4338_v8  ;;  %v5227_v22 = vadd.f32 %v12176_v19, %v17526_v18  ;;  %v5228_v32 = vadd.f32 %v12177_v40, %v4631_v53  ;;  %v12185_v48 = vrot.slane %v4637_v6, 9  ;;  %v4516_v8 = vpop.f32.mrf.mxu1  ;;  %8258 = vmatpush.bf16.msra.mxu0 %v13386_v11 }
 0x428   : > { %v12186_v52 = vrot.slane %v4638_v10, 9  ;;  %v12187_v43 = vrot.slane %v4639_v62, 9  ;;  %v5235_v36 = vadd.f32 %v12184_v58, %v4515_v38  ;;  %v3904_v2 = vsel %vm2163_vm10, %v3874_v27, %v3720_v17 }
 0x429   : > { %v4428_v63 = vadd.f32 %v4427_v20, %v4339_v7  ;;  %v5229_v18 = vadd.f32 %v12178_v59, %v4632_v57  ;;  %v5236_v53 = vadd.f32 %v12185_v48, %v4637_v6  ;;  %v3951_v40 = vsel %vm20021_vm5, %v3904_v2, %v3752_v25  ;;  %v3784_v59 = vpop.permute.xlu0 %3783 }
 0x42a   : > { %v5237_v19 = vadd.f32 %v12186_v52, %v4638_v10  ;;  %v5230_v23 = vadd.f32 %v12179_v46, %v4633_v15  ;;  %v5238_v0 = vadd.f32 %v12187_v43, %v4639_v62  ;;  %v5315_v56 = vadd.f32 %v5235_v36, %v5227_v22  ;;  %8139 = vmatpush.bf16.msra.mxu2 %v13357_v30  ;;  %v13356_v46 = vld [vmem:[%s20446_s0 + $0x28] sm:$0xff] }
 0x42b   : > { %v17596_v33 = vadd.f32 %v4516_v8, %v4428_v63  ;;  %4355 = vmatmul.bf16.gmra.mxu3 %v3951_v40  ;;  %v6926_v38 = vmul.f32 0.2, %v17325_v12  ;;  %v4634_v27 = vrot.slane %v17581_v41, 2  ;;  %v5316_v58 = vadd.f32 %v5236_v53, %v5228_v32 }
 0x42c   : > { %v5317_v57 = vadd.f32 %v5237_v19, %v5229_v18  ;;  %v6989_v6 = vsel %vm6861_vm6, %v17322_v3, %v6925_v24  ;;  %v5318_v10 = vadd.f32 %v5238_v0, %v5230_v23  ;;  %v5379_v20 = vmul.f32 0.25, %v5315_v56  ;;  %v13382_v3 = vld [vmem:[%s20446_s0 + $0xf8] sm:$0xff] }
 0x42d   : > { %v4640_v43 = vrot.slane %v17596_v33, 2  ;;  %v7051_v36 = vpack.c.bf16 %v17574_v35, %v17574_v35  ;;  %v5380_v63 = vmul.f32 0.25, %v5316_v58  ;;  %v12188_v15 = vrot.slane %v17596_v33, 9  ;;  %v13385_v35 = vld [vmem:[%s20446_s0 + $0x110] sm:$0xff]  ;;  %8225 = vmatpush.bf16.msra.mxu3 %v13382_v3 }
 0x42e   : > { %v5381_v62 = vmul.f32 0.25, %v5317_v57  ;;  %v12180_v0 = vrot.slane %v17581_v41, 9  ;;  %v5382_v23 = vmul.f32 0.25, %v5318_v10  ;;  %v4000_v56 = vsel %vm20013_vm11, %v17086_v9, %v3784_v59  ;;  %8259 = vmatpush.bf16.msra.mxu0 %v13385_v35  ;;  %8140 = vmatpush.bf16.msra.mxu2 %v13356_v46 }
 0x42f   : > { %v12189_v24 = vrot.slane %v4640_v43, 9  ;;  %v12181_v30 = vrot.slane %v4634_v27, 9  ;;  %v17620_v7 = vadd.f32 %v17499_v50, %v5379_v20  ;;  %v20447_v22 = vrot.slane %v17499_v50, 1 }
 0x430   : > { %v20448_v48 = vrot.slane %v17499_v50, 2  ;;  %v6990_v9 = vsel %vm6862_vm2, %v17325_v12, %v6926_v38  ;;  %v20449_v17 = vrot.slane %v17289_v42, 4  ;;  %v17637_v11 = vadd.f32 %v17546_v34, %v5382_v23 }
 0x431   : > { %v17624_v32 = vadd.f32 %v20447_v22, %v5380_v63  ;;  %v5239_v25 = vadd.f32 %v12188_v15, %v17596_v33  ;;  %v20450_v2 = vrot.slane %v17289_v42, 6  ;;  %v5240_v53 = vadd.f32 %v12189_v24, %v4640_v43 }
 0x432   : > { %v17628_v52 = vadd.f32 %v20448_v48, %v5381_v62  ;;  %v5209_v4 = vadd.f32 %v17558_v49, %v20449_v17  ;;  %v4031_v12 = vsel %vm2163_vm10, %v4000_v56, %v17416_v47  ;;  %v20451_v49 = vrot.slane %v17281_v16, 6 }
 0x433   : > { %v5210_v8 = vadd.f32 %v17565_v26, %v20450_v2  ;;  %v9430_v18 = vadd.f32 %v17624_v32, %v17620_v7  ;;  %v7053_v19 = vpack.c.bf16 %v6989_v6, %v6989_v6  ;;  %v5231_v40 = vadd.f32 %v12180_v0, %v17581_v41 }
 0x434   : > { %v5202_v34 = vadd.f32 %v17550_v54, %v20451_v49  ;;  %v9431_v42 = vadd.f32 %v17637_v11, %v17628_v52  ;;  %v7054_v38 = vpack.c.bf16 %v6990_v9, %v6990_v9  ;;  %v7179_v26 = vunpack.c.l.b16 %v7051_v36 }
 0x435   : > { %v5232_v58 = vadd.f32 %v12181_v30, %v4634_v27  ;;  %v17654_v57 = vadd.f32 %v9430_v18, %v17473_v51  ;;  %v5305_v59 = vadd.f32 %v5209_v4, %v17552_v37  ;;  %v5319_v16 = vadd.f32 %v5239_v25, %v5231_v40 }
 0x436   : > { %v17658_v47 = vadd.f32 %v9431_v42, %v17477_v21  ;;  %v4077_v54 = vsel %vm20021_vm5, %v4031_v12, %v17424_v60  ;;  %v20452_v6 = vrot.slane %v17202_v28, 6  ;;  %v5306_v20 = vadd.f32 %v5210_v8, %v5202_v34 }
 0x437   : > { %v6927_v43 = vmul.f32 0.2, %v17360_v14  ;;  %v5320_v36 = vadd.f32 %v5240_v53, %v5232_v58  ;;  %4444 = vmatmul.bf16.gmra.mxu0 %v4077_v54  ;;  %v20453_v51 = vrot.slane %v17499_v50, 4  ;;  %v7181_v63 = vunpack.c.l.b16 %v7053_v19 }
 0x438   : > { %v6690_v10 = vrot.slane %v20452_v6, 1  ;;  %vm6863_vm3 = vcmp.gt.f32.partialorder %v17360_v14, 0.0  ;;  %v6928_v21 = vmul.f32 0.2, %v17362_v29  ;;  %v7182_v37 = vunpack.c.l.b16 %v7054_v38 }
 0x439   : > { %v6697_v27 = vrot.slane %v20453_v51, 1  ;;  %v12388_v62 = vunpack.i.l.s16 %v7179_v26  ;;  %vm6864_vm0 = vcmp.gt.f32.partialorder %v17362_v29, 0.0  ;;  %v5383_v60 = vmul.f32 0.25, %v5319_v16  ;;  %v20457_v26 = vld [vmem:[#allocation27_spill] sm:$0xff] }
 0x43a   : > { %v5369_v15 = vmul.f32 0.25, %v5305_v59  ;;  %v6931_v46 = vmul.f32 0.2, %v17465_v39  ;;  %v6933_v3 = vmul.f32 0.2, %v17456_v31  ;;  %v5384_v0 = vmul.f32 0.25, %v5320_v36 }
 0x43b   : > { %v5370_v23 = vmul.f32 0.25, %v5306_v20  ;;  %v6991_v56 = vsel %vm6863_vm3, %v17360_v14, %v6927_v43  ;;  %vm6867_vm4 = vcmp.gt.f32.partialorder %v17465_v39, 0.0  ;;  %vm6869_vm6 = vcmp.gt.f32.partialorder %v17456_v31, 0.0  ;;  %v20458_v43 = vld [vmem:[#allocation56_spill] sm:$0xff] }
 0x43c   : > { %v6992_v24 = vsel %vm6864_vm0, %v17362_v29, %v6928_v21  ;;  %v6934_v35 = vmul.f32 0.2, %v17458_v45  ;;  %v6935_v30 = vmul.f32 0.2, %v17506_v5  ;;  %v17678_v22 = vadd.f32 %v6697_v27, %v5384_v0 }
 0x43d   : > { %v12390_v48 = vunpack.i.l.s16 %v7181_v63  ;;  %vm6870_vm2 = vcmp.gt.f32.partialorder %v17458_v45, 0.0  ;;  %vm6871_vm11 = vcmp.gt.f32.partialorder %v17506_v5, 0.0  ;;  %v20454_v9 = vmov %v20453_v51 }
 0x43e   : > { %v17684_v14 = vadd.f32 %v20454_v9, %v5383_v60  ;;  %v7055_v17 = vpack.c.bf16 %v6991_v56, %v6991_v56  ;;  %v6995_v4 = vsel %vm6867_vm4, %v17465_v39, %v6931_v46  ;;  %v6997_v29 = vsel %vm6869_vm6, %v17456_v31, %v6933_v3 }
 0x43f   : > { %v6936_v25 = vmul.f32 0.2, %v17503_v61  ;;  %v12391_v2 = vunpack.i.l.s16 %v7182_v37  ;;  %v7056_v8 = vpack.c.bf16 %v6992_v24, %v6992_v24  ;;  %vm6872_vm3 = vcmp.gt.f32.partialorder %v17503_v61, 0.0 }
 0x440   : > { %v9432_v18 = vadd.f32 %v17678_v22, %v17684_v14  ;;  %v20455_v53 = vmov %v20452_v6  ;;  %v17696_v49 = vadd.f32 %v6690_v10, %v5370_v23  ;;  %v6998_v34 = vsel %vm6870_vm2, %v17458_v45, %v6934_v35 }
 0x441   : > { %v17694_v12 = vadd.f32 %v20455_v53, %v5369_v15  ;;  %v6999_v39 = vsel %vm6871_vm11, %v17506_v5, %v6935_v30  ;;  %v9538_v31 = vrot.slane %v17535_v13, 5  ;;  %v7059_v19 = vpack.c.bf16 %v6995_v4, %v6995_v4  ;;  %v20460_v53 = vld [vmem:[#allocation46_spill] sm:$0xff] }
 0x442   : > { %20456 = vst [vmem:[#allocation30_spill] sm:$0xff] %v17696_v49  ;;  %v7061_v40 = vpack.c.bf16 %v6997_v29, %v6997_v29  ;;  %v17702_v42 = vadd.f32 %v9432_v18, %v17519_v1  ;;  %v7667_v38 = vrot.slane %v17272_v44, 5  ;;  %v6924_v58 = vmul.f32 0.2, %v20457_v26 }
 0x443   : > { %v7183_v28 = vunpack.c.l.b16 %v7055_v17  ;;  %v7000_v59 = vsel %vm6872_vm3, %v17503_v61, %v6936_v25  ;;  %v17707_v16 = vrot.slane %v12388_v62, 7  ;;  %v7184_v54 = vunpack.c.l.b16 %v7056_v8  ;;  %v20459_v17 = vld [vmem:[#allocation47_spill] sm:$0xff] }
 0x444   : > { %v7062_v45 = vpack.c.bf16 %v6998_v34, %v6998_v34  ;;  %v7063_v6 = vpack.c.bf16 %v6999_v39, %v6999_v39  ;;  %v17709_v5 = vrot.slane %v12390_v48, 5  ;;  %v17711_v10 = vrot.slane %v12391_v2, 4 }
 0x445   : > { %v6929_v20 = vmul.f32 0.2, %v17694_v12  ;;  %v6930_v1 = vmul.f32 0.2, %v17696_v49  ;;  %v6932_v36 = vmul.f32 0.2, %v20458_v43  ;;  %v7187_v51 = vunpack.c.l.b16 %v7059_v19 }
 0x446   : > { %v7189_v27 = vunpack.c.l.b16 %v7061_v40  ;;  %v7064_v63 = vpack.c.bf16 %v7000_v59, %v7000_v59  ;;  %v12392_v21 = vunpack.i.l.s16 %v7183_v28  ;;  %v6937_v61 = vmul.f32 0.2, %v17508_v55 }
 0x447   : > { %vm6860_vm11 = vcmp.gt.f32.partialorder %v20457_v26, 0.0  ;;  %vm6865_vm0 = vcmp.gt.f32.partialorder %v17694_v12, 0.0  ;;  %v12393_v37 = vunpack.i.l.s16 %v7184_v54  ;;  %v7190_v62 = vunpack.c.l.b16 %v7062_v45 }
 0x448   : > { %v7191_v60 = vunpack.c.l.b16 %v7063_v6  ;;  %vm6868_vm4 = vcmp.gt.f32.partialorder %v20458_v43, 0.0  ;;  %vm6866_vm6 = vcmp.gt.f32.partialorder %v17696_v49, 0.0  ;;  %vm6873_vm2 = vcmp.gt.f32.partialorder %v17508_v55, 0.0 }
 0x449   : > { %v6988_v15 = vsel %vm6860_vm11, %v20457_v26, %v6924_v58  ;;  %v6993_v46 = vsel %vm6865_vm0, %v17694_v12, %v6929_v20  ;;  %v12396_v3 = vunpack.i.l.s16 %v7187_v51  ;;  %v12398_v0 = vunpack.i.l.s16 %v7189_v27  ;;  %v13384_v51 = vld [vmem:[%s20446_s0 + $0x108] sm:$0xff] }
 0x44a   : > { %v7192_v23 = vunpack.c.l.b16 %v7064_v63  ;;  %v6996_v56 = vsel %vm6868_vm4, %v20458_v43, %v6932_v36  ;;  %v17725_v24 = vrot.slane %v12392_v21, 3  ;;  %v7001_v35 = vsel %vm6873_vm2, %v17508_v55, %v6937_v61  ;;  %v13355_v43 = vld [vmem:[%s20446_s0 + $0x20] sm:$0xff]  ;;  %v13381_v36 = vld [vmem:[%s20446_s0 + $0xf0] sm:$0xff]  ;;  %8260 = vmatpush.bf16.msra.mxu0 %v13384_v51 }
 0x44b   : > { %v17728_v30 = vpack.c.bf16 %v6988_v15, %v6988_v15  ;;  %v7057_v48 = vpack.c.bf16 %v6993_v46, %v6993_v46  ;;  %v12399_v9 = vunpack.i.l.s16 %v7190_v62  ;;  %v6938_v4 = vmul.f32 0.2, %v20459_v17  ;;  %v20461_v61 = vld [vmem:[#allocation22_spill] sm:$0xff]  ;;  %8141 = vmatpush.bf16.msra.mxu2 %v13355_v43  ;;  %8226 = vmatpush.bf16.msra.mxu3 %v13381_v36  ;;  %v13354_v46 = vld [vmem:[%s20446_s0 + $0x18] sm:$0xff]  ;;  %v13353_v43 = vld [vmem:[%s20446_s0 + $0x10] sm:$0xff] }
 0x44c   : > { %v12400_v29 = vunpack.i.l.s16 %v7191_v60  ;;  %v6994_v25 = vsel %vm6866_vm6, %v17696_v49, %v6930_v1  ;;  %v7395_v2 = vrot.slane %v12393_v37, 2  ;;  %vm6874_vm3 = vcmp.gt.f32.partialorder %v20459_v17, 0.0 }
 0x44d   : > { %v17733_v8 = vpack.c.bf16 %v6996_v56, %v6996_v56  ;;  %v7065_v18 = vpack.c.bf16 %v7001_v35, %v7001_v35  ;;  %v7675_v34 = vrot.slane %v20460_v53, 5  ;;  %v7399_v39 = vrot.slane %v12396_v3, 7  ;;  %v13380_v3 = vld [vmem:[%s20446_s0 + $0xe8] sm:$0xff] }
 0x44e   : > { %v7402_v19 = vrot.slane %v12398_v0, 5  ;;  %v12401_v55 = vunpack.i.l.s16 %v7192_v23  ;;  %v7058_v40 = vpack.c.bf16 %v6994_v25, %v6994_v25  ;;  %v7180_v26 = vunpack.c.l.b16 %v17728_v30  ;;  %v20462_v0 = vld [vmem:[#allocation44_spill] sm:$0xff] }
 0x44f   : > { %v7185_v58 = vunpack.c.l.b16 %v7057_v48  ;;  %v7188_v28 = vunpack.c.l.b16 %v17733_v8  ;;  %v7404_v59 = vrot.slane %v12399_v9, 4  ;;  %v7406_v54 = vrot.slane %v12400_v29, 3  ;;  %v13383_v9 = vld [vmem:[%s20446_s0 + $0x100] sm:$0xff]  ;;  %8142 = vmatpush.bf16.msra.mxu2 %v13354_v46  ;;  %8227 = vmatpush.bf16.msra.mxu3 %v13380_v3  ;;  %v20474_v46 = vld [vmem:[#allocation36_spill] sm:$0xff] }
 0x450   : > { %v7002_v45 = vsel %vm6874_vm3, %v20459_v17, %v6938_v4  ;;  %v7193_v6 = vunpack.c.l.b16 %v7065_v18  ;;  %v12389_v20 = vunpack.i.l.s16 %v7180_v26  ;;  %vm7662_vm11 = vcmask 1042432   ;;  %v20465_v4 = vld [vmem:[#allocation15_spill] sm:$0xff]  ;;  %8261 = vmatpush.bf16.msra.mxu0 %v13383_v9 }
 0x451   : > { %v12394_v1 = vunpack.i.l.s16 %v7185_v58  ;;  %vm7663_vm0 = vcmask 1046532   ;;  %v7408_v27 = vrot.slane %v12401_v55, 2  ;;  %v12397_v63 = vunpack.i.l.s16 %v7188_v28  ;;  %v20466_v55 = vld [vmem:[#allocation16_spill] sm:$0xff]  ;;  %v13396_v17 = vld [vmem:[%s20530_s26 + $0x48] sm:$0xff] }
 0x452   : > { %v12402_v21 = vunpack.i.l.s16 %v7193_v6  ;;  %v12437_v37 = vrot.slane %v20461_v61, 9  ;;  %v7066_v62 = vpack.c.bf16 %v7002_v45, %v7002_v45  ;;  %v7186_v60 = vunpack.c.l.b16 %v7058_v40  ;;  %vm17761_vm4 = vmor %vm7662_vm11, %vm7663_vm0  ;;  %v13352_v61 = vld [vmem:[%s20446_s0 + $0x8] sm:$0xff] }
 0x453   : > { %v7387_v15 = vrot.slane %v12389_v20, 6  ;;  %v12436_v23 = vrot.slane %v20462_v0, 9  ;;  %v7249_v56 = vpack.c.b16 %v7185_v58, %v7185_v58  ;;  %v7257_v35 = vpack.c.b16 %v7193_v6, %v7193_v6  ;;  %8143 = vmatpush.bf16.msra.mxu2 %v13353_v43  ;;  %v20480_v43 = vld [vmem:[#allocation58_spill] sm:$0xff] }
 0x454   : > { %v7400_v48 = vrot.slane %v12397_v63, 6  ;;  %v12438_v29 = vrot.slane %v20465_v4, 9  ;;  %v7397_v18 = vrot.slane %v12394_v1, 1  ;;  %v7671_v40 = vrot.slane %v20466_v55, 5  ;;  %v13387_v4 = vld [vmem:[%s20530_s26] sm:$0xff] }
 0x455   : > { %v7388_v25 = vsel %vm6471_vm12, %v7387_v15, %v17707_v16  ;;  %v7668_v53 = vsel %vm17761_vm4, %v12436_v23, %v7667_v38  ;;  %v7410_v28 = vrot.slane %v12402_v21, 1  ;;  %v7480_v20 = vshll.u32 %v7249_v56, 16 }
 0x456   : > { %v7390_v26 = vsel %vm6474_vm13, %v17709_v5, %v7388_v25  ;;  %v7401_v58 = vsel %vm6471_vm12, %v7400_v48, %v7399_v39  ;;  %v17778_v45 = vsel %vm17761_vm4, %v12438_v29, %v7675_v34  ;;  %v17783_v38 = vunpack.c.l.b16 %v7668_v53 }
 0x457   : > { %v7392_v16 = vsel %vm6477_vm14, %v17711_v10, %v7390_v26  ;;  %v7403_v44 = vsel %vm6474_vm13, %v7402_v19, %v7401_v58  ;;  %v7741_v6 = vunpack.c.l.b16 %v17778_v45  ;;  %v17791_v34 = vsel %vm17761_vm4, %v12437_v37, %v7671_v40  ;;  %v13378_v37 = vld [vmem:[%s20446_s0 + $0xd8] sm:$0xff]  ;;  %8144 = vmatpush.bf16.msra.mxu2 %v13352_v61  ;;  %v13377_v40 = vld [vmem:[%s20446_s0 + $0xd0] sm:$0xff] }
 0x458   : > { %v7394_v5 = vsel %vm6480_vm15, %v17725_v24, %v7392_v16  ;;  %v7405_v39 = vsel %vm6477_vm14, %v7404_v59, %v7403_v44  ;;  %vm20467_vm6 = vcmask 1046534   ;;  %v7484_v1 = vshll.u32 %v7257_v35, 16  ;;  %v13379_v24 = vld [vmem:[%s20446_s0 + $0xe0] sm:$0xff]  ;;  %v20478_v26 = vld [vmem:[#allocation23_spill] sm:$0xff]  ;;  %v7732_v16 = vpop.permute.xlu1 %7731 }
 0x459   : > { %v7396_v10 = vsel %vm20467_vm6, %v7395_v2, %v7394_v5  ;;  %v7407_v19 = vsel %vm6480_vm15, %v7406_v54, %v7405_v39  ;;  %v17804_v59 = vpack.c.b16 %v7741_v6, %v17783_v38  ;;  %v7194_v36 = vunpack.c.l.b16 %v7066_v62  ;;  %vm20470_vm3 = vmmov %vm20467_vm6  ;;  %8228 = vmatpush.bf16.msra.mxu3 %v13379_v24  ;;  %v20479_v58 = vld [vmem:[#allocation37_spill] sm:$0xff] }
 0x45a   : > { %vm20469_vm2 = vcmask 1047559   ;;  %v7409_v2 = vsel %vm20470_vm3, %v7408_v27, %v7407_v19  ;;  %v7740_v54 = vunpack.c.l.b16 %v17791_v34  ;;  %v7482_v15 = vrot.slane %v7480_v20, 4  ;;  %v13376_v19 = vld [vmem:[%s20446_s0 + $0xc8] sm:$0xff]  ;;  %vm20490_vm6 = vmmov %vm20470_vm3  ;;  %v17924_v34 = vld [vmem:[%s20389_s3] ss:$0 sm:$0xff] }
 0x45b   : > { %20468 = vst [vmem:[#allocation50_spill] sm:$0xff] %v17804_v59  ;;  %v7398_v51 = vsel %vm20469_vm2, %v7397_v18, %v7396_v10  ;;  %vm20471_vm0 = vmmov %vm20469_vm2  ;;  %12588 = vmatmul.msk.bf16.vlgmr.msra.gmra.mxu0 %vm2163_vm10, %v17804_v59  ;;  %v20475_v3 = vrot.slane %v20474_v46, 6  ;;  %v7486_v23 = vrot.slane %v7484_v1, 4  ;;  %v9462_v24 = vmul.f32 0.25, %v20480_v43 }
 0x45c   : > { %v7411_v63 = vsel %vm20471_vm0, %v7410_v28, %v7409_v2  ;;  %v12431_v21 = vpack.c.b16 %v7186_v60, %v7398_v51  ;;  %v17821_v27 = vpack.c.b16 %v7740_v54, %v17783_v38  ;;  %v20473_v60 = vld [vmem:[#allocation41_spill] sm:$0xff]  ;;  %v7716_v28 = vpack.c.b16 %v20479_v58, %v20478_v26 }
 0x45d   : > { %v12432_v62 = vpack.c.b16 %v7194_v36, %v7411_v63  ;;  %v9537_v0 = vsel %vm6471_vm12, %v20475_v3, %v20473_v60  ;;  %8229 = vmatpush.bf16.msra.mxu3 %v13378_v37  ;;  %v13375_v3 = vld [vmem:[%s20446_s0 + $0xc0] sm:$0xff]  ;;  %vm6875_vm2 = vcmp.gt.f32.partialorder %v17620_v7, 0.0  ;;  %vm6877_vm3 = vcmp.gt.f32.partialorder %v17628_v52, 0.0 }
 0x45e   : > { %20472 = vst [vmem:[#allocation49_spill] sm:$0xff] %v17821_v27  ;;  %v7510_v35 = vsel %vm13934_vm8, %v17728_v30, %v12431_v21  ;;  %v17833_v48 = vsel %vm6474_vm13, %v9538_v31, %v9537_v0  ;;  %v7787_v10 = vsel %vm2163_vm10, %v7716_v28, %v7732_v16  ;;  %vm6878_vm0 = vcmp.gt.f32.partialorder %v17637_v11, 0.0 }
 0x45f   : > { %v7511_v9 = vsel %vm13934_vm8, %v17733_v8, %v12432_v62  ;;  %v7521_v29 = vsel %vm17252_vm9, %v7510_v35, %v7482_v15  ;;  %v13351_v8 = vld [vmem:[%s20446_s0] sm:$0xff] }
 0x460   : > { %v7522_v25 = vsel %vm17252_vm9, %v7511_v9, %v7486_v23  ;;  %v17842_v18 = vunpack.c.l.b16 %v7521_v29  ;;  %v7540_v53 = vunpack.c.h.b16 %v7521_v29  ;;  %8145 = vmatpush.bf16.msra.mxu2 %v13351_v8  ;;  %v20481_v35 = vld [vmem:[#allocation54_spill] sm:$0xff]  ;;  %v20482_v9 = vld [vmem:[#allocation20_spill] sm:$0xff] }
 0x461   : > { %v17844_v30 = vunpack.c.l.b16 %v7522_v25  ;;  %v7542_v13 = vunpack.c.h.b16 %v7522_v25  ;;  %8230 = vmatpush.bf16.msra.mxu3 %v13377_v40  ;;  %v9447_v29 = vadd.f32 %v20482_v9, %v20481_v35  ;;  %v9478_v25 = vpack.c.bf16 %v9462_v24, %v9462_v24 }
 0x462   : > { %v7553_v31 = vpack.c.b16 %v17842_v18, %v17842_v18  ;;  %v7554_v55 = vpack.c.b16 %v7540_v53, %v7540_v53 }
 0x463   : > { %v7555_v44 = vpack.c.b16 %v17844_v30, %v17844_v30  ;;  %v7556_v5 = vpack.c.b16 %v7542_v13, %v7542_v13  ;;  %8146 = vmatmul.bf16.vlgmr.msra.gmra.mxu2 %v7787_v10  ;;  %v9463_v8 = vmul.f32 0.25, %v9447_v29  ;;  %v9522_v24 = vunpack.c.l.b16 %v9478_v25 }
 0x464   : > { %v7607_v39 = vshrl.u32 %v7553_v31, 16  ;;  %v7610_v20 = vshll.u32 %v7553_v31, 16  ;;  %v12439_v1 = vrot.slane %v7553_v31, 9  ;;  %v7679_v2 = vrot.slane %v7554_v55, 5 }
 0x465   : > { %v7621_v36 = vshrl.u32 %v7555_v44, 16  ;;  %v7624_v51 = vshll.u32 %v7555_v44, 16  ;;  %v7616_v61 = vshll.u32 %v7554_v55, 16  ;;  %v12440_v37 = vrot.slane %v7555_v44, 9  ;;  %8231 = vmatpush.bf16.msra.mxu3 %v13376_v19  ;;  %v4341_v44 = vpop.f32.mrf.mxu3 }
 0x466   : > { %v7609_v63 = vrot.slane %v7607_v39, 4  ;;  %v7612_v21 = vrot.slane %v7610_v20, 5  ;;  %v7630_v60 = vshll.u32 %v7556_v5, 16  ;;  %v17868_v0 = vsel %vm17761_vm4, %v12439_v1, %v7679_v2  ;;  %v20487_v2 = vld [vmem:[#allocation43_spill] sm:$0xff] }
 0x467   : > { %v7623_v62 = vrot.slane %v7621_v36, 4  ;;  %v7626_v15 = vrot.slane %v7624_v51, 5  ;;  %v7683_v23 = vrot.slane %v7556_v5, 5  ;;  %v7618_v31 = vrot.slane %v7616_v61, 5  ;;  %v13397_v5 = vld [vmem:[%s20530_s26 + $0x50] sm:$0xff] }
 0x468   : > { %v7613_v46 = vor.u32 %v7612_v21, %v7609_v63  ;;  %v7632_v58 = vrot.slane %v7630_v60, 5  ;;  %v7742_v28 = vunpack.c.l.b16 %v17868_v0  ;;  %v9479_v20 = vpack.c.bf16 %v9463_v8, %v9463_v8  ;;  %v20488_v63 = vld [vmem:[#allocation53_spill] sm:$0xff]  ;;  %v4519_v60 = vpop.f32.mrf.mxu1 }
 0x469   : > { %v7627_v53 = vor.u32 %v7626_v15, %v7623_v62  ;;  %v17874_v55 = vsel %vm17761_vm4, %v12440_v37, %v7683_v23  ;;  %8232 = vmatpush.bf16.msra.mxu3 %v13375_v3  ;;  %v9448_v21 = vadd.f32 %v20488_v63, %v20487_v2  ;;  %v4430_v37 = vpop.f32.mrf.mxu0  ;;  %v9540_v62 = vrot.slane %v9522_v24, 4 }
 0x46a   : > { %v7614_v13 = vrot.slane %v7613_v46, 4  ;;  %v20014_v16 = vunpack.c.l.b16 %v17874_v55  ;;  %v9523_v36 = vunpack.c.l.b16 %v9479_v20  ;;  %v20489_v46 = vld [vmem:[#allocation45_spill] sm:$0xff] }
 0x46b   : > { %v7628_v40 = vrot.slane %v7627_v53, 4  ;;  %v9464_v61 = vmul.f32 0.25, %v9448_v21  ;;  %v7717_v3 = vpack.c.b16 %v20489_v46, %v20478_v26  ;;  %v9541_v35 = vsel %vm6477_vm14, %v9540_v62, %v17833_v48  ;;  %v17908_v26 = vld [vmem:[%s20379_s5] ss:$0 sm:$0xff]  ;;  %s20532_s5 = sld [smem:[#allocation69_spill]] }
 0x46c   : > { %v7619_v39 = vsel %vm17292_vm1, %v7614_v13, %v7618_v31  ;;  %v17884_v19 = vpack.c.b16 %v20014_v16, %v7742_v28  ;;  %v9542_v15 = vrot.slane %v9523_v36, 3  ;;  %v7751_v13 = vpack.c.b16 %v17842_v18, %v20489_v46 }
 0x46d   : > { %v7633_v10 = vsel %vm17292_vm1, %v7628_v40, %v7632_v58  ;;  %v17886_v1 = vunpack.c.l.b16 %v7619_v39  ;;  %v9480_v0 = vpack.c.bf16 %v9464_v61, %v9464_v61  ;;  %v4343_v9 = vpop.f32.mrf.mxu3  ;;  %v4342_v31 = vadd.f32 %v17908_v26, %v4341_v44  ;;  %v6638_v44 = vpop.f32.mrf.mxu2 }
 0x46e   : > { %20484 = vst [vmem:[#allocation51_spill] sm:$0xff] %v17884_v19  ;;  %v17888_v43 = vunpack.c.l.b16 %v7633_v10  ;;  %12589 = vmatmul.msk.bf16.gmra.mxu0 %vm2163_vm10, %v17884_v19  ;;  %v9543_v25 = vsel %vm6480_vm15, %v9542_v15, %v9541_v35  ;;  %v7768_v10 = vpack.c.b16 %v17783_v38, %v7740_v54  ;;  %v4344_v36 = vadd.f32 %v17908_v26, %v4343_v9 }
 0x46f   : > { %20485 = vst [vmem:[#allocation55_spill] sm:$0xff] %v17886_v1  ;;  %v9524_v53 = vunpack.c.l.b16 %v9480_v0  ;;  %v4431_v8 = vadd.f32 %v4430_v37, %v4342_v31  ;;  %v17927_v38 = vadd.f32 %v17924_v34, %v6638_v44  ;;  %v17931_v46 = vpack.c.b16 %v7742_v28, %v7741_v6 }
 0x470   : > { %20486 = vst [vmem:[#allocation29_spill] sm:$0xff] %v17888_v43  ;;  %v7729_v51 = vpack.c.b16 %v17888_v43, %v17886_v1  ;;  %v4521_v39 = vpop.f32.mrf.mxu1  ;;  %v4641_v31 = vrot.slane %v17596_v33, 4 }
 0x471   : > { %v9544_v48 = vrot.slane %v9524_v53, 2  ;;  %v4432_v40 = vpop.f32.mrf.mxu0  ;;  %v4520_v24 = vadd.f32 %v4519_v60, %v4431_v8  ;;  %v6699_v43 = vrot.slane %v17927_v38, 1 }
 0x472   : > { %7735 = vrot.lane.b32.xlu0 %v7729_v51, %s20260_s2  ;;  %v4433_v15 = vadd.f32 %v4432_v40, %v4344_v36 }
 0x473   : > { %v17913_v58 = vsel %vm20490_vm6, %v9544_v48, %v9543_v25  ;;  %v4643_v2 = vrot.slane %v4520_v24, 2  ;;  %v4644_v63 = vrot.slane %v4520_v24, 4  ;;  %v4645_v21 = vrot.slane %v4520_v24, 6 }
 0x474   : > { %v7734_v23 = vpop.permute.xlu2 %7733  ;;  %20491 = vst [vmem:[#allocation42_spill] sm:$0xff] %v17913_v58  ;;  %v12192_v54 = vrot.slane %v4520_v24, 9  ;;  %v17935_v8 = vadd.f32 %v4521_v39, %v4433_v15  ;;  %vm6876_vm6 = vcmp.gt.f32.partialorder %v17624_v32, 0.0 }
 0x475   : > { %v7791_v29 = vsel %vm2163_vm10, %v7717_v3, %v7734_v23  ;;  %v4346_v20 = vpop.f32.mrf.mxu3  ;;  %v12193_v3 = vrot.slane %v4643_v2, 9  ;;  %v12194_v0 = vrot.slane %v4644_v63, 9  ;;  %v12195_v23 = vrot.slane %v4645_v21, 9 }
 0x476   : > { %8233 = vmatmul.bf16.vlgmr.msra.gmra.mxu3 %v7791_v29  ;;  %8151 = vmatmul.bf16.gmra.mxu2 %v7791_v29  ;;  %v4347_v51 = vadd.f32 %v17908_v26, %v4346_v20  ;;  %v5243_v48 = vadd.f32 %v12192_v54, %v4520_v24  ;;  %v4642_v24 = vrot.slane %v17596_v33, 6  ;;  %v4646_v39 = vrot.slane %v17935_v8, 2 }
 0x477   : > { %v5244_v28 = vadd.f32 %v12193_v3, %v4643_v2  ;;  %v5246_v36 = vadd.f32 %v12195_v23, %v4645_v21  ;;  %v4635_v21 = vrot.slane %v17581_v41, 4  ;;  %v4636_v3 = vrot.slane %v17581_v41, 6 }
 0x478   : > { %v4524_v37 = vpop.f32.mrf.mxu1  ;;  %v12191_v33 = vrot.slane %v4642_v24, 9 }
 0x47a   : > { %7756 = vrot.lane.b32.xlu0 %v7751_v13, %s20260_s2  ;;  %v6669_v13 = vrot.slane %v17927_v38, 2 }
 0x47c   : > { %v6700_v15 = vrot.slane %v6669_v13, 1 }
 0x47d   : > { %v4348_v35 = vpop.f32.mrf.mxu3 }
 0x47e   : > { %v4349_v44 = vadd.f32 %v17908_v26, %v4348_v35  ;;  %v12190_v35 = vrot.slane %v4641_v31, 9 }
 0x480   : > { %v4526_v19 = vpop.f32.mrf.mxu1 }
 0x482   : > { %7772 = vrot.lane.b32.xlu0 %v7768_v10, %s20260_s2  ;;  %v5245_v10 = vadd.f32 %v12194_v0, %v4644_v63 }
 0x484   : > { %v4435_v61 = vpop.f32.mrf.mxu0 }
 0x485   : > { %v4436_v62 = vadd.f32 %v4435_v61, %v4347_v51 }
 0x487   : > { %v4525_v60 = vadd.f32 %v4524_v37, %v4436_v62 }
 0x489   : > { %v4649_v9 = vrot.slane %v4525_v60, 2  ;;  %v4650_v29 = vrot.slane %v4525_v60, 4  ;;  %v4651_v25 = vrot.slane %v4525_v60, 6  ;;  %v12200_v53 = vrot.slane %v4525_v60, 9 }
 0x48b   : > { %v12201_v40 = vrot.slane %v4649_v9, 9  ;;  %v12202_v20 = vrot.slane %v4650_v29, 9  ;;  %v12203_v45 = vrot.slane %v4651_v25, 9  ;;  %v5251_v6 = vadd.f32 %v12200_v53, %v4525_v60 }
 0x48c   : > { %v4437_v51 = vpop.f32.mrf.mxu0  ;;  %v12196_v53 = vrot.slane %v17935_v8, 9 }
 0x48d   : > { %v5252_v61 = vadd.f32 %v12201_v40, %v4649_v9  ;;  %v5253_v37 = vadd.f32 %v12202_v20, %v4650_v29  ;;  %v5254_v62 = vadd.f32 %v12203_v45, %v4651_v25  ;;  %v5323_v16 = vadd.f32 %v5251_v6, %v5243_v48 }
 0x48e   : > { %v4438_v54 = vadd.f32 %v4437_v51, %v4349_v44  ;;  %v12197_v48 = vrot.slane %v4646_v39, 9  ;;  %v5241_v44 = vadd.f32 %v12190_v35, %v4641_v31  ;;  %v5242_v51 = vadd.f32 %v12191_v33, %v4642_v24 }
 0x48f   : > { %v5324_v60 = vadd.f32 %v5252_v61, %v5244_v28  ;;  %v5325_v2 = vadd.f32 %v5253_v37, %v5245_v10  ;;  %v5326_v63 = vadd.f32 %v5254_v62, %v5246_v36  ;;  %v5387_v0 = vmul.f32 0.25, %v5323_v16 }
 0x490   : > { %v17943_v23 = vadd.f32 %v4526_v19, %v4438_v54  ;;  %v6670_v28 = vrot.slane %v17927_v38, 4  ;;  %v12182_v10 = vrot.slane %v4635_v21, 9  ;;  %v12183_v36 = vrot.slane %v4636_v3, 9 }
 0x491   : > { %v5388_v9 = vmul.f32 0.25, %v5324_v60  ;;  %v5389_v29 = vmul.f32 0.25, %v5325_v2  ;;  %v5390_v25 = vmul.f32 0.25, %v5326_v63  ;;  %v17955_v16 = vadd.f32 %v17927_v38, %v5387_v0 }
 0x492   : > { %v4652_v40 = vrot.slane %v17943_v23, 2  ;;  %v12204_v41 = vrot.slane %v17943_v23, 9  ;;  %v5247_v61 = vadd.f32 %v12196_v53, %v17935_v8  ;;  %v5248_v37 = vadd.f32 %v12197_v48, %v4646_v39 }
 0x493   : > { %v17947_v20 = vadd.f32 %v6699_v43, %v5388_v9  ;;  %v17949_v45 = vadd.f32 %v6669_v13, %v5389_v29  ;;  %v17951_v6 = vadd.f32 %v6700_v15, %v5390_v25  ;;  %v5233_v15 = vadd.f32 %v12182_v10, %v4635_v21 }
 0x494   : > { %v12205_v19 = vrot.slane %v4652_v40, 9  ;;  %v5255_v62 = vadd.f32 %v12204_v41, %v17943_v23  ;;  %v5234_v60 = vadd.f32 %v12183_v36, %v4636_v3  ;;  %v6701_v31 = vrot.slane %v6670_v28, 1 }
 0x495   : > { %v17960_v43 = vadd.f32 %v17947_v20, %v17955_v16  ;;  %v17964_v13 = vadd.f32 %v17951_v6, %v17949_v45  ;;  %v5321_v24 = vadd.f32 %v5241_v44, %v5233_v15  ;;  %v6668_v29 = vrot.slane %v17499_v50, 6 }
 0x496   : > { %v5256_v54 = vadd.f32 %v12205_v19, %v4652_v40  ;;  %v5327_v2 = vadd.f32 %v5255_v62, %v5247_v61  ;;  %v5322_v0 = vadd.f32 %v5242_v51, %v5234_v60  ;;  %v6939_v39 = vmul.f32 0.2, %v17620_v7  ;;  %v6640_v61 = vpop.f32.mrf.mxu2 }
 0x497   : > { %20492 = vst [vmem:[#allocation33_spill] sm:$0xff] %v17964_v13  ;;  %v6941_v21 = vmul.f32 0.2, %v17628_v52  ;;  %v6942_v3 = vmul.f32 0.2, %v17637_v11  ;;  %v5385_v53 = vmul.f32 0.25, %v5321_v24 }
 0x498   : > { %v5328_v63 = vadd.f32 %v5256_v54, %v5248_v37  ;;  %v5391_v35 = vmul.f32 0.25, %v5327_v2  ;;  %v5386_v48 = vmul.f32 0.25, %v5322_v0  ;;  %v6698_v40 = vrot.slane %v6668_v29, 1 }
 0x499   : > { %v7003_v41 = vsel %vm6875_vm2, %v17620_v7, %v6939_v39  ;;  %v7005_v19 = vsel %vm6877_vm3, %v17628_v52, %v6941_v21  ;;  %v17986_v10 = vadd.f32 %v6668_v29, %v5385_v53  ;;  %v9467_v44 = vmul.f32 0.25, %v17658_v47 }
 0x49a   : > { %v5392_v9 = vmul.f32 0.25, %v5328_v63  ;;  %v17973_v33 = vadd.f32 %v6670_v28, %v5391_v35  ;;  %v7006_v28 = vsel %vm6878_vm0, %v17637_v11, %v6942_v3  ;;  %v17988_v36 = vadd.f32 %v6698_v40, %v5386_v48  ;;  %v20494_v35 = vld [vmem:[#allocation57_spill] sm:$0xff] }
 0x49b   : > { %v6940_v51 = vmul.f32 0.2, %v17624_v32  ;;  %v7067_v37 = vpack.c.bf16 %v7003_v41, %v7003_v41  ;;  %v7069_v62 = vpack.c.bf16 %v7005_v19, %v7005_v19  ;;  %v7070_v54 = vpack.c.bf16 %v7006_v28, %v7006_v28 }
 0x49c   : > { %v17969_v25 = vadd.f32 %v6701_v31, %v5392_v9  ;;  %v9433_v7 = vadd.f32 %v17988_v36, %v17986_v10  ;;  %v9466_v52 = vmul.f32 0.25, %v17654_v57  ;;  %v9483_v11 = vpack.c.bf16 %v9467_v44, %v9467_v44 }
 0x49d   : > { %v7004_v15 = vsel %vm6876_vm6, %v17624_v32, %v6940_v51  ;;  %v20017_v60 = vrot.slane %v17927_v38, 6  ;;  %v17999_v47 = vadd.f32 %v17924_v34, %v6640_v61  ;;  %v7195_v2 = vunpack.c.l.b16 %v7067_v37 }
 0x49e   : > { %v17981_v50 = vadd.f32 %v17969_v25, %v17973_v33  ;;  %v7197_v63 = vunpack.c.l.b16 %v7069_v62  ;;  %v18001_v31 = vunpack.c.l.b16 %v7070_v54  ;;  %v6943_v24 = vmul.f32 0.2, %v17684_v14 }
 0x49f   : > { %vm6879_vm2 = vcmp.gt.f32.partialorder %v17684_v14, 0.0  ;;  %v6944_v0 = vmul.f32 0.2, %v17678_v22  ;;  %v9453_v57 = vadd.f32 %v9433_v7, %v20494_v35  ;;  %v18007_v9 = vpack.c.bf16 %v7004_v15, %v7004_v15 }
 0x4a0   : > { %20493 = vst [vmem:[#allocation52_spill] sm:$0xff] %v17981_v50  ;;  %v9482_v32 = vpack.c.bf16 %v9466_v52, %v9466_v52  ;;  %v9527_v29 = vunpack.c.l.b16 %v9483_v11  ;;  %vm6880_vm3 = vcmp.gt.f32.partialorder %v17678_v22, 0.0  ;;  %v9468_v34 = vmul.f32 0.25, %v17702_v42  ;;  %v4351_v11 = vpop.f32.mrf.mxu3 }
 0x4a1   : > { %v18013_v39 = vrot.slane %v20017_v60, 1  ;;  %v12404_v48 = vunpack.i.l.s16 %v7195_v2  ;;  %v12406_v40 = vunpack.i.l.s16 %v7197_v63  ;;  %v7007_v19 = vsel %vm6879_vm2, %v17684_v14, %v6943_v24  ;;  %v4529_v2 = vpop.f32.mrf.mxu1 }
 0x4a2   : > { %v7008_v28 = vsel %vm6880_vm3, %v17678_v22, %v6944_v0  ;;  %v9469_v44 = vmul.f32 0.25, %v9453_v57  ;;  %v4653_v42 = vrot.slane %v17943_v23, 4  ;;  %v7196_v51 = vunpack.c.l.b16 %v18007_v9  ;;  %v4440_v15 = vpop.f32.mrf.mxu0 }
 0x4a3   : > { %v9526_v61 = vunpack.c.l.b16 %v9482_v32  ;;  %v9548_v37 = vrot.slane %v9527_v29, 7  ;;  %v9484_v62 = vpack.c.bf16 %v9468_v34, %v9468_v34  ;;  %v6947_v54 = vmul.f32 0.2, %v17955_v16 }
 0x4a4   : > { %v7071_v7 = vpack.c.bf16 %v7007_v19, %v7007_v19  ;;  %v4647_v52 = vrot.slane %v17935_v8, 4  ;;  %vm6883_vm0 = vcmp.gt.f32.partialorder %v17955_v16, 0.0  ;;  %v6945_v14 = vmul.f32 0.2, %v17986_v10 }
 0x4a5   : > { %v7072_v22 = vpack.c.bf16 %v7008_v28, %v7008_v28  ;;  %v6949_v63 = vmul.f32 0.2, %v17949_v45  ;;  %v4654_v24 = vrot.slane %v17943_v23, 6  ;;  %vm6881_vm6 = vcmp.gt.f32.partialorder %v17986_v10, 0.0 }
 0x4a6   : > { %vm6885_vm2 = vcmp.gt.f32.partialorder %v17949_v45, 0.0  ;;  %v12206_v0 = vrot.slane %v4653_v42, 9  ;;  %v12405_v35 = vunpack.i.l.s16 %v7196_v51  ;;  %v9485_v57 = vpack.c.bf16 %v9469_v44, %v9469_v44 }
 0x4a7   : > { %v9528_v32 = vunpack.c.l.b16 %v9484_v62  ;;  %v4648_v29 = vrot.slane %v17935_v8, 6  ;;  %v6950_v34 = vmul.f32 0.2, %v17951_v6  ;;  %v7011_v19 = vsel %vm6883_vm0, %v17955_v16, %v6947_v54 }
 0x4a8   : > { %v7199_v28 = vunpack.c.l.b16 %v7071_v7  ;;  %v12198_v60 = vrot.slane %v4647_v52, 9  ;;  %vm6886_vm3 = vcmp.gt.f32.partialorder %v17951_v6, 0.0  ;;  %v7009_v23 = vsel %vm6881_vm6, %v17986_v10, %v6945_v14 }
 0x4a9   : > { %v7412_v53 = vrot.slane %v12404_v48, 7  ;;  %v7013_v3 = vsel %vm6885_vm2, %v17949_v45, %v6949_v63  ;;  %v12207_v51 = vrot.slane %v4654_v24, 9  ;;  %v9529_v44 = vunpack.c.l.b16 %v9485_v57 }
 0x4aa   : > { %v7075_v62 = vpack.c.bf16 %v7011_v19, %v7011_v19  ;;  %v5257_v21 = vadd.f32 %v12206_v0, %v4653_v42  ;;  %v7413_v8 = vrot.slane %v12405_v35, 6  ;;  %v9549_v41 = vsel %vm20022_vm7, %v9548_v37, %v9526_v61  ;;  %v4353_v0 = vpop.f32.mrf.mxu3  ;;  %v4442_v35 = vpop.f32.mrf.mxu0 }
 0x4ab   : > { %v9550_v1 = vrot.slane %v9528_v32, 6  ;;  %v12199_v59 = vrot.slane %v4648_v29, 9  ;;  %v7014_v16 = vsel %vm6886_vm3, %v17951_v6, %v6950_v34  ;;  %v7073_v54 = vpack.c.bf16 %v7009_v23, %v7009_v23  ;;  %v18043_v37 = vpop.f32.mrf.mxu1 }
 0x4ac   : > { %v7415_v7 = vrot.slane %v12406_v40, 5  ;;  %v7200_v27 = vunpack.c.l.b16 %v7072_v22  ;;  %v12408_v58 = vunpack.i.l.s16 %v7199_v28  ;;  %v5249_v50 = vadd.f32 %v12198_v60, %v4647_v52 }
 0x4ad   : > { %v7077_v10 = vpack.c.bf16 %v7013_v3, %v7013_v3  ;;  %v5258_v48 = vadd.f32 %v12207_v51, %v4654_v24  ;;  %v4352_v45 = vadd.f32 %v17908_v26, %v4351_v11  ;;  %v9552_v14 = vrot.slane %v9529_v44, 5 }
 0x4ae   : > { %v7078_v63 = vpack.c.bf16 %v7014_v16, %v7014_v16  ;;  %v7203_v57 = vunpack.c.l.b16 %v7075_v62  ;;  %v5329_v42 = vadd.f32 %v5257_v21, %v5249_v50  ;;  %v7414_v61 = vsel %vm6471_vm12, %v7413_v8, %v7412_v53 }
 0x4af   : > { %v5250_v6 = vadd.f32 %v12199_v59, %v4648_v29  ;;  %v4441_v32 = vadd.f32 %v4440_v15, %v4352_v45  ;;  %v18045_v40 = vunpack.c.l.b16 %v7073_v54  ;;  %v9551_v60 = vsel %vm6471_vm12, %v9550_v1, %v9549_v41 }
 0x4b0   : > { %v20495_v3 = vunpack.i.l.s16 %v18001_v31  ;;  %v6946_v11 = vmul.f32 0.2, %v17988_v36  ;;  %v12409_v22 = vunpack.i.l.s16 %v7200_v27  ;;  %v18052_v50 = vsel %vm6474_vm13, %v9552_v14, %v9551_v60 }
 0x4b1   : > { %20496 = vst [vmem:[#allocation39_spill] sm:$0xff] %v18052_v50  ;;  %v7419_v21 = vrot.slane %v12408_v58, 3  ;;  %v7205_v24 = vunpack.c.l.b16 %v7077_v10  ;;  %v5330_v53 = vadd.f32 %v5258_v48, %v5250_v6  ;;  %v7416_v34 = vsel %vm6474_vm13, %v7415_v7, %v7414_v61 }
 0x4b2   : > { %v7417_v52 = vrot.slane %v20495_v3, 4  ;;  %v18055_v59 = vunpack.c.l.b16 %v7078_v63  ;;  %v12412_v15 = vunpack.i.l.s16 %v7203_v57  ;;  %v5393_v29 = vmul.f32 0.25, %v5329_v42  ;;  %v4356_v63 = vpop.f32.mrf.mxu3 }
 0x4b3   : > { %vm6882_vm0 = vcmp.gt.f32.partialorder %v17988_v36, 0.0  ;;  %v20497_v31 = vrot.slane %v17999_v47, 2  ;;  %v4530_v27 = vadd.f32 %v4529_v2, %v4441_v32  ;;  %v12410_v19 = vunpack.i.l.s16 %v18045_v40 }
 0x4b4   : > { %v20498_v58 = vrot.slane %v17999_v47, 4  ;;  %v20499_v23 = vrot.slane %v17999_v47, 6  ;;  %v7418_v44 = vsel %vm6477_vm14, %v7417_v52, %v7416_v34  ;;  %v7421_v62 = vrot.slane %v12409_v22, 2  ;;  %v4445_v60 = vpop.f32.mrf.mxu0 }
 0x4b5   : > { %v18061_v41 = vrot.slane %v20497_v31, 1  ;;  %v18074_v8 = vmul.f32 0.2, %v17947_v20  ;;  %v12414_v16 = vunpack.i.l.s16 %v7205_v24  ;;  %v7010_v54 = vsel %vm6882_vm0, %v17988_v36, %v6946_v11  ;;  %v4534_v11 = vpop.f32.mrf.mxu1 }
 0x4b6   : > { %v18066_v28 = vrot.slane %v20498_v58, 1  ;;  %v18070_v51 = vrot.slane %v20499_v23, 1  ;;  %v7420_v2 = vsel %vm6480_vm15, %v7419_v21, %v7418_v44  ;;  %v18079_v10 = vrot.slane %v12412_v15, 7 }
 0x4b7   : > { %v18081_v48 = vmul.f32 0.25, %v5330_v53  ;;  %v20500_v45 = vrot.slane %v17927_v38, 6  ;;  %v4354_v57 = vadd.f32 %v17908_v26, %v4353_v0  ;;  %v4655_v42 = vrot.slane %v4530_v27, 2 }
 0x4b8   : > { %v4357_v61 = vadd.f32 %v17908_v26, %v4356_v63  ;;  %v7423_v6 = vrot.slane %v12410_v19, 1  ;;  %v4656_v36 = vrot.slane %v4530_v27, 4  ;;  %v4657_v32 = vrot.slane %v4530_v27, 6 }
 0x4b9   : > { %v18085_v14 = vadd.f32 %v20500_v45, %v5393_v29  ;;  %v7074_v3 = vpack.c.bf16 %v7010_v54, %v7010_v54  ;;  %vm20501_vm6 = vcmask 1046534   ;;  %v18090_v22 = vrot.slane %v12414_v16, 5 }
 0x4ba   : > { %v7422_v52 = vsel %vm20501_vm6, %v7421_v62, %v7420_v2  ;;  %vm6887_vm2 = vcmp.gt.f32.partialorder %v17973_v33, 0.0  ;;  %vm6888_vm3 = vcmp.gt.f32.partialorder %v17969_v25, 0.0  ;;  %v4446_v38 = vadd.f32 %v4445_v60, %v4357_v61 }
 0x4bb   : > { %v6951_v0 = vmul.f32 0.2, %v17973_v33  ;;  %v12208_v21 = vrot.slane %v4530_v27, 9  ;;  %v4443_v24 = vadd.f32 %v4442_v35, %v4354_v57  ;;  %v7265_v53 = vpack.c.b16 %v18045_v40, %v18045_v40  ;;  %v4358_v40 = vpop.f32.mrf.mxu3 }
 0x4bc   : > { %v6952_v34 = vmul.f32 0.2, %v17969_v25  ;;  %v18099_v15 = vmul.f32 0.2, %v18085_v14  ;;  %v4535_v29 = vadd.f32 %v4534_v11, %v4446_v38  ;;  %vm20502_vm0 = vcmask 1047559   ;;  %v4447_v1 = vpop.f32.mrf.mxu0 }
 0x4bd   : > { %v7424_v31 = vsel %vm20502_vm0, %v7423_v6, %v7422_v52  ;;  %v12209_v19 = vrot.slane %v4655_v42, 9  ;;  %v12210_v58 = vrot.slane %v4656_v36, 9  ;;  %v12211_v23 = vrot.slane %v4657_v32, 9 }
 0x4be   : > { %v7202_v44 = vunpack.c.l.b16 %v7074_v3  ;;  %v4661_v62 = vrot.slane %v4535_v29, 2  ;;  %v4662_v16 = vrot.slane %v4535_v29, 4  ;;  %v4663_v54 = vrot.slane %v4535_v29, 6 }
 0x4bf   : > { %v12216_v2 = vrot.slane %v4535_v29, 9  ;;  %v5259_v35 = vadd.f32 %v12208_v21, %v4530_v27  ;;  %v18103_v45 = vadd.f32 %v18043_v37, %v4443_v24  ;;  %v7488_v57 = vshll.u32 %v7265_v53, 16 }
 0x4c0   : > { %v12433_v63 = vpack.c.b16 %v7202_v44, %v7424_v31  ;;  %v12217_v61 = vrot.slane %v4661_v62, 9  ;;  %v12218_v60 = vrot.slane %v4662_v16, 9  ;;  %v12219_v11 = vrot.slane %v4663_v54, 9 }
 0x4c1   : > { %v5267_v38 = vadd.f32 %v12216_v2, %v4535_v29  ;;  %v5260_v6 = vadd.f32 %v12209_v19, %v4655_v42  ;;  %v5261_v52 = vadd.f32 %v12210_v58, %v4656_v36  ;;  %v5262_v7 = vadd.f32 %v12211_v23, %v4657_v32  ;;  %v4536_v36 = vpop.f32.mrf.mxu1 }
 0x4c2   : > { %v4359_v3 = vadd.f32 %v17908_v26, %v4358_v40  ;;  %v5268_v50 = vadd.f32 %v12217_v61, %v4661_v62  ;;  %v5269_v13 = vadd.f32 %v12218_v60, %v4662_v16  ;;  %v5270_v49 = vadd.f32 %v12219_v11, %v4663_v54 }
 0x4c3   : > { %v5331_v27 = vadd.f32 %v5267_v38, %v5259_v35  ;;  %v7015_v37 = vsel %vm6887_vm2, %v17973_v33, %v6951_v0  ;;  %v4658_v21 = vrot.slane %v18103_v45, 2  ;;  %v7512_v42 = vsel %vm13934_vm8, %v18007_v9, %v12433_v63 }
 0x4c4   : > { %v4448_v24 = vadd.f32 %v4447_v1, %v4359_v3  ;;  %v5332_v32 = vadd.f32 %v5268_v50, %v5260_v6  ;;  %v5333_v53 = vadd.f32 %v5269_v13, %v5261_v52  ;;  %v5334_v26 = vadd.f32 %v5270_v49, %v5262_v7 }
 0x4c5   : > { %v7490_v29 = vrot.slane %v7488_v57, 4  ;;  %v7016_v31 = vsel %vm6888_vm3, %v17969_v25, %v6952_v34  ;;  %v12212_v19 = vrot.slane %v18103_v45, 9  ;;  %v5395_v58 = vmul.f32 0.25, %v5331_v27 }
 0x4c6   : > { %v18117_v33 = vadd.f32 %v4536_v36, %v4448_v24  ;;  %v5396_v0 = vmul.f32 0.25, %v5332_v32  ;;  %v5397_v1 = vmul.f32 0.25, %v5333_v53  ;;  %v5398_v23 = vmul.f32 0.25, %v5334_v26 }
 0x4c7   : > { %v7523_v9 = vsel %vm17252_vm9, %v7512_v42, %v7490_v29  ;;  %v12213_v44 = vrot.slane %v4658_v21, 9  ;;  %vm6884_vm6 = vcmp.gt.f32.partialorder %v17947_v20, 0.0  ;;  %v20503_v25 = vrot.slane %v17999_v47, 1 }
 0x4c8   : > { %v4664_v13 = vrot.slane %v18117_v33, 2  ;;  %v12220_v49 = vrot.slane %v18117_v33, 9  ;;  %v20504_v7 = vrot.slane %v17999_v47, 2  ;;  %v18133_v62 = vadd.f32 %v18061_v41, %v5398_v23 }
 0x4c9   : > { %v18126_v50 = vadd.f32 %v20503_v25, %v5396_v0  ;;  %vm6889_vm2 = vcmp.gt.f32.partialorder %v18085_v14, 0.0  ;;  %v18138_v16 = vadd.f32 %v18013_v39, %v18081_v48  ;;  %v18141_v54 = vadd.f32 %v17999_v47, %v5395_v58 }
 0x4ca   : > { %v18130_v34 = vadd.f32 %v20504_v7, %v5397_v1  ;;  %v12221_v2 = vrot.slane %v4664_v13, 9  ;;  %v18143_v35 = vunpack.c.l.b16 %v7523_v9  ;;  %v7079_v40 = vpack.c.bf16 %v7015_v37, %v7015_v37 }
 0x4cb   : > { %v7080_v63 = vpack.c.bf16 %v7016_v31, %v7016_v31  ;;  %v5263_v57 = vadd.f32 %v12212_v19, %v18103_v45  ;;  %v7012_v41 = vsel %vm6884_vm6, %v17947_v20, %v18074_v8  ;;  %v9438_v61 = vadd.f32 %v18126_v50, %v18141_v54 }
 0x4cc   : > { %v18152_v39 = vadd.f32 %v18133_v62, %v18130_v34  ;;  %v5271_v48 = vadd.f32 %v12220_v49, %v18117_v33  ;;  %v7017_v60 = vsel %vm6889_vm2, %v18085_v14, %v18099_v15  ;;  %v5264_v11 = vadd.f32 %v12213_v44, %v4658_v21 }
 0x4cd   : > { %v4665_v38 = vrot.slane %v18117_v33, 4  ;;  %v5272_v6 = vadd.f32 %v12221_v2, %v4664_v13  ;;  %v7544_v52 = vunpack.c.h.b16 %v7523_v9  ;;  %v20505_v3 = vunpack.i.l.s16 %v18055_v59 }
 0x4ce   : > { %v18163_v8 = vadd.f32 %v9438_v61, %v17960_v43  ;;  %v18165_v27 = vpack.c.bf16 %v7012_v41, %v7012_v41  ;;  %v7557_v37 = vpack.c.b16 %v18143_v35, %v18143_v35  ;;  %v4659_v24 = vrot.slane %v18103_v45, 4 }
 0x4cf   : > { %v18160_v20 = vrot.slane %v20505_v3, 4  ;;  %v5335_v15 = vadd.f32 %v5271_v48, %v5263_v57  ;;  %v5336_v21 = vadd.f32 %v5272_v6, %v5264_v11  ;;  %v7081_v42 = vpack.c.bf16 %v7017_v60, %v7017_v60 }
 0x4d0   : > { %vm6890_vm3 = vcmp.gt.f32.partialorder %v18138_v16, 0.0  ;;  %v7207_v36 = vunpack.c.l.b16 %v7079_v40  ;;  %v7208_v32 = vunpack.c.l.b16 %v7080_v63  ;;  %v4660_v59 = vrot.slane %v18103_v45, 6 }
 0x4d1   : > { %v12222_v53 = vrot.slane %v4665_v38, 9  ;;  %v5399_v26 = vmul.f32 0.25, %v5335_v15  ;;  %v5400_v43 = vmul.f32 0.25, %v5336_v21  ;;  %v18172_v29 = vpack.c.b16 %v7544_v52, %v7544_v52 }
 0x4d2   : > { %v6954_v31 = vmul.f32 0.2, %v18138_v16  ;;  %v7204_v19 = vunpack.c.l.b16 %v18165_v27  ;;  %v7635_v58 = vshrl.u32 %v7557_v37, 16  ;;  %v7638_v0 = vshll.u32 %v7557_v37, 16 }
 0x4d3   : > { %v12214_v1 = vrot.slane %v4659_v24, 9  ;;  %v4666_v23 = vrot.slane %v18117_v33, 6  ;;  %v18178_v9 = vadd.f32 %v18066_v28, %v5400_v43  ;;  %v7209_v44 = vunpack.c.l.b16 %v7081_v42 }
 0x4d4   : > { %v12416_v13 = vunpack.i.l.s16 %v7207_v36  ;;  %v12417_v45 = vunpack.i.l.s16 %v7208_v32  ;;  %v12215_v49 = vrot.slane %v4660_v59, 9  ;;  %v20506_v25 = vrot.slane %v17999_v47, 4 }
 0x4d5   : > { %v7718_v2 = vpack.c.b16 %v17844_v30, %v17842_v18  ;;  %v5273_v40 = vadd.f32 %v12222_v53, %v4665_v38  ;;  %v12441_v63 = vrot.slane %v7557_v37, 9  ;;  %v7687_v57 = vrot.slane %v18172_v29, 5 }
 0x4d6   : > { %v6831_v7 = vadd.f32 %v20506_v25, %v5399_v26  ;;  %v12413_v33 = vunpack.i.l.s16 %v7204_v19  ;;  %v7637_v28 = vrot.slane %v7635_v58, 4  ;;  %v7640_v61 = vrot.slane %v7638_v0, 5 }
 0x4d7   : > { %v5265_v48 = vadd.f32 %v12214_v1, %v4659_v24  ;;  %v12223_v60 = vrot.slane %v4666_v23, 9  ;;  %v7018_v11 = vsel %vm6890_vm3, %v18138_v16, %v6954_v31  ;;  %v12418_v6 = vunpack.i.l.s16 %v7209_v44 }
 0x4d8   : > { %v18186_v41 = vadd.f32 %v18178_v9, %v6831_v7  ;;  %v7432_v52 = vrot.slane %v12416_v13, 3  ;;  %v7434_v3 = vrot.slane %v12417_v45, 2  ;;  %v5266_v18 = vadd.f32 %v12215_v49, %v4660_v59 }
 0x4d9   : > { %v7426_v37 = vrot.slane %v12413_v33, 6  ;;  %v5337_v21 = vadd.f32 %v5273_v40, %v5265_v48  ;;  %v7273_v42 = vpack.c.b16 %v7209_v44, %v7209_v44  ;;  %v18194_v36 = vsel %vm17761_vm4, %v12441_v63, %v7687_v57 }
 0x4da   : > { %v7082_v24 = vpack.c.bf16 %v7018_v11, %v7018_v11  ;;  %v7641_v53 = vor.u32 %v7640_v61, %v7637_v28  ;;  %v7644_v26 = vshll.u32 %v18172_v29, 16  ;;  %vm6891_vm0 = vcmp.gt.f32.partialorder %v18141_v54, 0.0 }
 0x4db   : > { %v7427_v32 = vsel %vm6471_vm12, %v7426_v37, %v18079_v10  ;;  %v5274_v59 = vadd.f32 %v12223_v60, %v4666_v23  ;;  %v7436_v31 = vrot.slane %v12418_v6, 1  ;;  %vm6893_vm6 = vcmp.gt.f32.partialorder %v18130_v34, 0.0 }
 0x4dc   : > { %v7429_v43 = vsel %vm6474_vm13, %v18090_v22, %v7427_v32  ;;  %v6955_v19 = vmul.f32 0.2, %v18141_v54  ;;  %v6957_v58 = vmul.f32 0.2, %v18130_v34  ;;  %v6958_v10 = vmul.f32 0.2, %v18133_v62 }
 0x4dd   : > { %v7431_v0 = vsel %vm6477_vm14, %v18160_v20, %v7429_v43  ;;  %v5401_v1 = vmul.f32 0.25, %v5337_v21  ;;  %v7492_v44 = vshll.u32 %v7273_v42, 16  ;;  %vm6894_vm2 = vcmp.gt.f32.partialorder %v18133_v62, 0.0 }
 0x4de   : > { %v7433_v29 = vsel %vm6480_vm15, %v7432_v52, %v7431_v0  ;;  %v6959_v23 = vmul.f32 0.2, %v6831_v7  ;;  %v7210_v22 = vunpack.c.l.b16 %v7082_v24  ;;  %vm20507_vm3 = vcmask 1046534  }
 0x4df   : > { %v7435_v13 = vsel %vm20507_vm3, %v7434_v3, %v7433_v29  ;;  %v5338_v45 = vadd.f32 %v5274_v59, %v5266_v18  ;;  %vm6895_vm5 = vcmp.gt.f32.partialorder %v6831_v7, 0.0  ;;  %vm20508_vm7 = vcmask 1047559  }
 0x4e0   : > { %v7437_v49 = vsel %vm20508_vm7, %v7436_v31, %v7435_v13  ;;  %v7744_v25 = vunpack.c.l.b16 %v18194_v36  ;;  %v7019_v20 = vsel %vm6891_vm0, %v18141_v54, %v6955_v19  ;;  %v18219_v63 = vrot.slane %v7641_v53, 4 }
 0x4e1   : > { %v12434_v40 = vpack.c.b16 %v7210_v22, %v7437_v49  ;;  %v7022_v57 = vsel %vm6894_vm2, %v18133_v62, %v6958_v10  ;;  %v20509_v33 = vrot.slane %v17999_v47, 6  ;;  %v6960_v61 = vmul.f32 0.2, %v18178_v9  ;;  %vm20510_vm2 = vmmov %vm20507_vm3 }
 0x4e2   : > { %v7494_v48 = vrot.slane %v7492_v44, 4  ;;  %vm6896_vm7 = vcmp.gt.f32.partialorder %v18178_v9, 0.0  ;;  %v7023_v60 = vsel %vm6895_vm5, %v6831_v7, %v6959_v23  ;;  %v7083_v11 = vpack.c.bf16 %v7019_v20, %v7019_v20 }
 0x4e3   : > { %v18224_v28 = vadd.f32 %v20509_v33, %v5401_v1  ;;  %v7513_v54 = vsel %vm13934_vm8, %v18165_v27, %v12434_v40  ;;  %v5402_v52 = vmul.f32 0.25, %v5338_v45  ;;  %v7086_v47 = vpack.c.bf16 %v7022_v57, %v7022_v57 }
 0x4e4   : > { %v7736_v38 = vpop.permute.xlu0 %7735  ;;  %v7524_v62 = vsel %vm17252_vm9, %v7513_v54, %v7494_v48  ;;  %v7087_v7 = vpack.c.bf16 %v7023_v60, %v7023_v60  ;;  %vm6892_vm5 = vcmp.gt.f32.partialorder %v18126_v50, 0.0  ;;  %v7024_v27 = vsel %vm6896_vm7, %v18178_v9, %v6960_v61  ;;  %v13366_v54 = vld [vmem:[%s20446_s0 + $0x78] sm:$0xff]  ;;  %vm20519_vm7 = vmmov %vm20510_vm2 }
 0x4e5   : > { %v7795_v15 = vsel %vm2163_vm10, %v7718_v2, %v7736_v38  ;;  %v7021_v2 = vsel %vm6893_vm6, %v18130_v34, %v6957_v58  ;;  %v7646_v34 = vrot.slane %v7644_v26, 5  ;;  %v18233_v3 = vunpack.c.l.b16 %v7524_v62  ;;  %8167 = vmatpush.bf16.msrb.mxu2 %v13366_v54 }
 0x4e6   : > { %8156 = vmatmul.bf16.gmra.mxu2 %v7795_v15  ;;  %8238 = vmatmul.bf16.gmra.mxu3 %v7795_v15  ;;  %v7085_v6 = vpack.c.bf16 %v7021_v2, %v7021_v2  ;;  %v7546_v18 = vunpack.c.h.b16 %v7524_v62  ;;  %vm6897_vm0 = vcmp.gt.f32.partialorder %v18224_v28, 0.0  ;;  %v6956_v21 = vmul.f32 0.2, %v18126_v50 }
 0x4e7   : > { %v7647_v38 = vsel %vm17292_vm1, %v18219_v63, %v7646_v34  ;;  %v7559_v37 = vpack.c.b16 %v18233_v3, %v18233_v3  ;;  %v6961_v42 = vmul.f32 0.2, %v18224_v28  ;;  %v7211_v24 = vunpack.c.l.b16 %v7083_v11 }
 0x4e8   : > { %v7560_v15 = vpack.c.b16 %v7546_v18, %v7546_v18  ;;  %v7213_v32 = vunpack.c.l.b16 %v7085_v6  ;;  %v18246_v53 = vadd.f32 %v18070_v51, %v5402_v52  ;;  %v7088_v26 = vpack.c.bf16 %v7024_v27, %v7024_v27  ;;  %v13365_v18 = vld [vmem:[%s20446_s0 + $0x70] sm:$0xff] }
 0x4e9   : > { %v12442_v59 = vrot.slane %v7559_v37, 9  ;;  %v7649_v31 = vshrl.u32 %v7559_v37, 16  ;;  %v7652_v19 = vshll.u32 %v7559_v37, 16  ;;  %v7214_v58 = vunpack.c.l.b16 %v7086_v47  ;;  %8168 = vmatpush.bf16.msrb.mxu2 %v13365_v18 }
 0x4ea   : > { %v7691_v43 = vrot.slane %v7560_v15, 5  ;;  %v7215_v9 = vunpack.c.l.b16 %v7087_v7  ;;  %v7020_v0 = vsel %vm6892_vm5, %v18126_v50, %v6956_v21  ;;  %v7025_v10 = vsel %vm6897_vm0, %v18224_v28, %v6961_v42 }
 0x4eb   : > { %v7651_v51 = vrot.slane %v7649_v31, 4  ;;  %v7654_v29 = vrot.slane %v7652_v19, 5  ;;  %v7658_v44 = vshll.u32 %v7560_v15, 16  ;;  %v12420_v23 = vunpack.i.l.s16 %v7211_v24 }
 0x4ec   : > { %v7692_v1 = vsel %vm17761_vm4, %v12442_v59, %v7691_v43  ;;  %v7084_v13 = vpack.c.bf16 %v7020_v0, %v7020_v0  ;;  %v7089_v45 = vpack.c.bf16 %v7025_v10, %v7025_v10  ;;  %v12422_v49 = vunpack.i.l.s16 %v7213_v32 }
 0x4ed   : > { %v18256_v22 = vunpack.c.l.b16 %v7692_v1  ;;  %v7655_v20 = vor.u32 %v7654_v29, %v7651_v51  ;;  %v6962_v2 = vmul.f32 0.2, %v18246_v53  ;;  %v7216_v50 = vunpack.c.l.b16 %v7088_v26  ;;  %v13363_v29 = vld [vmem:[%s20446_s0 + $0x60] sm:$0xff] }
 0x4ee   : > { %vm6898_vm6 = vcmp.gt.f32.partialorder %v18246_v53, 0.0  ;;  %v7212_v63 = vunpack.c.l.b16 %v7084_v13  ;;  %v7217_v57 = vunpack.c.l.b16 %v7089_v45  ;;  %v12423_v33 = vunpack.i.l.s16 %v7214_v58 }
 0x4ef   : > { %v18262_v40 = vpack.c.b16 %v18256_v22, %v7744_v25  ;;  %v12424_v61 = vunpack.i.l.s16 %v7215_v9  ;;  %v7656_v48 = vrot.slane %v7655_v20, 4  ;;  %v7660_v60 = vrot.slane %v7658_v44, 5 }
 0x4f0   : > { %v12421_v34 = vunpack.i.l.s16 %v7212_v63  ;;  %v12425_v11 = vunpack.i.l.s16 %v7216_v50  ;;  %v7441_v6 = vrot.slane %v12422_v49, 5  ;;  %v7026_v62 = vsel %vm6898_vm6, %v18246_v53, %v6962_v2  ;;  %v13362_v2 = vld [vmem:[%s20446_s0 + $0x58] sm:$0xff] }
 0x4f1   : > { %12590 = vmatmul.msk.bf16.gmra.mxu0 %vm2163_vm10, %v18262_v40  ;;  %v7661_v52 = vsel %vm17292_vm1, %v7656_v48, %v7660_v60  ;;  %v12426_v47 = vunpack.i.l.s16 %v7217_v57  ;;  %v7438_v7 = vrot.slane %v12420_v23, 7  ;;  %v18276_v27 = vunpack.c.l.b16 %v7647_v38  ;;  %v13364_v38 = vld [vmem:[%s20446_s0 + $0x68] sm:$0xff] }
 0x4f2   : > { %v18278_v37 = vunpack.c.l.b16 %v7661_v52  ;;  %v7439_v15 = vrot.slane %v12421_v34, 6  ;;  %v7443_v21 = vrot.slane %v12423_v33, 4  ;;  %v7281_v42 = vpack.c.b16 %v7217_v57, %v7217_v57  ;;  %8169 = vmatpush.bf16.msrb.mxu2 %v13364_v38  ;;  %v13361_v33 = vld [vmem:[%s20446_s0 + $0x50] sm:$0xff] }
 0x4f3   : > { %v7445_v24 = vrot.slane %v12424_v61, 3  ;;  %v7090_v26 = vpack.c.bf16 %v7026_v62, %v7026_v62  ;;  %v7447_v43 = vrot.slane %v12425_v11, 2  ;;  %v7449_v19 = vrot.slane %v12426_v47, 1 }
 0x4f4   : > { %v7730_v32 = vpack.c.b16 %v18278_v37, %v18276_v27  ;;  %v7440_v59 = vsel %vm6471_vm12, %v7439_v15, %v7438_v7  ;;  %v7496_v0 = vshll.u32 %v7281_v42, 16  ;;  %vm20511_vm3 = vcmask 1047559  }
 0x4f5   : > { %v7442_v31 = vsel %vm6474_vm13, %v7441_v6, %v7440_v59  ;;  %v7218_v10 = vunpack.c.l.b16 %v7090_v26  ;;  %v7752_v45 = vpack.c.b16 %v18143_v35, %v17844_v30  ;;  %v20512_v15 = vunpack.c.l.b16 %v17874_v55  ;;  %v20513_v55 = vld [vmem:[#allocation30_spill] sm:$0xff]  ;;  %v20514_v26 = vld [vmem:[#allocation17_spill] sm:$0xff]  ;;  %vm20521_vm5 = vmmov %vm20511_vm3 }
 0x4f6   : > { %7737 = vrot.lane.b32.xlu1 %v7730_v32, %s20260_s2  ;;  %v7444_v58 = vsel %vm6477_vm14, %v7443_v21, %v7442_v31  ;;  %v7498_v23 = vrot.slane %v7496_v0, 4  ;;  %8170 = vmatpush.bf16.msrb.mxu2 %v13363_v29  ;;  %v9425_v36 = vadd.f32 %v20513_v55, %v17694_v12  ;;  %v20515_v59 = vld [vmem:[#allocation14_spill] sm:$0xff]  ;;  %v20516_v31 = vld [vmem:[#allocation33_spill] sm:$0xff]  ;;  %vm20522_vm0 = vmmov %vm20511_vm3 }
 0x4f7   : > { %v7446_v9 = vsel %vm6480_vm15, %v7445_v24, %v7444_v58  ;;  %v7770_v21 = vpack.c.b16 %v7744_v25, %v20512_v15  ;;  %v9470_v25 = vmul.f32 0.25, %v18163_v8  ;;  %v20517_v8 = vld [vmem:[#allocation52_spill] sm:$0xff] }
 0x4f8   : > { %v7448_v1 = vsel %vm20510_vm2, %v7447_v43, %v7446_v9  ;;  %v9421_v43 = vadd.f32 %v20515_v59, %v20514_v26 }
 0x4f9   : > { %v7450_v51 = vsel %vm20511_vm3, %v7449_v19, %v7448_v1  ;;  %v9455_v19 = vadd.f32 %v18152_v39, %v20516_v31  ;;  %v9486_v9 = vpack.c.bf16 %v9470_v25, %v9470_v25  ;;  %v9441_v1 = vadd.f32 %v18246_v53, %v18224_v28  ;;  %v13369_v25 = vld [vmem:[%s20446_s0 + $0x90] sm:$0xff]  ;;  %v7757_v31 = vpop.permute.xlu0 %7756 }
 0x4fa   : > { %v12435_v44 = vpack.c.b16 %v7218_v10, %v7450_v51  ;;  %8171 = vmatpush.bf16.msrb.mxu2 %v13362_v2  ;;  %v9449_v38 = vadd.f32 %v9425_v36, %v9421_v43  ;;  %v9437_v10 = vadd.f32 %v18138_v16, %v18085_v14  ;;  %v13370_v36 = vld [vmem:[%s20446_s0 + $0x98] sm:$0xff] }
 0x4fb   : > { %v9471_v58 = vmul.f32 0.25, %v9455_v19  ;;  %v9530_v12 = vunpack.c.l.b16 %v9486_v9  ;;  %v20524_v19 = vld [vmem:[#allocation50_spill] sm:$0xff] }
 0x4fc   : > { %v7514_v49 = vsel %vm13934_vm8, %v7084_v13, %v12435_v44  ;;  %v9465_v51 = vmul.f32 0.25, %v9449_v38  ;;  %v9456_v44 = vadd.f32 %v18186_v41, %v20517_v8  ;;  %v7807_v38 = vsel %vm2163_vm10, %v20524_v19, %v7757_v31  ;;  %v13367_v9 = vld [vmem:[%s20446_s0 + $0x80] sm:$0xff]  ;;  %v8147_v8 = vpop.f32.mrf.mxu2 }
 0x4fd   : > { %v7525_v20 = vsel %vm17252_vm9, %v7514_v49, %v7498_v23  ;;  %v9487_v0 = vpack.c.bf16 %v9471_v58, %v9471_v58  ;;  %v9457_v23 = vadd.f32 %v9441_v1, %v9437_v10  ;;  %v13368_v58 = vld [vmem:[%s20446_s0 + $0x88] sm:$0xff] }
 0x4fe   : > { %7758 = vrot.lane.b32.xlu1 %v7752_v45, %s20260_s2  ;;  %v18305_v50 = vunpack.c.l.b16 %v7525_v20  ;;  %v7695_v63 = vunpack.c.h.b16 %v7525_v20  ;;  %8172 = vmatpush.bf16.msrb.mxu2 %v13361_v33  ;;  %v9472_v45 = vmul.f32 0.25, %v9456_v44  ;;  %v9481_v39 = vpack.c.bf16 %v9465_v51, %v9465_v51  ;;  %v20527_v10 = vld [vmem:[#allocation51_spill] sm:$0xff] }
 0x4ff   : > { %v9531_v29 = vunpack.c.l.b16 %v9487_v0  ;;  %v9473_v49 = vmul.f32 0.25, %v9457_v23  ;;  %v9554_v20 = vrot.slane %v9530_v12, 4  ;;  %v20528_v23 = vld [vmem:[#allocation12_spill] sm:$0xff] }
 0x500   : > { %v7696_v57 = vpack.c.b16 %v18305_v50, %v18305_v50  ;;  %v7697_v30 = vpack.c.b16 %v7695_v63, %v7695_v63  ;;  %v7753_v13 = vpack.c.b16 %v18305_v50, %v18233_v3  ;;  %v9488_v63 = vpack.c.bf16 %v9472_v45, %v9472_v45  ;;  %v20529_v45 = vld [vmem:[#allocation13_spill] sm:$0xff] }
 0x501   : > { %v9556_v2 = vrot.slane %v9531_v29, 3  ;;  %v9525_v16 = vunpack.c.l.b16 %v9481_v39  ;;  %v7780_v26 = vpack.c.b16 %v18233_v3, %v18305_v50  ;;  %v20526_v50 = vld [vmem:[#allocation55_spill] sm:$0xff]  ;;  %v7773_v44 = vpop.permute.xlu0 %7772 }
 0x502   : > { %7760 = vrot.lane.b32.xlu2 %v7753_v13, %s20260_s2  ;;  %v12443_v61 = vrot.slane %v7696_v57, 9  ;;  %v7714_v48 = vrot.slane %v7697_v30, 5  ;;  %v7699_v60 = vshrl.u32 %v7696_v57, 16  ;;  %v7702_v54 = vshll.u32 %v7696_v57, 16 }
 0x503   : > { %v7708_v52 = vshll.u32 %v7697_v30, 16  ;;  %v9489_v57 = vpack.c.bf16 %v9473_v49, %v9473_v49  ;;  %v20518_v30 = vld [vmem:[#allocation39_spill] sm:$0xff]  ;;  %v9532_v53 = vunpack.c.l.b16 %v9488_v63  ;;  %v9546_v33 = vrot.slane %v9525_v16, 1 }
 0x504   : > { %v7715_v34 = vsel %vm17761_vm4, %v12443_v61, %v7714_v48  ;;  %v7701_v11 = vrot.slane %v7699_v60, 4  ;;  %v7704_v6 = vrot.slane %v7702_v54, 5  ;;  %v9555_v14 = vsel %vm6477_vm14, %v9554_v20, %v20518_v30  ;;  %v20520_v60 = vld [vmem:[#allocation42_spill] sm:$0xff]  ;;  %v13394_v20 = vld [vmem:[%s20530_s26 + $0x38] sm:$0xff]  ;;  %v13393_v30 = vld [vmem:[%s20530_s26 + $0x30] sm:$0xff] }
 0x505   : > { %v7767_v62 = vunpack.c.l.b16 %v7715_v34  ;;  %v7710_v24 = vrot.slane %v7708_v52, 5  ;;  %v9557_v28 = vsel %vm6480_vm15, %v9556_v2, %v9555_v14  ;;  %v9533_v13 = vunpack.c.l.b16 %v9489_v57  ;;  %v13359_v52 = vld [vmem:[%s20446_s0 + $0x40] sm:$0xff]  ;;  %9049 = vmatpush.bf16.msra.mxu1 %v13394_v20  ;;  %v8149_v2 = vpop.f32.mrf.mxu2 }
 0x506   : > { %7774 = vrot.lane.b32.xlu1 %v17931_v46, %s20260_s2  ;;  %v7705_v47 = vor.u32 %v7704_v6, %v7701_v11  ;;  %v9558_v61 = vrot.slane %v9532_v53, 2  ;;  %v18354_v54 = vsel %vm20521_vm5, %v9546_v33, %v20520_v60  ;;  %v13360_v6 = vld [vmem:[%s20446_s0 + $0x48] sm:$0xff]  ;;  %v7763_v49 = vpack.c.b16 %v20529_v45, %v20528_v23  ;;  %v20531_v14 = vld [vmem:[#allocation29_spill] sm:$0xff] }
 0x507   : > { %v7784_v18 = vpack.c.b16 %v18256_v22, %v7767_v62  ;;  %v7771_v7 = vpack.c.b16 %v7767_v62, %v18256_v22  ;;  %v9560_v48 = vrot.slane %v9533_v13, 1  ;;  %8173 = vmatpush.bf16.msrb.mxu2 %v13360_v6  ;;  %v13374_v62 = vld [vmem:[%s20446_s0 + $0xb8] sm:$0xff]  ;;  %v7765_v16 = vpack.c.b16 %v18276_v27, %v20531_v14  ;;  %v13392_v27 = vld [vmem:[%s20530_s26 + $0x28] sm:$0xff]  ;;  %v18435_v6 = vld [vmem:[%s20532_s5] ss:$0 sm:$0xff]  ;;  %s11763_s5 = sshll.u32 %s11759_s8, 4  ;;  %s11764_s5 = int_to_ptr.hbm [resolvable:$true] %s11763_s5 }
 0x508   : > { %v7706_v42 = vrot.slane %v7705_v47, 4  ;;  %v9559_v41 = vsel %vm20519_vm7, %v9558_v61, %v9557_v28  ;;  %v13373_v47 = vld [vmem:[%s20446_s0 + $0xb0] sm:$0xff]  ;;  %v7819_v39 = vsel %vm2163_vm10, %v7763_v49, %v7773_v44  ;;  %v13390_v45 = vld [vmem:[%s20530_s26 + $0x18] sm:$0xff]  ;;  %s13617_s28 = sshra.s32 %s11764_s5, 4  ;;  %s13618_s28 = int_to_ptr.hbm [resolvable:$true] %s13617_s28 }
 0x509   : > { %12591 = vmatmul.msk.bf16.gmra.mxu0 %vm2163_vm10, %v7784_v18  ;;  %7778 = vrot.lane.b32.xlu0 %v7771_v7, %s20260_s2  ;;  %v18357_v34 = vsel %vm20522_vm0, %v9560_v48, %v9559_v41  ;;  %v7719_v18 = vpack.c.b16 %v18233_v3, %v18143_v35  ;;  %v20525_v3 = vld [vmem:[#allocation24_spill] sm:$0xff]  ;;  %p13624_p0 = scmp.lt.s32.totalorder %s13618_s28, %s19831_s27 }
 0x50a   : > { %7776 = vrot.lane.b32.xlu2 %v7770_v21, %s20260_s2  ;;  %v7711_v46 = vsel %vm17292_vm1, %v7706_v42, %v7710_v24  ;;  %v9562_v11 = vpack.c.b16 %v18357_v34, %v18354_v54  ;;  %v13372_v21 = vld [vmem:[%s20446_s0 + $0xa8] sm:$0xff]  ;;  %v13371_v42 = vld [vmem:[%s20446_s0 + $0xa0] sm:$0xff]  ;;  %v7764_v0 = vpack.c.b16 %v20526_v50, %v20525_v3  ;;  %9050 = vmatpush.bf16.msra.mxu1 %v13393_v30  ;;  %s20543_s0 = smov 32  }
 0x50b   : > { %v18330_v32 = vunpack.c.l.b16 %v7711_v46  ;;  %8174 = vmatpush.bf16.msrb.mxu2 %v13359_v52  ;;  %v7755_v46 = vpop.permute.xlu2 %7754  ;;  %v8148_v52 = vadd.f32 %v18435_v6, %v8147_v8 }
 0x50d   : > { %v7781_v22 = vpack.c.b16 %v18278_v37, %v18330_v32  ;;  %v8152_v63 = vpop.f32.mrf.mxu2  ;;  %v7766_v61 = vpack.c.b16 %v18330_v32, %v18278_v37 }
 0x50e   : > { %9051 = vmatpush.bf16.msra.mxu1 %v13392_v27 }
 0x50f   : > { %7782 = vrot.lane.b32.xlu1 %v7781_v22, %s20260_s2  ;;  %8196 = vmatpush.bf16.msra.mxu2 %v13374_v62  ;;  %v20523_v22 = vld [vmem:[#allocation49_spill] sm:$0xff] }
 0x510   : > { %v7803_v35 = vsel %vm2163_vm10, %v20523_v22, %v7755_v46 }
 0x513   : > { %8197 = vmatpush.bf16.msra.mxu2 %v13373_v47  ;;  %v8153_v47 = vadd.f32 %v18435_v6, %v8152_v63 }
 0x515   : > { %v18414_v57 = vpop.f32.mrf.mxu2 }
 0x517   : > { %8198 = vmatpush.bf16.msra.mxu2 %v13372_v21  ;;  %v13391_v21 = vld [vmem:[%s20530_s26 + $0x20] sm:$0xff] }
 0x518   : > { %9052 = vmatpush.bf16.msra.mxu1 %v13391_v21 }
 0x51b   : > { %8199 = vmatpush.bf16.msra.mxu2 %v13371_v42 }
 0x51c   : > { %9053 = vmatpush.bf16.msra.mxu1 %v13390_v45 }
 0x51f   : > { %8200 = vmatpush.bf16.msra.mxu2 %v13370_v36 }
 0x523   : > { %8201 = vmatpush.bf16.msra.mxu2 %v13369_v25 }
 0x527   : > { %8202 = vmatpush.bf16.msra.mxu2 %v13368_v58 }
 0x52b   : > { %8203 = vmatpush.bf16.msra.mxu2 %v13367_v9  ;;  %v8150_v9 = vadd.f32 %v18435_v6, %v8149_v2 }
 0x55c   : > { %v7761_v12 = vpop.permute.xlu2 %7760 }
 0x55d   : > { %v7815_v29 = vsel %vm2163_vm10, %v18262_v40, %v7761_v12 }
 0x564   : > { %v7777_v40 = vpop.permute.xlu2 %7776 }
 0x565   : > { %v7827_v28 = vsel %vm2163_vm10, %v7765_v16, %v7777_v40 }
 0x568   : > { %v7738_v7 = vpop.permute.xlu1 %7737 }
 0x569   : > { %v7799_v15 = vsel %vm2163_vm10, %v7719_v18, %v7738_v7  ;;  %v8157_v53 = vpop.f32.mrf.mxu2 }
 0x56a   : > { %8161 = vmatmul.bf16.gmra.mxu2 %v7799_v15  ;;  %8243 = vmatmul.bf16.gmra.mxu3 %v7799_v15  ;;  %v8158_v42 = vadd.f32 %v18435_v6, %v8157_v53 }
 0x570   : > { %v7759_v24 = vpop.permute.xlu1 %7758 }
 0x571   : > { %v7811_v1 = vsel %vm2163_vm10, %v20527_v10, %v7759_v24  ;;  %v18422_v13 = vpop.f32.mrf.mxu2 }
 0x578   : > { %v7775_v55 = vpop.permute.xlu1 %7774 }
 0x579   : > { %v7823_v51 = vsel %vm2163_vm10, %v7764_v0, %v7775_v55 }
 0x57a   : > { %8175 = vmatmul.bf16.vlgmr.msrb.gmra.mxu2 %v7803_v35 }
 0x57b   : > { %v7779_v33 = vpop.permute.xlu0 %7778 }
 0x57c   : > { %v7831_v48 = vsel %vm2163_vm10, %v7766_v61, %v7779_v33 }
 0x581   : > { %v7783_v59 = vpop.permute.xlu1 %7782 }
 0x582   : > { %v7835_v43 = vsel %vm2163_vm10, %v7780_v26, %v7783_v59  ;;  %v8263_v26 = vpop.f32.mrf.mxu0  ;;  %v8234_v59 = vpop.f32.mrf.mxu3 }
 0x583   : > { %8248 = vmatmul.bf16.gmra.mxu3 %v7835_v43 }
 0x58a   : > { %8180 = vmatmul.bf16.gmra.mxu2 %v7807_v38  ;;  %v8265_v38 = vpop.f32.mrf.mxu0  ;;  %v8236_v58 = vpop.f32.mrf.mxu3 }
 0x592   : > { %v8239_v8 = vpop.f32.mrf.mxu3  ;;  %v8268_v23 = vpop.f32.mrf.mxu0 }
 0x59a   : > { %8185 = vmatmul.bf16.gmra.mxu2 %v7811_v1  ;;  %v8241_v33 = vpop.f32.mrf.mxu3 }
 0x5aa   : > { %8190 = vmatmul.bf16.gmra.mxu2 %v7815_v29 }
 0x5ba   : > { %8204 = vmatmul.bf16.vlgmr.msra.gmra.mxu2 %v7819_v39 }
 0x5ca   : > { %8209 = vmatmul.bf16.gmra.mxu2 %v7823_v51 }
 0x5da   : > { %8214 = vmatmul.bf16.gmra.mxu2 %v7827_v28  ;;  %v8155_v28 = vadd.f32 %v18435_v6, %v18414_v57 }
 0x5ea   : > { %8219 = vmatmul.bf16.gmra.mxu2 %v7831_v48 }
 0x5ed   : > { %v8162_v41 = vpop.f32.mrf.mxu2 }
 0x5ee   : > { %v8163_v35 = vadd.f32 %v18435_v6, %v8162_v41 }
 0x5f5   : > { %v18427_v60 = vpop.f32.mrf.mxu2 }
 0x5f6   : > { %v8165_v45 = vadd.f32 %v18435_v6, %v18427_v60 }
 0x5fd   : > { %v8176_v62 = vpop.f32.mrf.mxu2 }
 0x5fe   : > { %v8177_v37 = vadd.f32 %v8176_v62, %v8148_v52  ;;  %v8270_v52 = vpop.f32.mrf.mxu0 }
 0x605   : > { %v8178_v32 = vpop.f32.mrf.mxu2 }
 0x606   : > { %v8179_v50 = vadd.f32 %v8178_v32, %v8150_v9 }
 0x60d   : > { %v8181_v18 = vpop.f32.mrf.mxu2 }
 0x60e   : > { %v8182_v7 = vadd.f32 %v8181_v18, %v8153_v47 }
 0x615   : > { %v8183_v15 = vpop.f32.mrf.mxu2 }
 0x616   : > { %v8184_v48 = vadd.f32 %v8183_v15, %v8155_v28 }
 0x61d   : > { %v8186_v24 = vpop.f32.mrf.mxu2 }
 0x61e   : > { %v18443_v46 = vadd.f32 %v8186_v24, %v8158_v42 }
 0x625   : > { %v18445_v22 = vpop.f32.mrf.mxu2 }
 0x62d   : > { %v8191_v55 = vpop.f32.mrf.mxu2 }
 0x62e   : > { %v18448_v36 = vadd.f32 %v8191_v55, %v8163_v35 }
 0x635   : > { %v18450_v25 = vpop.f32.mrf.mxu2 }
 0x636   : > { %v18479_v28 = vadd.f32 %v18450_v25, %v8165_v45 }
 0x63d   : > { %v8205_v43 = vpop.f32.mrf.mxu2 }
 0x63e   : > { %v8206_v31 = vadd.f32 %v8205_v43, %v8177_v37 }
 0x640   : > { %v8235_v19 = vadd.f32 %v8234_v59, %v8206_v31  ;;  %v8244_v59 = vpop.f32.mrf.mxu3 }
 0x642   : > { %v8264_v3 = vadd.f32 %v8263_v26, %v8235_v19 }
 0x644   : > { %vm8283_vm15 = vcmp.gt.f32.partialorder %v8264_v3, 0.0  ;;  %v8291_v0 = vmul.f32 0.2, %v8264_v3 }
 0x645   : > { %v8207_v10 = vpop.f32.mrf.mxu2 }
 0x646   : > { %v8299_v1 = vsel %vm8283_vm15, %v8264_v3, %v8291_v0  ;;  %v8208_v51 = vadd.f32 %v8207_v10, %v8179_v50 }
 0x647   : > { %v8307_v12 = vpack.c.bf16 %v8299_v1, %v8299_v1 }
 0x648   : > { %v8237_v29 = vadd.f32 %v8236_v58, %v8208_v51  ;;  %v8273_v58 = vpop.f32.mrf.mxu0  ;;  %v8160_v51 = vadd.f32 %v18435_v6, %v18422_v13 }
 0x649   : > { %v8323_v49 = vunpack.c.l.b16 %v8307_v12 }
 0x64a   : > { %v8266_v44 = vadd.f32 %v8265_v38, %v8237_v29 }
 0x64b   : > { %v8331_v30 = vpack.c.b16 %v8323_v49, %v8323_v49  ;;  %v8189_v49 = vadd.f32 %v18445_v22, %v8160_v51 }
 0x64c   : > { %vm8284_vm6 = vcmp.gt.f32.partialorder %v8266_v44, 0.0  ;;  %v8292_v39 = vmul.f32 0.2, %v8266_v44 }
 0x64d   : > { %v8210_v20 = vpop.f32.mrf.mxu2  ;;  %v8340_v41 = vshrl.u32 %v8331_v30, 16  ;;  %v8372_v57 = vshll.u32 %v8331_v30, 16 }
 0x64e   : > { %v8300_v2 = vsel %vm8284_vm6, %v8266_v44, %v8292_v39  ;;  %v8211_v63 = vadd.f32 %v8210_v20, %v8182_v7 }
 0x64f   : > { %v8308_v40 = vpack.c.bf16 %v8300_v2, %v8300_v2  ;;  %v8371_v42 = vrot.slane %v8340_v41, 7 }
 0x650   : > { %v8240_v14 = vadd.f32 %v8239_v8, %v8211_v63  ;;  %v8411_v8 = vrot.slane %v8372_v57, 7 }
 0x651   : > { %v8324_v16 = vunpack.c.l.b16 %v8308_v40  ;;  %v8374_v31 = vor.u32 %v8372_v57, %v8371_v42 }
 0x652   : > { %v8269_v53 = vadd.f32 %v8268_v23, %v8240_v14 }
 0x653   : > { %v8332_v61 = vpack.c.b16 %v8324_v16, %v8324_v16  ;;  %v8427_v12 = vsel %vm13934_vm8, %v8340_v41, %v8374_v31  ;;  %v8246_v16 = vpop.f32.mrf.mxu3 }
 0x654   : > { %vm8285_vm2 = vcmp.gt.f32.partialorder %v8269_v53, 0.0  ;;  %v8293_v27 = vmul.f32 0.2, %v8269_v53  ;;  %v8435_v13 = vsel %vm17252_vm9, %v8427_v12, %v8411_v8 }
 0x655   : > { %v8343_v62 = vshrl.u32 %v8332_v61, 16  ;;  %v8212_v37 = vpop.f32.mrf.mxu2  ;;  %v8376_v7 = vshll.u32 %v8332_v61, 16  ;;  %v18476_v30 = vunpack.c.l.b16 %v8435_v13  ;;  %v8453_v14 = vunpack.c.h.b16 %v8435_v13 }
 0x656   : > { %v8301_v32 = vsel %vm8285_vm2, %v8269_v53, %v8293_v27  ;;  %v8213_v47 = vadd.f32 %v8212_v37, %v8184_v48  ;;  %v8275_v27 = vpop.f32.mrf.mxu0 }
 0x657   : > { %v8375_v18 = vrot.slane %v8343_v62, 7  ;;  %v8309_v21 = vpack.c.bf16 %v8301_v32, %v8301_v32  ;;  %v8412_v19 = vrot.slane %v8376_v7, 7  ;;  %v18490_v41 = vpack.c.b16 %v18476_v30, %v18476_v30 }
 0x658   : > { %v8242_v24 = vadd.f32 %v8241_v33, %v8213_v47 }
 0x659   : > { %v8378_v35 = vor.u32 %v8376_v7, %v8375_v18  ;;  %v8325_v55 = vunpack.c.l.b16 %v8309_v21  ;;  %v8493_v7 = vshrl.u32 %v18490_v41, 16 }
 0x65a   : > { %v8271_v26 = vadd.f32 %v8270_v52, %v8242_v24 }
 0x65b   : > { %v8428_v15 = vsel %vm13934_vm8, %v8343_v62, %v8378_v35  ;;  %v8333_v43 = vpack.c.b16 %v8325_v55, %v8325_v55  ;;  %v18493_v62 = vpack.c.b16 %v8453_v14, %v8453_v14  ;;  %v8496_v35 = vshll.u32 %v18490_v41, 16  ;;  %v13389_v55 = vld [vmem:[%s20530_s26 + $0x10] sm:$0xff] }
 0x65c   : > { %vm8286_vm3 = vcmp.gt.f32.partialorder %v8271_v26, 0.0  ;;  %v8294_v38 = vmul.f32 0.2, %v8271_v26  ;;  %v8436_v3 = vsel %vm17252_vm9, %v8428_v15, %v8412_v19  ;;  %v8495_v15 = vrot.slane %v8493_v7, 4  ;;  %9054 = vmatpush.bf16.msra.mxu1 %v13389_v55 }
 0x65d   : > { %v8215_v9 = vpop.f32.mrf.mxu2  ;;  %v8346_v50 = vshrl.u32 %v8333_v43, 16  ;;  %v18467_v44 = vunpack.c.l.b16 %v8436_v3  ;;  %v8451_v63 = vunpack.c.h.b16 %v8436_v3  ;;  %v8498_v19 = vrot.slane %v8496_v35, 5 }
 0x65e   : > { %v8302_v0 = vsel %vm8286_vm3, %v8271_v26, %v8294_v38  ;;  %v8216_v10 = vadd.f32 %v8215_v9, %v18443_v46  ;;  %v8380_v46 = vshll.u32 %v8333_v43, 16  ;;  %v8502_v38 = vshll.u32 %v18493_v62, 16 }
 0x65f   : > { %v8310_v1 = vpack.c.bf16 %v8302_v0, %v8302_v0  ;;  %v8379_v39 = vrot.slane %v8346_v50, 7  ;;  %v18484_v22 = vpack.c.b16 %v18467_v44, %v18467_v44  ;;  %v18486_v53 = vpack.c.b16 %v8451_v63, %v8451_v63  ;;  %v8249_v0 = vpop.f32.mrf.mxu3 }
 0x660   : > { %v8245_v29 = vadd.f32 %v8244_v59, %v8216_v10  ;;  %v8413_v57 = vrot.slane %v8380_v46, 7  ;;  %v8504_v13 = vrot.slane %v8502_v38, 5 }
 0x661   : > { %v8326_v23 = vunpack.c.l.b16 %v8310_v1  ;;  %v8382_v33 = vor.u32 %v8380_v46, %v8379_v39  ;;  %v8479_v37 = vshrl.u32 %v18484_v22, 16  ;;  %v8482_v18 = vshll.u32 %v18484_v22, 16 }
 0x662   : > { %v8274_v20 = vadd.f32 %v8273_v58, %v8245_v29  ;;  %v8488_v24 = vshll.u32 %v18486_v53, 16  ;;  %v8499_v29 = vor.u32 %v8498_v19, %v8495_v15  ;;  %v8578_v55 = vrot.slane %v18486_v53, 5 }
 0x663   : > { %v18472_v2 = vpack.c.b16 %v8326_v23, %v8326_v23  ;;  %v8481_v42 = vrot.slane %v8479_v37, 4  ;;  %v8484_v59 = vrot.slane %v8482_v18, 5  ;;  %v8429_v43 = vsel %vm13934_vm8, %v8346_v50, %v8382_v33 }
 0x664   : > { %vm8287_vm7 = vcmp.gt.f32.partialorder %v8274_v20, 0.0  ;;  %v8295_v40 = vmul.f32 0.2, %v8274_v20  ;;  %v8490_v12 = vrot.slane %v8488_v24, 5  ;;  %v8437_v45 = vsel %vm17252_vm9, %v8429_v43, %v8413_v57 }
 0x665   : > { %v8349_v60 = vshrl.u32 %v18472_v2, 16  ;;  %v8217_v6 = vpop.f32.mrf.mxu2  ;;  %v8384_v25 = vshll.u32 %v18472_v2, 16  ;;  %v8485_v3 = vor.u32 %v8484_v59, %v8481_v42  ;;  %v8500_v46 = vrot.slane %v8499_v29, 4 }
 0x666   : > { %v8303_v61 = vsel %vm8287_vm7, %v8274_v20, %v8295_v40  ;;  %v8218_v48 = vadd.f32 %v8217_v6, %v8189_v49  ;;  %v8278_v49 = vpop.f32.mrf.mxu0  ;;  %v18515_v14 = vunpack.c.l.b16 %v8437_v45  ;;  %v8661_v18 = vpack.c.b16 %v18467_v44, %v18476_v30 }
 0x667   : > { %v8311_v52 = vpack.c.bf16 %v8303_v61, %v8303_v61  ;;  %v8383_v32 = vrot.slane %v8349_v60, 7  ;;  %v18508_v58 = vrot.slane %v8384_v25, 7  ;;  %v8486_v50 = vrot.slane %v8485_v3, 4  ;;  %v8251_v43 = vpop.f32.mrf.mxu3 }
 0x668   : > { %v8247_v47 = vadd.f32 %v8246_v16, %v8218_v48  ;;  %v8455_v16 = vunpack.c.h.b16 %v8437_v45  ;;  %v12593_v53 = vrot.slane %v18490_v41, 9 }
 0x669   : > { %v8327_v21 = vunpack.c.l.b16 %v8311_v52  ;;  %v8386_v10 = vor.u32 %v8384_v25, %v8383_v32  ;;  %v8491_v40 = vsel %vm17292_vm1, %v8486_v50, %v8490_v12  ;;  %v18525_v25 = vpack.c.b16 %v18515_v14, %v18515_v14 }
 0x66a   : > { %v8276_v26 = vadd.f32 %v8275_v27, %v8247_v47  ;;  %v18519_v61 = vunpack.c.l.b16 %v8491_v40  ;;  %v18527_v52 = vpack.c.b16 %v8455_v16, %v8455_v16 }
 0x66b   : > { %v8335_v31 = vpack.c.b16 %v8327_v21, %v8327_v21  ;;  %v8430_v37 = vsel %vm13934_vm8, %v8349_v60, %v8386_v10  ;;  %v8507_v42 = vshrl.u32 %v18525_v25, 16  ;;  %v8510_v2 = vshll.u32 %v18525_v25, 16 }
 0x66c   : > { %vm8288_vm5 = vcmp.gt.f32.partialorder %v8276_v26, 0.0  ;;  %v8296_v9 = vmul.f32 0.2, %v8276_v26  ;;  %v12592_v60 = vrot.slane %v18484_v22, 9  ;;  %v8516_v15 = vshll.u32 %v18527_v52, 16 }
 0x66d   : > { %v8352_v1 = vshrl.u32 %v8335_v31, 16  ;;  %v8220_v51 = vpop.f32.mrf.mxu2  ;;  %v8388_v6 = vshll.u32 %v8335_v31, 16  ;;  %v8509_v59 = vrot.slane %v8507_v42, 4  ;;  %v8438_v41 = vsel %vm17252_vm9, %v8430_v37, %v18508_v58 }
 0x66e   : > { %v8304_v8 = vsel %vm8288_vm5, %v8276_v26, %v8296_v9  ;;  %v8221_v23 = vadd.f32 %v8220_v51, %v18448_v36  ;;  %v8505_v36 = vsel %vm17292_vm1, %v8500_v46, %v8504_v13  ;;  %v8512_v9 = vrot.slane %v8510_v2, 5  ;;  %v8280_v10 = vpop.f32.mrf.mxu0 }
 0x66f   : > { %v8387_v39 = vrot.slane %v8352_v1, 7  ;;  %v8312_v20 = vpack.c.bf16 %v8304_v8, %v8304_v8  ;;  %v18521_v27 = vunpack.c.l.b16 %v8505_v36  ;;  %v8415_v31 = vrot.slane %v8388_v6, 7 }
 0x670   : > { %v8250_v63 = vadd.f32 %v8249_v0, %v8221_v23  ;;  %v8582_v0 = vrot.slane %v18493_v62, 5  ;;  %v8513_v12 = vor.u32 %v8512_v9, %v8509_v59  ;;  %v8579_v29 = vsel %vm17761_vm4, %v12592_v60, %v8578_v55 }
 0x671   : > { %v8328_v33 = vunpack.c.l.b16 %v8312_v20  ;;  %v8390_v32 = vor.u32 %v8388_v6, %v8387_v39  ;;  %v8638_v21 = vpack.c.b16 %v18521_v27, %v18519_v61  ;;  %v8518_v23 = vrot.slane %v8516_v15, 5 }
 0x672   : > { %v8279_v48 = vadd.f32 %v8278_v49, %v8250_v63  ;;  %v18558_v50 = vsel %vm17761_vm4, %v12593_v53, %v8582_v0  ;;  %v8514_v45 = vrot.slane %v8513_v12, 4  ;;  %v18565_v20 = vunpack.c.l.b16 %v8438_v41 }
 0x673   : > { %v18533_v47 = vpack.c.b16 %v8328_v33, %v8328_v33  ;;  %8642 = vrot.lane.b32.xlu2 %v8638_v21, %s20260_s2  ;;  %v8431_v22 = vsel %vm13934_vm8, %v8352_v1, %v8390_v32  ;;  %v8457_v46 = vunpack.c.h.b16 %v8438_v41  ;;  %v18569_v40 = vunpack.c.l.b16 %v8579_v29  ;;  %v13388_v21 = vld [vmem:[%s20530_s26 + $0x8] sm:$0xff] }
 0x674   : > { %vm8289_vm0 = vcmp.gt.f32.partialorder %v8279_v48, 0.0  ;;  %v8297_v7 = vmul.f32 0.2, %v8279_v48  ;;  %v8439_v49 = vsel %vm17252_vm9, %v8431_v22, %v8415_v31  ;;  %v8519_v63 = vsel %vm17292_vm1, %v8514_v45, %v8518_v23  ;;  %9055 = vmatpush.bf16.msra.mxu1 %v13388_v21 }
 0x675   : > { %v8355_v24 = vshrl.u32 %v18533_v47, 16  ;;  %v8222_v35 = vpop.f32.mrf.mxu2  ;;  %v8651_v16 = vunpack.c.l.b16 %v18558_v50  ;;  %v18573_v6 = vunpack.c.l.b16 %v8519_v63  ;;  %v18575_v33 = vunpack.c.l.b16 %v8439_v49 }
 0x676   : > { %v8305_v57 = vsel %vm8289_vm0, %v8279_v48, %v8297_v7  ;;  %v8223_v26 = vadd.f32 %v8222_v35, %v18479_v28  ;;  %v8392_v28 = vshll.u32 %v18533_v47, 16  ;;  %v8459_v36 = vunpack.c.h.b16 %v8439_v49 }
 0x677   : > { %v8391_v19 = vrot.slane %v8355_v24, 7  ;;  %v8313_v38 = vpack.c.bf16 %v8305_v57, %v8305_v57  ;;  %v18579_v7 = vpack.c.b16 %v18565_v20, %v18565_v20  ;;  %v8639_v42 = vpack.c.b16 %v18573_v6, %v18519_v61 }
 0x678   : > { %v8252_v3 = vadd.f32 %v8251_v43, %v8223_v26  ;;  %v18590_v35 = vpack.c.b16 %v18575_v33, %v18575_v33  ;;  %v18592_v2 = vpack.c.b16 %v8459_v36, %v8459_v36  ;;  %v8679_v59 = vpack.c.b16 %v18569_v40, %v8651_v16  ;;  %9056 = vmatpush.bf16.msra.mxu1 %v13387_v4 }
 0x679   : > { %v8329_v51 = vunpack.c.l.b16 %v8313_v38  ;;  %v8394_v1 = vor.u32 %v8392_v28, %v8391_v19  ;;  %v8521_v57 = vshrl.u32 %v18579_v7, 16  ;;  %v8524_v26 = vshll.u32 %v18579_v7, 16  ;;  %8644 = vrot.lane.b32.xlu0 %v8639_v42, %s20260_s2 }
 0x67a   : > { %v8281_v8 = vadd.f32 %v8280_v10, %v8252_v3  ;;  %v8535_v43 = vshrl.u32 %v18590_v35, 16  ;;  %v8538_v31 = vshll.u32 %v18590_v35, 16  ;;  %v8544_v10 = vshll.u32 %v18592_v2, 16 }
 0x67b   : > { %v8337_v62 = vpack.c.b16 %v8329_v51, %v8329_v51  ;;  %8665 = vrot.lane.b32.xlu2 %v8661_v18, %s20260_s2  ;;  %v18586_v18 = vpack.c.b16 %v8457_v46, %v8457_v46  ;;  %v8523_v9 = vrot.slane %v8521_v57, 4  ;;  %v8526_v22 = vrot.slane %v8524_v26, 5 }
 0x67c   : > { %vm8290_vm15 = vcmp.gt.f32.partialorder %v8281_v8, 0.0  ;;  %v8298_v39 = vmul.f32 0.2, %v8281_v8  ;;  %v8537_v53 = vrot.slane %v8535_v43, 4  ;;  %v8540_v0 = vrot.slane %v8538_v31, 5  ;;  %v13402_v43 = vld [vmem:[%s20530_s26 + $0x78] sm:$0xff] }
 0x67d   : > { %v8358_v13 = vshrl.u32 %v8337_v62, 16  ;;  %v8396_v37 = vshll.u32 %v8337_v62, 16  ;;  %v8530_v15 = vshll.u32 %v18586_v18, 16  ;;  %v8527_v12 = vor.u32 %v8526_v22, %v8523_v9  ;;  %v13410_v22 = vld [vmem:[%s20530_s26 + $0xb8] sm:$0xff]  ;;  %9078 = vmatpush.bf16.msrb.mxu2 %v13402_v43 }
 0x67e   : > { %v8306_v58 = vsel %vm8290_vm15, %v8281_v8, %v8298_v39  ;;  %v8541_v8 = vor.u32 %v8540_v0, %v8537_v53  ;;  %v8416_v39 = vrot.slane %v8392_v28, 7  ;;  %v8432_v46 = vsel %vm13934_vm8, %v8355_v24, %v8394_v1  ;;  %9107 = vmatpush.bf16.msrb.mxu3 %v13410_v22 }
 0x67f   : > { %v8395_v48 = vrot.slane %v8358_v13, 7  ;;  %v8314_v32 = vpack.c.bf16 %v8306_v58, %v8306_v58  ;;  %v8417_v3 = vrot.slane %v8396_v37, 7  ;;  %v8528_v62 = vrot.slane %v8527_v12, 4 }
 0x680   : > { %v8532_v45 = vrot.slane %v8530_v15, 5  ;;  %v8546_v63 = vrot.slane %v8544_v10, 5  ;;  %v8440_v1 = vsel %vm17252_vm9, %v8432_v46, %v8416_v39  ;;  %v13401_v10 = vld [vmem:[%s20530_s26 + $0x70] sm:$0xff]  ;;  %vm9840_vm0 = vsmask.f32 2304 }
 0x681   : > { %v8398_v60 = vor.u32 %v8396_v37, %v8395_v48  ;;  %v8330_v55 = vunpack.c.l.b16 %v8314_v32  ;;  %9079 = vmatpush.bf16.msrb.mxu2 %v13401_v10  ;;  %vm18982_vm15 = vmand %vm7662_vm11, %vm9840_vm0 }
 0x682   : > { %v8533_v36 = vsel %vm17292_vm1, %v8528_v62, %v8532_v45 }
 0x683   : > { %v8433_v19 = vsel %vm13934_vm8, %v8358_v13, %v8398_v60  ;;  %v8338_v38 = vpack.c.b16 %v8330_v55, %v8330_v55  ;;  %8683 = vrot.lane.b32.xlu2 %v8679_v59, %s20260_s2  ;;  %v8542_v13 = vrot.slane %v8541_v8, 4  ;;  %v18623_v21 = vunpack.c.l.b16 %v8533_v36  ;;  %v13409_v8 = vld [vmem:[%s20530_s26 + $0xb0] sm:$0xff] }
 0x684   : > { %v8441_v23 = vsel %vm17252_vm9, %v8433_v19, %v8417_v3  ;;  %v18633_v60 = vunpack.c.l.b16 %v8440_v1  ;;  %v8461_v55 = vunpack.c.h.b16 %v8440_v1  ;;  %v8586_v36 = vrot.slane %v18527_v52, 5  ;;  %9108 = vmatpush.bf16.msrb.mxu3 %v13409_v8  ;;  %v13408_v1 = vld [vmem:[%s20530_s26 + $0xa8] sm:$0xff] }
 0x685   : > { %v8361_v51 = vshrl.u32 %v8338_v38, 16  ;;  %v8400_v29 = vshll.u32 %v8338_v38, 16  ;;  %v18609_v49 = vunpack.c.l.b16 %v8441_v23  ;;  %v8463_v48 = vunpack.c.h.b16 %v8441_v23 }
 0x686   : > { %v8547_v28 = vsel %vm17292_vm1, %v8542_v13, %v8546_v63  ;;  %v18650_v19 = vpack.c.b16 %v18633_v60, %v18633_v60  ;;  %v18652_v38 = vpack.c.b16 %v8461_v55, %v8461_v55  ;;  %v12595_v23 = vrot.slane %v18579_v7, 9  ;;  %v13400_v7 = vld [vmem:[%s20530_s26 + $0x68] sm:$0xff] }
 0x687   : > { %v8399_v41 = vrot.slane %v8361_v51, 7  ;;  %v18619_v37 = vpack.c.b16 %v18609_v49, %v18609_v49  ;;  %v8418_v32 = vrot.slane %v8400_v29, 7  ;;  %v18625_v47 = vunpack.c.l.b16 %v8547_v28  ;;  %9080 = vmatpush.bf16.msrb.mxu2 %v13400_v7 }
 0x688   : > { %v18637_v26 = vpack.c.b16 %v8463_v48, %v8463_v48  ;;  %v8552_v12 = vshll.u32 %v18650_v19, 16  ;;  %v8558_v62 = vshll.u32 %v18652_v38, 16  ;;  %9109 = vmatpush.bf16.msrb.mxu3 %v13408_v1  ;;  %v12596_v1 = vrot.slane %v18590_v35, 9 }
 0x689   : > { %v8402_v58 = vor.u32 %v8400_v29, %v8399_v41  ;;  %v8640_v57 = vpack.c.b16 %v18625_v47, %v18623_v21  ;;  %v8563_v15 = vshrl.u32 %v18619_v37, 16  ;;  %v8566_v9 = vshll.u32 %v18619_v37, 16 }
 0x68a   : > { %v8590_v41 = vrot.slane %v18586_v18, 5  ;;  %v8572_v45 = vshll.u32 %v18637_v26, 16  ;;  %v8554_v13 = vrot.slane %v8552_v12, 5 }
 0x68b   : > { %v8434_v24 = vsel %vm13934_vm8, %v8361_v51, %v8402_v58  ;;  %8646 = vrot.lane.b32.xlu1 %v8640_v57, %s20260_s2  ;;  %v8565_v0 = vrot.slane %v8563_v15, 4  ;;  %v8549_v51 = vshrl.u32 %v18650_v19, 16  ;;  %v8568_v29 = vrot.slane %v8566_v9, 5  ;;  %v13399_v9 = vld [vmem:[%s20530_s26 + $0x60] sm:$0xff] }
 0x68c   : > { %v8442_v42 = vsel %vm17252_vm9, %v8434_v24, %v8418_v32  ;;  %v12594_v58 = vrot.slane %v18525_v25, 9  ;;  %v8574_v28 = vrot.slane %v8572_v45, 5  ;;  %v8662_v25 = vpack.c.b16 %v18565_v20, %v18515_v14  ;;  %9081 = vmatpush.bf16.msrb.mxu2 %v13399_v9  ;;  %v13418_v9 = vld [vmem:[%s20530_s26 + $0xf8] sm:$0xff] }
 0x68d   : > { %v18639_v59 = vunpack.c.l.b16 %v8442_v42  ;;  %v8606_v31 = vunpack.c.h.b16 %v8442_v42  ;;  %v8551_v46 = vrot.slane %v8549_v51, 4  ;;  %v8569_v63 = vor.u32 %v8568_v29, %v8565_v0  ;;  %v13407_v51 = vld [vmem:[%s20530_s26 + $0xa0] sm:$0xff]  ;;  %9136 = vmatpush.bf16.msrb.mxu0 %v13418_v9 }
 0x68e   : > { %v18692_v52 = vsel %vm17761_vm4, %v12595_v23, %v8590_v41  ;;  %v8560_v42 = vrot.slane %v8558_v62, 5  ;;  %v8587_v22 = vsel %vm17761_vm4, %v12594_v58, %v8586_v36  ;;  %v8627_v23 = vpack.c.b16 %v18476_v30, %v18467_v44  ;;  %9110 = vmatpush.bf16.msrb.mxu3 %v13407_v51  ;;  %v13416_v51 = vld [vmem:[%s20530_s26 + $0xe8] sm:$0xff] }
 0x68f   : > { %v18661_v3 = vpack.c.b16 %v18639_v59, %v18639_v59  ;;  %v8664_v53 = vpack.c.b16 %v18639_v59, %v18609_v49  ;;  %v8608_v39 = vpack.c.b16 %v8606_v31, %v8606_v31  ;;  %v8555_v18 = vor.u32 %v8554_v13, %v8551_v46 }
 0x690   : > { %v8570_v32 = vrot.slane %v8569_v63, 4  ;;  %v18718_v45 = vpack.c.b16 %v8651_v16, %v18569_v40  ;;  %v8628_v46 = vpack.c.b16 %v18515_v14, %v18467_v44  ;;  %v8652_v13 = vunpack.c.l.b16 %v8587_v22  ;;  %v13395_v22 = vld [vmem:[%s20530_s26 + $0x40] sm:$0xff]  ;;  %v13424_v14 = vld [vmem:[%s19817_s13 + $0x8] sm:$0xff] }
 0x691   : > { %8671 = vrot.lane.b32.xlu2 %v8664_v53, %s20260_s2  ;;  %v8610_v48 = vshrl.u32 %v18661_v3, 16  ;;  %v8613_v24 = vshll.u32 %v18661_v3, 16  ;;  %v8556_v57 = vrot.slane %v8555_v18, 4  ;;  %v8619_v4 = vshll.u32 %v8608_v39, 16 }
 0x692   : > { %v8575_v15 = vsel %vm17292_vm1, %v8570_v32, %v8574_v28  ;;  %v8653_v53 = vunpack.c.l.b16 %v18692_v52  ;;  %v12599_v29 = vrot.slane %v18661_v3, 9  ;;  %v8625_v8 = vrot.slane %v8608_v39, 5  ;;  %v13398_v3 = vld [vmem:[%s20530_s26 + $0x58] sm:$0xff] }
 0x693   : > { %v8612_v55 = vrot.slane %v8610_v48, 4  ;;  %v8615_v43 = vrot.slane %v8613_v24, 5  ;;  %8667 = vrot.lane.b32.xlu1 %v8662_v25, %s20260_s2  ;;  %v18697_v31 = vunpack.c.l.b16 %v8575_v15  ;;  %v8561_v0 = vsel %vm17292_vm1, %v8556_v57, %v8560_v42  ;;  %9082 = vmatpush.bf16.msrb.mxu2 %v13398_v3 }
 0x694   : > { %v18710_v12 = vunpack.c.l.b16 %v8561_v0  ;;  %v8621_v62 = vrot.slane %v8619_v4, 5  ;;  %v12598_v39 = vrot.slane %v18619_v37, 9  ;;  %v8602_v58 = vrot.slane %v18637_v26, 5  ;;  %v13406_v4 = vld [vmem:[%s20530_s26 + $0x98] sm:$0xff]  ;;  %v13417_v0 = vld [vmem:[%s20530_s26 + $0xf0] sm:$0xff] }
 0x695   : > { %v8616_v10 = vor.u32 %v8615_v43, %v8612_v55  ;;  %v8680_v16 = vpack.c.b16 %v8653_v53, %v8652_v13  ;;  %v8626_v48 = vsel %vm17761_vm4, %v12599_v29, %v8625_v8  ;;  %v8674_v37 = vpack.c.b16 %v18519_v61, %v18521_v27  ;;  %9111 = vmatpush.bf16.msrb.mxu3 %v13406_v4  ;;  %v13403_v8 = vld [vmem:[%s20530_s26 + $0x80] sm:$0xff]  ;;  %v13425_v27 = vld [vmem:[%s19817_s13 + $0x10] sm:$0xff] }
 0x696   : > { %v8641_v63 = vpack.c.b16 %v18697_v31, %v18710_v12  ;;  %v8603_v26 = vsel %vm17761_vm4, %v12598_v39, %v8602_v58  ;;  %v12597_v18 = vrot.slane %v18650_v19, 9  ;;  %v8598_v32 = vrot.slane %v18652_v38, 5  ;;  %9137 = vmatpush.bf16.msrb.mxu0 %v13417_v0  ;;  %v13413_v39 = vld [vmem:[%s20530_s26 + $0xd0] sm:$0xff]  ;;  %v13412_v58 = vld [vmem:[%s20530_s26 + $0xc8] sm:$0xff]  ;;  %v13419_v61 = vld [vmem:[%s20530_s26 + $0x100] sm:$0xff] }
 0x697   : > { %v8617_v41 = vrot.slane %v8616_v10, 4  ;;  %v8678_v28 = vunpack.c.l.b16 %v8626_v48  ;;  %v18750_v24 = vpack.c.b16 %v8652_v13, %v18569_v40  ;;  %v8594_v25 = vrot.slane %v18592_v2, 5  ;;  %9083 = vmatpush.bf16.msrb.mxu2 %v13397_v5  ;;  %v13404_v10 = vld [vmem:[%s20530_s26 + $0x88] sm:$0xff] }
 0x698   : > { %8648 = vrot.lane.b32.xlu0 %v8641_v63, %s20260_s2  ;;  %v8656_v52 = vunpack.c.l.b16 %v8603_v26  ;;  %v8663_v42 = vpack.c.b16 %v18633_v60, %v18575_v33  ;;  %v8599_v19 = vsel %vm17761_vm4, %v12597_v18, %v8598_v32  ;;  %v8629_v2 = vpack.c.b16 %v18575_v33, %v18565_v20  ;;  %v13414_v63 = vld [vmem:[%s20530_s26 + $0xd8] sm:$0xff] }
 0x699   : > { %v8622_v50 = vsel %vm17292_vm1, %v8617_v41, %v8621_v62  ;;  %v8595_v38 = vsel %vm17761_vm4, %v12596_v1, %v8594_v25  ;;  %v8655_v40 = vunpack.c.l.b16 %v8599_v19  ;;  %v8675_v15 = vpack.c.b16 %v18623_v21, %v18573_v6  ;;  %v13415_v41 = vld [vmem:[%s20530_s26 + $0xe0] sm:$0xff] }
 0x69a   : > { %v18732_v36 = vunpack.c.l.b16 %v8622_v50  ;;  %v8682_v55 = vpack.c.b16 %v8678_v28, %v8656_v52  ;;  %v8654_v35 = vunpack.c.l.b16 %v8595_v38  ;;  %v8630_v29 = vpack.c.b16 %v18609_v49, %v18633_v60  ;;  %9138 = vmatpush.bf16.msrb.mxu0 %v13416_v51  ;;  %v13422_v60 = vld [vmem:[%s20530_s26 + $0x118] sm:$0xff]  ;;  %v13423_v25 = vld [vmem:[%s19817_s13] sm:$0xff] }
 0x69b   : > { %8685 = vrot.lane.b32.xlu1 %v8680_v16, %s20260_s2  ;;  %9084 = vmatpush.bf16.msrb.mxu2 %v13396_v17  ;;  %v8676_v62 = vpack.c.b16 %v18710_v12, %v18625_v47  ;;  %v18803_v13 = vpack.c.b16 %v8656_v52, %v8655_v40  ;;  %v8691_v3 = vpack.c.b16 %v18609_v49, %v18639_v59  ;;  %v13411_v16 = vld [vmem:[%s20530_s26 + $0xc0] sm:$0xff] }
 0x69c   : > { %v8692_v7 = vpack.c.b16 %v18697_v31, %v18732_v36  ;;  %v8681_v57 = vpack.c.b16 %v8655_v40, %v8654_v35  ;;  %v18767_v43 = vpack.c.b16 %v8654_v35, %v8653_v53  ;;  %v13405_v53 = vld [vmem:[%s20530_s26 + $0x90] sm:$0xff]  ;;  %9169 = vmatpush.bf16.msrb.mxu1 %v13422_v60  ;;  %v18819_v50 = vpack.c.b16 %v8656_v52, %v8678_v28 }
 0x69d   : > { %9112 = vmatpush.bf16.msrb.mxu3 %v13405_v53  ;;  %v8677_v49 = vpack.c.b16 %v18732_v36, %v18697_v31  ;;  %v13420_v31 = vld [vmem:[%s20530_s26 + $0x108] sm:$0xff] }
 0x69e   : > { %8693 = vrot.lane.b32.xlu2 %v8692_v7, %s20260_s2  ;;  %9139 = vmatpush.bf16.msrb.mxu0 %v13415_v41  ;;  %v13421_v7 = vld [vmem:[%s20530_s26 + $0x110] sm:$0xff] }
 0x69f   : > { %9085 = vmatpush.bf16.msrb.mxu2 %v13395_v22  ;;  %v18901_v22 = vld [vmem:[%s20533_s12] ss:$0 sm:$0xff] }
 0x6a0   : > { %8669 = vrot.lane.b32.xlu0 %v8663_v42, %s20260_s2  ;;  %9170 = vmatpush.bf16.msrb.mxu1 %v13421_v7 }
 0x6a1   : > { %9113 = vmatpush.bf16.msrb.mxu3 %v13404_v10 }
 0x6a2   : > { %9140 = vmatpush.bf16.msrb.mxu0 %v13414_v63 }
 0x6a3   : > { %8689 = vrot.lane.b32.xlu1 %v8682_v55, %s20260_s2 }
 0x6a4   : > { %9171 = vmatpush.bf16.msrb.mxu1 %v13420_v31 }
 0x6a5   : > { %9114 = vmatpush.bf16.msrb.mxu3 %v13403_v8 }
 0x6a6   : > { %9141 = vmatpush.bf16.msrb.mxu0 %v13413_v39 }
 0x6a8   : > { %8687 = vrot.lane.b32.xlu0 %v8681_v57, %s20260_s2  ;;  %9172 = vmatpush.bf16.msrb.mxu1 %v13419_v61 }
 0x6aa   : > { %9142 = vmatpush.bf16.msrb.mxu0 %v13412_v58 }
 0x6ae   : > { %9143 = vmatpush.bf16.msrb.mxu0 %v13411_v16 }
 0x6cd   : > { %v8643_v59 = vpop.permute.xlu2 %8642 }
 0x6ce   : > { %v8698_v48 = vsel %vm2163_vm10, %v8627_v23, %v8643_v59  ;;  %v13426_v23 = vld [vmem:[%s19817_s13 + $0x18] sm:$0xff] }
 0x6cf   : > { %9057 = vmatmul.bf16.vlgmr.msra.gmra.mxu1 %v8698_v48  ;;  %9594 = vmatpush.bf16.msra.mxu2 %v13426_v23 }
 0x6d3   : > { %9595 = vmatpush.bf16.msra.mxu2 %v13425_v27 }
 0x6d5   : > { %v8666_v5 = vpop.permute.xlu2 %8665 }
 0x6d6   : > { %v8714_v26 = vsel %vm2163_vm10, %v18718_v45, %v8666_v5 }
 0x6d7   : > { %9086 = vmatmul.bf16.vlgmr.msrb.gmra.mxu2 %v8714_v26 }
 0x6d8   : > { %9596 = vmatpush.bf16.msra.mxu2 %v13424_v14 }
 0x6dc   : > { %9597 = vmatpush.bf16.msra.mxu2 %v13423_v25 }
 0x6dd   : > { %v8684_v18 = vpop.permute.xlu2 %8683 }
 0x6de   : > { %v8730_v30 = vsel %vm2163_vm10, %v8674_v37, %v8684_v18 }
 0x6df   : > { %9115 = vmatmul.bf16.vlgmr.msrb.gmra.mxu3 %v8730_v30 }
 0x6eb   : > { %v8645_v36 = vpop.permute.xlu0 %8644  ;;  %v8672_v19 = vpop.permute.xlu2 %8671 }
 0x6ec   : > { %v8702_v45 = vsel %vm2163_vm10, %v8628_v46, %v8645_v36  ;;  %v8726_v40 = vsel %vm2163_vm10, %v18803_v13, %v8672_v19 }
 0x6ed   : > { %9062 = vmatmul.bf16.gmra.mxu1 %v8702_v45  ;;  %9144 = vmatmul.bf16.vlgmr.msrb.gmra.mxu0 %v8702_v45 }
 0x6f8   : > { %v8694_v21 = vpop.permute.xlu2 %8693 }
 0x6f9   : > { %v8746_v38 = vsel %vm2163_vm10, %v8691_v3, %v8694_v21 }
 0x6fd   : > { %v8647_v37 = vpop.permute.xlu1 %8646 }
 0x6fe   : > { %v8706_v44 = vsel %vm2163_vm10, %v8629_v2, %v8647_v37 }
 0x6ff   : > { %9067 = vmatmul.bf16.gmra.mxu1 %v8706_v44  ;;  %9149 = vmatmul.bf16.gmra.mxu0 %v8706_v44 }
 0x705   : > { %v8668_v46 = vpop.permute.xlu1 %8667 }
 0x706   : > { %v8718_v32 = vsel %vm2163_vm10, %v18750_v24, %v8668_v46 }
 0x707   : > { %9091 = vmatmul.bf16.gmra.mxu2 %v8718_v32 }
 0x70a   : > { %v8649_v28 = vpop.permute.xlu0 %8648 }
 0x70b   : > { %v8710_v33 = vsel %vm2163_vm10, %v8630_v29, %v8649_v28 }
 0x70d   : > { %v8686_v1 = vpop.permute.xlu1 %8685 }
 0x70e   : > { %v8734_v20 = vsel %vm2163_vm10, %v8675_v15, %v8686_v1 }
 0x70f   : > { %9120 = vmatmul.bf16.gmra.mxu3 %v8734_v20  ;;  %9072 = vmatmul.bf16.gmra.mxu1 %v8710_v33 }
 0x710   : > { %9154 = vmatmul.bf16.gmra.mxu0 %v8710_v33 }
 0x712   : > { %v8670_v52 = vpop.permute.xlu0 %8669 }
 0x713   : > { %v8722_v42 = vsel %vm2163_vm10, %v18767_v43, %v8670_v52 }
 0x715   : > { %v8690_v35 = vpop.permute.xlu1 %8689 }
 0x716   : > { %v8742_v2 = vsel %vm2163_vm10, %v8677_v49, %v8690_v35 }
 0x717   : > { %9096 = vmatmul.bf16.gmra.mxu2 %v8722_v42 }
 0x71a   : > { %v8688_v55 = vpop.permute.xlu0 %8687 }
 0x71b   : > { %v8738_v6 = vsel %vm2163_vm10, %v8676_v62, %v8688_v55 }
 0x71f   : > { %9125 = vmatmul.bf16.gmra.mxu3 %v8738_v6  ;;  %12744 = vmatmul.msk.bf16.vlgmr.msrb.gmra.mxu1 %vm2163_vm10, %v18750_v24 }
 0x720   : > { %9159 = vmatmul.bf16.gmra.mxu0 %v8746_v38 }
 0x727   : > { %9101 = vmatmul.bf16.gmra.mxu2 %v8726_v40 }
 0x72f   : > { %9130 = vmatmul.bf16.gmra.mxu3 %v8742_v2  ;;  %12745 = vmatmul.msk.bf16.gmra.mxu1 %vm2163_vm10, %v18767_v43 }
 0x737   : > { %12796 = vmatmul.msk.bf16.vlgmr.msra.gmra.mxu2 %vm2163_vm10, %v9562_v11 }
 0x73f   : > { %12746 = vmatmul.msk.bf16.gmra.mxu1 %vm2163_vm10, %v18803_v13 }
 0x74c   : > { %v9058_v47 = vpop.f32.mrf.mxu1 }
 0x74d   : > { %v9059_v10 = vadd.f32 %v18901_v22, %v9058_v47 }
 0x74f   : > { %12747 = vmatmul.msk.bf16.gmra.mxu1 %vm2163_vm10, %v18819_v50 }
 0x754   : > { %v9060_v12 = vpop.f32.mrf.mxu1 }
 0x755   : > { %v9061_v60 = vadd.f32 %v18901_v22, %v9060_v12 }
 0x75a   : > { %v9087_v15 = vpop.f32.mrf.mxu2 }
 0x75b   : > { %v9088_v29 = vadd.f32 %v9087_v15, %v9059_v10 }
 0x762   : > { %v9089_v4 = vpop.f32.mrf.mxu2  ;;  %v9116_v11 = vpop.f32.mrf.mxu3 }
 0x763   : > { %v9117_v8 = vadd.f32 %v9116_v11, %v9088_v29  ;;  %v9090_v39 = vadd.f32 %v9089_v4, %v9061_v60 }
 0x76a   : > { %v9063_v24 = vpop.f32.mrf.mxu1  ;;  %v9145_v53 = vpop.f32.mrf.mxu0 }
 0x76b   : > { %v9118_v41 = vpop.f32.mrf.mxu3  ;;  %v9146_v62 = vadd.f32 %v9145_v53, %v9117_v8  ;;  %v9064_v16 = vadd.f32 %v18901_v22, %v9063_v24 }
 0x76c   : > { %v9119_v50 = vadd.f32 %v9118_v41, %v9090_v39 }
 0x772   : > { %v9065_v57 = vpop.f32.mrf.mxu1  ;;  %v9147_v63 = vpop.f32.mrf.mxu0 }
 0x773   : > { %v9148_v5 = vadd.f32 %v9147_v63, %v9119_v50  ;;  %v9066_v28 = vadd.f32 %v18901_v22, %v9065_v57 }
 0x77c   : > { %v18894_v17 = vpop.f32.mrf.mxu1  ;;  %v9150_v1 = vpop.f32.mrf.mxu0 }
 0x784   : > { %v18896_v43 = vpop.f32.mrf.mxu1 }
 0x78a   : > { %v9092_v9 = vpop.f32.mrf.mxu2 }
 0x78b   : > { %v9093_v26 = vadd.f32 %v9092_v9, %v9064_v16  ;;  %v18920_v16 = vld [vmem:[%s19818_s14] ss:$0 sm:$0xff] }
 0x78c   : > { %v9073_v54 = vpop.f32.mrf.mxu1 }
 0x78d   : > { %v9074_v31 = vadd.f32 %v18901_v22, %v9073_v54 }
 0x792   : > { %v9094_v34 = vpop.f32.mrf.mxu2  ;;  %v9121_v49 = vpop.f32.mrf.mxu3 }
 0x793   : > { %v9122_v36 = vadd.f32 %v9121_v49, %v9093_v26  ;;  %v9095_v12 = vadd.f32 %v9094_v34, %v9066_v28 }
 0x794   : > { %v9075_v0 = vpop.f32.mrf.mxu1 }
 0x795   : > { %v9151_v38 = vadd.f32 %v9150_v1, %v9122_v36  ;;  %v9076_v11 = vadd.f32 %v18901_v22, %v9075_v0 }
 0x79a   : > { %v18904_v51 = vpop.f32.mrf.mxu2  ;;  %v9123_v24 = vpop.f32.mrf.mxu3 }
 0x79b   : > { %v9124_v53 = vadd.f32 %v9123_v24, %v9095_v12 }
 0x79c   : > { %v9174_v13 = vpop.f32.mrf.mxu1 }
 0x79d   : > { %v9175_v3 = vadd.f32 %v9174_v13, %v9146_v62  ;;  %v9152_v13 = vpop.f32.mrf.mxu0 }
 0x79e   : > { %v9153_v63 = vadd.f32 %v9152_v13, %v9124_v53 }
 0x79f   : > { %v9202_v59 = vrot.slane %v9175_v3, 2  ;;  %v9203_v48 = vrot.slane %v9175_v3, 4  ;;  %v9204_v7 = vrot.slane %v9175_v3, 6  ;;  %v12748_v18 = vrot.slane %v9175_v3, 9 }
 0x7a1   : > { %v12749_v45 = vrot.slane %v9202_v59, 9  ;;  %v12750_v61 = vrot.slane %v9203_v48, 9  ;;  %v12751_v27 = vrot.slane %v9204_v7, 9  ;;  %v9346_v20 = vadd.f32 %v12748_v18, %v9175_v3 }
 0x7a2   : > { %v18907_v58 = vpop.f32.mrf.mxu2 }
 0x7a3   : > { %v9347_v55 = vadd.f32 %v12749_v45, %v9202_v59  ;;  %v9348_v6 = vadd.f32 %v12750_v61, %v9203_v48  ;;  %v9349_v21 = vadd.f32 %v12751_v27, %v9204_v7 }
 0x7a4   : > { %v9176_v30 = vpop.f32.mrf.mxu1 }
 0x7a5   : > { %v9177_v23 = vadd.f32 %v9176_v30, %v9148_v5 }
 0x7a7   : > { %v9205_v37 = vrot.slane %v9177_v23, 2  ;;  %v9206_v44 = vrot.slane %v9177_v23, 4  ;;  %v9207_v14 = vrot.slane %v9177_v23, 6  ;;  %v12752_v46 = vrot.slane %v9177_v23, 9 }
 0x7a9   : > { %v12753_v25 = vrot.slane %v9205_v37, 9  ;;  %v12754_v52 = vrot.slane %v9206_v44, 9  ;;  %v12755_v42 = vrot.slane %v9207_v14, 9  ;;  %v9350_v19 = vadd.f32 %v12752_v46, %v9177_v23 }
 0x7aa   : > { %v9102_v32 = vpop.f32.mrf.mxu2 }
 0x7ab   : > { %v18912_v33 = vadd.f32 %v9102_v32, %v9074_v31  ;;  %v9351_v40 = vadd.f32 %v12753_v25, %v9205_v37  ;;  %v9352_v35 = vadd.f32 %v12754_v52, %v9206_v44  ;;  %v9353_v2 = vadd.f32 %v12755_v42, %v9207_v14 }
 0x7ac   : > { %v9378_v47 = vadd.f32 %v9350_v19, %v9346_v20  ;;  %v9179_v15 = vpop.f32.mrf.mxu1 }
 0x7ad   : > { %v9379_v57 = vadd.f32 %v9351_v40, %v9347_v55  ;;  %v9380_v4 = vadd.f32 %v9352_v35, %v9348_v6  ;;  %v9381_v9 = vadd.f32 %v9353_v2, %v9349_v21  ;;  %v9180_v54 = vadd.f32 %v9179_v15, %v9151_v38 }
 0x7ae   : > { %v9394_v49 = vmul.f32 0.25, %v9378_v47 }
 0x7af   : > { %v9208_v29 = vrot.slane %v9180_v54, 2  ;;  %v9209_v8 = vrot.slane %v9180_v54, 4  ;;  %v9210_v41 = vrot.slane %v9180_v54, 6  ;;  %v12756_v60 = vrot.slane %v9180_v54, 9 }
 0x7b0   : > { %v9397_v59 = vmul.f32 0.25, %v9381_v9  ;;  %v9395_v7 = vmul.f32 0.25, %v9379_v57  ;;  %v9396_v5 = vmul.f32 0.25, %v9380_v4 }
 0x7b1   : > { %v12757_v3 = vrot.slane %v9208_v29, 9  ;;  %v12758_v34 = vrot.slane %v9209_v8, 9  ;;  %v12759_v39 = vrot.slane %v9210_v41, 9  ;;  %v9354_v48 = vadd.f32 %v12756_v60, %v9180_v54 }
 0x7b2   : > { %v9104_v10 = vpop.f32.mrf.mxu2 }
 0x7b3   : > { %v18915_v62 = vadd.f32 %v9104_v10, %v9076_v11  ;;  %v9355_v36 = vadd.f32 %v12757_v3, %v9208_v29  ;;  %v9356_v45 = vadd.f32 %v12758_v34, %v9209_v8  ;;  %v9357_v61 = vadd.f32 %v12759_v39, %v9210_v41 }
 0x7b4   : > { %v9181_v50 = vpop.f32.mrf.mxu1 }
 0x7b5   : > { %v9182_v0 = vadd.f32 %v9181_v50, %v9153_v63 }
 0x7b7   : > { %v9211_v26 = vrot.slane %v9182_v0, 2  ;;  %v9212_v18 = vrot.slane %v9182_v0, 4  ;;  %v9213_v30 = vrot.slane %v9182_v0, 6  ;;  %v12760_v31 = vrot.slane %v9182_v0, 9 }
 0x7b9   : > { %v12761_v37 = vrot.slane %v9211_v26, 9  ;;  %v12762_v44 = vrot.slane %v9212_v18, 9  ;;  %v12763_v14 = vrot.slane %v9213_v30, 9  ;;  %v9358_v46 = vadd.f32 %v12760_v31, %v9182_v0 }
 0x7ba   : > { %v9599_v23 = vpop.f32.mrf.mxu2 }
 0x7bb   : > { %v9600_v27 = vadd.f32 %v18920_v16, %v9599_v23  ;;  %v9359_v25 = vadd.f32 %v12761_v37, %v9211_v26  ;;  %v9360_v52 = vadd.f32 %v12762_v44, %v9212_v18  ;;  %v9361_v42 = vadd.f32 %v12763_v14, %v9213_v30 }
 0x7bc   : > { %v9382_v19 = vadd.f32 %v9358_v46, %v9354_v48 }
 0x7bd   : > { %v9606_v32 = vrot.slane %v9600_v27, 2  ;;  %v9607_v28 = vrot.slane %v9600_v27, 4  ;;  %v9608_v1 = vrot.slane %v9600_v27, 6  ;;  %v9612_v20 = vrot.slane %v9600_v27, 1 }
 0x7be   : > { %v18923_v38 = vadd.f32 %v9600_v27, %v9394_v49  ;;  %v9383_v40 = vadd.f32 %v9359_v25, %v9355_v36  ;;  %v9384_v35 = vadd.f32 %v9360_v52, %v9356_v45  ;;  %v9385_v2 = vadd.f32 %v9361_v42, %v9357_v61 }
 0x7bf   : > { %v9613_v55 = vrot.slane %v9606_v32, 1  ;;  %v9614_v6 = vrot.slane %v9607_v28, 1  ;;  %v9615_v21 = vrot.slane %v9608_v1, 1  ;;  %v9398_v47 = vmul.f32 0.25, %v9382_v19 }
 0x7c0   : > { %v18925_v12 = vadd.f32 %v9612_v20, %v9395_v7  ;;  %v18927_v24 = vadd.f32 %v9606_v32, %v9396_v5  ;;  %vm9652_vm9 = vcmp.gt.f32.partialorder %v18923_v38, 0.0  ;;  %v9399_v57 = vmul.f32 0.25, %v9383_v40 }
 0x7c1   : > { %v18929_v15 = vadd.f32 %v9613_v55, %v9397_v59  ;;  %v9401_v4 = vmul.f32 0.25, %v9385_v2  ;;  %v9400_v9 = vmul.f32 0.25, %v9384_v35  ;;  %v18932_v54 = vadd.f32 %v9607_v28, %v9398_v47 }
 0x7c2   : > { %vm9653_vm1 = vcmp.gt.f32.partialorder %v18925_v12, 0.0  ;;  %vm9654_vm4 = vcmp.gt.f32.partialorder %v18927_v24, 0.0  ;;  %v9668_v11 = vmul.f32 0.2, %v18923_v38  ;;  %v18938_v53 = vadd.f32 %v9614_v6, %v9399_v57  ;;  %v9126_v6 = vpop.f32.mrf.mxu3 }
 0x7c3   : > { %vm9655_vm6 = vcmp.gt.f32.partialorder %v18929_v15, 0.0  ;;  %v18940_v10 = vadd.f32 %v9608_v1, %v9400_v9  ;;  %v18942_v29 = vadd.f32 %v9615_v21, %v9401_v4  ;;  %vm9656_vm2 = vcmp.gt.f32.partialorder %v18932_v54, 0.0 }
 0x7c4   : > { %v9669_v8 = vmul.f32 0.2, %v18925_v12  ;;  %v9670_v41 = vmul.f32 0.2, %v18927_v24  ;;  %v9671_v13 = vmul.f32 0.2, %v18929_v15  ;;  %v9684_v60 = vsel %vm9652_vm9, %v18923_v38, %v9668_v11 }
 0x7c5   : > { %vm9657_vm3 = vcmp.gt.f32.partialorder %v18938_v53, 0.0  ;;  %vm9658_vm7 = vcmp.gt.f32.partialorder %v18940_v10, 0.0  ;;  %vm9659_vm5 = vcmp.gt.f32.partialorder %v18942_v29, 0.0  ;;  %v9672_v63 = vmul.f32 0.2, %v18932_v54 }
 0x7c6   : > { %v9673_v3 = vmul.f32 0.2, %v18938_v53  ;;  %v9674_v34 = vmul.f32 0.2, %v18940_v10  ;;  %v9675_v39 = vmul.f32 0.2, %v18942_v29  ;;  %v9685_v50 = vsel %vm9653_vm1, %v18925_v12, %v9669_v8 }
 0x7c7   : > { %v9686_v0 = vsel %vm9654_vm4, %v18927_v24, %v9670_v41  ;;  %v9687_v49 = vsel %vm9655_vm6, %v18929_v15, %v9671_v13  ;;  %v9688_v59 = vsel %vm9656_vm2, %v18932_v54, %v9672_v63  ;;  %v9700_v48 = vpack.c.bf16 %v9684_v60, %v9684_v60 }
 0x7c8   : > { %v9689_v7 = vsel %vm9657_vm3, %v18938_v53, %v9673_v3  ;;  %v9690_v5 = vsel %vm9658_vm7, %v18940_v10, %v9674_v34  ;;  %v9691_v26 = vsel %vm9659_vm5, %v18942_v29, %v9675_v39  ;;  %v9701_v18 = vpack.c.bf16 %v9685_v50, %v9685_v50 }
 0x7c9   : > { %v9702_v30 = vpack.c.bf16 %v9686_v0, %v9686_v0  ;;  %v9703_v31 = vpack.c.bf16 %v9687_v49, %v9687_v49  ;;  %v9704_v23 = vpack.c.bf16 %v9688_v59, %v9688_v59  ;;  %v9705_v36 = vpack.c.bf16 %v9689_v7, %v9689_v7 }
 0x7ca   : > { %v9706_v45 = vpack.c.bf16 %v9690_v5, %v9690_v5  ;;  %v9707_v61 = vpack.c.bf16 %v9691_v26, %v9691_v26  ;;  %v9732_v27 = vunpack.c.l.b16 %v9700_v48  ;;  %v9733_v37 = vunpack.c.l.b16 %v9701_v18 }
 0x7cb   : > { %v9734_v44 = vunpack.c.l.b16 %v9702_v30  ;;  %v9735_v14 = vunpack.c.l.b16 %v9703_v31  ;;  %v9736_v46 = vunpack.c.l.b16 %v9704_v23  ;;  %v9737_v32 = vunpack.c.l.b16 %v9705_v36 }
 0x7cc   : > { %v9738_v28 = vunpack.c.l.b16 %v9706_v45  ;;  %v9739_v1 = vunpack.c.l.b16 %v9707_v61  ;;  %v12797_v20 = vunpack.i.l.s16 %v9732_v27  ;;  %v12798_v25 = vunpack.i.l.s16 %v9733_v37  ;;  %v9155_v27 = vpop.f32.mrf.mxu0 }
 0x7cd   : > { %v9750_v52 = vpack.c.b16 %v9734_v44, %v9734_v44  ;;  %v12799_v42 = vunpack.i.l.s16 %v9734_v44  ;;  %v12800_v19 = vunpack.i.l.s16 %v9735_v14  ;;  %v12801_v55 = vunpack.i.l.s16 %v9736_v46 }
 0x7ce   : > { %v9754_v21 = vpack.c.b16 %v9738_v28, %v9738_v28  ;;  %v12802_v40 = vunpack.i.l.s16 %v9737_v32  ;;  %v12803_v35 = vunpack.i.l.s16 %v9738_v28  ;;  %v12804_v2 = vunpack.i.l.s16 %v9739_v1 }
 0x7cf   : > { %v9780_v47 = vrot.slane %v12797_v20, 7  ;;  %v9781_v57 = vrot.slane %v12798_v25, 6  ;;  %v9783_v4 = vrot.slane %v12799_v42, 5  ;;  %v9785_v9 = vrot.slane %v12800_v19, 4 }
 0x7d0   : > { %v9787_v11 = vrot.slane %v12801_v55, 7  ;;  %v9788_v8 = vrot.slane %v12802_v40, 6  ;;  %v9790_v41 = vrot.slane %v12803_v35, 5  ;;  %v9792_v60 = vrot.slane %v12804_v2, 4 }
 0x7d1   : > { %v9782_v13 = vsel %vm6471_vm12, %v9781_v57, %v9780_v47  ;;  %v9817_v63 = vshll.u32 %v9750_v52, 16  ;;  %v9821_v39 = vshll.u32 %v9754_v21, 16  ;;  %v11496_v50 = vadd.f32 %v18925_v12, %v18923_v38  ;;  %v9601_v52 = vpop.f32.mrf.mxu2 }
 0x7d2   : > { %v9784_v3 = vsel %vm6474_vm13, %v9783_v4, %v9782_v13  ;;  %v9789_v34 = vsel %vm6471_vm12, %v9788_v8, %v9787_v11  ;;  %v9069_v0 = vadd.f32 %v18901_v22, %v18894_v17  ;;  %v11497_v26 = vadd.f32 %v18929_v15, %v18927_v24 }
 0x7d3   : > { %v9786_v49 = vsel %vm6477_vm14, %v9785_v9, %v9784_v3  ;;  %v9791_v59 = vsel %vm6474_vm13, %v9790_v41, %v9789_v34  ;;  %v11498_v38 = vadd.f32 %v18938_v53, %v18932_v54  ;;  %v9819_v30 = vrot.slane %v9817_v63, 6  ;;  %v9184_v54 = vpop.f32.mrf.mxu1  ;;  %v9128_v53 = vpop.f32.mrf.mxu3 }
 0x7d4   : > { %v9793_v48 = vsel %vm6477_vm14, %v9792_v60, %v9791_v59  ;;  %v9808_v7 = vpack.c.b16 %v9786_v49, %v9786_v49  ;;  %v9098_v17 = vadd.f32 %v18904_v51, %v9069_v0  ;;  %v11499_v31 = vadd.f32 %v18942_v29, %v18940_v10  ;;  %v9157_v46 = vpop.f32.mrf.mxu0 }
 0x7d5   : > { %v9809_v12 = vpack.c.b16 %v9793_v48, %v9793_v48  ;;  %v9823_v23 = vrot.slane %v9821_v39, 6  ;;  %v18995_v61 = vadd.f32 %v11498_v38, %v11496_v50  ;;  %v9071_v29 = vadd.f32 %v18901_v22, %v18896_v43 }
 0x7d6   : > { %v9836_v45 = vsel %vm13934_vm8, %v9701_v18, %v9808_v7  ;;  %v9127_v37 = vadd.f32 %v9126_v6, %v9098_v17  ;;  %v11505_v51 = vadd.f32 %v11499_v31, %v11497_v26  ;;  %v19014_v22 = vadd.f32 %v18920_v16, %v9601_v52 }
 0x7d7   : > { %v9837_v24 = vsel %vm13934_vm8, %v9705_v36, %v9809_v12  ;;  %v19001_v15 = vsel %vm18982_vm15, %v9836_v45, %v9819_v30  ;;  %v9100_v36 = vadd.f32 %v18907_v58, %v9071_v29  ;;  %vm9852_vm6 = vsmask.f32 1280 }
 0x7d8   : > { %v19005_v10 = vsel %vm18982_vm15, %v9837_v24, %v9823_v23  ;;  %9941 = vst [vmem:[#allocation1 + $0x1] ss:$4 sm:$0xff] %v19001_v15  ;;  %v9156_v18 = vadd.f32 %v9155_v27, %v9127_v37  ;;  %v9609_v60 = vrot.slane %v19014_v22, 2  ;;  %v11509_v48 = vmul.f32 0.25, %v11505_v51 }
 0x7d9   : > { %9939 = vst [vmem:[#allocation1] ss:$4 sm:$0xff] %v19005_v10  ;;  %v9129_v14 = vadd.f32 %v9128_v53, %v9100_v36  ;;  %v9616_v7 = vrot.slane %v19014_v22, 1  ;;  %v9850_v45 = vrot.slane %v19001_v15, 2  ;;  %v9860_v51 = vshrl.u32 %v19005_v10, 16 }
 0x7da   : > { %9943 = vst [vmem:[#allocation1 + $0x2] ss:$4 sm:$0xff] %v19005_v10  ;;  %v9185_v44 = vadd.f32 %v9184_v54, %v9156_v18  ;;  %v9617_v26 = vrot.slane %v9609_v60, 1  ;;  %v9874_v54 = vshrl.u32 %v19001_v15, 16  ;;  %v11513_v53 = vpack.c.bf16 %v11509_v48, %v11509_v48 }
 0x7db   : > { %v9186_v20 = vpop.f32.mrf.mxu1  ;;  %v9131_v25 = vpop.f32.mrf.mxu3  ;;  %v9158_v42 = vadd.f32 %v9157_v46, %v9129_v14  ;;  %v9863_v29 = vshll.u32 %v19005_v10, 16  ;;  %v9877_v46 = vshll.u32 %v19001_v15, 16  ;;  %vm9853_vm2 = vsmask.f32 3336 }
 0x7dc   : > { %v9214_v32 = vrot.slane %v9185_v44, 2  ;;  %v9215_v28 = vrot.slane %v9185_v44, 4  ;;  %v9216_v1 = vrot.slane %v9185_v44, 6  ;;  %v12764_v19 = vrot.slane %v9185_v44, 9  ;;  %v9160_v14 = vpop.f32.mrf.mxu0  ;;  %vm9854_vm0 = vmor %vm9852_vm6, %vm9853_vm2 }
 0x7dd   : > { %v9187_v55 = vadd.f32 %v9186_v20, %v9158_v42  ;;  %v9132_v31 = vadd.f32 %v9131_v25, %v18912_v33  ;;  %v9849_v20 = vrot.slane %v19005_v10, 2  ;;  %vm9855_vm3 = vsmask.f32 5392 }
 0x7de   : > { %v12765_v6 = vrot.slane %v9214_v32, 9  ;;  %v12766_v21 = vrot.slane %v9215_v28, 9  ;;  %v12767_v43 = vrot.slane %v9216_v1, 9  ;;  %v9362_v47 = vadd.f32 %v12764_v19, %v9185_v44 }
 0x7df   : > { %v9217_v40 = vrot.slane %v9187_v55, 2  ;;  %v9218_v58 = vrot.slane %v9187_v55, 4  ;;  %v9219_v35 = vrot.slane %v9187_v55, 6  ;;  %v12768_v2 = vrot.slane %v9187_v55, 9 }
 0x7e0   : > { %v9363_v8 = vadd.f32 %v12765_v6, %v9214_v32  ;;  %v9364_v41 = vadd.f32 %v12766_v21, %v9215_v28  ;;  %v9365_v13 = vadd.f32 %v12767_v43, %v9216_v1  ;;  %v11508_v32 = vmul.f32 0.25, %v18995_v61 }
 0x7e1   : > { %v12769_v57 = vrot.slane %v9217_v40, 9  ;;  %v12770_v4 = vrot.slane %v9218_v58, 9  ;;  %v12771_v9 = vrot.slane %v9219_v35, 9  ;;  %v9366_v11 = vadd.f32 %v12768_v2, %v9187_v55 }
 0x7e2   : > { %v11537_v19 = vunpack.c.l.b16 %v11513_v53  ;;  %v9862_v43 = vrot.slane %v9860_v51, 6  ;;  %v11512_v61 = vpack.c.bf16 %v11508_v32, %v11508_v32  ;;  %vm9857_vm7 = vsmask.f32 7448 }
 0x7e3   : > { %v9367_v63 = vadd.f32 %v12769_v57, %v9217_v40  ;;  %v9368_v3 = vadd.f32 %v12770_v4, %v9218_v58  ;;  %v9369_v34 = vadd.f32 %v12771_v9, %v9219_v35  ;;  %v9386_v39 = vadd.f32 %v9366_v11, %v9362_v47  ;;  %v9133_v16 = vpop.f32.mrf.mxu3  ;;  %v9189_v4 = vpop.f32.mrf.mxu1 }
 0x7e4   : > { %v19023_v23 = vadd.f32 %v9133_v16, %v18915_v62  ;;  %v9865_v40 = vrot.slane %v9863_v29, 7  ;;  %v9161_v35 = vadd.f32 %v9160_v14, %v9132_v31  ;;  %v19050_v9 = vrot.slane %v9874_v54, 6 }
 0x7e5   : > { %v9387_v50 = vadd.f32 %v9367_v63, %v9363_v8  ;;  %v9388_v0 = vadd.f32 %v9368_v3, %v9364_v41  ;;  %v9389_v49 = vadd.f32 %v9369_v34, %v9365_v13  ;;  %v9402_v59 = vmul.f32 0.25, %v9386_v39 }
 0x7e6   : > { %v19052_v11 = vrot.slane %v9877_v46, 7  ;;  %v9190_v41 = vadd.f32 %v9189_v4, %v9161_v35  ;;  %v11540_v3 = vrot.slane %v11537_v19, 7  ;;  %v19056_v34 = vshll.u32 %v9850_v45, 16 }
 0x7e7   : > { %v9403_v38 = vmul.f32 0.25, %v9387_v50  ;;  %v9404_v17 = vmul.f32 0.25, %v9388_v0  ;;  %v9405_v12 = vmul.f32 0.25, %v9389_v49  ;;  %v19019_v30 = vadd.f32 %v19014_v22, %v9402_v59 }
 0x7e8   : > { %v9220_v50 = vrot.slane %v9190_v41, 2  ;;  %v9866_v0 = vor.u32 %v9865_v40, %v9862_v43  ;;  %v11536_v49 = vunpack.c.l.b16 %v11512_v61  ;;  %v9221_v48 = vrot.slane %v9190_v41, 4 }
 0x7e9   : > { %v19026_v27 = vadd.f32 %v9616_v7, %v9403_v38  ;;  %v19028_v37 = vadd.f32 %v9609_v60, %v9404_v17  ;;  %v19030_v24 = vadd.f32 %v9617_v26, %v9405_v12  ;;  %vm9660_vm11 = vcmp.gt.f32.partialorder %v19019_v30, 0.0  ;;  %v9162_v12 = vpop.f32.mrf.mxu0 }
 0x7ea   : > { %v9676_v33 = vmul.f32 0.2, %v19019_v30  ;;  %v9222_v17 = vrot.slane %v9190_v41, 6  ;;  %v12772_v51 = vrot.slane %v9190_v41, 9  ;;  %v12773_v54 = vrot.slane %v9220_v50, 9 }
 0x7eb   : > { %vm9661_vm9 = vcmp.gt.f32.partialorder %v19026_v27, 0.0  ;;  %vm9662_vm1 = vcmp.gt.f32.partialorder %v19028_v37, 0.0  ;;  %vm9663_vm4 = vcmp.gt.f32.partialorder %v19030_v24, 0.0  ;;  %v9677_v62 = vmul.f32 0.2, %v19026_v27  ;;  %v9191_v46 = vpop.f32.mrf.mxu1 }
 0x7ec   : > { %v9678_v18 = vmul.f32 0.2, %v19028_v37  ;;  %v9679_v36 = vmul.f32 0.2, %v19030_v24  ;;  %v9692_v44 = vsel %vm9660_vm11, %v19019_v30, %v9676_v33  ;;  %vm20536_vm5 = vcmask 1041409   ;;  %vm9856_vm11 = vmor %vm9854_vm0, %vm9855_vm3 }
 0x7ed   : > { %v9693_v28 = vsel %vm9661_vm9, %v19026_v27, %v9677_v62  ;;  %v9708_v1 = vpack.c.bf16 %v9692_v44, %v9692_v44  ;;  %v19061_v53 = vsel %vm20536_vm5, %v11540_v3, %v11536_v49  ;;  %v9869_v33 = vshll.u32 %v9849_v20, 16  ;;  %vm19095_vm9 = vmor %vm9856_vm11, %vm9857_vm7 }
 0x7ee   : > { %v9694_v25 = vsel %vm9662_vm1, %v19028_v37, %v9678_v18  ;;  %v9695_v52 = vsel %vm9663_vm4, %v19030_v24, %v9679_v36  ;;  %v9709_v42 = vpack.c.bf16 %v9693_v28, %v9693_v28  ;;  %v19068_v29 = vadd.f32 %v19026_v27, %v19019_v30 }
 0x7ef   : > { %v9710_v55 = vpack.c.bf16 %v9694_v25, %v9694_v25  ;;  %v9711_v6 = vpack.c.bf16 %v9695_v52, %v9695_v52  ;;  %v9740_v21 = vunpack.c.l.b16 %v9708_v1  ;;  %v9163_v18 = vadd.f32 %v9162_v12, %v19023_v23 }
 0x7f0   : > { %v9741_v58 = vunpack.c.l.b16 %v9709_v42  ;;  %v9880_v36 = vor.u32 %v19052_v11, %v19050_v9  ;;  %v12774_v14 = vrot.slane %v9221_v48, 9  ;;  %v19075_v32 = vadd.f32 %v19030_v24, %v19028_v37 }
 0x7f1   : > { %v9742_v2 = vunpack.c.l.b16 %v9710_v55  ;;  %v9743_v47 = vunpack.c.l.b16 %v9711_v6  ;;  %v12805_v57 = vunpack.i.l.s16 %v9740_v21  ;;  %v9867_v28 = vrot.slane %v9866_v0, 2 }
 0x7f2   : > { %v12806_v8 = vunpack.i.l.s16 %v9741_v58  ;;  %v9610_v1 = vrot.slane %v19014_v22, 4  ;;  %v9192_v52 = vadd.f32 %v9191_v46, %v9163_v18  ;;  %v12775_v27 = vrot.slane %v9222_v17, 9 }
 0x7f3   : > { %v9758_v13 = vpack.c.b16 %v9742_v2, %v9742_v2  ;;  %v12807_v60 = vunpack.i.l.s16 %v9742_v2  ;;  %v12808_v63 = vunpack.i.l.s16 %v9743_v47  ;;  %v9794_v39 = vrot.slane %v12805_v57, 7 }
 0x7f4   : > { %v9795_v16 = vrot.slane %v12806_v8, 6  ;;  %v9370_v23 = vadd.f32 %v12772_v51, %v9190_v41  ;;  %v9371_v19 = vadd.f32 %v12773_v54, %v9220_v50  ;;  %v9223_v37 = vrot.slane %v9192_v52, 2 }
 0x7f5   : > { %v9797_v59 = vrot.slane %v12807_v60, 5  ;;  %v9799_v26 = vrot.slane %v12808_v63, 4  ;;  %v9825_v38 = vshll.u32 %v9758_v13, 16  ;;  %v9224_v24 = vrot.slane %v9192_v52, 4 }
 0x7f6   : > { %v9796_v7 = vsel %vm6471_vm12, %v9795_v16, %v9794_v39  ;;  %v9225_v6 = vrot.slane %v9192_v52, 6  ;;  %v12776_v58 = vrot.slane %v9192_v52, 9  ;;  %v12777_v35 = vrot.slane %v9223_v37, 9  ;;  %v13488_v16 = vld [vmem:[%s19821_s17 + $0x38] sm:$0xff] }
 0x7f7   : > { %v9798_v31 = vsel %vm6474_vm13, %v9797_v59, %v9796_v7  ;;  %v9827_v25 = vrot.slane %v9825_v38, 6  ;;  %v12778_v61 = vrot.slane %v9224_v24, 9  ;;  %v9373_v9 = vadd.f32 %v12775_v27, %v9222_v17 }
 0x7f8   : > { %v9800_v62 = vsel %vm6477_vm14, %v9799_v26, %v9798_v31  ;;  %v12779_v2 = vrot.slane %v9225_v6, 9  ;;  %v9374_v11 = vadd.f32 %v12776_v58, %v9192_v52  ;;  %v9375_v8 = vadd.f32 %v12777_v35, %v9223_v37 }
 0x7f9   : > { %v9810_v44 = vpack.c.b16 %v9800_v62, %v9800_v62  ;;  %v9376_v41 = vadd.f32 %v12778_v61, %v9224_v24  ;;  %v9871_v60 = vrot.slane %v9869_v33, 7  ;;  %v9881_v63 = vrot.slane %v9880_v36, 2 }
 0x7fa   : > { %v9377_v13 = vadd.f32 %v12779_v2, %v9225_v6  ;;  %v9611_v3 = vrot.slane %v19014_v22, 6  ;;  %v9390_v50 = vadd.f32 %v9374_v11, %v9370_v23  ;;  %v9391_v0 = vadd.f32 %v9375_v8, %v9371_v19  ;;  %v13487_v2 = vld [vmem:[%s19821_s17 + $0x30] sm:$0xff] }
 0x7fb   : > { %v9838_v30 = vsel %vm13934_vm8, %v9709_v42, %v9810_v44  ;;  %v9372_v42 = vadd.f32 %v12774_v14, %v9221_v48  ;;  %v9885_v48 = vrot.slane %v19056_v34, 7  ;;  %v9618_v7 = vrot.slane %v9610_v1, 1 }
 0x7fc   : > { %v19084_v55 = vsel %vm18982_vm15, %v9838_v30, %v9827_v25  ;;  %v9393_v59 = vadd.f32 %v9377_v13, %v9373_v9  ;;  %v19102_v17 = vsel %vm19095_vm9, %v9867_v28, %v9871_v60  ;;  %v9406_v12 = vmul.f32 0.25, %v9390_v50 }
 0x7fd   : > { %v9851_v21 = vrot.slane %v19084_v55, 2  ;;  %v9888_v43 = vshrl.u32 %v19084_v55, 16  ;;  %v9891_v40 = vshll.u32 %v19084_v55, 16  ;;  %9945 = vst [vmem:[#allocation1 + $0x3] ss:$4 sm:$0xff] %v19084_v55  ;;  %v9392_v49 = vadd.f32 %v9376_v41, %v9372_v42 }
 0x7fe   : > { %v9407_v31 = vmul.f32 0.25, %v9391_v0  ;;  %v19108_v54 = vsel %vm19095_vm9, %v9881_v63, %v9885_v48  ;;  %v9619_v33 = vrot.slane %v9611_v3, 1  ;;  %v9409_v62 = vmul.f32 0.25, %v9393_v59 }
 0x7ff   : > { %v9890_v47 = vrot.slane %v9888_v43, 6  ;;  %v9893_v57 = vrot.slane %v9891_v40, 7  ;;  %v9897_v4 = vshll.u32 %v9851_v21, 16  ;;  %v9408_v51 = vmul.f32 0.25, %v9392_v49 }
 0x800   : > { %v9648_v18 = vadd.f32 %v9610_v1, %v9406_v12  ;;  %v9649_v36 = vadd.f32 %v9618_v7, %v9407_v31  ;;  %vm20539_vm1 = vcmask 1040384   ;;  %v12813_v14 = vrot.slane %v19005_v10, 9 }
 0x801   : > { %v9894_v39 = vor.u32 %v9893_v57, %v9890_v47  ;;  %v9899_v38 = vrot.slane %v9897_v4, 7  ;;  %v9650_v44 = vadd.f32 %v9611_v3, %v9408_v51  ;;  %vm9902_vm4 = vmor %vm20539_vm1, %vm6471_vm12  ;;  %v12814_v46 = vrot.slane %v19001_v15, 9 }
 0x802   : > { %v9651_v28 = vadd.f32 %v9619_v33, %v9409_v62  ;;  %vm9664_vm6 = vcmp.gt.f32.partialorder %v9648_v18, 0.0  ;;  %vm9665_vm2 = vcmp.gt.f32.partialorder %v9649_v36, 0.0  ;;  %v11502_v25 = vadd.f32 %v9649_v36, %v9648_v18  ;;  %vm9904_vm5 = vmor %vm9902_vm4, %vm6477_vm14 }
 0x803   : > { %v9895_v26 = vrot.slane %v9894_v39, 2  ;;  %vm9666_vm3 = vcmp.gt.f32.partialorder %v9650_v44, 0.0  ;;  %v9680_v1 = vmul.f32 0.2, %v9648_v18  ;;  %v9681_v52 = vmul.f32 0.2, %v9649_v36 }
 0x804   : > { %v19104_v22 = vld.sshfl [vmem:[#allocation1] sm:$0xff pattern:$0x73625140]  ;;  %vm9667_vm7 = vcmp.gt.f32.partialorder %v9651_v28, 0.0  ;;  %v11503_v30 = vadd.f32 %v9651_v28, %v9650_v44  ;;  %v9909_v27 = vrot.slane %v9849_v20, 7  ;;  %v11506_v37 = vadd.f32 %v11502_v25, %v19068_v29 }
 0x805   : > { %v19112_v34 = vsel %vm19095_vm9, %v9895_v26, %v9899_v38  ;;  %9948 = vst [vmem:[#allocation1] ss:$4 sm:$0xff] %v19102_v17  ;;  %v9682_v23 = vmul.f32 0.2, %v9650_v44  ;;  %v9683_v19 = vmul.f32 0.2, %v9651_v28  ;;  %v9696_v6 = vsel %vm9664_vm6, %v9648_v18, %v9680_v1 }
 0x806   : > { %9951 = vst [vmem:[#allocation1 + $0x1] ss:$4 sm:$0xff] %v19108_v54  ;;  %v9913_v24 = vrot.slane %v9850_v45, 7  ;;  %v9697_v43 = vsel %vm9665_vm2, %v9649_v36, %v9681_v52  ;;  %v11507_v40 = vadd.f32 %v11503_v30, %v19075_v32  ;;  %v9712_v35 = vpack.c.bf16 %v9696_v6, %v9696_v6 }
 0x807   : > { %9953 = vst [vmem:[#allocation1 + $0x2] ss:$4 sm:$0xff] %v19102_v17  ;;  %v9698_v42 = vsel %vm9666_vm3, %v9650_v44, %v9682_v23  ;;  %v9699_v58 = vsel %vm9667_vm7, %v9651_v28, %v9683_v19  ;;  %v9713_v61 = vpack.c.bf16 %v9697_v43, %v9697_v43  ;;  %vm20540_vm0 = vcmask 1046534  }
 0x808   : > { %9956 = vst [vmem:[#allocation1 + $0x3] ss:$4 sm:$0xff] %v19112_v34  ;;  %vm19130_vm11 = vmor %vm9904_vm5, %vm20540_vm0  ;;  %v9714_v20 = vpack.c.bf16 %v9698_v42, %v9698_v42  ;;  %v9715_v47 = vpack.c.bf16 %v9699_v58, %v9699_v58  ;;  %v11510_v57 = vmul.f32 0.25, %v11506_v37  ;;  %v11511_v29 = vmul.f32 0.25, %v11507_v40 }
 0x809   : > { %v19136_v45 = vsel %vm19130_vm11, %v12813_v14, %v9909_v27  ;;  %v9917_v32 = vrot.slane %v9851_v21, 7  ;;  %v9744_v4 = vunpack.c.l.b16 %v9712_v35  ;;  %v9745_v9 = vunpack.c.l.b16 %v9713_v61 }
 0x80a   : > { %v9746_v8 = vunpack.c.l.b16 %v9714_v20  ;;  %v9747_v41 = vunpack.c.l.b16 %v9715_v47  ;;  %v11514_v13 = vpack.c.bf16 %v11510_v57, %v11510_v57  ;;  %v11515_v60 = vpack.c.bf16 %v11511_v29, %v11511_v29  ;;  %v13442_v47 = vld [vmem:[%s19819_s15 + $0x78] sm:$0xff] }
 0x80b   : > { %v9914_v63 = vsel %vm19130_vm11, %v12814_v46, %v9913_v24  ;;  %v12815_v3 = vrot.slane %v19084_v55, 9  ;;  %v12809_v39 = vunpack.i.l.s16 %v9744_v4  ;;  %v12810_v50 = vunpack.i.l.s16 %v9745_v9  ;;  %v13434_v57 = vld [vmem:[%s19819_s15 + $0x38] sm:$0xff]  ;;  %10507 = vmatpush.bf16.msra.mxu3 %v13442_v47  ;;  %v13449_v4 = vld [vmem:[%s19819_s15 + $0xb0] sm:$0xff]  ;;  %v13460_v47 = vld [vmem:[%s19819_s15 + $0x108] sm:$0xff] }
 0x80c   : > { %v9762_v21 = vpack.c.b16 %v9746_v8, %v9746_v8  ;;  %v12811_v0 = vunpack.i.l.s16 %v9746_v8  ;;  %v12812_v49 = vunpack.i.l.s16 %v9747_v41  ;;  %v11538_v59 = vunpack.c.l.b16 %v11514_v13  ;;  %v13450_v29 = vld [vmem:[%s19819_s15 + $0xb8] sm:$0xff]  ;;  %10493 = vmatpush.bf16.msrb.mxu2 %v13434_v57  ;;  %v13440_v8 = vld [vmem:[%s19819_s15 + $0x68] sm:$0xff] }
 0x80d   : > { %v19147_v48 = vsel %vm19130_vm11, %v12815_v3, %v9917_v32  ;;  %v9801_v7 = vrot.slane %v12809_v39, 7  ;;  %v9802_v26 = vrot.slane %v12810_v50, 6  ;;  %v11539_v38 = vunpack.c.l.b16 %v11515_v60  ;;  %v13433_v32 = vld [vmem:[%s19819_s15 + $0x30] sm:$0xff]  ;;  %10521 = vmatpush.bf16.msra.mxu0 %v13450_v29  ;;  %v13458_v9 = vld [vmem:[%s19819_s15 + $0xf8] sm:$0xff]  ;;  %v13448_v41 = vld [vmem:[%s19819_s15 + $0xa8] sm:$0xff] }
 0x80e   : > { %v9804_v12 = vrot.slane %v12811_v0, 5  ;;  %v11542_v31 = vrot.slane %v11538_v59, 6  ;;  %v9806_v33 = vrot.slane %v12812_v49, 4  ;;  %v9829_v62 = vshll.u32 %v9762_v21, 16  ;;  %10535 = vmatpush.bf16.msra.mxu1 %v13458_v9  ;;  %v13431_v60 = vld [vmem:[%s19819_s15 + $0x20] sm:$0xff]  ;;  %v13430_v39 = vld [vmem:[%s19819_s15 + $0x18] sm:$0xff] }
 0x80f   : > { %v9957_v11 = vld.sshfl [vmem:[#allocation1] sm:$0xff pattern:$0x73625140]  ;;  %v9803_v51 = vsel %vm6471_vm12, %v9802_v26, %v9801_v7  ;;  %v11544_v18 = vrot.slane %v11539_v38, 5  ;;  %v13429_v50 = vld [vmem:[%s19819_s15 + $0x10] sm:$0xff]  ;;  %v13428_v0 = vld [vmem:[%s19819_s15 + $0x8] sm:$0xff] }
 0x810   : > { %9962 = vst [vmem:[#allocation1] ss:$4 sm:$0xff] %v19136_v45  ;;  %9959 = vrot.lane.b32.xlu0 %v9957_v11, %s20387_s30  ;;  %v9805_v36 = vsel %vm6474_vm13, %v9804_v12, %v9803_v51  ;;  %v11543_v44 = vsel %vm6471_vm12, %v11542_v31, %v19061_v53  ;;  %v9831_v25 = vrot.slane %v9829_v62, 6  ;;  %v13457_v11 = vld [vmem:[%s19819_s15 + $0xf0] sm:$0xff]  ;;  %10494 = vmatpush.bf16.msrb.mxu2 %v13433_v32  ;;  %v13447_v3 = vld [vmem:[%s19819_s15 + $0xa0] sm:$0xff]  ;;  %v13456_v49 = vld [vmem:[%s19819_s15 + $0xe8] sm:$0xff] }
 0x811   : > { %9965 = vst [vmem:[#allocation1 + $0x1] ss:$4 sm:$0xff] %v9914_v63  ;;  %v9807_v14 = vsel %vm6477_vm14, %v9806_v33, %v9805_v36  ;;  %v19157_v46 = vsel %vm6474_vm13, %v11544_v18, %v11543_v44  ;;  %10522 = vmatpush.bf16.msra.mxu0 %v13449_v4  ;;  %v13444_v59 = vld [vmem:[%s19819_s15 + $0x88] sm:$0xff]  ;;  %v13437_v7 = vld [vmem:[%s19819_s15 + $0x50] sm:$0xff]  ;;  %v13455_v26 = vld [vmem:[%s19819_s15 + $0xe0] sm:$0xff]  ;;  %vm20544_vm14 = vcmask 785408  }
 0x812   : > { %9967 = vst [vmem:[#allocation1 + $0x2] ss:$4 sm:$0xff] %v19136_v45  ;;  %v9811_v28 = vpack.c.b16 %v9807_v14, %v9807_v14  ;;  %10536 = vmatpush.bf16.msra.mxu1 %v13457_v11  ;;  %v13443_v38 = vld [vmem:[%s19819_s15 + $0x80] sm:$0xff]  ;;  %v13436_v12 = vld [vmem:[%s19819_s15 + $0x48] sm:$0xff]  ;;  %v13466_v62 = vld [vmem:[%s19819_s15 + $0x138] sm:$0xff]  ;;  %vm20545_vm1 = vcmask 261120  }
 0x813   : > { %9970 = vst [vmem:[#allocation1 + $0x3] ss:$4 sm:$0xff] %v19147_v48  ;;  %v13480_v31 = vld [vmem:[%s19819_s15 + $0x1a8] sm:$0xff]  ;;  %v13435_v51 = vld [vmem:[%s19819_s15 + $0x40] sm:$0xff]  ;;  %v13474_v18 = vld [vmem:[%s19819_s15 + $0x178] sm:$0xff]  ;;  %vm10603_vm7 = vcmask 1041408  }
 0x814   : > { %v9839_v1 = vsel %vm13934_vm8, %v9713_v61, %v9811_v28  ;;  %v13479_v33 = vld [vmem:[%s19819_s15 + $0x1a0] sm:$0xff]  ;;  %v13478_v36 = vld [vmem:[%s19819_s15 + $0x198] sm:$0xff]  ;;  %v13465_v14 = vld [vmem:[%s19819_s15 + $0x130] sm:$0xff]  ;;  %vm10607_vm5 = vcmask 1043458  }
 0x815   : > { %v9845_v30 = vsel %vm18982_vm15, %v9839_v1, %v9831_v25  ;;  %10523 = vmatpush.bf16.msra.mxu0 %v13448_v41  ;;  %v13454_v44 = vld [vmem:[%s19819_s15 + $0xd8] sm:$0xff]  ;;  %v13473_v28 = vld [vmem:[%s19819_s15 + $0x170] sm:$0xff]  ;;  %v13468_v57 = vld [vmem:[%s19819_s15 + $0x148] sm:$0xff] }
 0x816   : > { %v9922_v27 = vshrl.u32 %v9845_v30, 16  ;;  %v9925_v23 = vshll.u32 %v9845_v30, 16  ;;  %v9920_v37 = vrot.slane %v9845_v30, 2  ;;  %v12816_v61 = vrot.slane %v9845_v30, 9  ;;  %10537 = vmatpush.bf16.msra.mxu1 %v13456_v49  ;;  %v13453_v25 = vld [vmem:[%s19819_s15 + $0xd0] sm:$0xff]  ;;  %v13459_v29 = vld [vmem:[%s19819_s15 + $0x100] sm:$0xff]  ;;  %vm20546_vm4 = vmmov %vm20544_vm14 }
 0x817   : > { %v13477_v1 = vld [vmem:[%s19819_s15 + $0x190] sm:$0xff]  ;;  %vm20547_vm6 = vmmov %vm20546_vm4 }
 0x818   : > { %v9924_v53 = vrot.slane %v9922_v27, 6  ;;  %v9927_v19 = vrot.slane %v9925_v23, 7  ;;  %v9931_v6 = vshll.u32 %v9920_v37, 16  ;;  %v9937_v58 = vrot.slane %v9920_v37, 7  ;;  %v13476_v27 = vld [vmem:[%s19819_s15 + $0x188] sm:$0xff]  ;;  %v13463_v23 = vld [vmem:[%s19819_s15 + $0x120] sm:$0xff]  ;;  %vm20548_vm2 = vmmov %vm20545_vm1 }
 0x819   : > { %10524 = vmatpush.bf16.msra.mxu0 %v13447_v3  ;;  %v13591_v3 = vld [vmem:[%s19820_s16] ss:$0 sm:$0xff] }
 0x81a   : > { %v9971_v52 = vld.sshfl [vmem:[#allocation1] sm:$0xff pattern:$0x73625140]  ;;  %v9928_v24 = vor.u32 %v9927_v19, %v9924_v53  ;;  %v9933_v42 = vrot.slane %v9931_v6, 7  ;;  %10538 = vmatpush.bf16.msra.mxu1 %v13455_v26  ;;  %v13452_v6 = vld [vmem:[%s19819_s15 + $0xc8] sm:$0xff] }
 0x81b   : > { %9979 = vst [vmem:[#allocation1 + $0x2] ss:$4 sm:$0xff] %v19084_v55  ;;  %9973 = vrot.lane.b32.xlu1 %v9971_v52, %s20260_s2  ;;  %v13464_v52 = vld [vmem:[%s19819_s15 + $0x128] sm:$0xff]  ;;  %v13471_v53 = vld [vmem:[%s19819_s15 + $0x160] sm:$0xff] }
 0x81c   : > { %9975 = vst [vmem:[#allocation1] ss:$4 sm:$0xff] %v19001_v15  ;;  %v9929_v43 = vrot.slane %v9928_v24, 2  ;;  %v13475_v19 = vld [vmem:[%s19819_s15 + $0x180] sm:$0xff] }
 0x81d   : > { %9977 = vst [vmem:[#allocation1 + $0x1] ss:$4 sm:$0xff] %v19005_v10 }
 0x81e   : > { %9981 = vst [vmem:[#allocation1 + $0x3] ss:$4 sm:$0xff] %v9845_v30  ;;  %v9934_v15 = vsel %vm19095_vm9, %v9929_v43, %v9933_v42  ;;  %10539 = vmatpush.bf16.msra.mxu1 %v13454_v44  ;;  %v13462_v43 = vld [vmem:[%s19819_s15 + $0x118] sm:$0xff] }
 0x822   : > { %10540 = vmatpush.bf16.msra.mxu1 %v13453_v25 }
 0x825   : > { %v9982_v40 = vld.sshfl [vmem:[#allocation1] sm:$0xff pattern:$0x73625140] }
 0x826   : > { %9986 = vst [vmem:[#allocation1] ss:$4 sm:$0xff] %v19108_v54  ;;  %9984 = vrot.lane.b32.xlu2 %v9982_v40, %s20543_s0  ;;  %v9938_v54 = vsel %vm19130_vm11, %v12816_v61, %v9937_v58  ;;  %v13470_v40 = vld [vmem:[%s19819_s15 + $0x158] sm:$0xff]  ;;  %10541 = vmatpush.bf16.msra.mxu1 %v13452_v6 }
 0x827   : > { %9988 = vst [vmem:[#allocation1 + $0x1] ss:$4 sm:$0xff] %v19102_v17 }
 0x828   : > { %9990 = vst [vmem:[#allocation1 + $0x2] ss:$4 sm:$0xff] %v19112_v34 }
 0x829   : > { %9993 = vst [vmem:[#allocation1 + $0x3] ss:$4 sm:$0xff] %v9934_v15 }
 0x830   : > { %v19173_v35 = vld.sshfl [vmem:[#allocation1] sm:$0xff pattern:$0x73625140] }
 0x831   : > { %9995 = vst [vmem:[#allocation1] ss:$4 sm:$0xff] %v9914_v63  ;;  %v13439_v63 = vld [vmem:[%s19819_s15 + $0x60] sm:$0xff] }
 0x832   : > { %9997 = vst [vmem:[#allocation1 + $0x1] ss:$4 sm:$0xff] %v19136_v45 }
 0x833   : > { %9999 = vst [vmem:[#allocation1 + $0x2] ss:$4 sm:$0xff] %v19147_v48 }
 0x834   : > { %10002 = vst [vmem:[#allocation1 + $0x3] ss:$4 sm:$0xff] %v9938_v54 }
 0x83b   : > { %v10003_v20 = vld.sshfl [vmem:[#allocation1] sm:$0xff pattern:$0x73625140] }
 0x83c   : > { %10007 = vst [vmem:[#allocation1] ss:$4 sm:$0xff] %v19005_v10  ;;  %10005 = vrot.lane.b32.xlu0 %v10003_v20, %s20387_s30  ;;  %v13441_v10 = vld [vmem:[%s19819_s15 + $0x70] sm:$0xff] }
 0x83d   : > { %10009 = vst [vmem:[#allocation1 + $0x1] ss:$4 sm:$0xff] %v19084_v55  ;;  %10508 = vmatpush.bf16.msra.mxu3 %v13441_v10  ;;  %v13469_v20 = vld [vmem:[%s19819_s15 + $0x150] sm:$0xff]  ;;  %v13467_v10 = vld [vmem:[%s19819_s15 + $0x140] sm:$0xff] }
 0x83e   : > { %10011 = vst [vmem:[#allocation1 + $0x2] ss:$4 sm:$0xff] %v9845_v30  ;;  %v13472_v30 = vld [vmem:[%s19819_s15 + $0x168] sm:$0xff] }
 0x83f   : > { %10013 = vst [vmem:[#allocation1 + $0x3] ss:$4 sm:$0xff] %v19084_v55  ;;  %v13432_v55 = vld [vmem:[%s19819_s15 + $0x28] sm:$0xff] }
 0x840   : > { %10495 = vmatpush.bf16.msrb.mxu2 %v13432_v55 }
 0x841   : > { %10509 = vmatpush.bf16.msra.mxu3 %v13440_v8 }
 0x844   : > { %10496 = vmatpush.bf16.msrb.mxu2 %v13431_v60 }
 0x845   : > { %10510 = vmatpush.bf16.msra.mxu3 %v13439_v63 }
 0x846   : > { %v10014_v13 = vld.sshfl [vmem:[#allocation1] sm:$0xff pattern:$0x73625140] }
 0x847   : > { %10018 = vst [vmem:[#allocation1] ss:$4 sm:$0xff] %v19102_v17  ;;  %10016 = vrot.lane.b32.xlu1 %v10014_v13, %s20260_s2  ;;  %v13446_v17 = vld [vmem:[%s19819_s15 + $0x98] sm:$0xff] }
 0x848   : > { %10020 = vst [vmem:[#allocation1 + $0x1] ss:$4 sm:$0xff] %v19112_v34  ;;  %10497 = vmatpush.bf16.msrb.mxu2 %v13430_v39  ;;  %10525 = vmatpush.bf16.msra.mxu0 %v13446_v17 }
 0x849   : > { %10022 = vst [vmem:[#allocation1 + $0x2] ss:$4 sm:$0xff] %v9934_v15 }
 0x84a   : > { %10024 = vst [vmem:[#allocation1 + $0x3] ss:$4 sm:$0xff] %v19112_v34  ;;  %v13445_v34 = vld [vmem:[%s19819_s15 + $0x90] sm:$0xff] }
 0x84c   : > { %10498 = vmatpush.bf16.msrb.mxu2 %v13429_v50  ;;  %10526 = vmatpush.bf16.msra.mxu0 %v13445_v34 }
 0x850   : > { %10499 = vmatpush.bf16.msrb.mxu2 %v13428_v0  ;;  %10527 = vmatpush.bf16.msra.mxu0 %v13444_v59 }
 0x851   : > { %v10025_v21 = vld.sshfl [vmem:[#allocation1] sm:$0xff pattern:$0x73625140] }
 0x852   : > { %10029 = vst [vmem:[#allocation1] ss:$4 sm:$0xff] %v19136_v45  ;;  %10027 = vrot.lane.b32.xlu2 %v10025_v21, %s20543_s0  ;;  %v13438_v45 = vld [vmem:[%s19819_s15 + $0x58] sm:$0xff] }
 0x853   : > { %10031 = vst [vmem:[#allocation1 + $0x1] ss:$4 sm:$0xff] %v19147_v48  ;;  %10511 = vmatpush.bf16.msra.mxu3 %v13438_v45 }
 0x854   : > { %10033 = vst [vmem:[#allocation1 + $0x2] ss:$4 sm:$0xff] %v9938_v54  ;;  %10528 = vmatpush.bf16.msra.mxu0 %v13443_v38  ;;  %v13461_v54 = vld [vmem:[%s19819_s15 + $0x110] sm:$0xff] }
 0x855   : > { %10035 = vst [vmem:[#allocation1 + $0x3] ss:$4 sm:$0xff] %v19147_v48  ;;  %v13427_v48 = vld [vmem:[%s19819_s15] sm:$0xff] }
 0x856   : > { %10500 = vmatpush.bf16.msrb.mxu2 %v13427_v48 }
 0x857   : > { %10512 = vmatpush.bf16.msra.mxu3 %v13437_v7 }
 0x858   : > { %10579 = vmatpush.bf16.msrb.mxu0 %v13480_v31 }
 0x85a   : > { %10549 = vmatpush.bf16.msra.mxu2 %v13466_v62 }
 0x85b   : > { %10513 = vmatpush.bf16.msra.mxu3 %v13436_v12 }
 0x85c   : > { %10580 = vmatpush.bf16.msrb.mxu0 %v13479_v33  ;;  %v10036_v32 = vld.sshfl [vmem:[#allocation1] sm:$0xff pattern:$0x73625140] }
 0x85e   : > { %10550 = vmatpush.bf16.msra.mxu2 %v13465_v14 }
 0x85f   : > { %10514 = vmatpush.bf16.msra.mxu3 %v13435_v51 }
 0x860   : > { %10581 = vmatpush.bf16.msrb.mxu0 %v13478_v36 }
 0x862   : > { %10551 = vmatpush.bf16.msra.mxu2 %v13464_v52 }
 0x863   : > { %10563 = vmatpush.bf16.msrb.mxu3 %v13474_v18 }
 0x864   : > { %10582 = vmatpush.bf16.msrb.mxu0 %v13477_v1 }
 0x866   : > { %10552 = vmatpush.bf16.msra.mxu2 %v13463_v23 }
 0x867   : > { %10564 = vmatpush.bf16.msrb.mxu3 %v13473_v28 }
 0x868   : > { %10583 = vmatpush.bf16.msrb.mxu0 %v13476_v27 }
 0x86a   : > { %10553 = vmatpush.bf16.msra.mxu2 %v13462_v43 }
 0x86b   : > { %10565 = vmatpush.bf16.msrb.mxu3 %v13472_v30 }
 0x86c   : > { %10584 = vmatpush.bf16.msrb.mxu0 %v13475_v19 }
 0x86e   : > { %10554 = vmatpush.bf16.msra.mxu2 %v13461_v54 }
 0x86f   : > { %10566 = vmatpush.bf16.msrb.mxu3 %v13471_v53 }
 0x872   : > { %10555 = vmatpush.bf16.msra.mxu2 %v13460_v47 }
 0x873   : > { %10567 = vmatpush.bf16.msrb.mxu3 %v13470_v40 }
 0x876   : > { %10556 = vmatpush.bf16.msra.mxu2 %v13459_v29 }
 0x877   : > { %10568 = vmatpush.bf16.msrb.mxu3 %v13469_v20 }
 0x87b   : > { %10569 = vmatpush.bf16.msrb.mxu3 %v13468_v57 }
 0x87f   : > { %10570 = vmatpush.bf16.msrb.mxu3 %v13467_v10 }
 0x880   : > { %v9985_v42 = vpop.permute.xlu2 %9984 }
 0x882   : > { %v9960_v37 = vpop.permute.xlu0 %9959 }
 0x883   : > { %v10038_v24 = vsel %vm20544_vm14, %v19104_v22, %v9960_v37  ;;  %v13451_v22 = vld [vmem:[%s19819_s15 + $0xc0] sm:$0xff]  ;;  %vm20553_vm14 = vmmov %vm20546_vm4 }
 0x884   : > { %10501 = vmatmul.bf16.vlgmr.msrb.gmra.mxu2 %v10038_v24  ;;  %10542 = vmatpush.bf16.msra.mxu1 %v13451_v22 }
 0x888   : > { %11344 = vmatpush.bf16.msrb.mxu1 %v13488_v16 }
 0x88c   : > { %11345 = vmatpush.bf16.msrb.mxu1 %v13487_v2  ;;  %v13513_v2 = vld [vmem:[%s19821_s17 + $0x100] sm:$0xff] }
 0x88d   : > { %v9974_v15 = vpop.permute.xlu1 %9973 }
 0x88e   : > { %v10041_v58 = vsel %vm2163_vm10, %v9960_v37, %v9974_v15  ;;  %v10044_v61 = vsel %vm20545_vm1, %v9974_v15, %v9985_v42 }
 0x88f   : > { %10515 = vmatmul.bf16.vlgmr.msra.gmra.mxu3 %v10041_v58  ;;  %10529 = vmatmul.bf16.vlgmr.msra.gmra.mxu0 %v10044_v61 }
 0x89f   : > { %13033 = vmatmul.msk.bf16.vlgmr.msrb.gmra.mxu0 %vm20546_vm4, %v10036_v32 }
 0x8ac   : > { %v10028_v11 = vpop.permute.xlu2 %10027 }
 0x8ae   : > { %v10006_v4 = vpop.permute.xlu0 %10005 }
 0x8af   : > { %v10047_v9 = vsel %vm20547_vm6, %v19173_v35, %v10006_v4 }
 0x8b0   : > { %10543 = vmatmul.bf16.vlgmr.msra.gmra.mxu1 %v10047_v9 }
 0x8b9   : > { %v10017_v55 = vpop.permute.xlu1 %10016 }
 0x8ba   : > { %v10050_v8 = vsel %vm2163_vm10, %v10006_v4, %v10017_v55  ;;  %v10053_v41 = vsel %vm20548_vm2, %v10017_v55, %v10028_v11 }
 0x8bb   : > { %10557 = vmatmul.bf16.vlgmr.msra.gmra.mxu2 %v10050_v8  ;;  %10571 = vmatmul.bf16.vlgmr.msrb.gmra.mxu3 %v10053_v41 }
 0x907   : > { %v10502_v13 = vpop.f32.mrf.mxu2 }
 0x908   : > { %v10503_v39 = vadd.f32 %v13591_v3, %v10502_v13 }
 0x90c   : > { %v10530_v60 = vpop.f32.mrf.mxu0 }
 0x90f   : > { %v10504_v17 = vpop.f32.mrf.mxu2 }
 0x910   : > { %v10505_v45 = vadd.f32 %v13591_v3, %v10504_v17 }
 0x912   : > { %v10516_v63 = vpop.f32.mrf.mxu3 }
 0x913   : > { %v10517_v21 = vadd.f32 %v10516_v63, %v10503_v39 }
 0x914   : > { %v10532_v50 = vpop.f32.mrf.mxu0 }
 0x915   : > { %v10531_v0 = vadd.f32 %v10530_v60, %v10517_v21 }
 0x91a   : > { %v10518_v35 = vpop.f32.mrf.mxu3 }
 0x91b   : > { %v10519_v7 = vadd.f32 %v10518_v35, %v10505_v45 }
 0x91c   : > { %v10586_v38 = vpop.f32.mrf.mxu0 }
 0x91d   : > { %v10533_v51 = vadd.f32 %v10532_v50, %v10519_v7 }
 0x924   : > { %v10588_v52 = vpop.f32.mrf.mxu0 }
 0x92d   : > { %v10544_v34 = vpop.f32.mrf.mxu1 }
 0x92e   : > { %v10545_v49 = vadd.f32 %v10544_v34, %v10531_v0 }
 0x935   : > { %v10546_v31 = vpop.f32.mrf.mxu1 }
 0x936   : > { %v10547_v62 = vadd.f32 %v10546_v31, %v10533_v51 }
 0x93e   : > { %v10558_v59 = vpop.f32.mrf.mxu2  ;;  %v10572_v48 = vpop.f32.mrf.mxu3 }
 0x93f   : > { %v10559_v26 = vadd.f32 %v10558_v59, %v10545_v49 }
 0x941   : > { %v10573_v12 = vadd.f32 %v10572_v48, %v10559_v26 }
 0x943   : > { %v10587_v33 = vadd.f32 %v10586_v38, %v10573_v12 }
 0x945   : > { %vm10591_vm3 = vcmp.gt.f32.partialorder %v10587_v33, 0.0  ;;  %v10593_v18 = vmul.f32 0.2, %v10587_v33 }
 0x946   : > { %v10560_v36 = vpop.f32.mrf.mxu2  ;;  %v10574_v25 = vpop.f32.mrf.mxu3 }
 0x947   : > { %v10595_v44 = vsel %vm10591_vm3, %v10587_v33, %v10593_v18  ;;  %v10561_v14 = vadd.f32 %v10560_v36, %v10547_v62 }
 0x948   : > { %v10597_v28 = vpack.c.bf16 %v10595_v44, %v10595_v44 }
 0x949   : > { %v10575_v1 = vadd.f32 %v10574_v25, %v10561_v14 }
 0x94a   : > { %v10601_v30 = vrot.slane %v10597_v28, 2 }
 0x94b   : > { %v10589_v27 = vadd.f32 %v10588_v52, %v10575_v1 }
 0x94c   : > { %v10606_v23 = vsel %vm10603_vm7, %v10597_v28, %v10601_v30  ;;  %v10608_v53 = vsel %vm10607_vm5, %v10597_v28, %v10601_v30 }
 0x94d   : > { %v10610_v19 = vrot.slane %v10608_v53, 2  ;;  %10617 = vst [vmem:[#allocation1] ss:$4 sm:$0xff] %v10606_v23  ;;  %vm10592_vm0 = vcmp.gt.f32.partialorder %v10589_v27, 0.0  ;;  %v10594_v37 = vmul.f32 0.2, %v10589_v27 }
 0x94f   : > { %10621 = vst [vmem:[#allocation1 + $0x20] ss:$4 sm:$0xff] %v10610_v19  ;;  %v10596_v24 = vsel %vm10592_vm0, %v10589_v27, %v10594_v37 }
 0x950   : > { %v10598_v6 = vpack.c.bf16 %v10596_v24, %v10596_v24 }
 0x952   : > { %v10602_v43 = vrot.slane %v10598_v6, 2 }
 0x954   : > { %v10618_v40 = vld.sshfl [vmem:[#allocation1] sm:$0xff pattern:$0x73625140]  ;;  %v10613_v42 = vsel %vm10603_vm7, %v10598_v6, %v10602_v43  ;;  %v10614_v15 = vsel %vm10607_vm5, %v10598_v6, %v10602_v43  ;;  %vm20554_vm7 = vcmask 1041409   ;;  %vm20555_vm5 = vcmask 1043456  }
 0x955   : > { %v10616_v58 = vrot.slane %v10614_v15, 2  ;;  %10623 = vst [vmem:[#allocation1] ss:$4 sm:$0xff] %v10613_v42  ;;  %v10628_v63 = vshrl.u32 %v10618_v40, 16 }
 0x956   : > { %v10622_v61 = vld.sshfl [vmem:[#allocation1 + $0x20] sm:$0xff pattern:$0x73625140] }
 0x957   : > { %10626 = vst [vmem:[#allocation1 + $0x20] ss:$4 sm:$0xff] %v10616_v58  ;;  %v10630_v35 = vshrl.u32 %v10622_v61, 16 }
 0x95c   : > { %v10624_v22 = vld.sshfl [vmem:[#allocation1] sm:$0xff pattern:$0x73625140] }
 0x95d   : > { %10640 = vst [vmem:[#allocation1] ss:$4 sm:$0xff] %v10606_v23  ;;  %v10632_v33 = vshrl.u32 %v10624_v22, 16 }
 0x95e   : > { %v19369_v54 = vld.sshfl [vmem:[#allocation1 + $0x20] sm:$0xff pattern:$0x73625140] }
 0x95f   : > { %10643 = vst [vmem:[#allocation1 + $0x20] ss:$4 sm:$0xff] %v10610_v19 }
 0x964   : > { %v10641_v20 = vld.sshfl [vmem:[#allocation1] sm:$0xff pattern:$0x73625140] }
 0x965   : > { %10645 = vst [vmem:[#allocation1] ss:$4 sm:$0xff] %v10613_v42  ;;  %v10649_v29 = vshrl.u32 %v10641_v20, 16  ;;  %v10652_v9 = vshll.u32 %v10641_v20, 16 }
 0x966   : > { %v10644_v47 = vld.sshfl [vmem:[#allocation1 + $0x20] sm:$0xff pattern:$0x73625140] }
 0x967   : > { %10647 = vst [vmem:[#allocation1 + $0x20] ss:$4 sm:$0xff] %v10616_v58  ;;  %v10655_v32 = vshrl.u32 %v10644_v47, 16  ;;  %v10651_v4 = vrot.slane %v10649_v29, 7  ;;  %v10658_v8 = vshll.u32 %v10644_v47, 16 }
 0x969   : > { %v10657_v11 = vrot.slane %v10655_v32, 7  ;;  %v10654_v55 = vor.u32 %v10652_v9, %v10651_v4 }
 0x96b   : > { %v10660_v3 = vor.u32 %v10658_v8, %v10657_v11  ;;  %v10702_v34 = vsel %vm13934_vm8, %v10628_v63, %v10654_v55 }
 0x96c   : > { %v10646_v57 = vld.sshfl [vmem:[#allocation1] sm:$0xff pattern:$0x73625140] }
 0x96d   : > { %10677 = vst [vmem:[#allocation1] ss:$4 sm:$0xff] %v10606_v23  ;;  %v10661_v41 = vshrl.u32 %v10646_v57, 16  ;;  %v10664_v49 = vshll.u32 %v10646_v57, 16  ;;  %v10703_v59 = vsel %vm13934_vm8, %v10630_v35, %v10660_v3 }
 0x96e   : > { %v19371_v10 = vld.sshfl [vmem:[#allocation1 + $0x20] sm:$0xff pattern:$0x73625140] }
 0x96f   : > { %10680 = vst [vmem:[#allocation1 + $0x20] ss:$4 sm:$0xff] %v10610_v19  ;;  %v10663_v21 = vrot.slane %v10661_v41, 7  ;;  %v10667_v11 = vshrl.u32 %v19371_v10, 16  ;;  %v10670_v3 = vshll.u32 %v19371_v10, 16  ;;  %v10634_v10 = vshrl.u32 %v19369_v54, 16 }
 0x971   : > { %v10666_v38 = vor.u32 %v10664_v49, %v10663_v21  ;;  %v10669_v41 = vrot.slane %v10667_v11, 7  ;;  %v13492_v11 = vld [vmem:[%s19821_s17 + $0x58] sm:$0xff] }
 0x973   : > { %v10704_v1 = vsel %vm13934_vm8, %v10632_v33, %v10666_v38  ;;  %v10672_v21 = vor.u32 %v10670_v3, %v10669_v41  ;;  %v13481_v41 = vld [vmem:[%s19821_s17] sm:$0xff]  ;;  %v13490_v3 = vld [vmem:[%s19821_s17 + $0x48] sm:$0xff] }
 0x974   : > { %v10678_v13 = vld.sshfl [vmem:[#allocation1] sm:$0xff pattern:$0x73625140] }
 0x975   : > { %10682 = vst [vmem:[#allocation1] ss:$4 sm:$0xff] %v10613_v42  ;;  %v10686_v60 = vshll.u32 %v10678_v13, 16 }
 0x976   : > { %v10681_v39 = vld.sshfl [vmem:[#allocation1 + $0x20] sm:$0xff pattern:$0x73625140] }
 0x977   : > { %10684 = vst [vmem:[#allocation1 + $0x20] ss:$4 sm:$0xff] %v10616_v58  ;;  %v10688_v17 = vrot.slane %v10686_v60, 7  ;;  %v10689_v50 = vshll.u32 %v10681_v39, 16 }
 0x979   : > { %v10691_v0 = vrot.slane %v10689_v50, 7  ;;  %v19377_v45 = vsel %vm18982_vm15, %v10702_v34, %v10688_v17 }
 0x97a   : > { %v10731_v48 = vshrl.u32 %v19377_v45, 16  ;;  %v10734_v7 = vshll.u32 %v19377_v45, 16  ;;  %v10714_v52 = vrot.slane %v19377_v45, 2  ;;  %v13035_v39 = vrot.slane %v19377_v45, 9 }
 0x97b   : > { %v19385_v26 = vsel %vm18982_vm15, %v10703_v59, %v10691_v0 }
 0x97c   : > { %v10683_v12 = vld.sshfl [vmem:[#allocation1] sm:$0xff pattern:$0x73625140]  ;;  %v10717_v31 = vshrl.u32 %v19385_v26, 16  ;;  %v10720_v51 = vshll.u32 %v19385_v26, 16  ;;  %v10733_v44 = vrot.slane %v10731_v48, 6  ;;  %v10705_v48 = vsel %vm13934_vm8, %v10634_v10, %v10672_v21  ;;  %vm20549_vm8 = vmmov %vm20546_vm4 }
 0x97d   : > { %v10692_v62 = vshll.u32 %v10683_v12, 16  ;;  %10790 = vst [vmem:[#allocation1] ss:$4 sm:$0xff] %v19385_v26  ;;  %v10736_v14 = vrot.slane %v10734_v7, 7  ;;  %v10713_v25 = vrot.slane %v19385_v26, 2  ;;  %v10740_v6 = vshll.u32 %v10714_v52, 16 }
 0x97e   : > { %v10719_v18 = vrot.slane %v10717_v31, 6  ;;  %v10722_v36 = vrot.slane %v10720_v51, 7  ;;  %10792 = vst [vmem:[#allocation1 + $0x1] ss:$4 sm:$0xff] %v19377_v45  ;;  %v10764_v13 = vrot.slane %v10714_v52, 7  ;;  %v13034_v63 = vrot.slane %v19385_v26, 9 }
 0x97f   : > { %v10694_v28 = vrot.slane %v10692_v62, 7  ;;  %10794 = vst [vmem:[#allocation1 + $0x2] ss:$4 sm:$0xff] %v19385_v26  ;;  %v10737_v53 = vor.u32 %v10736_v14, %v10733_v44  ;;  %v10726_v24 = vshll.u32 %v10713_v25, 16  ;;  %v10742_v20 = vrot.slane %v10740_v6, 7  ;;  %v13512_v52 = vld [vmem:[%s19821_s17 + $0xf8] sm:$0xff] }
 0x980   : > { %v10723_v27 = vor.u32 %v10722_v36, %v10719_v18  ;;  %v10685_v55 = vld.sshfl [vmem:[#allocation1 + $0x20] sm:$0xff pattern:$0x73625140]  ;;  %v10760_v8 = vrot.slane %v10713_v25, 7  ;;  %v10765_v34 = vsel %vm19130_vm11, %v13035_v39, %v10764_v13  ;;  %11386 = vmatpush.bf16.msra.mxu0 %v13512_v52  ;;  %v13502_v6 = vld [vmem:[%s19821_s17 + $0xa8] sm:$0xff]  ;;  %v13491_v13 = vld [vmem:[%s19821_s17 + $0x50] sm:$0xff] }
 0x981   : > { %v19398_v30 = vsel %vm18982_vm15, %v10704_v1, %v10694_v28  ;;  %v10738_v58 = vrot.slane %v10737_v53, 2  ;;  %v10728_v22 = vrot.slane %v10726_v24, 7  ;;  %v10695_v60 = vshll.u32 %v10685_v55, 16  ;;  %v13504_v1 = vld [vmem:[%s19821_s17 + $0xb8] sm:$0xff]  ;;  %v13511_v53 = vld [vmem:[%s19821_s17 + $0xf0] sm:$0xff]  ;;  %v13486_v24 = vld [vmem:[%s19821_s17 + $0x28] sm:$0xff] }
 0x982   : > { %v10715_v23 = vrot.slane %v19398_v30, 2  ;;  %v10745_v19 = vshrl.u32 %v19398_v30, 16  ;;  %v10748_v37 = vshll.u32 %v19398_v30, 16  ;;  %10796 = vst [vmem:[#allocation1 + $0x3] ss:$4 sm:$0xff] %v19398_v30  ;;  %v10724_v15 = vrot.slane %v10723_v27, 2  ;;  %11372 = vmatpush.bf16.msra.mxu3 %v13504_v1  ;;  %11346 = vmatpush.bf16.msrb.mxu1 %v13486_v24 }
 0x983   : > { %v10743_v4 = vsel %vm19095_vm9, %v10738_v58, %v10742_v20  ;;  %v19425_v50 = vsel %vm19130_vm11, %v13034_v63, %v10760_v8  ;;  %v13036_v0 = vrot.slane %v19398_v30, 9  ;;  %v10697_v49 = vrot.slane %v10695_v60, 7  ;;  %v13503_v27 = vld [vmem:[%s19821_s17 + $0xb0] sm:$0xff]  ;;  %v13484_v58 = vld [vmem:[%s19821_s17 + $0x18] sm:$0xff]  ;;  %v13498_v55 = vld [vmem:[%s19821_s17 + $0x88] sm:$0xff] }
 0x984   : > { %v10747_v43 = vrot.slane %v10745_v19, 6  ;;  %v10750_v40 = vrot.slane %v10748_v37, 7  ;;  %v10754_v42 = vshll.u32 %v10715_v23, 16  ;;  %v19406_v29 = vsel %vm19095_vm9, %v10724_v15, %v10728_v22  ;;  %v13495_v19 = vld [vmem:[%s19821_s17 + $0x70] sm:$0xff]  ;;  %11387 = vmatpush.bf16.msra.mxu0 %v13511_v53  ;;  %v13509_v15 = vld [vmem:[%s19821_s17 + $0xe0] sm:$0xff]  ;;  %v13508_v22 = vld [vmem:[%s19821_s17 + $0xd8] sm:$0xff] }
 0x985   : > { %v10768_v17 = vrot.slane %v10715_v23, 7  ;;  %v10709_v7 = vsel %vm18982_vm15, %v10705_v48, %v10697_v49  ;;  %v13496_v23 = vld [vmem:[%s19821_s17 + $0x78] sm:$0xff]  ;;  %v13506_v8 = vld [vmem:[%s19821_s17 + $0xc8] sm:$0xff]  ;;  %v13497_v60 = vld [vmem:[%s19821_s17 + $0x80] sm:$0xff] }
 0x986   : > { %v10751_v61 = vor.u32 %v10750_v40, %v10747_v43  ;;  %v10756_v57 = vrot.slane %v10754_v42, 7  ;;  %v10773_v38 = vshrl.u32 %v10709_v7, 16  ;;  %v10776_v12 = vshll.u32 %v10709_v7, 16  ;;  %11358 = vmatpush.bf16.msrb.mxu2 %v13496_v23  ;;  %11373 = vmatpush.bf16.msra.mxu3 %v13503_v27  ;;  %v13510_v43 = vld [vmem:[%s19821_s17 + $0xe8] sm:$0xff]  ;;  %v13501_v42 = vld [vmem:[%s19821_s17 + $0xa0] sm:$0xff]  ;;  %v13538_v49 = vld [vmem:[%s19823_s19 + $0x18] sm:$0xff] }
 0x987   : > { %v19435_v59 = vsel %vm19130_vm11, %v13036_v0, %v10768_v17  ;;  %v10771_v33 = vrot.slane %v10709_v7, 2  ;;  %v13037_v28 = vrot.slane %v10709_v7, 9  ;;  %v13494_v40 = vld [vmem:[%s19821_s17 + $0x68] sm:$0xff]  ;;  %v13505_v63 = vld [vmem:[%s19821_s17 + $0xc0] sm:$0xff]  ;;  %v13532_v0 = vld [vmem:[%s19821_s17 + $0x198] sm:$0xff] }
 0x988   : > { %v10752_v47 = vrot.slane %v10751_v61, 2  ;;  %v10775_v54 = vrot.slane %v10773_v38, 6  ;;  %v10778_v51 = vrot.slane %v10776_v12, 7  ;;  %11388 = vmatpush.bf16.msra.mxu0 %v13510_v43  ;;  %v13500_v61 = vld [vmem:[%s19821_s17 + $0x98] sm:$0xff]  ;;  %v13534_v39 = vld [vmem:[%s19821_s17 + $0x1a8] sm:$0xff]  ;;  %v13539_v21 = vld [vmem:[%s19823_s19 + $0x20] sm:$0xff] }
 0x989   : > { %v19408_v32 = vld.sshfl [vmem:[#allocation1] sm:$0xff pattern:$0x73625140]  ;;  %v10782_v62 = vshll.u32 %v10771_v33, 16  ;;  %v13540_v17 = vld [vmem:[%s19823_s19 + $0x28] sm:$0xff]  ;;  %v13519_v10 = vld [vmem:[%s19821_s17 + $0x130] sm:$0xff] }
 0x98a   : > { %v19414_v9 = vsel %vm19095_vm9, %v10752_v47, %v10756_v57  ;;  %10799 = vst [vmem:[#allocation1] ss:$4 sm:$0xff] %v19406_v29  ;;  %v10779_v56 = vor.u32 %v10778_v51, %v10775_v54  ;;  %11359 = vmatpush.bf16.msrb.mxu2 %v13495_v19  ;;  %11374 = vmatpush.bf16.msra.mxu3 %v13502_v6  ;;  %v13483_v47 = vld [vmem:[%s19821_s17 + $0x10] sm:$0xff]  ;;  %v13528_v48 = vld [vmem:[%s19821_s17 + $0x178] sm:$0xff]  ;;  %v13518_v12 = vld [vmem:[%s19821_s17 + $0x128] sm:$0xff] }
 0x98b   : > { %10802 = vst [vmem:[#allocation1 + $0x1] ss:$4 sm:$0xff] %v10743_v4  ;;  %v10784_v36 = vrot.slane %v10782_v62, 7  ;;  %v13527_v38 = vld [vmem:[%s19821_s17 + $0x170] sm:$0xff]  ;;  %v13536_v54 = vld [vmem:[%s19823_s19 + $0x8] sm:$0xff]  ;;  %vm20550_vm15 = vmmov %vm20545_vm1  ;;  %v11546_v6 = vpack.c.b16 %v19157_v46, %v19157_v46 }
 0x98c   : > { %10804 = vst [vmem:[#allocation1 + $0x2] ss:$4 sm:$0xff] %v19406_v29  ;;  %v10780_v18 = vrot.slane %v10779_v56, 2  ;;  %11389 = vmatpush.bf16.msra.mxu0 %v13509_v15  ;;  %v13529_v56 = vld [vmem:[%s19821_s17 + $0x180] sm:$0xff]  ;;  %v13514_v1 = vld [vmem:[%s19821_s17 + $0x108] sm:$0xff]  ;;  %v13524_v52 = vld [vmem:[%s19821_s17 + $0x158] sm:$0xff] }
 0x98d   : > { %10807 = vst [vmem:[#allocation1 + $0x3] ss:$4 sm:$0xff] %v19414_v9  ;;  %v13523_v27 = vld [vmem:[%s19821_s17 + $0x150] sm:$0xff]  ;;  %v13522_v19 = vld [vmem:[%s19821_s17 + $0x148] sm:$0xff]  ;;  %v13592_v46 = vld [vmem:[%s19822_s18] ss:$0 sm:$0xff] }
 0x98e   : > { %v10785_v44 = vsel %vm19095_vm9, %v10780_v18, %v10784_v36  ;;  %11360 = vmatpush.bf16.msrb.mxu2 %v13494_v40  ;;  %11375 = vmatpush.bf16.msra.mxu3 %v13501_v42  ;;  %v13535_v18 = vld [vmem:[%s19823_s19] sm:$0xff]  ;;  %v13526_v36 = vld [vmem:[%s19821_s17 + $0x168] sm:$0xff]  ;;  %vm20551_vm9 = vmmov %vm20546_vm4 }
 0x990   : > { %11390 = vmatpush.bf16.msra.mxu0 %v13508_v22 }
 0x992   : > { %11376 = vmatpush.bf16.msra.mxu3 %v13500_v61 }
 0x994   : > { %v10808_v35 = vld.sshfl [vmem:[#allocation1] sm:$0xff pattern:$0x73625140] }
 0x995   : > { %10813 = vst [vmem:[#allocation1] ss:$4 sm:$0xff] %v19425_v50  ;;  %10810 = vrot.lane.b32.xlu0 %v10808_v35, %s20387_s30  ;;  %v13533_v35 = vld [vmem:[%s19821_s17 + $0x1a0] sm:$0xff] }
 0x996   : > { %10816 = vst [vmem:[#allocation1 + $0x1] ss:$4 sm:$0xff] %v10765_v34 }
 0x997   : > { %10818 = vst [vmem:[#allocation1 + $0x2] ss:$4 sm:$0xff] %v19425_v50 }
 0x998   : > { %10821 = vst [vmem:[#allocation1 + $0x3] ss:$4 sm:$0xff] %v19435_v59 }
 0x99f   : > { %v10822_v31 = vld.sshfl [vmem:[#allocation1] sm:$0xff pattern:$0x73625140] }
 0x9a0   : > { %10828 = vst [vmem:[#allocation1 + $0x1] ss:$4 sm:$0xff] %v19385_v26  ;;  %10824 = vrot.lane.b32.xlu1 %v10822_v31, %s20260_s2  ;;  %v13530_v31 = vld [vmem:[%s19821_s17 + $0x188] sm:$0xff] }
 0x9a1   : > { %10832 = vst [vmem:[#allocation1 + $0x3] ss:$4 sm:$0xff] %v10709_v7 }
 0x9a2   : > { %10826 = vst [vmem:[#allocation1] ss:$4 sm:$0xff] %v19377_v45  ;;  %v10788_v45 = vrot.slane %v10771_v33, 7  ;;  %v13517_v33 = vld [vmem:[%s19821_s17 + $0x120] sm:$0xff] }
 0x9a3   : > { %10830 = vst [vmem:[#allocation1 + $0x2] ss:$4 sm:$0xff] %v19398_v30 }
 0x9a4   : > { %v10789_v25 = vsel %vm19130_vm11, %v13037_v28, %v10788_v45  ;;  %vm20552_vm11 = vmmov %vm20546_vm4 }
 0x9aa   : > { %v10833_v5 = vld.sshfl [vmem:[#allocation1] sm:$0xff pattern:$0x73625140] }
 0x9ab   : > { %10835 = vrot.lane.b32.xlu2 %v10833_v5, %s20543_s0  ;;  %10837 = vst [vmem:[#allocation1] ss:$4 sm:$0xff] %v10743_v4  ;;  %v13507_v4 = vld [vmem:[%s19821_s17 + $0xd0] sm:$0xff]  ;;  %v13516_v5 = vld [vmem:[%s19821_s17 + $0x118] sm:$0xff] }
 0x9ac   : > { %10839 = vst [vmem:[#allocation1 + $0x1] ss:$4 sm:$0xff] %v19406_v29  ;;  %11391 = vmatpush.bf16.msra.mxu0 %v13507_v4 }
 0x9ad   : > { %10841 = vst [vmem:[#allocation1 + $0x2] ss:$4 sm:$0xff] %v19414_v9 }
 0x9ae   : > { %10844 = vst [vmem:[#allocation1 + $0x3] ss:$4 sm:$0xff] %v10785_v44 }
 0x9b0   : > { %11392 = vmatpush.bf16.msra.mxu0 %v13506_v8  ;;  %v11664_v8 = vld [vmem:[%s19825_s21 + $0x70] sm:$0xff] }
 0x9b4   : > { %11393 = vmatpush.bf16.msra.mxu0 %v13505_v63 }
 0x9b5   : > { %v19452_v14 = vld.sshfl [vmem:[#allocation1] sm:$0xff pattern:$0x73625140] }
 0x9b6   : > { %10846 = vst [vmem:[#allocation1] ss:$4 sm:$0xff] %v10765_v34  ;;  %v13520_v34 = vld [vmem:[%s19821_s17 + $0x138] sm:$0xff] }
 0x9b7   : > { %10848 = vst [vmem:[#allocation1 + $0x1] ss:$4 sm:$0xff] %v19425_v50 }
 0x9b8   : > { %10850 = vst [vmem:[#allocation1 + $0x2] ss:$4 sm:$0xff] %v19435_v59  ;;  %11588 = vmatpush.bf16.msrb.mxu0 %v13540_v17  ;;  %v11661_v17 = vld [vmem:[%s19825_s21 + $0x58] sm:$0xff] }
 0x9b9   : > { %10853 = vst [vmem:[#allocation1 + $0x3] ss:$4 sm:$0xff] %v10789_v25 }
 0x9bc   : > { %11589 = vmatpush.bf16.msrb.mxu0 %v13539_v21 }
 0x9c0   : > { %v10854_v37 = vld.sshfl [vmem:[#allocation1] sm:$0xff pattern:$0x73625140]  ;;  %11590 = vmatpush.bf16.msrb.mxu0 %v13538_v49 }
 0x9c1   : > { %10856 = vrot.lane.b32.xlu2 %v10854_v37, %s20387_s30  ;;  %10858 = vst [vmem:[#allocation1] ss:$4 sm:$0xff] %v19385_v26  ;;  %v13485_v26 = vld [vmem:[%s19821_s17 + $0x20] sm:$0xff]  ;;  %s810_s30 = scalar_lea.vmem [#allocation2], %s809_s29 }
 0x9c2   : > { %10860 = vst [vmem:[#allocation1 + $0x1] ss:$4 sm:$0xff] %v19398_v30  ;;  %11347 = vmatpush.bf16.msrb.mxu1 %v13485_v26  ;;  %v13521_v37 = vld [vmem:[%s19821_s17 + $0x140] sm:$0xff]  ;;  %s11761_s3 = sshll.u32 %s810_s30, 4  ;;  %s11762_s3 = int_to_ptr.vmem [resolvable:$true] %s11761_s3 }
 0x9c3   : > { %10862 = vst [vmem:[#allocation1 + $0x2] ss:$4 sm:$0xff] %v10709_v7  ;;  %v13537_v7 = vld [vmem:[%s19823_s19 + $0x10] sm:$0xff] }
 0x9c4   : > { %10864 = vst [vmem:[#allocation1 + $0x3] ss:$4 sm:$0xff] %v19398_v30  ;;  %v13493_v30 = vld [vmem:[%s19821_s17 + $0x60] sm:$0xff]  ;;  %11591 = vmatpush.bf16.msrb.mxu0 %v13537_v7 }
 0x9c5   : > { %11361 = vmatpush.bf16.msrb.mxu2 %v13493_v30  ;;  %v13593_v7 = vld [vmem:[%s19824_s20] ss:$0 sm:$0xff] }
 0x9c6   : > { %11348 = vmatpush.bf16.msrb.mxu1 %v13484_v58 }
 0x9c8   : > { %11592 = vmatpush.bf16.msrb.mxu0 %v13536_v54 }
 0x9c9   : > { %11362 = vmatpush.bf16.msrb.mxu2 %v13492_v11 }
 0x9ca   : > { %11349 = vmatpush.bf16.msrb.mxu1 %v13483_v47 }
 0x9cb   : > { %v10865_v20 = vld.sshfl [vmem:[#allocation1] sm:$0xff pattern:$0x73625140] }
 0x9cc   : > { %10867 = vrot.lane.b32.xlu0 %v10865_v20, %s20260_s2  ;;  %10869 = vst [vmem:[#allocation1] ss:$4 sm:$0xff] %v19406_v29  ;;  %v13499_v29 = vld [vmem:[%s19821_s17 + $0x90] sm:$0xff]  ;;  %11593 = vmatpush.bf16.msrb.mxu0 %v13535_v18  ;;  %s13619_s2 = scalar_lea.hbm %s13618_s28, 1 }
 0x9cd   : > { %10871 = vst [vmem:[#allocation1 + $0x1] ss:$4 sm:$0xff] %v19414_v9  ;;  %11377 = vmatpush.bf16.msra.mxu3 %v13499_v29  ;;  %11363 = vmatpush.bf16.msrb.mxu2 %v13491_v13  ;;  %p13620_p11 = scmp.ne.s32.totalorder %s13618_s28, %s13619_s2  ;;  %p13625_p1 = scmp.lt.s32.totalorder %s13623_s11, %s13619_s2 }
 0x9ce   : > { %10873 = vst [vmem:[#allocation1 + $0x2] ss:$4 sm:$0xff] %v10785_v44  ;;  %v13525_v44 = vld [vmem:[%s19821_s17 + $0x160] sm:$0xff] }
 0x9cf   : > { %10875 = vst [vmem:[#allocation1 + $0x3] ss:$4 sm:$0xff] %v19414_v9  ;;  %v13482_v9 = vld [vmem:[%s19821_s17 + $0x8] sm:$0xff]  ;;  %p13621_p12 = pnand %p13620_p11, %p13849_p5  ;;  %p13626_p2 = por %p13625_p1, %p13624_p0 }
 0x9d0   : > { %11350 = vmatpush.bf16.msrb.mxu1 %v13482_v9  ;;  %v11665_v9 = vld [vmem:[%s19825_s21 + $0x78] sm:$0xff] }
 0x9d1   : > { %11378 = vmatpush.bf16.msra.mxu3 %v13498_v55  ;;  %11364 = vmatpush.bf16.msrb.mxu2 %v13490_v3  ;;  %p13622_p13 = pneg %p13621_p12 }
 0x9d3   : > { %p13627_p3 = pnand %p13626_p2, %p13622_p13 }
 0x9d4   : > { %11351 = vmatpush.bf16.msrb.mxu1 %v13481_v41 }
 0x9d5   : > { %11379 = vmatpush.bf16.msra.mxu3 %v13497_v60  ;;  %v11663_v60 = vld [vmem:[%s19825_s21 + $0x68] sm:$0xff] }
 0x9d6   : > { %v10876_v57 = vld.sshfl [vmem:[#allocation1] sm:$0xff pattern:$0x73625140] }
 0x9d7   : > { %10878 = vrot.lane.b32.xlu1 %v10876_v57, %s20543_s0  ;;  %10880 = vst [vmem:[#allocation1] ss:$4 sm:$0xff] %v19425_v50  ;;  %v13489_v50 = vld [vmem:[%s19821_s17 + $0x40] sm:$0xff] }
 0x9d8   : > { %10882 = vst [vmem:[#allocation1 + $0x1] ss:$4 sm:$0xff] %v19435_v59  ;;  %11365 = vmatpush.bf16.msrb.mxu2 %v13489_v50  ;;  %11400 = vmatpush.bf16.msra.mxu1 %v13520_v34 }
 0x9d9   : > { %10884 = vst [vmem:[#allocation1 + $0x2] ss:$4 sm:$0xff] %v10789_v25  ;;  %11430 = vmatpush.bf16.msrb.mxu3 %v13534_v39  ;;  %v11662_v39 = vld [vmem:[%s19825_s21 + $0x60] sm:$0xff] }
 0x9da   : > { %10886 = vst [vmem:[#allocation1 + $0x3] ss:$4 sm:$0xff] %v19435_v59  ;;  %v13531_v59 = vld [vmem:[%s19821_s17 + $0x190] sm:$0xff] }
 0x9dc   : > { %11414 = vmatpush.bf16.msra.mxu2 %v13528_v48  ;;  %11401 = vmatpush.bf16.msra.mxu1 %v13519_v10  ;;  %v11659_v10 = vld [vmem:[%s19825_s21 + $0x48] sm:$0xff]  ;;  %v11658_v48 = vld [vmem:[%s19825_s21 + $0x40] sm:$0xff] }
 0x9dd   : > { %11431 = vmatpush.bf16.msrb.mxu3 %v13533_v35  ;;  %v11660_v35 = vld [vmem:[%s19825_s21 + $0x50] sm:$0xff] }
 0x9e0   : > { %11415 = vmatpush.bf16.msra.mxu2 %v13527_v38  ;;  %11402 = vmatpush.bf16.msra.mxu1 %v13518_v12 }
 0x9e1   : > { %11432 = vmatpush.bf16.msrb.mxu3 %v13532_v0  ;;  %v10887_v24 = vld.sshfl [vmem:[#allocation1] sm:$0xff pattern:$0x73625140] }
 0x9e4   : > { %11403 = vmatpush.bf16.msra.mxu1 %v13517_v33  ;;  %11416 = vmatpush.bf16.msra.mxu2 %v13526_v36 }
 0x9e5   : > { %11433 = vmatpush.bf16.msrb.mxu3 %v13531_v59 }
 0x9e8   : > { %11404 = vmatpush.bf16.msra.mxu1 %v13516_v5  ;;  %11417 = vmatpush.bf16.msra.mxu2 %v13525_v44 }
 0x9e9   : > { %11434 = vmatpush.bf16.msrb.mxu3 %v13530_v31 }
 0x9ec   : > { %11418 = vmatpush.bf16.msra.mxu2 %v13524_v52 }
 0x9ed   : > { %11435 = vmatpush.bf16.msrb.mxu3 %v13529_v56  ;;  %v11657_v56 = vld [vmem:[%s19825_s21 + $0x38] sm:$0xff] }
 0x9f0   : > { %11419 = vmatpush.bf16.msra.mxu2 %v13523_v27 }
 0x9f4   : > { %11420 = vmatpush.bf16.msra.mxu2 %v13522_v19 }
 0x9f8   : > { %11421 = vmatpush.bf16.msra.mxu2 %v13521_v37  ;;  %v11654_v37 = vld [vmem:[%s19825_s21 + $0x20] sm:$0xff] }
 0xa05   : > { %v10836_v45 = vpop.permute.xlu2 %10835 }
 0xa07   : > { %v10811_v51 = vpop.permute.xlu0 %10810 }
 0xa08   : > { %v10889_v62 = vsel %vm20549_vm8, %v19408_v32, %v10811_v51  ;;  %v13515_v32 = vld [vmem:[%s19821_s17 + $0x110] sm:$0xff] }
 0xa09   : > { %11352 = vmatmul.bf16.vlgmr.msrb.gmra.mxu1 %v10889_v62 }
 0xa0a   : > { %11405 = vmatpush.bf16.msra.mxu1 %v13515_v32  ;;  %v11656_v32 = vld [vmem:[%s19825_s21 + $0x30] sm:$0xff] }
 0xa0e   : > { %11406 = vmatpush.bf16.msra.mxu1 %v13514_v1 }
 0xa12   : > { %v10825_v28 = vpop.permute.xlu1 %10824  ;;  %11407 = vmatpush.bf16.msra.mxu1 %v13513_v2  ;;  %v11655_v2 = vld [vmem:[%s19825_s21 + $0x28] sm:$0xff] }
 0xa13   : > { %v10892_v25 = vsel %vm2163_vm10, %v10811_v51, %v10825_v28  ;;  %v10895_v16 = vsel %vm20550_vm15, %v10825_v28, %v10836_v45 }
 0xa14   : > { %11366 = vmatmul.bf16.vlgmr.msrb.gmra.mxu2 %v10892_v25  ;;  %11380 = vmatmul.bf16.vlgmr.msra.gmra.mxu3 %v10895_v16 }
 0xa16   : > { %11667 = vmatpush.msrb.mxu1 %v11665_v9 }
 0xa18   : > { %11668 = vmatpush.msrb.mxu1 %v11664_v8 }
 0xa1a   : > { %11669 = vmatpush.msrb.mxu1 %v11663_v60 }
 0xa1b   : > { %v10857_v23 = vpop.permute.xlu2 %10856 }
 0xa1c   : > { %v10898_v53 = vsel %vm20551_vm9, %v19452_v14, %v10857_v23  ;;  %11670 = vmatpush.msrb.mxu1 %v11662_v39 }
 0xa1d   : > { %11394 = vmatmul.bf16.vlgmr.msra.gmra.mxu0 %v10898_v53 }
 0xa1e   : > { %11671 = vmatpush.msrb.mxu1 %v11661_v17 }
 0xa20   : > { %11672 = vmatpush.msrb.mxu1 %v11660_v35 }
 0xa22   : > { %11673 = vmatpush.msrb.mxu1 %v11659_v10  ;;  %v11691_v10 = vld [vmem:[%s19827_s23 + $0x18] sm:$0xff] }
 0xa24   : > { %13254 = vmatmul.msk.bf16.vlgmr.msrb.gmra.mxu3 %vm20552_vm11, %v10887_v24  ;;  %11674 = vmatpush.msrb.mxu1 %v11658_v48 }
 0xa26   : > { %11675 = vmatpush.msrb.mxu1 %v11657_v56 }
 0xa28   : > { %11676 = vmatpush.msrb.mxu1 %v11656_v32 }
 0xa2a   : > { %11677 = vmatpush.msrb.mxu1 %v11655_v2 }
 0xa2c   : > { %11678 = vmatpush.msrb.mxu1 %v11654_v37 }
 0xa2d   : > { %13287 = vmatmul.msk.bf16.vlgmr.msrb.gmra.mxu0 %vm20553_vm14, %v11546_v6 }
 0xa3e   : > { %v10868_v14 = vpop.permute.xlu0 %10867 }
 0xa3f   : > { %v10901_v43 = vsel %vm2163_vm10, %v10857_v23, %v10868_v14 }
 0xa40   : > { %11408 = vmatmul.bf16.vlgmr.msra.gmra.mxu1 %v10901_v43 }
 0xa49   : > { %v10879_v40 = vpop.permute.xlu1 %10878 }
 0xa4a   : > { %v10904_v26 = vsel %vm20545_vm1, %v10868_v14, %v10879_v40 }
 0xa4b   : > { %11422 = vmatmul.bf16.vlgmr.msra.gmra.mxu2 %v10904_v26  ;;  %v11653_v26 = vld [vmem:[%s19825_s21 + $0x18] sm:$0xff] }
 0xa4c   : > { %11679 = vmatpush.msrb.mxu1 %v11653_v26  ;;  %v11666_v26 = vld [vmem:[%s19826_s22] sm:$0x1] }
 0xa86   : > { %v11353_v61 = vpop.f32.mrf.mxu1 }
 0xa87   : > { %v11354_v57 = vadd.f32 %v13592_v46, %v11353_v61 }
 0xa8e   : > { %v11355_v47 = vpop.f32.mrf.mxu1 }
 0xa8f   : > { %v11356_v41 = vadd.f32 %v13592_v46, %v11355_v47  ;;  %v11695_v47 = vld [vmem:[%s19827_s23 + $0x38] sm:$0xff] }
 0xa90   : > { %11708 = vmatpush.msrb.mxu2 %v11695_v47  ;;  %v11725_v47 = vld [vmem:[%s20557_s6] sm:$0x1] }
 0xa97   : > { %v11381_v22 = vpop.f32.mrf.mxu3  ;;  %v11367_v20 = vpop.f32.mrf.mxu2 }
 0xa98   : > { %v11368_v29 = vadd.f32 %v11367_v20, %v11354_v57  ;;  %v11652_v20 = vld [vmem:[%s19825_s21 + $0x10] sm:$0xff] }
 0xa99   : > { %v11694_v57 = vld [vmem:[%s19827_s23 + $0x30] sm:$0xff]  ;;  %11680 = vmatpush.msrb.mxu1 %v11652_v20 }
 0xa9a   : > { %v11395_v42 = vpop.f32.mrf.mxu0  ;;  %v11382_v55 = vadd.f32 %v11381_v22, %v11368_v29  ;;  %11709 = vmatpush.msrb.mxu2 %v11694_v57 }
 0xa9c   : > { %v11396_v3 = vadd.f32 %v11395_v42, %v11382_v55  ;;  %v13670_v55 = vmov 4.0  }
 0xa9d   : > { %13594 = vrcp.f32 %v13670_v55 }
 0xa9f   : > { %v11383_v4 = vpop.f32.mrf.mxu3  ;;  %v11369_v11 = vpop.f32.mrf.mxu2 }
 0xaa0   : > { %v11370_v63 = vadd.f32 %v11369_v11, %v11356_v41  ;;  %v11651_v11 = vld [vmem:[%s19825_s21 + $0x8] sm:$0xff] }
 0xaa1   : > { %11681 = vmatpush.msrb.mxu1 %v11651_v11 }
 0xaa2   : > { %v11397_v15 = vpop.f32.mrf.mxu0  ;;  %v11384_v21 = vadd.f32 %v11383_v4, %v11370_v63  ;;  %v11693_v63 = vld [vmem:[%s19827_s23 + $0x28] sm:$0xff] }
 0xaa3   : > { %11710 = vmatpush.msrb.mxu2 %v11693_v63 }
 0xaa4   : > { %v11398_v38 = vadd.f32 %v11397_v15, %v11384_v21 }
 0xaa7   : > { %v11437_v34 = vpop.f32.mrf.mxu3 }
 0xaaa   : > { %v11595_v30 = vpop.f32.mrf.mxu0 }
 0xaab   : > { %v19698_v44 = vadd.f32 %v13593_v7, %v11595_v30 }
 0xaad   : > { %v11601_v24 = vrot.slane %v19698_v44, 1  ;;  %v11600_v29 = vrot.slane %v19698_v44, 2 }
 0xaaf   : > { %v11439_v27 = vpop.f32.mrf.mxu3  ;;  %v11602_v35 = vrot.slane %v11600_v29, 1 }
 0xab2   : > { %v11597_v58 = vpop.f32.mrf.mxu0 }
 0xabd   : > { %v11409_v13 = vpop.f32.mrf.mxu1 }
 0xabe   : > { %v11410_v50 = vadd.f32 %v11409_v13, %v11396_v3  ;;  %v11650_v3 = vld [vmem:[%s19825_s21] sm:$0xff] }
 0xabf   : > { %11682 = vmatpush.msrb.mxu1 %v11650_v3 }
 0xac5   : > { %v11411_v12 = vpop.f32.mrf.mxu1 }
 0xac6   : > { %v11412_v62 = vadd.f32 %v11411_v12, %v11398_v38  ;;  %v11690_v38 = vld [vmem:[%s19827_s23 + $0x10] sm:$0xff] }
 0xace   : > { %v11423_v0 = vpop.f32.mrf.mxu2 }
 0xacf   : > { %v11424_v49 = vadd.f32 %v11423_v0, %v11410_v50  ;;  %v11692_v50 = vld [vmem:[%s19827_s23 + $0x20] sm:$0xff] }
 0xad0   : > { %11711 = vmatpush.msrb.mxu2 %v11692_v50 }
 0xad1   : > { %v11438_v59 = vadd.f32 %v11437_v34, %v11424_v49 }
 0xad2   : > { %11712 = vmatpush.msrb.mxu2 %v11691_v10 }
 0xad3   : > { %v11444_v31 = vrot.slane %v11438_v59, 2  ;;  %v11445_v54 = vrot.slane %v11438_v59, 4  ;;  %v11446_v51 = vrot.slane %v11438_v59, 6  ;;  %v13255_v33 = vrot.slane %v11438_v59, 9 }
 0xad4   : > { %11713 = vmatpush.msrb.mxu2 %v11690_v38 }
 0xad5   : > { %v13256_v18 = vrot.slane %v11444_v31, 9  ;;  %v13257_v5 = vrot.slane %v11445_v54, 9  ;;  %v13258_v36 = vrot.slane %v11446_v51, 9  ;;  %v11480_v45 = vadd.f32 %v13255_v33, %v11438_v59  ;;  %v13595_v59 = vpop.eup %13594 }
 0xad6   : > { %v11425_v28 = vpop.f32.mrf.mxu2  ;;  %v11643_v33 = vmul.f32 4.0, %v13595_v59  ;;  %vm11647_vm0 = vweird.f32 %v13595_v59 }
 0xad7   : > { %v11481_v25 = vadd.f32 %v13256_v18, %v11444_v31  ;;  %v11482_v16 = vadd.f32 %v13257_v5, %v11445_v54  ;;  %v11483_v1 = vadd.f32 %v13258_v36, %v11446_v51  ;;  %v11426_v52 = vadd.f32 %v11425_v28, %v11412_v62 }
 0xad9   : > { %v11488_v23 = vadd.f32 %v11482_v16, %v11480_v45  ;;  %v11489_v53 = vadd.f32 %v11483_v1, %v11481_v25  ;;  %v11440_v19 = vadd.f32 %v11439_v27, %v11426_v52 }
 0xadb   : > { %v11492_v6 = vmul.f32 0.25, %v11488_v23  ;;  %v11493_v14 = vmul.f32 0.25, %v11489_v53  ;;  %v11447_v43 = vrot.slane %v11440_v19, 2  ;;  %v11448_v40 = vrot.slane %v11440_v19, 4 }
 0xadc   : > { %v11449_v42 = vrot.slane %v11440_v19, 6  ;;  %v13259_v15 = vrot.slane %v11440_v19, 9 }
 0xadd   : > { %v11607_v30 = vadd.f32 %v19698_v44, %v11492_v6  ;;  %v11608_v58 = vadd.f32 %v11601_v24, %v11493_v14  ;;  %v13260_v61 = vrot.slane %v11447_v43, 9  ;;  %v13261_v22 = vrot.slane %v11448_v40, 9  ;;  %v11689_v24 = vld [vmem:[%s19827_s23 + $0x8] sm:$0xff]  ;;  %v11688_v6 = vld [vmem:[%s19827_s23] sm:$0xff]  ;;  %v11724_v14 = vld [vmem:[%s19829_s25 + $0x18] sm:$0xff] }
 0xade   : > { %v13262_v46 = vrot.slane %v11449_v42, 9  ;;  %v11484_v9 = vadd.f32 %v13259_v15, %v11440_v19  ;;  %v11644_v44 = vsub.f32 1.0, %v11643_v33  ;;  %11714 = vmatpush.msrb.mxu2 %v11689_v24  ;;  %11741 = vmatpush.msra.mxu3 %v11724_v14 }
 0xadf   : > { %v11615_v4 = vmul.f32 0.2, %v11607_v30  ;;  %v11616_v8 = vmul.f32 0.2, %v11608_v58  ;;  %v11485_v41 = vadd.f32 %v13260_v61, %v11447_v43  ;;  %v11486_v13 = vadd.f32 %v13261_v22, %v11448_v40  ;;  %v11723_v43 = vld [vmem:[%s19829_s25 + $0x10] sm:$0xff]  ;;  %v11722_v40 = vld [vmem:[%s19829_s25 + $0x8] sm:$0xff] }
 0xae0   : > { %v11487_v60 = vadd.f32 %v13262_v46, %v11449_v42  ;;  %vm11611_vm4 = vcmp.gt.f32.partialorder %v11607_v30, 0.0  ;;  %vm11612_vm6 = vcmp.gt.f32.partialorder %v11608_v58, 0.0  ;;  %v11645_v16 = vmul.f32 %v13595_v59, %v11644_v44  ;;  %11715 = vmatpush.msrb.mxu2 %v11688_v6  ;;  %11742 = vmatpush.msra.mxu3 %v11723_v43  ;;  %v11696_v61 = vld [vmem:[%s19828_s24] sm:$0x1] }
 0xae1   : > { %v11490_v39 = vadd.f32 %v11486_v13, %v11484_v9  ;;  %v11619_v21 = vsel %vm11611_vm4, %v11607_v30, %v11615_v4  ;;  %v11620_v34 = vsel %vm11612_vm6, %v11608_v58, %v11616_v8  ;;  %v11721_v58 = vld [vmem:[%s19829_s25] sm:$0xff] }
 0xae2   : > { %v11491_v17 = vadd.f32 %v11487_v60, %v11485_v41  ;;  %v11627_v12 = vperm.slane %v11619_v21, 0  ;;  %v11628_v31 = vperm.slane %v11620_v34, 0  ;;  %v11646_v2 = vadd.f32 %v13595_v59, %v11645_v16  ;;  %11743 = vmatpush.msra.mxu3 %v11722_v40 }
 0xae3   : > { %v11494_v0 = vmul.f32 0.25, %v11490_v39 }
 0xae4   : > { %v11495_v49 = vmul.f32 0.25, %v11491_v17  ;;  %v11631_v36 = vsel %vm20554_vm7, %v11628_v31, %v11627_v12  ;;  %v11648_v53 = vsel %vm11647_vm0, %v13595_v59, %v11646_v2  ;;  %11744 = vmatpush.msra.mxu3 %v11721_v58 }
 0xae5   : > { %v11609_v48 = vadd.f32 %v11600_v29, %v11494_v0 }
 0xae6   : > { %v11610_v7 = vadd.f32 %v11602_v35, %v11495_v49 }
 0xae7   : > { %vm11613_vm2 = vcmp.gt.f32.partialorder %v11609_v48, 0.0  ;;  %v11617_v54 = vmul.f32 0.2, %v11609_v48 }
 0xae8   : > { %vm11614_vm3 = vcmp.gt.f32.partialorder %v11610_v7, 0.0  ;;  %v11618_v51 = vmul.f32 0.2, %v11610_v7 }
 0xae9   : > { %v11621_v56 = vsel %vm11613_vm2, %v11609_v48, %v11617_v54 }
 0xaea   : > { %v11622_v62 = vsel %vm11614_vm3, %v11610_v7, %v11618_v51  ;;  %v11629_v18 = vperm.slane %v11621_v56, 0 }
 0xaeb   : > { %v11630_v5 = vperm.slane %v11622_v62, 0 }
 0xaec   : > { %v11632_v32 = vsel %vm6471_vm12, %v11629_v18, %v11631_v36  ;;  %vm20556_vm12 = vmmov %vm20545_vm1 }
 0xaed   : > { %v11633_v45 = vsel %vm6474_vm13, %v11630_v5, %v11632_v32 }
 0xaee   : > { %v11635_v28 = vsel %vm20555_vm5, %v11633_v45, 0.0 }
 0xaef   : > { %v11636_v25 = vrot.slane %v11635_v28, 4 }
 0xaf1   : > { %v11637_v1 = vadd.f32 %v11636_v25, %v11635_v28 }
 0xaf3   : > { %v11638_v52 = vrot.slane %v11637_v1, 2 }
 0xaf5   : > { %v11639_v27 = vadd.f32 %v11638_v52, %v11637_v1 }
 0xaf7   : > { %v11640_v23 = vrot.slane %v11639_v27, 1 }
 0xaf9   : > { %v11641_v19 = vadd.f32 %v11640_v23, %v11639_v27 }
 0xafb   : > { %v11649_v37 = vmul.f32 %v11648_v53, %v11641_v19 }
 0xafd   : > { %11683 = vmatmul.f32.vlgmr.msrb.gmra.mxu1 %v11649_v37 }
 0xb7a   : > { %v11684_v42 = vpop.f32.mrf.mxu1 }
 0xb7b   : > { %v11685_v15 = vadd.f32 %v11684_v42, %v11666_v26 }
 0xb7d   : > { %v11687_v30 = vmax.f32 %v11685_v15, 0.0 }
 0xb7f   : > { %13288 = vmatmul.msk.f32.vlgmr.msrb.gmra.mxu2 %vm2163_vm10, %v11687_v30 }
 0xc02   : > { %v11717_v22 = vpop.f32.mrf.mxu2 }
 0xc03   : > { %v11718_v20 = vadd.f32 %v11717_v22, %v11696_v61 }
 0xc05   : > { %v11720_v46 = vmax.f32 %v11718_v20, 0.0 }
 0xc07   : > { %13289 = vmatmul.msk.f32.vlgmr.msra.gmra.mxu3 %vm20556_vm12, %v11720_v46 }
 0xc8a   : > { %v11746_v57 = vpop.f32.mrf.mxu3 }
 0xc8b   : > { %v11747_v29 = vadd.f32 %v11746_v57, %v11725_v47 }
 0xc8d   : > { %11749 = vst [vmem:[%s810_s30] sm:$0x1] %v11747_v29 }
 0xc8e   : > { %13630 = shalt.err (!%p13627_p3)
}
 0xc8f   : > { %13541 = dma.vmem_to_hbm [thread:$0]  (%p13849_p5), %s11762_s3, 16, %s11764_s5, %s11751_s10  }
 0xc90 PF: > { %s20558_s29 = sld [smem:[#allocation7_spill]] }
 0xc91   : > { %s20559_s8 = sld [smem:[#allocation5_spill]] }
 0xc96   : > { %p13547_p4 = scmp.ge.s32.totalorder %s20558_s29, 2 }
 0xc97   : > { %s11775_s30 = sand.u32 1, %s20559_s8  }
 0xc98   : > { %p13544_p7 = pnand %p13547_p4, %p13853_p6  ;;  %s11776_s9 = scalar_lea.sflag [#allocation3], %s11775_s30 }
 0xc9a   : > { %p13545_p8 = pneg %p13544_p7 }
 0xc9c   : > { %13648 = dma.done.wait (%p13545_p8), %s11776_s9, 16  }
 0xc9d   : > { %13650 = vsyncadd (%p13545_p8), %s11776_s9, 4294967280  ;;  %s20561_s30 = sld [smem:[#allocation8_spill]]  ;;  %s20564_s7 = smov %s13657_s4 }
 0xc9e   : > { %s20562_s28 = sld [smem:[#allocation6_spill]] }
 0xc9f   : > { %s20563_s8 = sld [smem:[#allocation9_spill]] }
 0xca3   : > { %p37_p9 = scmp.ge.s32.totalorder %s20561_s30, 4  }
 0xca4   : > { %s20565_s4 = smov %s20562_s28 }
 0xca5   :  { %39 = sbr.rel (!%p37_p9) target bundleno = 18 (0x12), region = 220 }
 0xcaa   :  { %11781 = vsyncpa [#allocation3], 1 }
 0xcab   :  { %11783 = vsyncpa [#allocation3 + $0x1], 1 }

</bundles_post_ra>
